<compile_context>
chip_gen: v5e
topology: v5e:2x2
jax: 0.10.0
libtpu: 0.0.40
codegen_flags: <defaults>
</compile_context>

<pallas_src>
import functools

import jax
import jax.numpy as jnp
from jax.experimental import pallas as pl
from jax.experimental.pallas import tpu as pltpu

BN_EPS = 1e-5


def _vmem_capacity_bytes():
    """Physical VMEM of the attached TPU generation (64 MiB fallback ~ v7x)."""
    try:
        return int(pltpu.get_tpu_info().vmem_capacity_bytes)
    except Exception:
        return 64 * 1024 * 1024


def _bottleneck_kernel(x_ref, w1_ref, w2_ref, w3_ref,
                       g1_ref, b1_ref, g2_ref, b2_ref, g3_ref, b3_ref,
                       o_ref, pad_ref, *, N, H, W, dil):
    """Fused Bottleneck forward on a channels-last (M, C) activation layout.

    x_ref   : (M, Cin) f32          M = N*H*W, Cin = 4*planes (residual width)
    w1_ref  : (Cin, P)  mxu dtype   1x1 conv
    w2_ref  : (9*P, P)  mxu dtype   3x3 conv, im2col row order = (kh, kw, cin)
    w3_ref  : (P, 4*P)  mxu dtype   1x1 conv
    g*/b*   : (1, C) f32            BatchNorm affine params
    o_ref   : (M, 4*P) f32          output (lane-dense: last dim = 4*P)
    pad_ref : (N, H+2d, W+2d, P)    VMEM scratch: halo-zeroed conv2 input
    """
    M = N * H * W
    P = w1_ref.shape[1]
    f32 = jnp.float32
    mxu_dtype = w1_ref.dtype

    def bn(t, g_ref, b_ref):
        # Training-mode BatchNorm2d (biased batch stats over the N*H*W rows),
        # single pass: var = E[t^2] - mean^2, folded to one scale/shift FMA.
        mean = jnp.mean(t, axis=0, keepdims=True)
        var = jnp.maximum(jnp.mean(t * t, axis=0, keepdims=True) - mean * mean, 0.0)
        scale = g_ref[...] * jax.lax.rsqrt(var + BN_EPS)
        return t * scale + (b_ref[...] - mean * scale)

    x = x_ref[...]                                            # (M, Cin) f32

    # ---- conv1 (1x1) + BN1 + ReLU: one MXU dot over the channel dim --------
    t1 = jnp.dot(x.astype(mxu_dtype), w1_ref[...], preferred_element_type=f32)
    h1 = jnp.maximum(bn(t1, g1_ref, b1_ref), 0.0)             # (M, P) f32

    # ---- conv2 (3x3, dilation=dil) + BN2 + ReLU -----------------------------
    # Zero only the padding halo ring (top/bottom full-width rows cover the
    # corners) and write the interior exactly once.
    Wp = W + 2 * dil
    zrow = jnp.zeros((N, dil, Wp, P), pad_ref.dtype)
    zcol = jnp.zeros((N, H, dil, P), pad_ref.dtype)
    pad_ref[:, :dil, :, :] = zrow
    pad_ref[:, H + dil:, :, :] = zrow
    pad_ref[:, dil:H + dil, :dil, :] = zcol
    pad_ref[:, dil:H + dil, W + dil:, :] = zcol
    pad_ref[:, dil:H + dil, dil:W + dil, :] = (
        h1.reshape(N, H, W, P).astype(pad_ref.dtype))

    # Gather the 9 taps and concatenate them IN REGISTERS into the (M, 9P)
    # im2col matrix -- no scratch round-trip, no masked band stores -- then one
    # MXU dot ((M, 9P) @ (9P, P)).
    taps = [pad_ref[:, kh * dil:kh * dil + H, kw * dil:kw * dil + W, :]
            .reshape(M, P)
            for kh in range(3) for kw in range(3)]
    im2col = jnp.concatenate(taps, axis=-1)                   # (M, 9P)
    t2 = jnp.dot(im2col, w2_ref[...], preferred_element_type=f32)
    h2 = jnp.maximum(bn(t2, g2_ref, b2_ref), 0.0)             # (M, P) f32
    # TODO(synk): repack the narrow (M, P) elementwise stages as (M/4, 4P) to
    # use all 128 lanes when P < 128 (moderate win, after structural items).

    # ---- conv3 (1x1) + BN3 + residual add + final ReLU ----------------------
    t3 = jnp.dot(h2.astype(mxu_dtype), w3_ref[...], preferred_element_type=f32)
    o_ref[...] = jnp.maximum(bn(t3, g3_ref, b3_ref) + x, 0.0)


def bottleneck_forward_nhwc(x_nhwc, params, *, stride=1, dilation=1,
                            mxu_dtype=jnp.bfloat16):
    """Forward of `Bottleneck` on NHWC activations (stride=1, downsample=None).

    Activations stay NHWC end-to-end (channels on the TPU lane dim); use this
    entry point across a network to avoid NCHW<->NHWC HBM transpose passes.
    """
    assert stride == 1, "stride != 1 requires a `downsample` module"
    # TODO(synk): the optional `downsample` argument is an arbitrary nn.Module;
    # only the default (downsample=None, stride=1) configuration is implemented.
    N, H, W, Cin = x_nhwc.shape
    P = params["w1"].shape[0]                     # planes
    Cout = 4 * P                                  # planes * expansion
    assert Cin == Cout, "residual add requires inplanes == planes * 4"

    f32 = jnp.float32
    M = N * H * W
    x2d = x_nhwc.astype(f32).reshape(M, Cin)      # free reshape NHWC -> (M, C)

    # Repack conv weights once (tiny, done by XLA outside the kernel). MXU
    # inputs default to bf16 (f32 accumulation); BN / residual / output are f32.
    w1 = jnp.transpose(params["w1"][:, :, 0, 0], (1, 0)).astype(mxu_dtype)             # (Cin, P)
    w2 = jnp.transpose(params["w2"], (2, 3, 1, 0)).reshape(9 * P, P).astype(mxu_dtype)  # (9P, P)
    w3 = jnp.transpose(params["w3"][:, :, 0, 0], (1, 0)).astype(mxu_dtype)             # (P, 4P)
    g1 = params["g1"].reshape(1, P).astype(f32)
    b1 = params["b1"].reshape(1, P).astype(f32)
    g2 = params["g2"].reshape(1, P).astype(f32)
    b2 = params["b2"].reshape(1, P).astype(f32)
    g3 = params["g3"].reshape(1, Cout).astype(f32)
    b3 = params["b3"].reshape(1, Cout).astype(f32)

    # Whole working set stays VMEM-resident (no grid): the three batch-stat BNs
    # are global sync points and everything here is a few MiB. The budget is
    # sized from the actual chip (64 MiB VMEM on v7x vs 128 MiB on v5e/v6e).
    Hp, Wp = H + 2 * dilation, W + 2 * dilation
    isz = jnp.dtype(mxu_dtype).itemsize
    vmem_bytes = (4 * (2 * M * Cin + 4 * M * P)                    # x/out + f32 intermediates
                  + isz * (M * 9 * P + N * Hp * Wp * P)            # im2col value + pad scratch
                  + isz * (Cin * P + 9 * P * P + P * Cout))        # weights
    vmem_limit = int(min(max(4 * vmem_bytes, 16 * 1024 * 1024),
                         _vmem_capacity_bytes() // 2))
    assert vmem_bytes <= vmem_limit, "working set too large for un-tiled kernel"
    # TODO(synk): for activation sets that exceed VMEM (production N,H,W), add a
    # grid over M row-tiles (dimension_semantics=("parallel",) to use both v7x
    # TensorCores) with a per-tile sum/sumsq BN accumulate pass + apply pass.

    vmem = pl.BlockSpec(memory_space=pltpu.MemorySpace.VMEM)
    kernel = functools.partial(_bottleneck_kernel, N=N, H=H, W=W, dil=dilation)
    out2d = pl.pallas_call(
        kernel,
        out_shape=jax.ShapeDtypeStruct((M, Cout), f32),
        in_specs=[vmem] * 10,
        out_specs=vmem,
        scratch_shapes=[pltpu.VMEM((N, Hp, Wp, P), mxu_dtype)],
        compiler_params=pltpu.CompilerParams(vmem_limit_bytes=vmem_limit),
    )(x2d, w1, w2, w3, g1, b1, g2, b2, g3, b3)

    return out2d.reshape(N, H, W, Cout)


def bottleneck_forward(x_nchw, params, *, stride=1, dilation=1,
                       mxu_dtype=jnp.bfloat16):
    """NCHW wrapper matching the PyTorch module's interface.

    Prefer `bottleneck_forward_nhwc` across a whole network: the two
    transposes here are full HBM read/write passes over the activation.
    """
    x_nhwc = jnp.transpose(x_nchw, (0, 2, 3, 1))
    out = bottleneck_forward_nhwc(x_nhwc, params, stride=stride,
                                  dilation=dilation, mxu_dtype=mxu_dtype)
    return jnp.transpose(out, (0, 3, 1, 2))


def _reference(x, params, dilation=1):
    """Pure-JAX NCHW reference following the PyTorch module literally."""
    def conv(xx, w, pad, dil):
        return jax.lax.conv_general_dilated(
            xx, w, window_strides=(1, 1), padding=[(pad, pad), (pad, pad)],
            rhs_dilation=(dil, dil),
            dimension_numbers=("NCHW", "OIHW", "NCHW"))

    def bn(t, g, b):  # training-mode BatchNorm2d (biased batch statistics)
        mean = jnp.mean(t, axis=(0, 2, 3), keepdims=True)
        var = jnp.mean((t - mean) ** 2, axis=(0, 2, 3), keepdims=True)
        return ((t - mean) * jax.lax.rsqrt(var + BN_EPS)
                * g[None, :, None, None] + b[None, :, None, None])

    out = jnp.maximum(bn(conv(x, params["w1"], 0, 1), params["g1"], params["b1"]), 0.0)
    out = jnp.maximum(bn(conv(out, params["w2"], dilation, dilation),
                         params["g2"], params["b2"]), 0.0)
    out = bn(conv(out, params["w3"], 0, 1), params["g3"], params["b3"])
    return jnp.maximum(out + x, 0.0)


if __name__ == "__main__":
    N, planes, H, W = 2, 32, 16, 16
    inplanes = 4 * planes          # Bottleneck.expansion == 4 (residual add)

    key = jax.random.PRNGKey(0)
    ks = jax.random.split(key, 10)
    params = {
        # Conv2d weights are PyTorch-layout (out, in, kh, kw), bias=False.
        "w1": 0.1 * jax.random.normal(ks[0], (planes, inplanes, 1, 1), jnp.float32),
        "w2": 0.1 * jax.random.normal(ks[1], (planes, planes, 3, 3), jnp.float32),
        "w3": 0.1 * jax.random.normal(ks[2], (4 * planes, planes, 1, 1), jnp.float32),
        # BatchNorm2d affine params (frozen in the module, arbitrary values).
        "g1": 1.0 + 0.1 * jax.random.normal(ks[3], (planes,), jnp.float32),
        "b1": 0.1 * jax.random.normal(ks[4], (planes,), jnp.float32),
        "g2": 1.0 + 0.1 * jax.random.normal(ks[5], (planes,), jnp.float32),
        "b2": 0.1 * jax.random.normal(ks[6], (planes,), jnp.float32),
        "g3": 1.0 + 0.1 * jax.random.normal(ks[7], (4 * planes,), jnp.float32),
        "b3": 0.1 * jax.random.normal(ks[8], (4 * planes,), jnp.float32),
    }
    x = jax.random.normal(ks[9], (N, inplanes, H, W), jnp.float32)   # NCHW (spec layout)
    x_nhwc = jnp.transpose(x, (0, 2, 3, 1))                          # NHWC kernel layout

    fwd = jax.jit(bottleneck_forward_nhwc,
                  static_argnames=("stride", "dilation", "mxu_dtype"))

    for dil in (1, 2):                       # default block and dilated variant
        ref = jnp.transpose(_reference(x, params, dilation=dil), (0, 2, 3, 1))

        # Exactness check of the kernel structure with f32 MXU inputs.
        out_f32 = jax.block_until_ready(
            fwd(x_nhwc, params, dilation=dil, mxu_dtype=jnp.float32))
        assert out_f32.shape == (N, H, W, inplanes), out_f32.shape
        err = float(jnp.max(jnp.abs(out_f32 - ref)))
        assert jnp.allclose(out_f32, ref, rtol=1e-3, atol=1e-3), err

        # Perf-default bf16 MXU path: looser (relative-L2) check vs f32 ref.
        out_bf16 = jax.block_until_ready(
            fwd(x_nhwc, params, dilation=dil, mxu_dtype=jnp.bfloat16))
        rel = float(jnp.linalg.norm(out_bf16 - ref)
                    / (jnp.linalg.norm(ref) + 1e-12))
        assert rel < 5e-2, rel

    # NCHW spec-compatible wrapper (semantics of the PyTorch module preserved).
    out_nchw = jax.block_until_ready(
        jax.jit(bottleneck_forward,
                static_argnames=("stride", "dilation", "mxu_dtype"))(
            x, params, dilation=1, mxu_dtype=jnp.float32))
    assert out_nchw.shape == (N, inplanes, H, W), out_nchw.shape
    ref_nchw = _reference(x, params, dilation=1)
    assert jnp.allclose(out_nchw, ref_nchw, rtol=1e-3, atol=1e-3)

    print("KERNEL_OK")
</pallas_src>

<mosaic_0001>
module attributes {stable_mosaic.version = 11 : i64} {
  func.func @_bottleneck_kernel(%arg0: memref<512x128xf32, #tpu.memory_space<vmem>>, %arg1: memref<128x32xf32, #tpu.memory_space<vmem>>, %arg2: memref<288x32xf32, #tpu.memory_space<vmem>>, %arg3: memref<32x128xf32, #tpu.memory_space<vmem>>, %arg4: memref<1x32xf32, #tpu.memory_space<vmem>>, %arg5: memref<1x32xf32, #tpu.memory_space<vmem>>, %arg6: memref<1x32xf32, #tpu.memory_space<vmem>>, %arg7: memref<1x32xf32, #tpu.memory_space<vmem>>, %arg8: memref<1x128xf32, #tpu.memory_space<vmem>>, %arg9: memref<1x128xf32, #tpu.memory_space<vmem>>, %arg10: memref<512x128xf32, #tpu.memory_space<vmem>>, %arg11: memref<2x18x18x32xf32, #tpu.memory_space<vmem>>) attributes {dimension_semantics = [], scalar_prefetch = 0 : i64, scratch_operands = 1 : i64, tpu.core_type = #tpu.core_type<tc>} {
    %c0 = arith.constant 0 : index
    %c0_0 = arith.constant 0 : index
    %0 = vector.load %arg0[%c0, %c0_0] : memref<512x128xf32, #tpu.memory_space<vmem>>, vector<512x128xf32>
    %c0_1 = arith.constant 0 : index
    %c0_2 = arith.constant 0 : index
    %1 = vector.load %arg1[%c0_1, %c0_2] : memref<128x32xf32, #tpu.memory_space<vmem>>, vector<128x32xf32>
    %cst = arith.constant dense<0.000000e+00> : vector<512x32xf32>
    %2 = tpu.matmul %0, %1, %cst {dimension_numbers = #tpu.dot_dimension_numbers<[1], [0], [0], [1], [0, 0, 1, 1], [], []>} : vector<512x128xf32>, vector<128x32xf32>, vector<512x32xf32> -> vector<512x32xf32>
    %cst_3 = arith.constant dense<0.000000e+00> : vector<32xf32>
    %3 = vector.multi_reduction <add>, %2, %cst_3 [0] : vector<512x32xf32> to vector<32xf32>
    %4 = vector.shape_cast %3 : vector<32xf32> to vector<1x32xf32>
    %cst_4 = arith.constant 5.120000e+02 : f32
    %5 = vector.broadcast %cst_4 : f32 to vector<1x32xf32>
    %6 = arith.divf %4, %5 : vector<1x32xf32>
    %7 = arith.mulf %2, %2 : vector<512x32xf32>
    %cst_5 = arith.constant dense<0.000000e+00> : vector<32xf32>
    %8 = vector.multi_reduction <add>, %7, %cst_5 [0] : vector<512x32xf32> to vector<32xf32>
    %9 = vector.shape_cast %8 : vector<32xf32> to vector<1x32xf32>
    %cst_6 = arith.constant 5.120000e+02 : f32
    %10 = vector.broadcast %cst_6 : f32 to vector<1x32xf32>
    %11 = arith.divf %9, %10 : vector<1x32xf32>
    %12 = arith.mulf %6, %6 : vector<1x32xf32>
    %13 = arith.subf %11, %12 : vector<1x32xf32>
    %cst_7 = arith.constant 0.000000e+00 : f32
    %14 = vector.broadcast %cst_7 : f32 to vector<1x32xf32>
    %15 = arith.maximumf %13, %14 : vector<1x32xf32>
    %c0_8 = arith.constant 0 : index
    %c0_9 = arith.constant 0 : index
    %16 = vector.load %arg4[%c0_8, %c0_9] : memref<1x32xf32, #tpu.memory_space<vmem>>, vector<1x32xf32>
    %cst_10 = arith.constant 9.99999974E-6 : f32
    %17 = vector.broadcast %cst_10 : f32 to vector<1x32xf32>
    %18 = arith.addf %15, %17 : vector<1x32xf32>
    %19 = math.rsqrt %18 : vector<1x32xf32>
    %20 = arith.mulf %16, %19 : vector<1x32xf32>
    %21 = vector.broadcast %20 : vector<1x32xf32> to vector<512x32xf32>
    %22 = arith.mulf %2, %21 : vector<512x32xf32>
    %c0_11 = arith.constant 0 : index
    %c0_12 = arith.constant 0 : index
    %23 = vector.load %arg5[%c0_11, %c0_12] : memref<1x32xf32, #tpu.memory_space<vmem>>, vector<1x32xf32>
    %24 = arith.mulf %6, %20 : vector<1x32xf32>
    %25 = arith.subf %23, %24 : vector<1x32xf32>
    %26 = vector.broadcast %25 : vector<1x32xf32> to vector<512x32xf32>
    %27 = arith.addf %22, %26 : vector<512x32xf32>
    %cst_13 = arith.constant 0.000000e+00 : f32
    %28 = vector.broadcast %cst_13 : f32 to vector<512x32xf32>
    %29 = arith.maximumf %27, %28 : vector<512x32xf32>
    %cst_14 = arith.constant 0.000000e+00 : f32
    %30 = vector.broadcast %cst_14 : f32 to vector<2x1x18x32xf32>
    %cst_15 = arith.constant 0.000000e+00 : f32
    %31 = vector.broadcast %cst_15 : f32 to vector<2x16x1x32xf32>
    %c0_16 = arith.constant 0 : index
    %c0_17 = arith.constant 0 : index
    %c0_18 = arith.constant 0 : index
    %c0_19 = arith.constant 0 : index
    %32 = vector.load %arg11[%c0_16, %c0_17, %c0_18, %c0_19] : memref<2x18x18x32xf32, #tpu.memory_space<vmem>>, vector<2x1x18x32xf32>
    tpu.vector_store %arg11[%c0_16, %c0_17, %c0_18, %c0_19], %30 {strides = array<i32>} : memref<2x18x18x32xf32, #tpu.memory_space<vmem>>, vector<2x1x18x32xf32>,
    %c0_20 = arith.constant 0 : index
    %c17 = arith.constant 17 : index
    %c0_21 = arith.constant 0 : index
    %c0_22 = arith.constant 0 : index
    %33 = vector.load %arg11[%c0_20, %c17, %c0_21, %c0_22] : memref<2x18x18x32xf32, #tpu.memory_space<vmem>>, vector<2x1x18x32xf32>
    tpu.vector_store %arg11[%c0_20, %c17, %c0_21, %c0_22], %30 {strides = array<i32>} : memref<2x18x18x32xf32, #tpu.memory_space<vmem>>, vector<2x1x18x32xf32>,
    %c0_23 = arith.constant 0 : index
    %c1 = arith.constant 1 : index
    %c0_24 = arith.constant 0 : index
    %c0_25 = arith.constant 0 : index
    %34 = vector.load %arg11[%c0_23, %c1, %c0_24, %c0_25] : memref<2x18x18x32xf32, #tpu.memory_space<vmem>>, vector<2x16x1x32xf32>
    tpu.vector_store %arg11[%c0_23, %c1, %c0_24, %c0_25], %31 {strides = array<i32>} : memref<2x18x18x32xf32, #tpu.memory_space<vmem>>, vector<2x16x1x32xf32>,
    %c0_26 = arith.constant 0 : index
    %c1_27 = arith.constant 1 : index
    %c17_28 = arith.constant 17 : index
    %c0_29 = arith.constant 0 : index
    %35 = vector.load %arg11[%c0_26, %c1_27, %c17_28, %c0_29] : memref<2x18x18x32xf32, #tpu.memory_space<vmem>>, vector<2x16x1x32xf32>
    tpu.vector_store %arg11[%c0_26, %c1_27, %c17_28, %c0_29], %31 {strides = array<i32>} : memref<2x18x18x32xf32, #tpu.memory_space<vmem>>, vector<2x16x1x32xf32>,
    %36 = vector.shape_cast %29 : vector<512x32xf32> to vector<2x16x16x32xf32>
    %c0_30 = arith.constant 0 : index
    %c1_31 = arith.constant 1 : index
    %c1_32 = arith.constant 1 : index
    %c0_33 = arith.constant 0 : index
    %37 = vector.load %arg11[%c0_30, %c1_31, %c1_32, %c0_33] : memref<2x18x18x32xf32, #tpu.memory_space<vmem>>, vector<2x16x16x32xf32>
    tpu.vector_store %arg11[%c0_30, %c1_31, %c1_32, %c0_33], %36 {strides = array<i32>} : memref<2x18x18x32xf32, #tpu.memory_space<vmem>>, vector<2x16x16x32xf32>,
    %c0_34 = arith.constant 0 : index
    %c0_35 = arith.constant 0 : index
    %c0_36 = arith.constant 0 : index
    %c0_37 = arith.constant 0 : index
    %38 = vector.load %arg11[%c0_34, %c0_35, %c0_36, %c0_37] : memref<2x18x18x32xf32, #tpu.memory_space<vmem>>, vector<2x16x16x32xf32>
    %39 = vector.shape_cast %38 : vector<2x16x16x32xf32> to vector<512x32xf32>
    %c0_38 = arith.constant 0 : index
    %c0_39 = arith.constant 0 : index
    %c1_40 = arith.constant 1 : index
    %c0_41 = arith.constant 0 : index
    %40 = vector.load %arg11[%c0_38, %c0_39, %c1_40, %c0_41] : memref<2x18x18x32xf32, #tpu.memory_space<vmem>>, vector<2x16x16x32xf32>
    %41 = vector.shape_cast %40 : vector<2x16x16x32xf32> to vector<512x32xf32>
    %c0_42 = arith.constant 0 : index
    %c0_43 = arith.constant 0 : index
    %c2 = arith.constant 2 : index
    %c0_44 = arith.constant 0 : index
    %42 = vector.load %arg11[%c0_42, %c0_43, %c2, %c0_44] : memref<2x18x18x32xf32, #tpu.memory_space<vmem>>, vector<2x16x16x32xf32>
    %43 = vector.shape_cast %42 : vector<2x16x16x32xf32> to vector<512x32xf32>
    %c0_45 = arith.constant 0 : index
    %c1_46 = arith.constant 1 : index
    %c0_47 = arith.constant 0 : index
    %c0_48 = arith.constant 0 : index
    %44 = vector.load %arg11[%c0_45, %c1_46, %c0_47, %c0_48] : memref<2x18x18x32xf32, #tpu.memory_space<vmem>>, vector<2x16x16x32xf32>
    %45 = vector.shape_cast %44 : vector<2x16x16x32xf32> to vector<512x32xf32>
    %c0_49 = arith.constant 0 : index
    %c1_50 = arith.constant 1 : index
    %c1_51 = arith.constant 1 : index
    %c0_52 = arith.constant 0 : index
    %46 = vector.load %arg11[%c0_49, %c1_50, %c1_51, %c0_52] : memref<2x18x18x32xf32, #tpu.memory_space<vmem>>, vector<2x16x16x32xf32>
    %47 = vector.shape_cast %46 : vector<2x16x16x32xf32> to vector<512x32xf32>
    %c0_53 = arith.constant 0 : index
    %c1_54 = arith.constant 1 : index
    %c2_55 = arith.constant 2 : index
    %c0_56 = arith.constant 0 : index
    %48 = vector.load %arg11[%c0_53, %c1_54, %c2_55, %c0_56] : memref<2x18x18x32xf32, #tpu.memory_space<vmem>>, vector<2x16x16x32xf32>
    %49 = vector.shape_cast %48 : vector<2x16x16x32xf32> to vector<512x32xf32>
    %c0_57 = arith.constant 0 : index
    %c2_58 = arith.constant 2 : index
    %c0_59 = arith.constant 0 : index
    %c0_60 = arith.constant 0 : index
    %50 = vector.load %arg11[%c0_57, %c2_58, %c0_59, %c0_60] : memref<2x18x18x32xf32, #tpu.memory_space<vmem>>, vector<2x16x16x32xf32>
    %51 = vector.shape_cast %50 : vector<2x16x16x32xf32> to vector<512x32xf32>
    %c0_61 = arith.constant 0 : index
    %c2_62 = arith.constant 2 : index
    %c1_63 = arith.constant 1 : index
    %c0_64 = arith.constant 0 : index
    %52 = vector.load %arg11[%c0_61, %c2_62, %c1_63, %c0_64] : memref<2x18x18x32xf32, #tpu.memory_space<vmem>>, vector<2x16x16x32xf32>
    %53 = vector.shape_cast %52 : vector<2x16x16x32xf32> to vector<512x32xf32>
    %c0_65 = arith.constant 0 : index
    %c2_66 = arith.constant 2 : index
    %c2_67 = arith.constant 2 : index
    %c0_68 = arith.constant 0 : index
    %54 = vector.load %arg11[%c0_65, %c2_66, %c2_67, %c0_68] : memref<2x18x18x32xf32, #tpu.memory_space<vmem>>, vector<2x16x16x32xf32>
    %55 = vector.shape_cast %54 : vector<2x16x16x32xf32> to vector<512x32xf32>
    %56 = tpu.concatenate %39, %41, %43, %45, %47, %49, %51, %53, %55 in 1 : vector<512x32xf32>, vector<512x32xf32>, vector<512x32xf32>, vector<512x32xf32>, vector<512x32xf32>, vector<512x32xf32>, vector<512x32xf32>, vector<512x32xf32>, vector<512x32xf32> -> vector<512x288xf32>
    %c0_69 = arith.constant 0 : index
    %c0_70 = arith.constant 0 : index
    %57 = vector.load %arg2[%c0_69, %c0_70] : memref<288x32xf32, #tpu.memory_space<vmem>>, vector<288x32xf32>
    %cst_71 = arith.constant dense<0.000000e+00> : vector<512x32xf32>
    %58 = tpu.matmul %56, %57, %cst_71 {dimension_numbers = #tpu.dot_dimension_numbers<[1], [0], [0], [1], [0, 0, 1, 1], [], []>} : vector<512x288xf32>, vector<288x32xf32>, vector<512x32xf32> -> vector<512x32xf32>
    %cst_72 = arith.constant dense<0.000000e+00> : vector<32xf32>
    %59 = vector.multi_reduction <add>, %58, %cst_72 [0] : vector<512x32xf32> to vector<32xf32>
    %60 = vector.shape_cast %59 : vector<32xf32> to vector<1x32xf32>
    %cst_73 = arith.constant 5.120000e+02 : f32
    %61 = vector.broadcast %cst_73 : f32 to vector<1x32xf32>
    %62 = arith.divf %60, %61 : vector<1x32xf32>
    %63 = arith.mulf %58, %58 : vector<512x32xf32>
    %cst_74 = arith.constant dense<0.000000e+00> : vector<32xf32>
    %64 = vector.multi_reduction <add>, %63, %cst_74 [0] : vector<512x32xf32> to vector<32xf32>
    %65 = vector.shape_cast %64 : vector<32xf32> to vector<1x32xf32>
    %cst_75 = arith.constant 5.120000e+02 : f32
    %66 = vector.broadcast %cst_75 : f32 to vector<1x32xf32>
    %67 = arith.divf %65, %66 : vector<1x32xf32>
    %68 = arith.mulf %62, %62 : vector<1x32xf32>
    %69 = arith.subf %67, %68 : vector<1x32xf32>
    %cst_76 = arith.constant 0.000000e+00 : f32
    %70 = vector.broadcast %cst_76 : f32 to vector<1x32xf32>
    %71 = arith.maximumf %69, %70 : vector<1x32xf32>
    %c0_77 = arith.constant 0 : index
    %c0_78 = arith.constant 0 : index
    %72 = vector.load %arg6[%c0_77, %c0_78] : memref<1x32xf32, #tpu.memory_space<vmem>>, vector<1x32xf32>
    %cst_79 = arith.constant 9.99999974E-6 : f32
    %73 = vector.broadcast %cst_79 : f32 to vector<1x32xf32>
    %74 = arith.addf %71, %73 : vector<1x32xf32>
    %75 = math.rsqrt %74 : vector<1x32xf32>
    %76 = arith.mulf %72, %75 : vector<1x32xf32>
    %77 = vector.broadcast %76 : vector<1x32xf32> to vector<512x32xf32>
    %78 = arith.mulf %58, %77 : vector<512x32xf32>
    %c0_80 = arith.constant 0 : index
    %c0_81 = arith.constant 0 : index
    %79 = vector.load %arg7[%c0_80, %c0_81] : memref<1x32xf32, #tpu.memory_space<vmem>>, vector<1x32xf32>
    %80 = arith.mulf %62, %76 : vector<1x32xf32>
    %81 = arith.subf %79, %80 : vector<1x32xf32>
    %82 = vector.broadcast %81 : vector<1x32xf32> to vector<512x32xf32>
    %83 = arith.addf %78, %82 : vector<512x32xf32>
    %cst_82 = arith.constant 0.000000e+00 : f32
    %84 = vector.broadcast %cst_82 : f32 to vector<512x32xf32>
    %85 = arith.maximumf %83, %84 : vector<512x32xf32>
    %c0_83 = arith.constant 0 : index
    %c0_84 = arith.constant 0 : index
    %86 = vector.load %arg3[%c0_83, %c0_84] : memref<32x128xf32, #tpu.memory_space<vmem>>, vector<32x128xf32>
    %cst_85 = arith.constant dense<0.000000e+00> : vector<512x128xf32>
    %87 = tpu.matmul %85, %86, %cst_85 {dimension_numbers = #tpu.dot_dimension_numbers<[1], [0], [0], [1], [0, 0, 1, 1], [], []>} : vector<512x32xf32>, vector<32x128xf32>, vector<512x128xf32> -> vector<512x128xf32>
    %cst_86 = arith.constant dense<0.000000e+00> : vector<128xf32>
    %88 = vector.multi_reduction <add>, %87, %cst_86 [0] : vector<512x128xf32> to vector<128xf32>
    %89 = vector.shape_cast %88 : vector<128xf32> to vector<1x128xf32>
    %cst_87 = arith.constant 5.120000e+02 : f32
    %90 = vector.broadcast %cst_87 : f32 to vector<1x128xf32>
    %91 = arith.divf %89, %90 : vector<1x128xf32>
    %92 = arith.mulf %87, %87 : vector<512x128xf32>
    %cst_88 = arith.constant dense<0.000000e+00> : vector<128xf32>
    %93 = vector.multi_reduction <add>, %92, %cst_88 [0] : vector<512x128xf32> to vector<128xf32>
    %94 = vector.shape_cast %93 : vector<128xf32> to vector<1x128xf32>
    %cst_89 = arith.constant 5.120000e+02 : f32
    %95 = vector.broadcast %cst_89 : f32 to vector<1x128xf32>
    %96 = arith.divf %94, %95 : vector<1x128xf32>
    %97 = arith.mulf %91, %91 : vector<1x128xf32>
    %98 = arith.subf %96, %97 : vector<1x128xf32>
    %cst_90 = arith.constant 0.000000e+00 : f32
    %99 = vector.broadcast %cst_90 : f32 to vector<1x128xf32>
    %100 = arith.maximumf %98, %99 : vector<1x128xf32>
    %c0_91 = arith.constant 0 : index
    %c0_92 = arith.constant 0 : index
    %101 = vector.load %arg8[%c0_91, %c0_92] : memref<1x128xf32, #tpu.memory_space<vmem>>, vector<1x128xf32>
    %cst_93 = arith.constant 9.99999974E-6 : f32
    %102 = vector.broadcast %cst_93 : f32 to vector<1x128xf32>
    %103 = arith.addf %100, %102 : vector<1x128xf32>
    %104 = math.rsqrt %103 : vector<1x128xf32>
    %105 = arith.mulf %101, %104 : vector<1x128xf32>
    %106 = vector.broadcast %105 : vector<1x128xf32> to vector<512x128xf32>
    %107 = arith.mulf %87, %106 : vector<512x128xf32>
    %c0_94 = arith.constant 0 : index
    %c0_95 = arith.constant 0 : index
    %108 = vector.load %arg9[%c0_94, %c0_95] : memref<1x128xf32, #tpu.memory_space<vmem>>, vector<1x128xf32>
    %109 = arith.mulf %91, %105 : vector<1x128xf32>
    %110 = arith.subf %108, %109 : vector<1x128xf32>
    %111 = vector.broadcast %110 : vector<1x128xf32> to vector<512x128xf32>
    %112 = arith.addf %107, %111 : vector<512x128xf32>
    %113 = arith.addf %112, %0 : vector<512x128xf32>
    %cst_96 = arith.constant 0.000000e+00 : f32
    %114 = vector.broadcast %cst_96 : f32 to vector<512x128xf32>
    %115 = arith.maximumf %113, %114 : vector<512x128xf32>
    %c0_97 = arith.constant 0 : index
    %c0_98 = arith.constant 0 : index
    %116 = vector.load %arg10[%c0_97, %c0_98] : memref<512x128xf32, #tpu.memory_space<vmem>>, vector<512x128xf32>
    tpu.vector_store %arg10[%c0_97, %c0_98], %115 {strides = array<i32>} : memref<512x128xf32, #tpu.memory_space<vmem>>, vector<512x128xf32>,
    return
  }
}

</mosaic_0001>

<bundles_post_ra>
// kernel: bottleneck_forward_nhwc.1
= control target key start
LH: loop header
LB: loop body
LE: loop exit
PB: predicated region body
PF: predicated region fallthrough
CT: control target
= control target key end

     0   :  { %s12020_s0 = inlined_call_operand.vmem [shape: f32[512,128], index: 0, kind: input, shape index: {}]   ;;  %s12021_s1 = inlined_call_operand.vmem [shape: f32[128,32], index: 1, kind: input, shape index: {}]   ;;  %s12022_s2 = inlined_call_operand.vmem [shape: f32[288,32], index: 2, kind: input, shape index: {}]   ;;  %s12023_s3 = inlined_call_operand.vmem [shape: f32[32,128], index: 3, kind: input, shape index: {}]   ;;  %s12024_s4 = inlined_call_operand.vmem [shape: f32[1,32], index: 4, kind: input, shape index: {}]   ;;  %s12025_s5 = inlined_call_operand.vmem [shape: f32[1,32], index: 5, kind: input, shape index: {}]   ;;  %s12026_s6 = inlined_call_operand.vmem [shape: f32[1,32], index: 6, kind: input, shape index: {}]   ;;  %s12027_s7 = inlined_call_operand.vmem [shape: f32[1,32], index: 7, kind: input, shape index: {}]   ;;  %s12028_s8 = inlined_call_operand.vmem [shape: f32[1,128], index: 8, kind: input, shape index: {}]   ;;  %s12029_s9 = inlined_call_operand.vmem [shape: f32[1,128], index: 9, kind: input, shape index: {}]   ;;  %s12030_s10 = inlined_call_operand.hbm [shape: f32[512,128], index: 10, kind: output, shape index: {}]  }
   0x1   :  { %v115_v0 = vld [vmem:[%s12021_s1 + $0x78] sm:$0xff]  ;;  %v114_v1 = vld [vmem:[%s12021_s1 + $0x70] sm:$0xff]  ;;  %v113_v2 = vld [vmem:[%s12021_s1 + $0x68] sm:$0xff] }
   0x2   :  { %116 = vmatpush.msra.mxu0 %v115_v0  ;;  %6029 = vmatpush.msra.mxu1 %v115_v0  ;;  %v112_v3 = vld [vmem:[%s12021_s1 + $0x60] sm:$0xff]  ;;  %v111_v4 = vld [vmem:[%s12021_s1 + $0x58] sm:$0xff] }
   0x3   :  { %6030 = vmatpush.msra.mxu2 %v115_v0 }
   0x4   :  { %117 = vmatpush.msra.mxu0 %v114_v1  ;;  %6031 = vmatpush.msra.mxu1 %v114_v1 }
   0x5   :  { %6032 = vmatpush.msra.mxu2 %v114_v1 }
   0x6   :  { %118 = vmatpush.msra.mxu0 %v113_v2  ;;  %6033 = vmatpush.msra.mxu1 %v113_v2 }
   0x7   :  { %6034 = vmatpush.msra.mxu2 %v113_v2 }
   0x8   :  { %15 = vsyncpa [#allocation4], 0  ;;  %119 = vmatpush.msra.mxu0 %v112_v3  ;;  %6035 = vmatpush.msra.mxu1 %v112_v3  ;;  %v110_v5 = vld [vmem:[%s12021_s1 + $0x50] sm:$0xff]  ;;  %v109_v6 = vld [vmem:[%s12021_s1 + $0x48] sm:$0xff]  ;;  %vm325_vm0 = vcmask 261120   ;;  %vm897_vm5 = vcmask 253952  }
   0x9   :  { %6036 = vmatpush.msra.mxu2 %v112_v3  ;;  %v108_v7 = vld [vmem:[%s12021_s1 + $0x40] sm:$0xff]  ;;  %v107_v8 = vld [vmem:[%s12021_s1 + $0x38] sm:$0xff]  ;;  %v106_v9 = vld [vmem:[%s12021_s1 + $0x30] sm:$0xff]  ;;  %s7123_s18 = smov 32   ;;  %s7124_s19 = smov 96   ;;  %vm884_vm6 = vcmask 254976  }
   0xa   :  { %120 = vmatpush.msra.mxu0 %v111_v4  ;;  %6037 = vmatpush.msra.mxu1 %v111_v4  ;;  %v105_v10 = vld [vmem:[%s12021_s1 + $0x28] sm:$0xff]  ;;  %v104_v11 = vld [vmem:[%s12021_s1 + $0x20] sm:$0xff]  ;;  %v103_v12 = vld [vmem:[%s12021_s1 + $0x18] sm:$0xff]  ;;  %s7125_s22 = smov 64   ;;  %vm3203_vm7 = vcmask 523264   ;;  %vm3268_vm8 = vcmask 785408  }
   0xb   :  { %6038 = vmatpush.msra.mxu2 %v111_v4  ;;  %v102_v13 = vld [vmem:[%s12021_s1 + $0x10] sm:$0xff]  ;;  %v101_v14 = vld [vmem:[%s12021_s1 + $0x8] sm:$0xff]  ;;  %v100_v15 = vld [vmem:[%s12021_s1] sm:$0xff]  ;;  %s7126_s21 = smov [#allocation3]   ;;  %s7128_s23 = smov 8  }
   0xc   :  { %121 = vmatpush.msra.mxu0 %v110_v5  ;;  %6039 = vmatpush.msra.mxu1 %v110_v5  ;;  %v36_v16 = vld [vmem:[%s12020_s0] sm:$0xff]  ;;  %v37_v17 = vld [vmem:[%s12020_s0 + $0x8] sm:$0xff]  ;;  %v38_v18 = vld [vmem:[%s12020_s0 + $0x10] sm:$0xff] }
   0xd   :  { %6040 = vmatpush.msra.mxu2 %v110_v5  ;;  %v39_v19 = vld [vmem:[%s12020_s0 + $0x18] sm:$0xff]  ;;  %v40_v20 = vld [vmem:[%s12020_s0 + $0x20] sm:$0xff]  ;;  %v41_v21 = vld [vmem:[%s12020_s0 + $0x28] sm:$0xff] }
   0xe   :  { %122 = vmatpush.msra.mxu0 %v109_v6  ;;  %6041 = vmatpush.msra.mxu1 %v109_v6  ;;  %v42_v22 = vld [vmem:[%s12020_s0 + $0x30] sm:$0xff]  ;;  %v43_v23 = vld [vmem:[%s12020_s0 + $0x38] sm:$0xff]  ;;  %v44_v24 = vld [vmem:[%s12020_s0 + $0x40] sm:$0xff] }
   0xf   :  { %6042 = vmatpush.msra.mxu2 %v109_v6  ;;  %v45_v25 = vld [vmem:[%s12020_s0 + $0x48] sm:$0xff]  ;;  %v46_v26 = vld [vmem:[%s12020_s0 + $0x50] sm:$0xff]  ;;  %v47_v27 = vld [vmem:[%s12020_s0 + $0x58] sm:$0xff] }
  0x10   :  { %123 = vmatpush.msra.mxu0 %v108_v7  ;;  %6043 = vmatpush.msra.mxu1 %v108_v7  ;;  %v48_v28 = vld [vmem:[%s12020_s0 + $0x60] sm:$0xff]  ;;  %v49_v29 = vld [vmem:[%s12020_s0 + $0x68] sm:$0xff]  ;;  %v50_v30 = vld [vmem:[%s12020_s0 + $0x70] sm:$0xff] }
  0x11   :  { %6044 = vmatpush.msra.mxu2 %v108_v7  ;;  %v51_v31 = vld [vmem:[%s12020_s0 + $0x78] sm:$0xff]  ;;  %v52_v33 = vld [vmem:[%s12020_s0 + $0x80] sm:$0xff]  ;;  %v53_v35 = vld [vmem:[%s12020_s0 + $0x88] sm:$0xff] }
  0x12   :  { %124 = vmatpush.msra.mxu0 %v107_v8  ;;  %6045 = vmatpush.msra.mxu1 %v107_v8  ;;  %v54_v37 = vld [vmem:[%s12020_s0 + $0x90] sm:$0xff]  ;;  %v55_v39 = vld [vmem:[%s12020_s0 + $0x98] sm:$0xff]  ;;  %v56_v42 = vld [vmem:[%s12020_s0 + $0xa0] sm:$0xff] }
  0x13   :  { %6046 = vmatpush.msra.mxu2 %v107_v8  ;;  %v71_v40 = vld [vmem:[%s12020_s0 + $0x118] sm:$0xff]  ;;  %v72_v43 = vld [vmem:[%s12020_s0 + $0x120] sm:$0xff]  ;;  %v57_v45 = vld [vmem:[%s12020_s0 + $0xa8] sm:$0xff] }
  0x14   :  { %125 = vmatpush.msra.mxu0 %v106_v9  ;;  %6047 = vmatpush.msra.mxu1 %v106_v9  ;;  %v73_v46 = vld [vmem:[%s12020_s0 + $0x128] sm:$0xff]  ;;  %v58_v48 = vld [vmem:[%s12020_s0 + $0xb0] sm:$0xff]  ;;  %v59_v51 = vld [vmem:[%s12020_s0 + $0xb8] sm:$0xff] }
  0x15   :  { %6048 = vmatpush.msra.mxu2 %v106_v9  ;;  %v74_v49 = vld [vmem:[%s12020_s0 + $0x130] sm:$0xff]  ;;  %v75_v52 = vld [vmem:[%s12020_s0 + $0x138] sm:$0xff]  ;;  %v60_v54 = vld [vmem:[%s12020_s0 + $0xc0] sm:$0xff] }
  0x16   :  { %126 = vmatpush.msra.mxu0 %v105_v10  ;;  %6049 = vmatpush.msra.mxu1 %v105_v10  ;;  %v76_v55 = vld [vmem:[%s12020_s0 + $0x140] sm:$0xff]  ;;  %v87_v56 = vld [vmem:[%s12020_s0 + $0x198] sm:$0xff]  ;;  %v61_v58 = vld [vmem:[%s12020_s0 + $0xc8] sm:$0xff] }
  0x17   :  { %6050 = vmatpush.msra.mxu2 %v105_v10  ;;  %v77_v59 = vld [vmem:[%s12020_s0 + $0x148] sm:$0xff]  ;;  %v88_v60 = vld [vmem:[%s12020_s0 + $0x1a0] sm:$0xff]  ;;  %v62_v62 = vld [vmem:[%s12020_s0 + $0xd0] sm:$0xff] }
  0x18   :  { %127 = vmatpush.msra.mxu0 %v104_v11  ;;  %6051 = vmatpush.msra.mxu1 %v104_v11  ;;  %v78_v63 = vld [vmem:[%s12020_s0 + $0x150] sm:$0xff]  ;;  %v89_v0 = vld [vmem:[%s12020_s0 + $0x1a8] sm:$0xff]  ;;  %v63_v2 = vld [vmem:[%s12020_s0 + $0xd8] sm:$0xff] }
  0x19   :  { %6052 = vmatpush.msra.mxu2 %v104_v11  ;;  %v79_v3 = vld [vmem:[%s12020_s0 + $0x158] sm:$0xff]  ;;  %v90_v4 = vld [vmem:[%s12020_s0 + $0x1b0] sm:$0xff]  ;;  %v64_v6 = vld [vmem:[%s12020_s0 + $0xe0] sm:$0xff] }
  0x1a   :  { %128 = vmatpush.msra.mxu0 %v103_v12  ;;  %6053 = vmatpush.msra.mxu1 %v103_v12  ;;  %v80_v7 = vld [vmem:[%s12020_s0 + $0x160] sm:$0xff]  ;;  %v91_v8 = vld [vmem:[%s12020_s0 + $0x1b8] sm:$0xff]  ;;  %v65_v10 = vld [vmem:[%s12020_s0 + $0xe8] sm:$0xff] }
  0x1b   :  { %6054 = vmatpush.msra.mxu2 %v103_v12  ;;  %v81_v11 = vld [vmem:[%s12020_s0 + $0x168] sm:$0xff]  ;;  %v92_v12 = vld [vmem:[%s12020_s0 + $0x1c0] sm:$0xff] }
  0x1c   :  { %129 = vmatpush.msra.mxu0 %v102_v13  ;;  %6055 = vmatpush.msra.mxu1 %v102_v13 }
  0x1d   :  { %6056 = vmatpush.msra.mxu2 %v102_v13 }
  0x1e   :  { %130 = vmatpush.msra.mxu0 %v101_v14  ;;  %6057 = vmatpush.msra.mxu1 %v101_v14 }
  0x1f   :  { %6058 = vmatpush.msra.mxu2 %v101_v14  ;;  %v66_v14 = vld [vmem:[%s12020_s0 + $0xf0] sm:$0xff] }
  0x20   :  { %131 = vmatpush.msra.mxu0 %v100_v15  ;;  %6059 = vmatpush.msra.mxu1 %v100_v15 }
  0x21   :  { %132 = vmatmul.f32.vlgmr.msra.gmra.mxu0 %v36_v16  ;;  %6060 = vmatpush.msra.mxu2 %v100_v15  ;;  %v82_v15 = vld [vmem:[%s12020_s0 + $0x170] sm:$0xff]  ;;  %v93_v16 = vld [vmem:[%s12020_s0 + $0x1c8] sm:$0xff] }
  0x22   :  { %237 = vmatmul.f32.vlgmr.msra.gmra.mxu1 %v71_v40  ;;  %285 = vmatmul.f32.vlgmr.msra.gmra.mxu2 %v87_v56 }
  0x29   :  { %135 = vmatmul.f32.gmra.mxu0 %v37_v17 }
  0x2a   :  { %240 = vmatmul.f32.gmra.mxu1 %v72_v43  ;;  %288 = vmatmul.f32.gmra.mxu2 %v88_v60  ;;  %v99_v43 = vld [vmem:[%s12020_s0 + $0x1f8] sm:$0xff] }
  0x31   :  { %138 = vmatmul.f32.gmra.mxu0 %v38_v18  ;;  %v67_v18 = vld [vmem:[%s12020_s0 + $0xf8] sm:$0xff] }
  0x32   :  { %243 = vmatmul.f32.gmra.mxu1 %v73_v46  ;;  %291 = vmatmul.f32.gmra.mxu2 %v89_v0 }
  0x39   :  { %141 = vmatmul.f32.gmra.mxu0 %v39_v19  ;;  %v83_v19 = vld [vmem:[%s12020_s0 + $0x178] sm:$0xff] }
  0x3a   :  { %246 = vmatmul.f32.gmra.mxu1 %v74_v49  ;;  %294 = vmatmul.f32.gmra.mxu2 %v90_v4 }
  0x41   :  { %144 = vmatmul.f32.gmra.mxu0 %v40_v20  ;;  %v94_v20 = vld [vmem:[%s12020_s0 + $0x1d0] sm:$0xff] }
  0x42   :  { %249 = vmatmul.f32.gmra.mxu1 %v75_v52  ;;  %297 = vmatmul.f32.gmra.mxu2 %v91_v8 }
  0x49   :  { %147 = vmatmul.f32.gmra.mxu0 %v41_v21 }
  0x4a   :  { %252 = vmatmul.f32.gmra.mxu1 %v76_v55  ;;  %300 = vmatmul.f32.gmra.mxu2 %v92_v12 }
  0x51   :  { %150 = vmatmul.f32.gmra.mxu0 %v42_v22  ;;  %v68_v22 = vld [vmem:[%s12020_s0 + $0x100] sm:$0xff] }
  0x52   :  { %255 = vmatmul.f32.gmra.mxu1 %v77_v59  ;;  %303 = vmatmul.f32.gmra.mxu2 %v93_v16 }
  0x59   :  { %153 = vmatmul.f32.gmra.mxu0 %v43_v23  ;;  %v84_v23 = vld [vmem:[%s12020_s0 + $0x180] sm:$0xff] }
  0x5a   :  { %258 = vmatmul.f32.gmra.mxu1 %v78_v63  ;;  %306 = vmatmul.f32.gmra.mxu2 %v94_v20 }
  0x61   :  { %156 = vmatmul.f32.gmra.mxu0 %v44_v24  ;;  %v95_v24 = vld [vmem:[%s12020_s0 + $0x1d8] sm:$0xff] }
  0x62   :  { %261 = vmatmul.f32.gmra.mxu1 %v79_v3  ;;  %309 = vmatmul.f32.gmra.mxu2 %v95_v24 }
  0x69   :  { %159 = vmatmul.f32.gmra.mxu0 %v45_v25 }
  0x6a   :  { %264 = vmatmul.f32.gmra.mxu1 %v80_v7 }
  0x71   :  { %162 = vmatmul.f32.gmra.mxu0 %v46_v26  ;;  %v69_v26 = vld [vmem:[%s12020_s0 + $0x108] sm:$0xff] }
  0x72   :  { %267 = vmatmul.f32.gmra.mxu1 %v81_v11 }
  0x79   :  { %165 = vmatmul.f32.gmra.mxu0 %v47_v27  ;;  %v85_v27 = vld [vmem:[%s12020_s0 + $0x188] sm:$0xff] }
  0x7a   :  { %270 = vmatmul.f32.gmra.mxu1 %v82_v15 }
  0x81   :  { %168 = vmatmul.f32.gmra.mxu0 %v48_v28  ;;  %v96_v28 = vld [vmem:[%s12020_s0 + $0x1e0] sm:$0xff] }
  0x82   :  { %273 = vmatmul.f32.gmra.mxu1 %v83_v19  ;;  %312 = vmatmul.f32.gmra.mxu2 %v96_v28 }
  0x89   :  { %171 = vmatmul.f32.gmra.mxu0 %v49_v29 }
  0x8a   :  { %276 = vmatmul.f32.gmra.mxu1 %v84_v23 }
  0x91   :  { %174 = vmatmul.f32.gmra.mxu0 %v50_v30  ;;  %v70_v30 = vld [vmem:[%s12020_s0 + $0x110] sm:$0xff] }
  0x92   :  { %279 = vmatmul.f32.gmra.mxu1 %v85_v27 }
  0x99   :  { %177 = vmatmul.f32.gmra.mxu0 %v51_v31  ;;  %v86_v31 = vld [vmem:[%s12020_s0 + $0x190] sm:$0xff] }
  0x9a   :  { %282 = vmatmul.f32.gmra.mxu1 %v86_v31 }
  0x9e   :  { %v7280_v32 = vpop.f32.mrf.mxu0 }
  0x9f   :  { %v467_v60 = vmul.f32 %v7280_v32, %v7280_v32  ;;  %v326_v0 = vsel %vm325_vm0, %v7280_v32, 0.0 }
  0xa1   :  { %180 = vmatmul.f32.gmra.mxu0 %v52_v33  ;;  %v97_v33 = vld [vmem:[%s12020_s0 + $0x1e8] sm:$0xff] }
  0xa2   :  { %315 = vmatmul.f32.gmra.mxu2 %v97_v33 }
  0xa5   :  { %v7490_v59 = vpop.f32.mrf.mxu2 }
  0xa6   :  { %v7285_v34 = vpop.f32.mrf.mxu0 }
  0xa9   :  { %183 = vmatmul.f32.gmra.mxu0 %v53_v35 }
  0xad   :  { %v7525_v31 = vpop.f32.mrf.mxu2 }
  0xae   :  { %v7290_v36 = vpop.f32.mrf.mxu0 }
  0xaf   :  { %v469_v63 = vmul.f32 %v7290_v36, %v7290_v36  ;;  %v329_v3 = vsel %vm325_vm0, %v7290_v36, 0.0 }
  0xb1   :  { %186 = vmatmul.f32.gmra.mxu0 %v54_v37  ;;  %v7458_v37 = vpop.f32.mrf.mxu1  ;;  %v534_v11 = vsel %vm325_vm0, %v469_v63, 0.0 }
  0xb2   :  { %12125 = vst [vmem:[#allocation15_spill] sm:$0xff] %v7458_v37 }
  0xb6   :  { %v7295_v38 = vpop.f32.mrf.mxu0 }
  0xb7   :  { %v470_v4 = vmul.f32 %v7295_v38, %v7295_v38  ;;  %v331_v12 = vsel %vm325_vm0, %v7295_v38, 0.0 }
  0xb9   :  { %189 = vmatmul.f32.gmra.mxu0 %v55_v39  ;;  %v98_v39 = vld [vmem:[%s12020_s0 + $0x1f0] sm:$0xff] }
  0xba   :  { %318 = vmatmul.f32.gmra.mxu2 %v98_v39 }
  0xbe   :  { %v7303_v41 = vpop.f32.mrf.mxu0 }
  0xbf   :  { %v333_v19 = vsel %vm325_vm0, %v7303_v41, 0.0 }
  0xc1   :  { %192 = vmatmul.f32.gmra.mxu0 %v56_v42  ;;  %v7465_v42 = vpop.f32.mrf.mxu1 }
  0xc2   :  { %12127 = vst [vmem:[#allocation17_spill] sm:$0xff] %v7465_v42  ;;  %321 = vmatmul.f32.gmra.mxu2 %v99_v43 }
  0xc6   :  { %v7311_v44 = vpop.f32.mrf.mxu0 }
  0xc7   :  { %v472_v20 = vmul.f32 %v7311_v44, %v7311_v44 }
  0xc9   :  { %195 = vmatmul.f32.gmra.mxu0 %v57_v45  ;;  %v7472_v46 = vpop.f32.mrf.mxu1  ;;  %v540_v33 = vsel %vm325_vm0, %v472_v20, 0.0 }
  0xce   :  { %v7319_v47 = vpop.f32.mrf.mxu0 }
  0xcf   :  { %v473_v27 = vmul.f32 %v7319_v47, %v7319_v47  ;;  %v337_v39 = vsel %vm325_vm0, %v7319_v47, 0.0 }
  0xd1   :  { %198 = vmatmul.f32.gmra.mxu0 %v58_v48  ;;  %v7476_v49 = vpop.f32.mrf.mxu1  ;;  %v542_v63 = vsel %vm325_vm0, %v473_v27, 0.0 }
  0xd6   :  { %v7327_v50 = vpop.f32.mrf.mxu0 }
  0xd7   :  { %v474_v43 = vmul.f32 %v7327_v50, %v7327_v50 }
  0xd9   :  { %201 = vmatmul.f32.gmra.mxu0 %v59_v51  ;;  %v7480_v52 = vpop.f32.mrf.mxu1 }
  0xde   :  { %v7335_v53 = vpop.f32.mrf.mxu0 }
  0xe1   :  { %204 = vmatmul.f32.gmra.mxu0 %v60_v54  ;;  %v7484_v55 = vpop.f32.mrf.mxu1 }
  0xe6   :  { %v7346_v57 = vpop.f32.mrf.mxu0 }
  0xe9   :  { %207 = vmatmul.f32.gmra.mxu0 %v61_v58  ;;  %v468_v58 = vmul.f32 %v7285_v34, %v7285_v34  ;;  %v7507_v8 = vpop.f32.mrf.mxu1 }
  0xee   :  { %v7357_v61 = vpop.f32.mrf.mxu0 }
  0xf1   :  { %210 = vmatmul.f32.gmra.mxu0 %v62_v62  ;;  %v327_v62 = vsel %vm325_vm0, %v7285_v34, 0.0 }
  0xf6   :  { %v7368_v1 = vpop.f32.mrf.mxu0 }
  0xf7   :  { %12116 = vst [vmem:[#allocation6_spill] sm:$0xff] %v7368_v1 }
  0xf9   :  { %213 = vmatmul.f32.gmra.mxu0 %v63_v2  ;;  %v532_v2 = vsel %vm325_vm0, %v468_v58, 0.0 }
  0xfe   :  { %v7379_v5 = vpop.f32.mrf.mxu0 }
  0xff   :  { %12117 = vst [vmem:[#allocation7_spill] sm:$0xff] %v7379_v5 }
 0x101   :  { %216 = vmatmul.f32.gmra.mxu0 %v64_v6  ;;  %v328_v6 = vadd.f32 %v327_v62, %v326_v0  ;;  %v339_v0 = vsel %vm325_vm0, %v7327_v50, 0.0 }
 0x103   :  { %v330_v16 = vadd.f32 %v329_v3, %v328_v6  ;;  %v7539_v6 = vpop.f32.mrf.mxu1 }
 0x105   :  { %v332_v23 = vadd.f32 %v331_v12, %v330_v16  ;;  %v476_v12 = vmul.f32 %v7346_v57, %v7346_v57 }
 0x106   :  { %v7390_v9 = vpop.f32.mrf.mxu0 }
 0x107   :  { %12118 = vst [vmem:[#allocation8_spill] sm:$0xff] %v7390_v9 }
 0x109   :  { %219 = vmatmul.f32.gmra.mxu0 %v65_v10  ;;  %v531_v10 = vsel %vm325_vm0, %v467_v60, 0.0 }
 0x10a   :  { %v533_v15 = vadd.f32 %v532_v2, %v531_v10  ;;  %v475_v2 = vmul.f32 %v7335_v53, %v7335_v53  ;;  %v544_v10 = vsel %vm325_vm0, %v474_v43, 0.0  ;;  %v347_v43 = vsel %vm325_vm0, %v7368_v1, 0.0 }
 0x10c   :  { %v546_v16 = vsel %vm325_vm0, %v475_v2, 0.0  ;;  %v349_v2 = vsel %vm325_vm0, %v7379_v5, 0.0 }
 0x10e   :  { %v7401_v13 = vpop.f32.mrf.mxu0 }
 0x10f   :  { %12119 = vst [vmem:[#allocation9_spill] sm:$0xff] %v7401_v13 }
 0x111   :  { %222 = vmatmul.f32.gmra.mxu0 %v66_v14  ;;  %v471_v14 = vmul.f32 %v7303_v41, %v7303_v41 }
 0x113   :  { %v538_v24 = vsel %vm325_vm0, %v471_v14, 0.0 }
 0x116   :  { %v7412_v17 = vpop.f32.mrf.mxu0 }
 0x117   :  { %12120 = vst [vmem:[#allocation10_spill] sm:$0xff] %v7412_v17 }
 0x119   :  { %225 = vmatmul.f32.gmra.mxu0 %v67_v18  ;;  %v536_v18 = vsel %vm325_vm0, %v470_v4, 0.0 }
 0x11e   :  { %v7423_v21 = vpop.f32.mrf.mxu0 }
 0x11f   :  { %12121 = vst [vmem:[#allocation11_spill] sm:$0xff] %v7423_v21 }
 0x121   :  { %228 = vmatmul.f32.gmra.mxu0 %v68_v22  ;;  %v535_v22 = vadd.f32 %v534_v11, %v533_v15  ;;  %v341_v11 = vsel %vm325_vm0, %v7335_v53, 0.0 }
 0x123   :  { %v537_v28 = vadd.f32 %v536_v18, %v535_v22  ;;  %v343_v18 = vsel %vm325_vm0, %v7346_v57, 0.0 }
 0x125   :  { %v539_v58 = vadd.f32 %v538_v24, %v537_v28  ;;  %v345_v24 = vsel %vm325_vm0, %v7357_v61, 0.0 }
 0x126   :  { %v7434_v25 = vpop.f32.mrf.mxu0 }
 0x127   :  { %12122 = vst [vmem:[#allocation12_spill] sm:$0xff] %v7434_v25  ;;  %v541_v3 = vadd.f32 %v540_v33, %v539_v58  ;;  %v7558_v33 = vpop.f32.mrf.mxu2  ;;  %v479_v58 = vmul.f32 %v7379_v5, %v7379_v5 }
 0x129   :  { %231 = vmatmul.f32.gmra.mxu0 %v69_v26  ;;  %v335_v26 = vsel %vm325_vm0, %v7311_v44, 0.0  ;;  %v543_v14 = vadd.f32 %v542_v63, %v541_v3  ;;  %v480_v3 = vmul.f32 %v7390_v9, %v7390_v9 }
 0x12b   :  { %v545_v20 = vadd.f32 %v544_v10, %v543_v14  ;;  %v351_v14 = vsel %vm325_vm0, %v7390_v9, 0.0 }
 0x12d   :  { %v547_v27 = vadd.f32 %v546_v16, %v545_v20  ;;  %v353_v20 = vsel %vm325_vm0, %v7401_v13, 0.0 }
 0x12e   :  { %v7445_v29 = vpop.f32.mrf.mxu0 }
 0x12f   :  { %12123 = vst [vmem:[#allocation13_spill] sm:$0xff] %v7445_v29 }
 0x131   :  { %234 = vmatmul.f32.gmra.mxu0 %v70_v30  ;;  %v334_v30 = vadd.f32 %v333_v19, %v332_v23  ;;  %v477_v19 = vmul.f32 %v7357_v61, %v7357_v61  ;;  %v548_v23 = vsel %vm325_vm0, %v476_v12, 0.0  ;;  %v554_v12 = vsel %vm325_vm0, %v479_v58, 0.0 }
 0x133   :  { %v336_v60 = vadd.f32 %v335_v26, %v334_v30  ;;  %v478_v26 = vmul.f32 %v7368_v1, %v7368_v1 }
 0x135   :  { %v338_v4 = vadd.f32 %v337_v39, %v336_v60  ;;  %v550_v39 = vsel %vm325_vm0, %v477_v19, 0.0  ;;  %v549_v60 = vadd.f32 %v548_v23, %v547_v27  ;;  %v556_v19 = vsel %vm325_vm0, %v480_v3, 0.0 }
 0x136   :  { %v7456_v35 = vpop.f32.mrf.mxu0 }
 0x137   :  { %12124 = vst [vmem:[#allocation14_spill] sm:$0xff] %v7456_v35  ;;  %v340_v15 = vadd.f32 %v339_v0, %v338_v4  ;;  %v552_v0 = vsel %vm325_vm0, %v478_v26, 0.0  ;;  %v551_v4 = vadd.f32 %v550_v39, %v549_v60  ;;  %v483_v39 = vmul.f32 %v7423_v21, %v7423_v21  ;;  %v7589_v60 = vpop.f32.mrf.mxu2 }
 0x139   :  { %v342_v22 = vadd.f32 %v341_v11, %v340_v15  ;;  %v7570_v11 = vpop.f32.mrf.mxu1  ;;  %v481_v15 = vmul.f32 %v7401_v13, %v7401_v13  ;;  %v553_v16 = vadd.f32 %v552_v0, %v551_v4  ;;  %v357_v0 = vsel %vm325_vm0, %v7423_v21, 0.0 }
 0x13b   :  { %v344_v28 = vadd.f32 %v343_v18, %v342_v22  ;;  %v482_v22 = vmul.f32 %v7412_v17, %v7412_v17  ;;  %v555_v23 = vadd.f32 %v554_v12, %v553_v16  ;;  %v558_v27 = vsel %vm325_vm0, %v481_v15, 0.0 }
 0x13c   :  { %v359_v12 = vsel %vm325_vm0, %v7434_v25, 0.0 }
 0x13d   :  { %v346_v63 = vadd.f32 %v345_v24, %v344_v28  ;;  %v355_v28 = vsel %vm325_vm0, %v7412_v17, 0.0 }
 0x13e   :  { %v7463_v40 = vpop.f32.mrf.mxu0 }
 0x13f   :  { %12126 = vst [vmem:[#allocation16_spill] sm:$0xff] %v7463_v40  ;;  %v348_v10 = vadd.f32 %v347_v43, %v346_v63  ;;  %v557_v43 = vadd.f32 %v556_v19, %v555_v23  ;;  %v560_v63 = vsel %vm325_vm0, %v482_v22, 0.0  ;;  %v486_v22 = vmul.f32 %v7456_v35, %v7456_v35 }
 0x141   :  { %v350_v18 = vadd.f32 %v349_v2, %v348_v10  ;;  %v484_v2 = vmul.f32 %v7434_v25, %v7434_v25  ;;  %v559_v3 = vadd.f32 %v558_v27, %v557_v43  ;;  %v562_v10 = vsel %vm325_vm0, %v483_v39, 0.0 }
 0x142   :  { %v363_v39 = vsel %vm325_vm0, %v7456_v35, 0.0  ;;  %v487_v43 = vmul.f32 %v7463_v40, %v7463_v40 }
 0x143   :  { %v352_v24 = vadd.f32 %v351_v14, %v350_v18  ;;  %v485_v14 = vmul.f32 %v7445_v29, %v7445_v29  ;;  %v561_v15 = vadd.f32 %v560_v63, %v559_v3  ;;  %v7601_v18 = vpop.f32.mrf.mxu1  ;;  %v564_v19 = vsel %vm325_vm0, %v484_v2, 0.0 }
 0x144   :  { %v365_v2 = vsel %vm325_vm0, %v7463_v40, 0.0 }
 0x145   :  { %v354_v58 = vadd.f32 %v353_v20, %v352_v24  ;;  %v361_v20 = vsel %vm325_vm0, %v7445_v29, 0.0  ;;  %v563_v23 = vadd.f32 %v562_v10, %v561_v15 }
 0x146   :  { %v7470_v45 = vpop.f32.mrf.mxu0 }
 0x147   :  { %12128 = vst [vmem:[#allocation18_spill] sm:$0xff] %v7470_v45  ;;  %v356_v4 = vadd.f32 %v355_v28, %v354_v58  ;;  %v566_v28 = vsel %vm325_vm0, %v485_v14, 0.0  ;;  %v565_v58 = vadd.f32 %v564_v19, %v563_v23  ;;  %v488_v3 = vmul.f32 %v7470_v45, %v7470_v45 }
 0x148   :  { %v570_v14 = vsel %vm325_vm0, %v487_v43, 0.0  ;;  %v367_v15 = vsel %vm325_vm0, %v7470_v45, 0.0 }
 0x149   :  { %v358_v16 = vadd.f32 %v357_v0, %v356_v4  ;;  %v568_v0 = vsel %vm325_vm0, %v486_v22, 0.0  ;;  %v567_v4 = vadd.f32 %v566_v28, %v565_v58  ;;  %v572_v22 = vsel %vm325_vm0, %v488_v3, 0.0 }
 0x14b   :  { %v360_v24 = vadd.f32 %v359_v12, %v358_v16  ;;  %v7620_v12 = vpop.f32.mrf.mxu2  ;;  %v569_v19 = vadd.f32 %v568_v0, %v567_v4  ;;  %v7634_v43 = vpop.f32.mrf.mxu1 }
 0x14d   :  { %v362_v63 = vadd.f32 %v361_v20, %v360_v24  ;;  %v571_v28 = vadd.f32 %v570_v14, %v569_v19 }
 0x14e   :  { %v7474_v48 = vpop.f32.mrf.mxu0 }
 0x14f   :  { %12129 = vst [vmem:[#allocation19_spill] sm:$0xff] %v7474_v48  ;;  %v364_v10 = vadd.f32 %v363_v39, %v362_v63  ;;  %v489_v16 = vmul.f32 %v7474_v48, %v7474_v48  ;;  %v369_v23 = vsel %vm325_vm0, %v7474_v48, 0.0  ;;  %v573_v3 = vadd.f32 %v572_v22, %v571_v28 }
 0x151   :  { %v366_v20 = vadd.f32 %v365_v2, %v364_v10  ;;  %v574_v63 = vsel %vm325_vm0, %v489_v16, 0.0 }
 0x152   :  { %v575_v19 = vadd.f32 %v574_v63, %v573_v3 }
 0x153   :  { %v368_v39 = vadd.f32 %v367_v15, %v366_v20  ;;  %v7651_v28 = vpop.f32.mrf.mxu2 }
 0x155   :  { %v370_v4 = vadd.f32 %v369_v23, %v368_v39 }
 0x156   :  { %v7478_v51 = vpop.f32.mrf.mxu0 }
 0x157   :  { %12130 = vst [vmem:[#allocation20_spill] sm:$0xff] %v7478_v51  ;;  %v490_v24 = vmul.f32 %v7478_v51, %v7478_v51  ;;  %v371_v0 = vsel %vm325_vm0, %v7478_v51, 0.0 }
 0x158   :  { %v372_v20 = vadd.f32 %v371_v0, %v370_v4 }
 0x159   :  { %v576_v10 = vsel %vm325_vm0, %v490_v24, 0.0 }
 0x15a   :  { %v577_v22 = vadd.f32 %v576_v10, %v575_v19 }
 0x15e   :  { %v7482_v54 = vpop.f32.mrf.mxu0 }
 0x15f   :  { %12131 = vst [vmem:[#allocation21_spill] sm:$0xff] %v7482_v54  ;;  %v491_v2 = vmul.f32 %v7482_v54, %v7482_v54  ;;  %v373_v14 = vsel %vm325_vm0, %v7482_v54, 0.0 }
 0x160   :  { %v374_v23 = vadd.f32 %v373_v14, %v372_v20  ;;  %v7665_v20 = vpop.f32.mrf.mxu1 }
 0x161   :  { %v578_v16 = vsel %vm325_vm0, %v491_v2, 0.0 }
 0x162   :  { %v579_v0 = vadd.f32 %v578_v16, %v577_v22 }
 0x166   :  { %v7486_v56 = vpop.f32.mrf.mxu0 }
 0x167   :  { %12132 = vst [vmem:[#allocation22_spill] sm:$0xff] %v7486_v56  ;;  %v492_v15 = vmul.f32 %v7486_v56, %v7486_v56  ;;  %v375_v51 = vsel %vm325_vm0, %v7486_v56, 0.0 }
 0x168   :  { %v376_v2 = vadd.f32 %v375_v51, %v374_v23 }
 0x169   :  { %v580_v24 = vsel %vm325_vm0, %v492_v15, 0.0 }
 0x16a   :  { %v581_v19 = vadd.f32 %v580_v24, %v579_v0 }
 0x16e   :  { %v7505_v7 = vpop.f32.mrf.mxu0 }
 0x16f   :  { %12133 = vst [vmem:[#allocation23_spill] sm:$0xff] %v7505_v7  ;;  %v493_v48 = vmul.f32 %v7505_v7, %v7505_v7  ;;  %v377_v39 = vsel %vm325_vm0, %v7505_v7, 0.0 }
 0x170   :  { %v378_v15 = vadd.f32 %v377_v39, %v376_v2 }
 0x171   :  { %v582_v4 = vsel %vm325_vm0, %v493_v48, 0.0 }
 0x172   :  { %v583_v22 = vadd.f32 %v582_v4, %v581_v19 }
 0x176   :  { %v7532_v62 = vpop.f32.mrf.mxu0 }
 0x177   :  { %12134 = vst [vmem:[#allocation24_spill] sm:$0xff] %v7532_v62  ;;  %v494_v63 = vmul.f32 %v7532_v62, %v7532_v62  ;;  %v379_v10 = vsel %vm325_vm0, %v7532_v62, 0.0 }
 0x178   :  { %v380_v48 = vadd.f32 %v379_v10, %v378_v15 }
 0x179   :  { %v584_v7 = vsel %vm325_vm0, %v494_v63, 0.0 }
 0x17a   :  { %v585_v39 = vadd.f32 %v584_v7, %v583_v22 }
 0x17e   :  { %v7556_v30 = vpop.f32.mrf.mxu0 }
 0x17f   :  { %12135 = vst [vmem:[#allocation25_spill] sm:$0xff] %v7556_v30  ;;  %v495_v14 = vmul.f32 %v7556_v30, %v7556_v30  ;;  %v381_v16 = vsel %vm325_vm0, %v7556_v30, 0.0 }
 0x180   :  { %v382_v0 = vadd.f32 %v381_v16, %v380_v48 }
 0x181   :  { %v586_v23 = vsel %vm325_vm0, %v495_v14, 0.0  ;;  %v7684_v14 = vpop.f32.mrf.mxu2 }
 0x182   :  { %v587_v4 = vadd.f32 %v586_v23, %v585_v39 }
 0x186   :  { %v7582_v26 = vpop.f32.mrf.mxu0 }
 0x187   :  { %12136 = vst [vmem:[#allocation26_spill] sm:$0xff] %v7582_v26  ;;  %v496_v51 = vmul.f32 %v7582_v26, %v7582_v26  ;;  %v383_v62 = vsel %vm325_vm0, %v7582_v26, 0.0 }
 0x188   :  { %v384_v10 = vadd.f32 %v383_v62, %v382_v0 }
 0x189   :  { %v588_v63 = vsel %vm325_vm0, %v496_v51, 0.0 }
 0x18a   :  { %v589_v51 = vadd.f32 %v588_v63, %v587_v4 }
 0x18e   :  { %v7608_v27 = vpop.f32.mrf.mxu0 }
 0x18f   :  { %12137 = vst [vmem:[#allocation27_spill] sm:$0xff] %v7608_v27  ;;  %v497_v24 = vmul.f32 %v7608_v27, %v7608_v27  ;;  %v385_v2 = vsel %vm325_vm0, %v7608_v27, 0.0  ;;  %v7696_v27 = vpop.f32.mrf.mxu1 }
 0x190   :  { %v386_v22 = vadd.f32 %v385_v2, %v384_v10 }
 0x191   :  { %v590_v15 = vsel %vm325_vm0, %v497_v24, 0.0 }
 0x192   :  { %v591_v39 = vadd.f32 %v590_v15, %v589_v51 }
 0x196   :  { %v7632_v58 = vpop.f32.mrf.mxu0 }
 0x197   :  { %12138 = vst [vmem:[#allocation28_spill] sm:$0xff] %v7632_v58  ;;  %v498_v30 = vmul.f32 %v7632_v58, %v7632_v58  ;;  %v387_v7 = vsel %vm325_vm0, %v7632_v58, 0.0 }
 0x198   :  { %v388_v0 = vadd.f32 %v387_v7, %v386_v22  ;;  %v7710_v22 = vpop.f32.mrf.mxu2 }
 0x199   :  { %v592_v48 = vsel %vm325_vm0, %v498_v30, 0.0 }
 0x19a   :  { %v593_v26 = vadd.f32 %v592_v48, %v591_v39  ;;  %v395_v48 = vsel %vm325_vm0, %v7458_v37, 0.0 }
 0x19e   :  { %v7658_v3 = vpop.f32.mrf.mxu0 }
 0x19f   :  { %12139 = vst [vmem:[#allocation29_spill] sm:$0xff] %v7658_v3  ;;  %v499_v16 = vmul.f32 %v7658_v3, %v7658_v3  ;;  %v389_v23 = vsel %vm325_vm0, %v7658_v3, 0.0  ;;  %v502_v3 = vmul.f32 %v7458_v37, %v7458_v37  ;;  %v512_v37 = vmul.f32 %v7634_v43, %v7634_v43 }
 0x1a0   :  { %v390_v63 = vadd.f32 %v389_v23, %v388_v0  ;;  %v397_v0 = vsel %vm325_vm0, %v7465_v42, 0.0 }
 0x1a1   :  { %v594_v24 = vsel %vm325_vm0, %v499_v16, 0.0  ;;  %v600_v39 = vsel %vm325_vm0, %v502_v3, 0.0 }
 0x1a2   :  { %v595_v30 = vadd.f32 %v594_v24, %v593_v26  ;;  %v503_v26 = vmul.f32 %v7465_v42, %v7465_v42  ;;  %v504_v24 = vmul.f32 %v7472_v46, %v7472_v46  ;;  %v409_v42 = vsel %vm325_vm0, %v7539_v6, 0.0 }
 0x1a6   :  { %v7682_v19 = vpop.f32.mrf.mxu0 }
 0x1a7   :  { %12140 = vst [vmem:[#allocation30_spill] sm:$0xff] %v7682_v19  ;;  %v500_v62 = vmul.f32 %v7682_v19, %v7682_v19  ;;  %v391_v58 = vsel %vm325_vm0, %v7682_v19, 0.0 }
 0x1a8   :  { %v392_v4 = vadd.f32 %v391_v58, %v390_v63 }
 0x1a9   :  { %v596_v2 = vsel %vm325_vm0, %v500_v62, 0.0 }
 0x1aa   :  { %v597_v16 = vadd.f32 %v596_v2, %v595_v30  ;;  %v7722_v30 = vpop.f32.mrf.mxu1 }
 0x1ae   :  { %v7702_v10 = vpop.f32.mrf.mxu0 }
 0x1af   :  { %12141 = vst [vmem:[#allocation31_spill] sm:$0xff] %v7702_v10  ;;  %v393_v15 = vsel %vm325_vm0, %v7702_v10, 0.0  ;;  %v501_v7 = vmul.f32 %v7702_v10, %v7702_v10  ;;  %v419_v10 = vsel %vm325_vm0, %v7696_v27, 0.0 }
 0x1b0   :  { %v394_v51 = vadd.f32 %v393_v15, %v392_v4  ;;  %v602_v4 = vsel %vm325_vm0, %v503_v26, 0.0  ;;  %v399_v15 = vsel %vm325_vm0, %v7472_v46, 0.0 }
 0x1b1   :  { %v598_v58 = vsel %vm325_vm0, %v501_v7, 0.0  ;;  %v505_v7 = vmul.f32 %v7476_v49, %v7476_v49 }
 0x1b2   :  { %v396_v23 = vadd.f32 %v395_v48, %v394_v51  ;;  %v599_v62 = vadd.f32 %v598_v58, %v597_v16  ;;  %v604_v51 = vsel %vm325_vm0, %v504_v24, 0.0  ;;  %v401_v48 = vsel %vm325_vm0, %v7476_v49, 0.0 }
 0x1b3   :  { %v506_v58 = vmul.f32 %v7480_v52, %v7480_v52  ;;  %v606_v26 = vsel %vm325_vm0, %v505_v7, 0.0 }
 0x1b4   :  { %v398_v63 = vadd.f32 %v397_v0, %v396_v23  ;;  %v601_v2 = vadd.f32 %v600_v39, %v599_v62  ;;  %v403_v39 = vsel %vm325_vm0, %v7480_v52, 0.0  ;;  %v507_v0 = vmul.f32 %v7484_v55, %v7484_v55 }
 0x1b5   :  { %v608_v24 = vsel %vm325_vm0, %v506_v58, 0.0 }
 0x1b6   :  { %v400_v16 = vadd.f32 %v399_v15, %v398_v63  ;;  %v603_v3 = vadd.f32 %v602_v4, %v601_v2  ;;  %v7739_v4 = vpop.f32.mrf.mxu2  ;;  %v405_v15 = vsel %vm325_vm0, %v7484_v55, 0.0 }
 0x1b8   :  { %v402_v23 = vadd.f32 %v401_v48, %v400_v16  ;;  %v605_v62 = vadd.f32 %v604_v51, %v603_v3  ;;  %v508_v16 = vmul.f32 %v7507_v8, %v7507_v8  ;;  %v610_v51 = vsel %vm325_vm0, %v507_v0, 0.0 }
 0x1b9   :  { %v407_v48 = vsel %vm325_vm0, %v7507_v8, 0.0 }
 0x1ba   :  { %v404_v63 = vadd.f32 %v403_v39, %v402_v23  ;;  %v607_v2 = vadd.f32 %v606_v26, %v605_v62  ;;  %v509_v23 = vmul.f32 %v7539_v6, %v7539_v6  ;;  %v7751_v39 = vpop.f32.mrf.mxu1  ;;  %v612_v58 = vsel %vm325_vm0, %v508_v16, 0.0 }
 0x1bb   :  { %v423_v19 = vsel %vm325_vm0, %v7751_v39, 0.0 }
 0x1bc   :  { %v609_v3 = vadd.f32 %v608_v24, %v607_v2  ;;  %v406_v7 = vadd.f32 %v405_v15, %v404_v63  ;;  %v510_v63 = vmul.f32 %v7570_v11, %v7570_v11  ;;  %v614_v24 = vsel %vm325_vm0, %v509_v23, 0.0 }
 0x1bd   :  { %v411_v15 = vsel %vm325_vm0, %v7570_v11, 0.0 }
 0x1be   :  { %v408_v62 = vadd.f32 %v407_v48, %v406_v7  ;;  %v611_v26 = vadd.f32 %v610_v51, %v609_v3  ;;  %v511_v3 = vmul.f32 %v7601_v18, %v7601_v18  ;;  %v616_v16 = vsel %vm325_vm0, %v510_v63, 0.0 }
 0x1bf   :  { %v413_v48 = vsel %vm325_vm0, %v7601_v18, 0.0 }
 0x1c0   :  { %v410_v2 = vadd.f32 %v409_v42, %v408_v62  ;;  %v613_v0 = vadd.f32 %v612_v58, %v611_v26  ;;  %v7768_v26 = vpop.f32.mrf.mxu2  ;;  %v618_v23 = vsel %vm325_vm0, %v511_v3, 0.0  ;;  %v415_v58 = vsel %vm325_vm0, %v7634_v43, 0.0 }
 0x1c1   :  { %v445_v45 = vsel %vm325_vm0, %v7768_v26, 0.0 }
 0x1c2   :  { %v412_v7 = vadd.f32 %v411_v15, %v410_v2  ;;  %v615_v51 = vadd.f32 %v614_v24, %v613_v0  ;;  %v513_v2 = vmul.f32 %v7665_v20, %v7665_v20  ;;  %v620_v24 = vsel %vm325_vm0, %v512_v37, 0.0 }
 0x1c3   :  { %v417_v15 = vsel %vm325_vm0, %v7665_v20, 0.0 }
 0x1c4   :  { %v414_v42 = vadd.f32 %v413_v48, %v412_v7  ;;  %v617_v62 = vadd.f32 %v616_v16, %v615_v51  ;;  %v514_v7 = vmul.f32 %v7696_v27, %v7696_v27  ;;  %v7780_v48 = vpop.f32.mrf.mxu1  ;;  %v622_v3 = vsel %vm325_vm0, %v513_v2, 0.0 }
 0x1c6   :  { %v416_v0 = vadd.f32 %v415_v58, %v414_v42  ;;  %v619_v63 = vadd.f32 %v618_v23, %v617_v62  ;;  %v515_v42 = vmul.f32 %v7722_v30, %v7722_v30  ;;  %v624_v23 = vsel %vm325_vm0, %v514_v7, 0.0 }
 0x1c7   :  { %v421_v58 = vsel %vm325_vm0, %v7722_v30, 0.0 }
 0x1c8   :  { %v418_v51 = vadd.f32 %v417_v15, %v416_v0  ;;  %v621_v16 = vadd.f32 %v620_v24, %v619_v63  ;;  %v516_v0 = vmul.f32 %v7751_v39, %v7751_v39  ;;  %v517_v63 = vmul.f32 %v7780_v48, %v7780_v48 }
 0x1c9   :  { %v626_v15 = vsel %vm325_vm0, %v515_v42, 0.0  ;;  %v427_v42 = vsel %vm325_vm0, %v7490_v59, 0.0 }
 0x1ca   :  { %v623_v62 = vadd.f32 %v622_v3, %v621_v16  ;;  %v420_v37 = vadd.f32 %v419_v10, %v418_v51  ;;  %v425_v10 = vsel %vm325_vm0, %v7780_v48, 0.0  ;;  %v7799_v16 = vpop.f32.mrf.mxu2  ;;  %v518_v3 = vmul.f32 %v7490_v59, %v7490_v59 }
 0x1cb   :  { %v628_v56 = vsel %vm325_vm0, %v516_v0, 0.0  ;;  %v520_v0 = vmul.f32 %v7558_v33, %v7558_v33 }
 0x1cc   :  { %v625_v2 = vadd.f32 %v624_v23, %v623_v62  ;;  %v422_v24 = vadd.f32 %v421_v58, %v420_v37  ;;  %v630_v62 = vsel %vm325_vm0, %v517_v63, 0.0  ;;  %v519_v58 = vmul.f32 %v7525_v31, %v7525_v31 }
 0x1ce   :  { %v627_v7 = vadd.f32 %v626_v15, %v625_v2  ;;  %v424_v51 = vadd.f32 %v423_v19, %v422_v24  ;;  %v632_v19 = vsel %vm325_vm0, %v518_v3, 0.0  ;;  %v429_v24 = vsel %vm325_vm0, %v7525_v31, 0.0 }
 0x1cf   :  { %v636_v3 = vsel %vm325_vm0, %v520_v0, 0.0 }
 0x1d0   :  { %v629_v37 = vadd.f32 %v628_v56, %v627_v7  ;;  %v426_v23 = vadd.f32 %v425_v10, %v424_v51  ;;  %v634_v56 = vsel %vm325_vm0, %v519_v58, 0.0  ;;  %v431_v10 = vsel %vm325_vm0, %v7558_v33, 0.0 }
 0x1d1   :  { %v521_v7 = vmul.f32 %v7589_v60, %v7589_v60 }
 0x1d2   :  { %v428_v54 = vadd.f32 %v427_v42, %v426_v23  ;;  %v631_v2 = vadd.f32 %v630_v62, %v629_v37  ;;  %v433_v37 = vsel %vm325_vm0, %v7589_v60, 0.0  ;;  %v522_v23 = vmul.f32 %v7620_v12, %v7620_v12 }
 0x1d3   :  { %v638_v58 = vsel %vm325_vm0, %v521_v7, 0.0 }
 0x1d4   :  { %v430_v15 = vadd.f32 %v429_v24, %v428_v54  ;;  %v633_v63 = vadd.f32 %v632_v19, %v631_v2  ;;  %v7824_v2 = vpop.f32.mrf.mxu2  ;;  %v435_v19 = vsel %vm325_vm0, %v7620_v12, 0.0  ;;  %v523_v24 = vmul.f32 %v7651_v28, %v7651_v28 }
 0x1d6   :  { %v432_v51 = vadd.f32 %v431_v10, %v430_v15  ;;  %v635_v62 = vadd.f32 %v634_v56, %v633_v63  ;;  %v640_v63 = vsel %vm325_vm0, %v522_v23, 0.0  ;;  %v437_v56 = vsel %vm325_vm0, %v7651_v28, 0.0 }
 0x1d7   :  { %v524_v10 = vmul.f32 %v7684_v14, %v7684_v14  ;;  %v642_v7 = vsel %vm325_vm0, %v523_v24, 0.0  ;;  %v527_v24 = vmul.f32 %v7768_v26, %v7768_v26 }
 0x1d8   :  { %v434_v54 = vadd.f32 %v433_v37, %v432_v51  ;;  %v637_v42 = vadd.f32 %v636_v3, %v635_v62  ;;  %v7121_v3 = vmov 512.0   ;;  %v439_v37 = vsel %vm325_vm0, %v7684_v14, 0.0 }
 0x1d9   :  { %7023 = vrcp.f32 %v7121_v3  ;;  %v443_v3 = vsel %vm325_vm0, %v7739_v4, 0.0 }
 0x1da   :  { %v639_v15 = vadd.f32 %v638_v58, %v637_v42  ;;  %v436_v0 = vadd.f32 %v435_v19, %v434_v54  ;;  %v525_v54 = vmul.f32 %v7710_v22, %v7710_v22  ;;  %v644_v58 = vsel %vm325_vm0, %v524_v10, 0.0 }
 0x1db   :  { %v441_v19 = vsel %vm325_vm0, %v7710_v22, 0.0 }
 0x1dc   :  { %v438_v51 = vadd.f32 %v437_v56, %v436_v0  ;;  %v641_v62 = vadd.f32 %v640_v63, %v639_v15  ;;  %v526_v15 = vmul.f32 %v7739_v4, %v7739_v4  ;;  %v646_v56 = vsel %vm325_vm0, %v525_v54, 0.0  ;;  %v7851_v10 = vpop.f32.mrf.mxu2 }
 0x1dd   :  { %v650_v54 = vsel %vm325_vm0, %v527_v24, 0.0  ;;  %v451_v24 = vsel %vm325_vm0, %v7851_v10, 0.0 }
 0x1de   :  { %v440_v42 = vadd.f32 %v439_v37, %v438_v51  ;;  %v643_v23 = vadd.f32 %v642_v7, %v641_v62  ;;  %v648_v37 = vsel %vm325_vm0, %v526_v15, 0.0  ;;  %v530_v15 = vmul.f32 %v7851_v10, %v7851_v10 }
 0x1df   :  { %v7024_v51 = vpop.eup %7023 }
 0x1e0   :  { %v442_v0 = vadd.f32 %v441_v19, %v440_v42  ;;  %v645_v63 = vadd.f32 %v644_v58, %v643_v23  ;;  %v528_v42 = vmul.f32 %v7799_v16, %v7799_v16  ;;  %v447_v58 = vsel %vm325_vm0, %v7799_v16, 0.0 }
 0x1e1   :  { %v656_v29 = vsel %vm325_vm0, %v530_v15, 0.0  ;;  %vm464_vm1 = vweird.f32 %v7024_v51 }
 0x1e2   :  { %v444_v62 = vadd.f32 %v443_v3, %v442_v0  ;;  %v647_v7 = vadd.f32 %v646_v56, %v645_v63  ;;  %v529_v0 = vmul.f32 %v7824_v2, %v7824_v2  ;;  %v460_v63 = vmul.f32 512.0, %v7024_v51 }
 0x1e3   :  { %v652_v40 = vsel %vm325_vm0, %v528_v42, 0.0 }
 0x1e4   :  { %v446_v19 = vadd.f32 %v445_v45, %v444_v62  ;;  %v649_v23 = vadd.f32 %v648_v37, %v647_v7  ;;  %v449_v45 = vsel %vm325_vm0, %v7824_v2, 0.0  ;;  %v654_v37 = vsel %vm325_vm0, %v529_v0, 0.0 }
 0x1e5   :  { %v461_v35 = vsub.f32 1.0, %v460_v63 }
 0x1e6   :  { %v651_v56 = vadd.f32 %v650_v54, %v649_v23  ;;  %v448_v3 = vadd.f32 %v447_v58, %v446_v19 }
 0x1e7   :  { %v462_v19 = vmul.f32 %v7024_v51, %v461_v35 }
 0x1e8   :  { %v653_v62 = vadd.f32 %v652_v40, %v651_v56  ;;  %v450_v7 = vadd.f32 %v449_v45, %v448_v3 }
 0x1e9   :  { %v463_v9 = vadd.f32 %v7024_v51, %v462_v19  ;;  %v748_v19 = vld [vmem:[%s12025_s5] sm:$0x1] }
 0x1ea   :  { %v655_v25 = vadd.f32 %v654_v37, %v653_v62  ;;  %v452_v21 = vadd.f32 %v451_v24, %v450_v7  ;;  %v3560_v62 = vld [vmem:[%s12022_s2 + $0x118] sm:$0xff] }
 0x1eb   :  { %v7872_v3 = vsel %vm464_vm1, %v7024_v51, %v463_v9  ;;  %4183 = vmatpush.msrb.mxu0 %v3560_v62  ;;  %6061 = vmatpush.msra.mxu3 %v3560_v62  ;;  %v668_v51 = vld [vmem:[%s12024_s4] sm:$0x1] }
 0x1ec   :  { %v453_v17 = vrot.slane %v452_v21, 4  ;;  %v657_v23 = vadd.f32 %v656_v29, %v655_v25  ;;  %12142 = vst [vmem:[#allocation32_spill] sm:$0xff] %v7872_v3 }
 0x1ee   :  { %v454_v54 = vadd.f32 %v453_v17, %v452_v21  ;;  %v658_v42 = vrot.slane %v657_v23, 4 }
 0x1f0   :  { %v455_v58 = vrot.slane %v454_v54, 2  ;;  %v659_v13 = vadd.f32 %v658_v42, %v657_v23 }
 0x1f2   :  { %v456_v5 = vadd.f32 %v455_v58, %v454_v54  ;;  %v660_v1 = vrot.slane %v659_v13, 2 }
 0x1f4   :  { %v457_v40 = vrot.slane %v456_v5, 1  ;;  %v661_v56 = vadd.f32 %v660_v1, %v659_v13 }
 0x1f6   :  { %v458_v0 = vadd.f32 %v457_v40, %v456_v5  ;;  %v662_v63 = vrot.slane %v661_v56, 1 }
 0x1f8   :  { %v466_v15 = vmul.f32 %v7872_v3, %v458_v0  ;;  %v663_v45 = vadd.f32 %v662_v63, %v661_v56 }
 0x1fa   :  { %v664_v25 = vmul.f32 %v663_v45, %v7872_v3  ;;  %v665_v29 = vmul.f32 %v466_v15, %v466_v15 }
 0x1fc   :  { %v666_v17 = vsub.f32 %v664_v25, %v665_v29 }
 0x1fe   :  { %v667_v21 = vmax.f32 %v666_v17, 0.0 }
 0x200   :  { %v669_v35 = vadd.f32 1e-05, %v667_v21  ;;  %v3559_v21 = vld [vmem:[%s12022_s2 + $0x110] sm:$0xff] }
 0x201   :  { %4184 = vmatpush.msrb.mxu0 %v3559_v21  ;;  %6062 = vmatpush.msra.mxu3 %v3559_v21 }
 0x202   :  { %7025 = vrsqrt.f32 %v669_v35  ;;  %vm676_vm3 = vweird.f32 %v669_v35 }
 0x208   :  { %v7026_v24 = vpop.eup %7025 }
 0x209   :  { %v671_v1 = vmul.f32 %v7026_v24, %v669_v35  ;;  %vm677_vm2 = vweird.f32 %v7026_v24 }
 0x20a   :  { %vm678_vm4 = vmor %vm676_vm3, %vm677_vm2 }
 0x20b   :  { %v672_v5 = vmul.f32 %v7026_v24, %v671_v1 }
 0x20d   :  { %v673_v9 = vmul.f32 0.5, %v672_v5 }
 0x20f   :  { %v674_v13 = vsub.f32 1.5, %v673_v9 }
 0x211   :  { %v675_v7 = vmul.f32 %v7026_v24, %v674_v13 }
 0x213   :  { %v679_v37 = vsel %vm678_vm4, %v7026_v24, %v675_v7 }
 0x214   :  { %v680_v23 = vmul.f32 %v679_v37, %v668_v51 }
 0x216   :  { %v7885_v54 = vperm.slane %v680_v23, 0  ;;  %v749_v42 = vmul.f32 %v680_v23, %v466_v15 }
 0x218   :  { %v750_v58 = vsub.f32 %v748_v19, %v749_v42  ;;  %v747_v40 = vmul.f32 %v7885_v54, %v7851_v10  ;;  %v684_v45 = vmul.f32 %v7885_v54, %v7280_v32  ;;  %v685_v25 = vmul.f32 %v7885_v54, %v7285_v34 }
 0x219   :  { %v686_v15 = vmul.f32 %v7885_v54, %v7290_v36  ;;  %v687_v29 = vmul.f32 %v7885_v54, %v7295_v38  ;;  %v688_v10 = vmul.f32 %v7885_v54, %v7303_v41  ;;  %v689_v17 = vmul.f32 %v7885_v54, %v7311_v44 }
 0x21a   :  { %v7889_v56 = vperm.slane %v750_v58, 0  ;;  %v690_v32 = vmul.f32 %v7885_v54, %v7319_v47  ;;  %v7912_v34 = vmul.f32 %v7885_v54, %v7327_v50  ;;  %v7916_v36 = vmul.f32 %v7885_v54, %v7335_v53 }
 0x21b   :  { %v7920_v38 = vmul.f32 %v7885_v54, %v7346_v57  ;;  %v721_v41 = vmul.f32 %v7885_v54, %v7472_v46  ;;  %v722_v44 = vmul.f32 %v7885_v54, %v7476_v49  ;;  %v723_v47 = vmul.f32 %v7885_v54, %v7480_v52 }
 0x21c   :  { %v817_v0 = vadd.f32 %v7889_v56, %v747_v40  ;;  %v724_v50 = vmul.f32 %v7885_v54, %v7484_v55  ;;  %v725_v53 = vmul.f32 %v7885_v54, %v7507_v8  ;;  %v726_v57 = vmul.f32 %v7885_v54, %v7539_v6 }
 0x21d   :  { %v727_v35 = vmul.f32 %v7885_v54, %v7570_v11  ;;  %v728_v46 = vmul.f32 %v7885_v54, %v7601_v18  ;;  %v729_v49 = vmul.f32 %v7885_v54, %v7634_v43  ;;  %v730_v52 = vmul.f32 %v7885_v54, %v7665_v20 }
 0x21e   :  { %v881_v63 = vmax.f32 %v817_v0, 0.0  ;;  %v731_v55 = vmul.f32 %v7885_v54, %v7696_v27  ;;  %v732_v8 = vmul.f32 %v7885_v54, %v7722_v30  ;;  %v733_v6 = vmul.f32 %v7885_v54, %v7751_v39 }
 0x21f   :  { %v734_v11 = vmul.f32 %v7885_v54, %v7780_v48  ;;  %v735_v18 = vmul.f32 %v7885_v54, %v7490_v59  ;;  %v736_v43 = vmul.f32 %v7885_v54, %v7525_v31  ;;  %v737_v20 = vmul.f32 %v7885_v54, %v7558_v33 }
 0x220   :  { %1025 = vst.msk [vmem:[#allocation2 + $0x339] sm:$0xff] %vm325_vm0, %v881_v63  ;;  %v738_v27 = vmul.f32 %v7885_v54, %v7589_v60  ;;  %v739_v30 = vmul.f32 %v7885_v54, %v7620_v12  ;;  %v740_v39 = vmul.f32 %v7885_v54, %v7651_v28  ;;  %v741_v48 = vmul.f32 %v7885_v54, %v7684_v14 }
 0x221   :  { %v742_v59 = vmul.f32 %v7885_v54, %v7710_v22  ;;  %v743_v31 = vmul.f32 %v7885_v54, %v7739_v4  ;;  %v744_v33 = vmul.f32 %v7885_v54, %v7768_v26  ;;  %v745_v60 = vmul.f32 %v7885_v54, %v7799_v16 }
 0x222   :  { %v746_v12 = vmul.f32 %v7885_v54, %v7824_v2  ;;  %v754_v28 = vadd.f32 %v7889_v56, %v684_v45  ;;  %v755_v24 = vadd.f32 %v7889_v56, %v685_v25  ;;  %v756_v14 = vadd.f32 %v7889_v56, %v686_v15 }
 0x223   :  { %v757_v22 = vadd.f32 %v7889_v56, %v687_v29  ;;  %v758_v62 = vadd.f32 %v7889_v56, %v688_v10  ;;  %v759_v4 = vadd.f32 %v7889_v56, %v689_v17  ;;  %v760_v26 = vadd.f32 %v7889_v56, %v690_v32 }
 0x224   :  { %v7982_v1 = vadd.f32 %v7889_v56, %v721_v41  ;;  %v7985_v16 = vadd.f32 %v7889_v56, %v722_v44  ;;  %v7988_v2 = vadd.f32 %v7889_v56, %v723_v47  ;;  %v7991_v5 = vadd.f32 %v7889_v56, %v724_v50 }
 0x225   :  { %v7994_v9 = vadd.f32 %v7889_v56, %v725_v53  ;;  %v7997_v13 = vadd.f32 %v7889_v56, %v726_v57  ;;  %v8000_v51 = vadd.f32 %v7889_v56, %v727_v35  ;;  %v8003_v7 = vadd.f32 %v7889_v56, %v728_v46 }
 0x226   :  { %v8006_v37 = vadd.f32 %v7889_v56, %v729_v49  ;;  %v8009_v23 = vadd.f32 %v7889_v56, %v730_v52  ;;  %v8012_v19 = vadd.f32 %v7889_v56, %v731_v55  ;;  %v8015_v42 = vadd.f32 %v7889_v56, %v732_v8  ;;  %v12143_v55 = vld [vmem:[#allocation6_spill] sm:$0xff] }
 0x227   :  { %v8018_v58 = vadd.f32 %v7889_v56, %v733_v6  ;;  %v8021_v40 = vadd.f32 %v7889_v56, %v734_v11  ;;  %v8024_v0 = vadd.f32 %v7889_v56, %v735_v18  ;;  %v8027_v63 = vadd.f32 %v7889_v56, %v736_v43 }
 0x228   :  { %v8030_v45 = vadd.f32 %v7889_v56, %v737_v20  ;;  %v8033_v25 = vadd.f32 %v7889_v56, %v738_v27  ;;  %v8036_v15 = vadd.f32 %v7889_v56, %v739_v30  ;;  %v8039_v29 = vadd.f32 %v7889_v56, %v740_v39 }
 0x229   :  { %v8042_v10 = vadd.f32 %v7889_v56, %v741_v48  ;;  %v8045_v17 = vadd.f32 %v7889_v56, %v742_v59  ;;  %v8048_v21 = vadd.f32 %v7889_v56, %v743_v31  ;;  %v8051_v32 = vadd.f32 %v7889_v56, %v744_v33  ;;  %v12147_v31 = vld [vmem:[#allocation10_spill] sm:$0xff] }
 0x22a   :  { %v8054_v41 = vadd.f32 %v7889_v56, %v745_v60  ;;  %v8057_v44 = vadd.f32 %v7889_v56, %v746_v12  ;;  %v818_v47 = vmax.f32 %v754_v28, 0.0  ;;  %v761_v50 = vadd.f32 %v7889_v56, %v7912_v34  ;;  %v12144_v34 = vld [vmem:[#allocation7_spill] sm:$0xff] }
 0x22b   :  { %v819_v53 = vmax.f32 %v755_v24, 0.0  ;;  %v820_v57 = vmax.f32 %v756_v14, 0.0  ;;  %v821_v35 = vmax.f32 %v757_v22, 0.0  ;;  %v694_v46 = vmul.f32 %v7885_v54, %v7357_v61  ;;  %v12148_v28 = vld [vmem:[#allocation11_spill] sm:$0xff] }
 0x22c   :  { %v762_v49 = vadd.f32 %v7889_v56, %v7916_v36  ;;  %v822_v52 = vmax.f32 %v758_v62, 0.0  ;;  %962 = vst.msk [vmem:[#allocation2 + $0x19] sm:$0xff] %vm325_vm0, %v818_v47  ;;  %v695_v8 = vmul.f32 %v7885_v54, %v12143_v55  ;;  %v763_v6 = vadd.f32 %v7889_v56, %v7920_v38  ;;  %v12145_v36 = vld [vmem:[#allocation8_spill] sm:$0xff]  ;;  %v12146_v38 = vld [vmem:[#allocation9_spill] sm:$0xff] }
 0x22d   :  { %v823_v11 = vmax.f32 %v759_v4, 0.0  ;;  %963 = vst.msk [vmem:[#allocation2 + $0x21] sm:$0xff] %vm325_vm0, %v819_v53  ;;  %v696_v18 = vmul.f32 %v7885_v54, %v12144_v34  ;;  %v764_v61 = vadd.f32 %v7889_v56, %v694_v46  ;;  %v824_v43 = vmax.f32 %v760_v26, 0.0  ;;  %v12149_v62 = vld [vmem:[#allocation12_spill] sm:$0xff]  ;;  %v12151_v46 = vld [vmem:[#allocation14_spill] sm:$0xff] }
 0x22e   :  { %964 = vst.msk [vmem:[#allocation2 + $0x31] sm:$0xff] %vm325_vm0, %v820_v57  ;;  %v697_v20 = vmul.f32 %v7885_v54, %v12145_v36  ;;  %v765_v27 = vadd.f32 %v7889_v56, %v695_v8  ;;  %v825_v30 = vmax.f32 %v761_v50, 0.0  ;;  %v698_v39 = vmul.f32 %v7885_v54, %v12146_v38  ;;  %v12150_v50 = vld [vmem:[#allocation13_spill] sm:$0xff]  ;;  %v12152_v8 = vld [vmem:[#allocation16_spill] sm:$0xff] }
 0x22f   :  { %965 = vst.msk [vmem:[#allocation2 + $0x39] sm:$0xff] %vm325_vm0, %v821_v35  ;;  %v766_v48 = vadd.f32 %v7889_v56, %v696_v18  ;;  %v826_v59 = vmax.f32 %v762_v49, 0.0  ;;  %v699_v33 = vmul.f32 %v7885_v54, %v12147_v31  ;;  %v827_v12 = vmax.f32 %v763_v6, 0.0  ;;  %v12153_v18 = vld [vmem:[#allocation18_spill] sm:$0xff] }
 0x230   :  { %966 = vst.msk [vmem:[#allocation2 + $0x49] sm:$0xff] %vm325_vm0, %v822_v52  ;;  %v767_v60 = vadd.f32 %v7889_v56, %v697_v20  ;;  %v700_v24 = vmul.f32 %v7885_v54, %v12148_v28  ;;  %v768_v14 = vadd.f32 %v7889_v56, %v698_v39  ;;  %v828_v22 = vmax.f32 %v764_v61, 0.0  ;;  %v12154_v20 = vld [vmem:[#allocation19_spill] sm:$0xff]  ;;  %v12155_v39 = vld [vmem:[#allocation20_spill] sm:$0xff] }
 0x231   :  { %967 = vst.msk [vmem:[#allocation2 + $0x51] sm:$0xff] %vm325_vm0, %v823_v11  ;;  %v701_v4 = vmul.f32 %v7885_v54, %v12149_v62  ;;  %v769_v26 = vadd.f32 %v7889_v56, %v699_v33  ;;  %v829_v47 = vmax.f32 %v765_v27, 0.0  ;;  %v702_v53 = vmul.f32 %v7885_v54, %v12150_v50  ;;  %v12156_v33 = vld [vmem:[#allocation21_spill] sm:$0xff] }
 0x232   :  { %968 = vst.msk [vmem:[#allocation2 + $0x61] sm:$0xff] %vm325_vm0, %v824_v43  ;;  %v770_v57 = vadd.f32 %v7889_v56, %v700_v24  ;;  %v830_v35 = vmax.f32 %v766_v48, 0.0  ;;  %v703_v49 = vmul.f32 %v7885_v54, %v12151_v46  ;;  %v831_v55 = vmax.f32 %v767_v60, 0.0  ;;  %v12157_v24 = vld [vmem:[#allocation22_spill] sm:$0xff] }
 0x233   :  { %969 = vst.msk [vmem:[#allocation2 + $0x69] sm:$0xff] %vm325_vm0, %v825_v30  ;;  %v771_v52 = vadd.f32 %v7889_v56, %v701_v4  ;;  %v704_v6 = vmul.f32 %v7885_v54, %v12152_v8  ;;  %v772_v11 = vadd.f32 %v7889_v56, %v702_v53  ;;  %v832_v34 = vmax.f32 %v768_v14, 0.0  ;;  %v12158_v4 = vld [vmem:[#allocation23_spill] sm:$0xff]  ;;  %v12159_v53 = vld [vmem:[#allocation24_spill] sm:$0xff] }
 0x234   :  { %970 = vst.msk [vmem:[#allocation2 + $0x79] sm:$0xff] %vm325_vm0, %v826_v59  ;;  %v705_v61 = vmul.f32 %v7885_v54, %v12153_v18  ;;  %v773_v43 = vadd.f32 %v7889_v56, %v703_v49  ;;  %v833_v36 = vmax.f32 %v769_v26, 0.0  ;;  %v706_v27 = vmul.f32 %v7885_v54, %v12154_v20  ;;  %v12160_v49 = vld [vmem:[#allocation25_spill] sm:$0xff] }
 0x235   :  { %971 = vst.msk [vmem:[#allocation2 + $0x81] sm:$0xff] %vm325_vm0, %v827_v12  ;;  %v774_v30 = vadd.f32 %v7889_v56, %v704_v6  ;;  %v834_v38 = vmax.f32 %v770_v57, 0.0  ;;  %v707_v48 = vmul.f32 %v7885_v54, %v12155_v39  ;;  %v835_v31 = vmax.f32 %v771_v52, 0.0  ;;  %v12161_v6 = vld [vmem:[#allocation26_spill] sm:$0xff] }
 0x236   :  { %972 = vst.msk [vmem:[#allocation2 + $0x91] sm:$0xff] %vm325_vm0, %v828_v22  ;;  %v775_v59 = vadd.f32 %v7889_v56, %v705_v61  ;;  %v708_v60 = vmul.f32 %v7885_v54, %v12156_v33  ;;  %v776_v12 = vadd.f32 %v7889_v56, %v706_v27  ;;  %v836_v28 = vmax.f32 %v772_v11, 0.0  ;;  %v12162_v61 = vld [vmem:[#allocation27_spill] sm:$0xff]  ;;  %v12163_v27 = vld [vmem:[#allocation28_spill] sm:$0xff] }
 0x237   :  { %973 = vst.msk [vmem:[#allocation2 + $0x99] sm:$0xff] %vm325_vm0, %v829_v47  ;;  %v709_v14 = vmul.f32 %v7885_v54, %v12157_v24  ;;  %v777_v22 = vadd.f32 %v7889_v56, %v707_v48  ;;  %v837_v62 = vmax.f32 %v773_v43, 0.0  ;;  %v710_v26 = vmul.f32 %v7885_v54, %v12158_v4  ;;  %v12164_v48 = vld [vmem:[#allocation29_spill] sm:$0xff] }
 0x238   :  { %974 = vst.msk [vmem:[#allocation2 + $0xa9] sm:$0xff] %vm325_vm0, %v830_v35  ;;  %v778_v47 = vadd.f32 %v7889_v56, %v708_v60  ;;  %v838_v50 = vmax.f32 %v774_v30, 0.0  ;;  %v711_v57 = vmul.f32 %v7885_v54, %v12159_v53  ;;  %v839_v46 = vmax.f32 %v775_v59, 0.0  ;;  %v12165_v60 = vld [vmem:[#allocation30_spill] sm:$0xff] }
 0x239   :  { %975 = vst.msk [vmem:[#allocation2 + $0xb1] sm:$0xff] %vm325_vm0, %v831_v55  ;;  %v779_v35 = vadd.f32 %v7889_v56, %v709_v14  ;;  %v712_v52 = vmul.f32 %v7885_v54, %v12160_v49  ;;  %v780_v55 = vadd.f32 %v7889_v56, %v710_v26  ;;  %v840_v8 = vmax.f32 %v776_v12, 0.0  ;;  %v12166_v14 = vld [vmem:[#allocation31_spill] sm:$0xff] }
 0x23a   :  { %976 = vst.msk [vmem:[#allocation2 + $0xc1] sm:$0xff] %vm325_vm0, %v832_v34  ;;  %v713_v11 = vmul.f32 %v7885_v54, %v12161_v6  ;;  %v781_v34 = vadd.f32 %v7889_v56, %v711_v57  ;;  %v841_v18 = vmax.f32 %v777_v22, 0.0  ;;  %v714_v43 = vmul.f32 %v7885_v54, %v12162_v61  ;;  %v12167_v26 = vld [vmem:[#allocation15_spill] sm:$0xff]  ;;  %v12168_v57 = vld [vmem:[#allocation17_spill] sm:$0xff] }
 0x23b   :  { %977 = vst.msk [vmem:[#allocation2 + $0xc9] sm:$0xff] %vm325_vm0, %v833_v36  ;;  %v782_v36 = vadd.f32 %v7889_v56, %v712_v52  ;;  %v842_v20 = vmax.f32 %v778_v47, 0.0  ;;  %v715_v30 = vmul.f32 %v7885_v54, %v12163_v27  ;;  %v843_v39 = vmax.f32 %v779_v35, 0.0 }
 0x23c   :  { %978 = vst.msk [vmem:[#allocation2 + $0xd9] sm:$0xff] %vm325_vm0, %v834_v38  ;;  %v783_v38 = vadd.f32 %v7889_v56, %v713_v11  ;;  %v716_v59 = vmul.f32 %v7885_v54, %v12164_v48  ;;  %v844_v33 = vmax.f32 %v780_v55, 0.0  ;;  %v717_v12 = vmul.f32 %v7885_v54, %v12165_v60  ;;  %v8353_v48 = vld [vmem:[#allocation2 + $0x31] sm:$0xff] }
 0x23d   :  { %979 = vst.msk [vmem:[#allocation2 + $0xe1] sm:$0xff] %vm325_vm0, %v835_v31  ;;  %v784_v31 = vadd.f32 %v7889_v56, %v714_v43  ;;  %v845_v24 = vmax.f32 %v781_v34, 0.0  ;;  %v718_v22 = vmul.f32 %v7885_v54, %v12166_v14  ;;  %v846_v4 = vmax.f32 %v782_v36, 0.0  ;;  %v3539_v14 = vld [vmem:[%s12022_s2 + $0x70] sm:$0xff] }
 0x23e   :  { %980 = vst.msk [vmem:[#allocation2 + $0xf1] sm:$0xff] %vm325_vm0, %v836_v28  ;;  %v785_v28 = vadd.f32 %v7889_v56, %v715_v30  ;;  %v719_v47 = vmul.f32 %v7885_v54, %v12167_v26  ;;  %v847_v53 = vmax.f32 %v783_v38, 0.0  ;;  %v720_v35 = vmul.f32 %v7885_v54, %v12168_v57  ;;  %v3558_v54 = vld [vmem:[%s12022_s2 + $0x108] sm:$0xff] }
 0x23f   :  { %981 = vst.msk [vmem:[#allocation2 + $0xf9] sm:$0xff] %vm325_vm0, %v837_v62  ;;  %v786_v62 = vadd.f32 %v7889_v56, %v716_v59  ;;  %v848_v49 = vmax.f32 %v784_v31, 0.0  ;;  %4185 = vmatpush.msrb.mxu0 %v3558_v54  ;;  %6063 = vmatpush.msra.mxu3 %v3558_v54  ;;  %v855_v36 = vmax.f32 %v7982_v1, 0.0  ;;  %v857_v27 = vmax.f32 %v7988_v2, 0.0  ;;  %v3540_v59 = vld [vmem:[%s12022_s2 + $0x78] sm:$0xff]  ;;  %v3538_v26 = vld [vmem:[%s12022_s2 + $0x68] sm:$0xff] }
 0x240   :  { %982 = vst.msk [vmem:[#allocation2 + $0x109] sm:$0xff] %vm325_vm0, %v838_v50  ;;  %v787_v50 = vadd.f32 %v7889_v56, %v717_v12  ;;  %v789_v52 = vadd.f32 %v7889_v56, %v719_v47  ;;  %v849_v55 = vmax.f32 %v785_v28, 0.0  ;;  %v858_v30 = vmax.f32 %v7991_v5, 0.0  ;;  %3753 = vmatpush.msrb.mxu1 %v3540_v59  ;;  %v8435_v57 = vld [vmem:[#allocation2 + $0x21] sm:$0xff] }
 0x241   :  { %983 = vst.msk [vmem:[#allocation2 + $0x111] sm:$0xff] %vm325_vm0, %v839_v46  ;;  %v788_v46 = vadd.f32 %v7889_v56, %v718_v22  ;;  %v850_v6 = vmax.f32 %v786_v62, 0.0  ;;  %v859_v1 = vmax.f32 %v7994_v9, 0.0  ;;  %v860_v38 = vmax.f32 %v7997_v13, 0.0  ;;  %v8389_v22 = vld [vmem:[#allocation2 + $0x4a] sm:$0xff]  ;;  %v8404_v62 = vld [vmem:[#allocation2 + $0x19] sm:$0xff] }
 0x242   :  { %984 = vst.msk [vmem:[#allocation2 + $0x121] sm:$0xff] %vm325_vm0, %v840_v8  ;;  %v790_v8 = vadd.f32 %v7889_v56, %v720_v35  ;;  %v851_v11 = vmax.f32 %v787_v50, 0.0  ;;  %v853_v61 = vmax.f32 %v789_v52, 0.0  ;;  %v8184_v56 = vld [vmem:[#allocation2 + $0x32] sm:$0xff]  ;;  %v862_v2 = vmax.f32 %v8003_v7, 0.0  ;;  %3754 = vmatpush.msrb.mxu1 %v3539_v14  ;;  %v8450_v52 = vld [vmem:[#allocation2 + $0x62] sm:$0xff] }
 0x243   :  { %985 = vst.msk [vmem:[#allocation2 + $0x129] sm:$0xff] %vm325_vm0, %v841_v18  ;;  %v852_v34 = vmax.f32 %v788_v46, 0.0  ;;  %v3557_v18 = vld [vmem:[%s12022_s2 + $0x100] sm:$0xff]  ;;  %v863_v5 = vmax.f32 %v8006_v37, 0.0  ;;  %v864_v9 = vmax.f32 %v8009_v23, 0.0  ;;  %v865_v13 = vmax.f32 %v8012_v19, 0.0 }
 0x244   :  { %986 = vst.msk [vmem:[#allocation2 + $0x139] sm:$0xff] %vm325_vm0, %v842_v20  ;;  %v854_v43 = vmax.f32 %v790_v8, 0.0  ;;  %4186 = vmatpush.msrb.mxu0 %v3557_v18  ;;  %6064 = vmatpush.msra.mxu3 %v3557_v18  ;;  %v856_v20 = vmax.f32 %v7985_v16, 0.0  ;;  %v861_v16 = vmax.f32 %v8000_v51, 0.0  ;;  %v866_v51 = vmax.f32 %v8015_v42, 0.0  ;;  %v3556_v50 = vld [vmem:[%s12022_s2 + $0xf8] sm:$0xff] }
 0x245   :  { %987 = vst.msk [vmem:[#allocation2 + $0x141] sm:$0xff] %vm325_vm0, %v843_v39  ;;  %5901 = vmatmul.msk.f32.vlgmr.msrb.gmra.mxu0 %vm325_vm0, %v8184_v56  ;;  %v867_v7 = vmax.f32 %v8018_v58, 0.0  ;;  %v868_v37 = vmax.f32 %v8021_v40, 0.0  ;;  %v869_v23 = vmax.f32 %v8024_v0, 0.0  ;;  %v870_v19 = vmax.f32 %v8027_v63, 0.0  ;;  %3755 = vmatpush.msrb.mxu1 %v3538_v26  ;;  %v3537_v46 = vld [vmem:[%s12022_s2 + $0x60] sm:$0xff] }
 0x246   :  { %988 = vst.msk [vmem:[#allocation2 + $0x151] sm:$0xff] %vm325_vm0, %v844_v33  ;;  %v871_v42 = vmax.f32 %v8030_v45, 0.0  ;;  %v872_v58 = vmax.f32 %v8033_v25, 0.0  ;;  %v873_v40 = vmax.f32 %v8036_v15, 0.0  ;;  %v874_v0 = vmax.f32 %v8039_v29, 0.0  ;;  %3962 = vmatpush.msrb.mxu2 %v3556_v50  ;;  %v1416_v59 = vld [vmem:[#allocation2 + $0x68] sm:$0xff] }
 0x247   :  { %989 = vst.msk [vmem:[#allocation2 + $0x159] sm:$0xff] %vm325_vm0, %v845_v24  ;;  %v875_v63 = vmax.f32 %v8042_v10, 0.0  ;;  %v876_v45 = vmax.f32 %v8045_v17, 0.0  ;;  %v877_v25 = vmax.f32 %v8048_v21, 0.0  ;;  %v878_v15 = vmax.f32 %v8051_v32, 0.0  ;;  %3756 = vmatpush.msrb.mxu1 %v3537_v46  ;;  %v3532_v14 = vld [vmem:[%s12022_s2 + $0x38] sm:$0xff] }
 0x248   :  { %990 = vst.msk [vmem:[#allocation2 + $0x169] sm:$0xff] %vm325_vm0, %v846_v4  ;;  %v879_v29 = vmax.f32 %v8054_v41, 0.0  ;;  %v880_v10 = vmax.f32 %v8057_v44, 0.0  ;;  %v7122_v17 = vmov 0.0   ;;  %v8346_v41 = vld [vmem:[#allocation2 + $0x1a] sm:$0xff]  ;;  %v6103_v4 = vpack.i.bf16 %v8404_v62, %v8184_v56  ;;  %v8557_v26 = vld [vmem:[#allocation2 + $0x69] sm:$0xff] }
 0x249   :  { %991 = vst.msk [vmem:[#allocation2 + $0x171] sm:$0xff] %vm325_vm0, %v847_v53 }
 0x24a   :  { %992 = vst.msk [vmem:[#allocation2 + $0x181] sm:$0xff] %vm325_vm0, %v848_v49  ;;  %v3555_v49 = vld [vmem:[%s12022_s2 + $0xf0] sm:$0xff] }
 0x24b   :  { %993 = vst.msk [vmem:[#allocation2 + $0x189] sm:$0xff] %vm325_vm0, %v849_v55  ;;  %3963 = vmatpush.msrb.mxu2 %v3555_v49  ;;  %v1412_v55 = vld [vmem:[#allocation2 + $0x38] sm:$0xff] }
 0x24c   :  { %994 = vst.msk [vmem:[#allocation2 + $0x1c9] sm:$0xff] %vm325_vm0, %v850_v6 }
 0x24d   :  { %995 = vst.msk [vmem:[#allocation2 + $0x1d1] sm:$0xff] %vm325_vm0, %v851_v11 }
 0x24e   :  { %996 = vst.msk [vmem:[#allocation2 + $0x1e1] sm:$0xff] %vm325_vm0, %v852_v34 }
 0x24f   :  { %997 = vst.msk [vmem:[#allocation2 + $0x1e9] sm:$0xff] %vm325_vm0, %v853_v61  ;;  %v6133_v61 = vpack.i.bf16 %v8353_v48, %v8389_v22 }
 0x250   :  { %998 = vst.msk [vmem:[#allocation2 + $0x1f9] sm:$0xff] %vm325_vm0, %v854_v43  ;;  %v3554_v43 = vld [vmem:[%s12022_s2 + $0xe8] sm:$0xff] }
 0x251   :  { %999 = vst.msk [vmem:[#allocation2 + $0x201] sm:$0xff] %vm325_vm0, %v855_v36  ;;  %v3536_v36 = vld [vmem:[%s12022_s2 + $0x58] sm:$0xff]  ;;  %3964 = vmatpush.msrb.mxu2 %v3554_v43  ;;  %v3547_v43 = vld [vmem:[%s12022_s2 + $0xb0] sm:$0xff] }
 0x252   :  { %1000 = vst.msk [vmem:[#allocation2 + $0x211] sm:$0xff] %vm325_vm0, %v856_v20  ;;  %3757 = vmatpush.msrb.mxu1 %v3536_v36  ;;  %v3530_v36 = vld [vmem:[%s12022_s2 + $0x28] sm:$0xff] }
 0x253   :  { %1001 = vst.msk [vmem:[#allocation2 + $0x219] sm:$0xff] %vm325_vm0, %v857_v27  ;;  %v8471_v27 = vld [vmem:[#allocation2 + $0x20] sm:$0xff] }
 0x254   :  { %1002 = vst.msk [vmem:[#allocation2 + $0x229] sm:$0xff] %vm325_vm0, %v858_v30  ;;  %v8473_v30 = vld [vmem:[#allocation2 + $0x39] sm:$0xff] }
 0x255   :  { %1003 = vst.msk [vmem:[#allocation2 + $0x231] sm:$0xff] %vm325_vm0, %v859_v1 }
 0x256   :  { %1004 = vst.msk [vmem:[#allocation2 + $0x241] sm:$0xff] %vm325_vm0, %v860_v38 }
 0x257   :  { %1005 = vst.msk [vmem:[#allocation2 + $0x249] sm:$0xff] %vm325_vm0, %v861_v16  ;;  %v6098_v16 = vpack.i.bf16 %v8471_v27, %v8473_v30 }
 0x258   :  { %1006 = vst.msk [vmem:[#allocation2 + $0x259] sm:$0xff] %vm325_vm0, %v862_v2 }
 0x259   :  { %1007 = vst.msk [vmem:[#allocation2 + $0x261] sm:$0xff] %vm325_vm0, %v863_v5 }
 0x25a   :  { %1008 = vst.msk [vmem:[#allocation2 + $0x271] sm:$0xff] %vm325_vm0, %v864_v9  ;;  %v3553_v9 = vld [vmem:[%s12022_s2 + $0xe0] sm:$0xff] }
 0x25b   :  { %1009 = vst.msk [vmem:[#allocation2 + $0x279] sm:$0xff] %vm325_vm0, %v865_v13  ;;  %v3535_v13 = vld [vmem:[%s12022_s2 + $0x50] sm:$0xff]  ;;  %3965 = vmatpush.msrb.mxu2 %v3553_v9 }
 0x25c   :  { %1010 = vst.msk [vmem:[#allocation2 + $0x289] sm:$0xff] %vm325_vm0, %v866_v51  ;;  %3758 = vmatpush.msrb.mxu1 %v3535_v13  ;;  %v8489_v51 = vld [vmem:[#allocation2 + $0x7a] sm:$0xff] }
 0x25d   :  { %1011 = vst.msk [vmem:[#allocation2 + $0x291] sm:$0xff] %vm325_vm0, %v867_v7  ;;  %v8494_v7 = vld [vmem:[#allocation2 + $0x49] sm:$0xff] }
 0x25e   :  { %1012 = vst.msk [vmem:[#allocation2 + $0x2a1] sm:$0xff] %vm325_vm0, %v868_v37  ;;  %v1414_v37 = vld [vmem:[#allocation2 + $0x50] sm:$0xff] }
 0x25f   :  { %1013 = vst.msk [vmem:[#allocation2 + $0x2a9] sm:$0xff] %vm325_vm0, %v869_v23 }
 0x260   :  { %1014 = vst.msk [vmem:[#allocation2 + $0x2b9] sm:$0xff] %vm325_vm0, %v870_v19 }
 0x261   :  { %1015 = vst.msk [vmem:[#allocation2 + $0x2c1] sm:$0xff] %vm325_vm0, %v871_v42 }
 0x262   :  { %1016 = vst.msk [vmem:[#allocation2 + $0x2d1] sm:$0xff] %vm325_vm0, %v872_v58  ;;  %v6163_v58 = vpack.i.bf16 %v8494_v7, %v8450_v52 }
 0x263   :  { %1017 = vst.msk [vmem:[#allocation2 + $0x2d9] sm:$0xff] %vm325_vm0, %v873_v40  ;;  %v3552_v40 = vld [vmem:[%s12022_s2 + $0xd8] sm:$0xff] }
 0x264   :  { %1018 = vst.msk [vmem:[#allocation2 + $0x2e9] sm:$0xff] %vm325_vm0, %v874_v0  ;;  %v1585_v60 = vld [vmem:[#allocation2 + $0x28a] sm:$0xff]  ;;  %3966 = vmatpush.msrb.mxu2 %v3552_v40 }
 0x265   :  { %1019 = vst.msk [vmem:[#allocation2 + $0x2f1] sm:$0xff] %vm325_vm0, %v875_v63  ;;  %v3534_v0 = vld [vmem:[%s12022_s2 + $0x48] sm:$0xff] }
 0x266   :  { %1020 = vst.msk [vmem:[#allocation2 + $0x301] sm:$0xff] %vm325_vm0, %v876_v45  ;;  %v1587_v34 = vld [vmem:[#allocation2 + $0x2a2] sm:$0xff]  ;;  %3759 = vmatpush.msrb.mxu1 %v3534_v0  ;;  %v3551_v45 = vld [vmem:[%s12022_s2 + $0xd0] sm:$0xff] }
 0x267   :  { %1021 = vst.msk [vmem:[#allocation2 + $0x309] sm:$0xff] %vm325_vm0, %v877_v25  ;;  %v8517_v25 = vld [vmem:[#allocation2 + $0x51] sm:$0xff]  ;;  %3967 = vmatpush.msrb.mxu2 %v3551_v45 }
 0x268   :  { %1022 = vst.msk [vmem:[#allocation2 + $0x319] sm:$0xff] %vm325_vm0, %v878_v15  ;;  %v1589_v23 = vld [vmem:[#allocation2 + $0x2ba] sm:$0xff] }
 0x269   :  { %1023 = vst.msk [vmem:[#allocation2 + $0x321] sm:$0xff] %vm325_vm0, %v879_v29 }
 0x26a   :  { %1024 = vst.msk [vmem:[#allocation2 + $0x331] sm:$0xff] %vm325_vm0, %v880_v10  ;;  %v6128_v10 = vpack.i.bf16 %v1412_v55, %v8517_v25 }
 0x26b   :  { %953 = vst.msk [vmem:[#allocation2 + $0x281] sm:$0x1] %vm897_vm5, %v7122_v17 }
 0x26c   :  { %882 = vst.msk [vmem:[#allocation2] sm:$0xff] %vm325_vm0, %v7122_v17 }
 0x26d   :  { %883 = vst.msk [vmem:[#allocation2 + $0x8] sm:$0xff] %vm325_vm0, %v7122_v17 }
 0x26e   :  { %886 = vst.msk [vmem:[#allocation2 + $0x1b0] sm:$0xff] %vm325_vm0, %v7122_v17 }
 0x26f   :  { %887 = vst.msk [vmem:[#allocation2 + $0x1b8] sm:$0xff] %vm325_vm0, %v7122_v17 }
 0x270   :  { %890 = vst.msk [vmem:[#allocation2 + $0x198] sm:$0xff] %vm325_vm0, %v7122_v17 }
 0x271   :  { %891 = vst.msk [vmem:[#allocation2 + $0x1a0] sm:$0xff] %vm325_vm0, %v7122_v17 }
 0x272   :  { %v1584_v21 = vld [vmem:[#allocation2 + $0x27a] sm:$0xff]  ;;  %893 = vst.msk [vmem:[#allocation2 + $0x348] sm:$0xff] %vm325_vm0, %v7122_v17 }
 0x273   :  { %5946 = vmatmul.msk.f32.vlgmr.msra.gmra.mxu3 %vm325_vm0, %v1584_v21  ;;  %894 = vst.msk [vmem:[#allocation2 + $0x350] sm:$0xff] %vm325_vm0, %v7122_v17 }
 0x274   :  { %898 = vst.msk [vmem:[#allocation2 + $0x18] sm:$0x1] %vm897_vm5, %v7122_v17  ;;  %v1090_v32 = vld [vmem:[#allocation2 + $0x1] sm:$0xff] }
 0x275   :  { %899 = vst.msk [vmem:[#allocation2 + $0x30] sm:$0x1] %vm897_vm5, %v7122_v17  ;;  %v6073_v39 = vpack.i.bf16 %v1090_v32, %v8346_v41  ;;  %v1154_v12 = vld [vmem:[#allocation2 + $0x2] sm:$0xff] }
 0x276   :  { %900 = vst.msk [vmem:[#allocation2 + $0x48] sm:$0x1] %vm897_vm5, %v7122_v17  ;;  %v3533_v32 = vld [vmem:[%s12022_s2 + $0x40] sm:$0xff] }
 0x277   :  { %901 = vst.msk [vmem:[#allocation2 + $0x60] sm:$0x1] %vm897_vm5, %v7122_v17  ;;  %6074 = vrot.lane.b32.xlu0 %v6073_v39, %s7123_s18  ;;  %3760 = vmatpush.msrb.mxu1 %v3533_v32  ;;  %v8537_v39 = vld [vmem:[#allocation2 + $0x61] sm:$0xff] }
 0x278   :  { %902 = vst.msk [vmem:[#allocation2 + $0x78] sm:$0x1] %vm897_vm5, %v7122_v17 }
 0x279   :  { %903 = vst.msk [vmem:[#allocation2 + $0x90] sm:$0x1] %vm897_vm5, %v7122_v17  ;;  %3761 = vmatpush.msrb.mxu1 %v3532_v14  ;;  %v1597_v14 = vld [vmem:[#allocation2 + $0x31a] sm:$0xff] }
 0x27a   :  { %904 = vst.msk [vmem:[#allocation2 + $0xa8] sm:$0x1] %vm897_vm5, %v7122_v17 }
 0x27b   :  { %905 = vst.msk [vmem:[#allocation2 + $0xc0] sm:$0x1] %vm897_vm5, %v7122_v17  ;;  %v8348_v44 = vld [vmem:[#allocation2 + $0x18] sm:$0xff]  ;;  %5947 = vmatmul.msk.f32.gmra.mxu3 %vm325_vm0, %v1585_v60 }
 0x27c   :  { %906 = vst.msk [vmem:[#allocation2 + $0xd8] sm:$0x1] %vm897_vm5, %v7122_v17  ;;  %v6083_v33 = vpack.i.bf16 %v8348_v44, %v8353_v48  ;;  %v8377_v28 = vld [vmem:[#allocation2 + $0x30] sm:$0xff] }
 0x27d   :  { %907 = vst.msk [vmem:[#allocation2 + $0xf0] sm:$0x1] %vm897_vm5, %v7122_v17  ;;  %v6078_v24 = vpack.i.bf16 %v1154_v12, %v8377_v28  ;;  %v1413_v1 = vld [vmem:[#allocation2 + $0x48] sm:$0xff]  ;;  %v6113_v19 = vpack.i.bf16 %v8377_v28, %v8494_v7 }
 0x27e   :  { %908 = vst.msk [vmem:[#allocation2 + $0x108] sm:$0x1] %vm897_vm5, %v7122_v17  ;;  %6084 = vrot.lane.b32.xlu1 %v6083_v33, %s7124_s19  ;;  %v6108_v2 = vpack.i.bf16 %v8346_v41, %v1413_v1  ;;  %v1415_v15 = vld [vmem:[#allocation2 + $0x60] sm:$0xff]  ;;  %v3550_v41 = vld [vmem:[%s12022_s2 + $0xc8] sm:$0xff]  ;;  %v1591_v33 = vld [vmem:[#allocation2 + $0x2d2] sm:$0xff]  ;;  %v6143_v60 = vpack.i.bf16 %v1413_v1, %v8537_v39 }
 0x27f   :  { %909 = vst.msk [vmem:[#allocation2 + $0x120] sm:$0x1] %vm897_vm5, %v7122_v17  ;;  %6079 = vrot.lane.b32.xlu0 %v6078_v24, %s7125_s22  ;;  %3968 = vmatpush.msrb.mxu2 %v3550_v41  ;;  %v6193_v24 = vpack.i.bf16 %v8537_v39, %v8489_v51  ;;  %v1417_v50 = vld [vmem:[#allocation2 + $0x78] sm:$0xff] }
 0x280   :  { %910 = vst.msk [vmem:[#allocation2 + $0x138] sm:$0x1] %vm897_vm5, %v7122_v17  ;;  %v6168_v46 = vpack.i.bf16 %v8389_v22, %v1417_v50 }
 0x281   :  { %911 = vst.msk [vmem:[#allocation2 + $0x150] sm:$0x1] %vm897_vm5, %v7122_v17 }
 0x282   :  { %912 = vst.msk [vmem:[#allocation2 + $0x168] sm:$0x1] %vm897_vm5, %v7122_v17 }
 0x283   :  { %913 = vst.msk [vmem:[#allocation2 + $0x180] sm:$0x1] %vm897_vm5, %v7122_v17 }
 0x284   :  { %914 = vst.msk [vmem:[#allocation2 + $0x1c8] sm:$0x1] %vm897_vm5, %v7122_v17 }
 0x285   :  { %915 = vst.msk [vmem:[#allocation2 + $0x1e0] sm:$0x1] %vm897_vm5, %v7122_v17 }
 0x286   :  { %916 = vst.msk [vmem:[#allocation2 + $0x1f8] sm:$0x1] %vm897_vm5, %v7122_v17 }
 0x287   :  { %917 = vst.msk [vmem:[#allocation2 + $0x210] sm:$0x1] %vm897_vm5, %v7122_v17  ;;  %6104 = vrot.lane.b32.xlu0 %v6103_v4, %s7123_s18  ;;  %v3549_v4 = vld [vmem:[%s12022_s2 + $0xc0] sm:$0xff] }
 0x288   :  { %918 = vst.msk [vmem:[#allocation2 + $0x228] sm:$0x1] %vm897_vm5, %v7122_v17  ;;  %3969 = vmatpush.msrb.mxu2 %v3549_v4 }
 0x289   :  { %919 = vst.msk [vmem:[#allocation2 + $0x240] sm:$0x1] %vm897_vm5, %v7122_v17 }
 0x28a   :  { %920 = vst.msk [vmem:[#allocation2 + $0x258] sm:$0x1] %vm897_vm5, %v7122_v17 }
 0x28b   :  { %921 = vst.msk [vmem:[#allocation2 + $0x270] sm:$0x1] %vm897_vm5, %v7122_v17 }
 0x28c   :  { %922 = vst.msk [vmem:[#allocation2 + $0x288] sm:$0x1] %vm897_vm5, %v7122_v17 }
 0x28d   :  { %923 = vst.msk [vmem:[#allocation2 + $0x2a0] sm:$0x1] %vm897_vm5, %v7122_v17 }
 0x28e   :  { %924 = vst.msk [vmem:[#allocation2 + $0x2b8] sm:$0x1] %vm897_vm5, %v7122_v17 }
 0x28f   :  { %925 = vst.msk [vmem:[#allocation2 + $0x2d0] sm:$0x1] %vm897_vm5, %v7122_v17 }
 0x290   :  { %926 = vst.msk [vmem:[#allocation2 + $0x2e8] sm:$0x1] %vm897_vm5, %v7122_v17 }
 0x291   :  { %927 = vst.msk [vmem:[#allocation2 + $0x300] sm:$0x1] %vm897_vm5, %v7122_v17 }
 0x292   :  { %928 = vst.msk [vmem:[#allocation2 + $0x318] sm:$0x1] %vm897_vm5, %v7122_v17 }
 0x293   :  { %929 = vst.msk [vmem:[#allocation2 + $0x330] sm:$0x1] %vm897_vm5, %v7122_v17 }
 0x294   :  { %930 = vst.msk [vmem:[#allocation2 + $0x29] sm:$0x1] %vm897_vm5, %v7122_v17 }
 0x295   :  { %931 = vst.msk [vmem:[#allocation2 + $0x41] sm:$0x1] %vm897_vm5, %v7122_v17 }
 0x296   :  { %932 = vst.msk [vmem:[#allocation2 + $0x59] sm:$0x1] %vm897_vm5, %v7122_v17 }
 0x297   :  { %933 = vst.msk [vmem:[#allocation2 + $0x71] sm:$0x1] %vm897_vm5, %v7122_v17 }
 0x298   :  { %934 = vst.msk [vmem:[#allocation2 + $0x89] sm:$0x1] %vm897_vm5, %v7122_v17 }
 0x299   :  { %935 = vst.msk [vmem:[#allocation2 + $0xa1] sm:$0x1] %vm897_vm5, %v7122_v17 }
 0x29a   :  { %936 = vst.msk [vmem:[#allocation2 + $0xb9] sm:$0x1] %vm897_vm5, %v7122_v17 }
 0x29b   :  { %937 = vst.msk [vmem:[#allocation2 + $0xd1] sm:$0x1] %vm897_vm5, %v7122_v17  ;;  %v1347_v8 = vld [vmem:[#allocation2 + $0x22] sm:$0xff] }
 0x29c   :  { %938 = vst.msk [vmem:[#allocation2 + $0xe9] sm:$0x1] %vm897_vm5, %v7122_v17  ;;  %v8358_v31 = vld [vmem:[#allocation2 + $0x3a] sm:$0xff]  ;;  %v6123_v42 = vpack.i.bf16 %v1347_v8, %v1414_v37 }
 0x29d   :  { %939 = vst.msk [vmem:[#allocation2 + $0x101] sm:$0x1] %vm897_vm5, %v7122_v17  ;;  %5902 = vmatmul.msk.f32.gmra.mxu0 %vm325_vm0, %v8358_v31  ;;  %v8417_v47 = vld [vmem:[#allocation2 + $0x52] sm:$0xff]  ;;  %v6118_v35 = vpack.i.bf16 %v8435_v57, %v8358_v31  ;;  %v6153_v12 = vpack.i.bf16 %v8358_v31, %v1416_v59 }
 0x29e   :  { %940 = vst.msk [vmem:[#allocation2 + $0x119] sm:$0x1] %vm897_vm5, %v7122_v17  ;;  %v8466_v20 = vld [vmem:[#allocation2 + $0x6a] sm:$0xff]  ;;  %v6148_v5 = vpack.i.bf16 %v8473_v30, %v8417_v47 }
 0x29f   :  { %941 = vst.msk [vmem:[#allocation2 + $0x131] sm:$0x1] %vm897_vm5, %v7122_v17  ;;  %6119 = vrot.lane.b32.xlu0 %v6118_v35, %s7123_s18  ;;  %v8509_v63 = vld [vmem:[#allocation2 + $0x82] sm:$0xff]  ;;  %v6178_v21 = vpack.i.bf16 %v8517_v25, %v8466_v20  ;;  %v6158_v35 = vpack.i.bf16 %v1414_v37, %v8557_v26 }
 0x2a0   :  { %942 = vst.msk [vmem:[#allocation2 + $0x149] sm:$0x1] %vm897_vm5, %v7122_v17  ;;  %v8552_v31 = vld [vmem:[#allocation2 + $0x9a] sm:$0xff]  ;;  %v6208_v49 = vpack.i.bf16 %v8557_v26, %v8509_v63  ;;  %v8601_v37 = vld [vmem:[#allocation2 + $0xc2] sm:$0xff] }
 0x2a1   :  { %943 = vst.msk [vmem:[#allocation2 + $0x161] sm:$0x1] %vm897_vm5, %v7122_v17  ;;  %v8588_v1 = vld [vmem:[#allocation2 + $0xb2] sm:$0xff] }
 0x2a2   :  { %944 = vst.msk [vmem:[#allocation2 + $0x179] sm:$0x1] %vm897_vm5, %v7122_v17 }
 0x2a3   :  { %945 = vst.msk [vmem:[#allocation2 + $0x191] sm:$0x1] %vm897_vm5, %v7122_v17 }
 0x2a4   :  { %946 = vst.msk [vmem:[#allocation2 + $0x1d9] sm:$0x1] %vm897_vm5, %v7122_v17 }
 0x2a5   :  { %947 = vst.msk [vmem:[#allocation2 + $0x1f1] sm:$0x1] %vm897_vm5, %v7122_v17  ;;  %5903 = vmatmul.msk.f32.gmra.mxu0 %vm325_vm0, %v8389_v22  ;;  %v8572_v22 = vld [vmem:[#allocation2 + $0xaa] sm:$0xff] }
 0x2a6   :  { %948 = vst.msk [vmem:[#allocation2 + $0x209] sm:$0x1] %vm897_vm5, %v7122_v17 }
 0x2a7   :  { %949 = vst.msk [vmem:[#allocation2 + $0x221] sm:$0x1] %vm897_vm5, %v7122_v17  ;;  %6134 = vrot.lane.b32.xlu0 %v6133_v61, %s7123_s18 }
 0x2a8   :  { %950 = vst.msk [vmem:[#allocation2 + $0x239] sm:$0x1] %vm897_vm5, %v7122_v17 }
 0x2a9   :  { %951 = vst.msk [vmem:[#allocation2 + $0x251] sm:$0x1] %vm897_vm5, %v7122_v17 }
 0x2aa   :  { %952 = vst.msk [vmem:[#allocation2 + $0x269] sm:$0x1] %vm897_vm5, %v7122_v17 }
 0x2ab   :  { %954 = vst.msk [vmem:[#allocation2 + $0x299] sm:$0x1] %vm897_vm5, %v7122_v17 }
 0x2ac   :  { %955 = vst.msk [vmem:[#allocation2 + $0x2b1] sm:$0x1] %vm897_vm5, %v7122_v17 }
 0x2ad   :  { %956 = vst.msk [vmem:[#allocation2 + $0x2c9] sm:$0x1] %vm897_vm5, %v7122_v17  ;;  %5904 = vmatmul.msk.f32.gmra.mxu0 %vm325_vm0, %v8417_v47 }
 0x2ae   :  { %957 = vst.msk [vmem:[#allocation2 + $0x2e1] sm:$0x1] %vm897_vm5, %v7122_v17 }
 0x2af   :  { %958 = vst.msk [vmem:[#allocation2 + $0x2f9] sm:$0x1] %vm897_vm5, %v7122_v17  ;;  %6149 = vrot.lane.b32.xlu0 %v6148_v5, %s7123_s18 }
 0x2b0   :  { %959 = vst.msk [vmem:[#allocation2 + $0x311] sm:$0x1] %vm897_vm5, %v7122_v17 }
 0x2b1   :  { %960 = vst.msk [vmem:[#allocation2 + $0x329] sm:$0x1] %vm897_vm5, %v7122_v17 }
 0x2b2   :  { %961 = vst.msk [vmem:[#allocation2 + $0x341] sm:$0x1] %vm897_vm5, %v7122_v17  ;;  %v1586_v53 = vld [vmem:[#allocation2 + $0x292] sm:$0xff] }
 0x2b3   :  { %885 = vst.msk [vmem:[#allocation2 + $0x10] sm:$0x3] %vm884_vm6, %v7122_v17  ;;  %5948 = vmatmul.msk.f32.gmra.mxu3 %vm325_vm0, %v1586_v53  ;;  %v1588_v38 = vld [vmem:[#allocation2 + $0x2aa] sm:$0xff] }
 0x2b4   :  { %888 = vst.msk [vmem:[#allocation2 + $0x1c0] sm:$0x3] %vm884_vm6, %v7122_v17  ;;  %v1590_v29 = vld [vmem:[#allocation2 + $0x2c2] sm:$0xff] }
 0x2b5   :  { %892 = vst.msk [vmem:[#allocation2 + $0x1a8] sm:$0x3] %vm884_vm6, %v7122_v17  ;;  %5905 = vmatmul.msk.f32.gmra.mxu0 %vm325_vm0, %v8450_v52  ;;  %v1592_v53 = vld [vmem:[#allocation2 + $0x2da] sm:$0xff] }
 0x2b6   :  { %895 = vst.msk [vmem:[#allocation2 + $0x358] sm:$0x3] %vm884_vm6, %v7122_v17  ;;  %v6138_v17 = vpack.i.bf16 %v8184_v56, %v1415_v15  ;;  %v8532_v56 = vld [vmem:[#allocation2 + $0x92] sm:$0xff] }
 0x2b7   :  { %6164 = vrot.lane.b32.xlu0 %v6163_v58, %s7123_s18  ;;  %v1595_v58 = vld [vmem:[#allocation2 + $0x302] sm:$0xff] }
 0x2ba   :  { %v1155_v6 = vld [vmem:[#allocation2 + $0xa] sm:$0xff] }
 0x2bb   :  { %v1091_v11 = vld [vmem:[#allocation2 + $0x9] sm:$0xff]  ;;  %v6093_v54 = vpack.i.bf16 %v1155_v6, %v1412_v55  ;;  %5949 = vmatmul.msk.f32.gmra.mxu3 %vm325_vm0, %v1587_v34  ;;  %v3548_v55 = vld [vmem:[%s12022_s2 + $0xb8] sm:$0xff] }
 0x2bc   :  { %v6088_v18 = vpack.i.bf16 %v1091_v11, %v1347_v8  ;;  %v3531_v8 = vld [vmem:[%s12022_s2 + $0x30] sm:$0xff]  ;;  %3970 = vmatpush.msrb.mxu2 %v3548_v55  ;;  %v1481_v6 = vld [vmem:[#allocation2 + $0x79] sm:$0xff]  ;;  %v3526_v55 = vld [vmem:[%s12022_s2 + $0x8] sm:$0xff] }
 0x2bd   :  { %6094 = vrot.lane.b32.xlu2 %v6093_v54, %s7125_s22  ;;  %5906 = vmatmul.msk.f32.gmra.mxu0 %vm325_vm0, %v8466_v20  ;;  %v1418_v11 = vld [vmem:[#allocation2 + $0x80] sm:$0xff]  ;;  %v1593_v34 = vld [vmem:[#allocation2 + $0x2ea] sm:$0xff]  ;;  %v6173_v54 = vpack.i.bf16 %v1415_v15, %v1481_v6  ;;  %v6223_v61 = vpack.i.bf16 %v1481_v6, %v8532_v56 }
 0x2be   :  { %6089 = vrot.lane.b32.xlu1 %v6088_v18, %s7123_s18  ;;  %3762 = vmatpush.msrb.mxu1 %v3531_v8  ;;  %v6183_v18 = vpack.i.bf16 %v8417_v47, %v1418_v11  ;;  %v3546_v47 = vld [vmem:[%s12022_s2 + $0xa8] sm:$0xff] }
 0x2bf   :  { %6179 = vrot.lane.b32.xlu0 %v6178_v21, %s7123_s18  ;;  %3971 = vmatpush.msrb.mxu2 %v3547_v43  ;;  %v8617_v15 = vld [vmem:[#allocation2 + $0xca] sm:$0xff]  ;;  %v1598_v6 = vld [vmem:[#allocation2 + $0x322] sm:$0xff]  ;;  %v8677_v43 = vld [vmem:[#allocation2 + $0xf2] sm:$0xff] }
 0x2c0   :  { %3763 = vmatpush.msrb.mxu1 %v3530_v36  ;;  %v1596_v21 = vld [vmem:[#allocation2 + $0x30a] sm:$0xff] }
 0x2c1   :  { %3972 = vmatpush.msrb.mxu2 %v3546_v47  ;;  %v8681_v47 = vld [vmem:[#allocation2 + $0xc8] sm:$0xff] }
 0x2c3   :  { %5950 = vmatmul.msk.f32.gmra.mxu3 %vm325_vm0, %v1588_v38  ;;  %v1482_v38 = vld [vmem:[#allocation2 + $0x81] sm:$0xff] }
 0x2c4   :  { %v6188_v5 = vpack.i.bf16 %v1416_v59, %v1482_v38  ;;  %v6238_v13 = vpack.i.bf16 %v1482_v38, %v8552_v31 }
 0x2c5   :  { %6099 = vrot.lane.b32.xlu2 %v6098_v16, %s7124_s19  ;;  %5907 = vmatmul.msk.f32.gmra.mxu0 %vm325_vm0, %v8489_v51  ;;  %v1419_v16 = vld [vmem:[#allocation2 + $0x90] sm:$0xff] }
 0x2c6   :  { %6109 = vrot.lane.b32.xlu1 %v6108_v2, %s7125_s22  ;;  %v1594_v2 = vld [vmem:[#allocation2 + $0x2f2] sm:$0xff]  ;;  %v6198_v9 = vpack.i.bf16 %v8450_v52, %v1419_v16  ;;  %v3529_v52 = vld [vmem:[%s12022_s2 + $0x20] sm:$0xff] }
 0x2c7   :  { %6194 = vrot.lane.b32.xlu0 %v6193_v24, %s7123_s18  ;;  %3764 = vmatpush.msrb.mxu1 %v3529_v52  ;;  %v3527_v24 = vld [vmem:[%s12022_s2 + $0x10] sm:$0xff] }
 0x2cb   :  { %5951 = vmatmul.msk.f32.gmra.mxu3 %vm325_vm0, %v1589_v23  ;;  %v1483_v23 = vld [vmem:[#allocation2 + $0x91] sm:$0xff] }
 0x2cc   :  { %v6203_v40 = vpack.i.bf16 %v1417_v50, %v1483_v23  ;;  %v6253_v45 = vpack.i.bf16 %v1483_v23, %v8572_v22  ;;  %v6273_v23 = vpack.i.bf16 %v8552_v31, %v8681_v47 }
 0x2cd   :  { %6114 = vrot.lane.b32.xlu2 %v6113_v19, %s7124_s19  ;;  %5908 = vmatmul.msk.f32.gmra.mxu0 %vm325_vm0, %v8509_v63  ;;  %v1420_v19 = vld [vmem:[#allocation2 + $0x98] sm:$0xff] }
 0x2ce   :  { %6124 = vrot.lane.b32.xlu1 %v6123_v42, %s7125_s22  ;;  %v3545_v42 = vld [vmem:[%s12022_s2 + $0xa0] sm:$0xff]  ;;  %v6213_v0 = vpack.i.bf16 %v8466_v20, %v1420_v19  ;;  %v3528_v20 = vld [vmem:[%s12022_s2 + $0x18] sm:$0xff] }
 0x2cf   :  { %6209 = vrot.lane.b32.xlu0 %v6208_v49, %s7123_s18  ;;  %3973 = vmatpush.msrb.mxu2 %v3545_v42  ;;  %v8663_v49 = vld [vmem:[#allocation2 + $0xc0] sm:$0xff] }
 0x2d0   :  { %3765 = vmatpush.msrb.mxu1 %v3528_v20 }
 0x2d2   :  { %3766 = vmatpush.msrb.mxu1 %v3527_v24 }
 0x2d3   :  { %5952 = vmatmul.msk.f32.gmra.mxu3 %vm325_vm0, %v1590_v29  ;;  %v1484_v29 = vld [vmem:[#allocation2 + $0x99] sm:$0xff] }
 0x2d4   :  { %v6218_v32 = vpack.i.bf16 %v1418_v11, %v1484_v29  ;;  %v6268_v59 = vpack.i.bf16 %v1484_v29, %v8588_v1  ;;  %3767 = vmatpush.msrb.mxu1 %v3526_v55 }
 0x2d5   :  { %6129 = vrot.lane.b32.xlu2 %v6128_v10, %s7124_s19  ;;  %5909 = vmatmul.msk.f32.gmra.mxu0 %vm325_vm0, %v8532_v56  ;;  %v8622_v10 = vld [vmem:[#allocation2 + $0xa8] sm:$0xff] }
 0x2d6   :  { %6139 = vrot.lane.b32.xlu1 %v6138_v17, %s7125_s22  ;;  %v3544_v17 = vld [vmem:[%s12022_s2 + $0x98] sm:$0xff]  ;;  %v6228_v41 = vpack.i.bf16 %v8489_v51, %v8622_v10  ;;  %v3543_v51 = vld [vmem:[%s12022_s2 + $0x90] sm:$0xff] }
 0x2d7   :  { %6224 = vrot.lane.b32.xlu0 %v6223_v61, %s7123_s18  ;;  %3974 = vmatpush.msrb.mxu2 %v3544_v17  ;;  %v1487_v61 = vld [vmem:[#allocation2 + $0xc1] sm:$0xff] }
 0x2d9   :  { %3975 = vmatpush.msrb.mxu2 %v3543_v51 }
 0x2db   :  { %5953 = vmatmul.msk.f32.gmra.mxu3 %vm325_vm0, %v1591_v33  ;;  %v8636_v33 = vld [vmem:[#allocation2 + $0xda] sm:$0xff] }
 0x2dc   :  { %v6313_v17 = vpack.i.bf16 %v1487_v61, %v8636_v33 }
 0x2dd   :  { %6144 = vrot.lane.b32.xlu2 %v6143_v60, %s7124_s19  ;;  %5910 = vmatmul.msk.f32.gmra.mxu0 %vm325_vm0, %v8552_v31  ;;  %v1485_v60 = vld [vmem:[#allocation2 + $0xa9] sm:$0xff] }
 0x2de   :  { %6154 = vrot.lane.b32.xlu1 %v6153_v12, %s7125_s22  ;;  %v8641_v12 = vld [vmem:[#allocation2 + $0xb0] sm:$0xff]  ;;  %v6233_v4 = vpack.i.bf16 %v1419_v16, %v1485_v60 }
 0x2df   :  { %6239 = vrot.lane.b32.xlu0 %v6238_v13, %s7123_s18  ;;  %v6243_v50 = vpack.i.bf16 %v8509_v63, %v8641_v12  ;;  %v1486_v63 = vld [vmem:[#allocation2 + $0xb1] sm:$0xff] }
 0x2e0   :  { %v6248_v11 = vpack.i.bf16 %v1420_v19, %v1486_v63  ;;  %v1599_v19 = vld [vmem:[#allocation2 + $0x332] sm:$0xff] }
 0x2e3   :  { %5954 = vmatmul.msk.f32.gmra.mxu3 %vm325_vm0, %v1592_v53  ;;  %v6283_v53 = vpack.i.bf16 %v1485_v60, %v8601_v37  ;;  %v1600_v60 = vld [vmem:[#allocation2 + $0x33a] sm:$0xff] }
 0x2e5   :  { %6159 = vrot.lane.b32.xlu2 %v6158_v35, %s7124_s19  ;;  %5911 = vmatmul.msk.f32.gmra.mxu0 %vm325_vm0, %v8572_v22  ;;  %v3542_v35 = vld [vmem:[%s12022_s2 + $0x88] sm:$0xff] }
 0x2e6   :  { %6169 = vrot.lane.b32.xlu1 %v6168_v46, %s7125_s22  ;;  %3976 = vmatpush.msrb.mxu2 %v3542_v35  ;;  %v8658_v46 = vld [vmem:[#allocation2 + $0xe2] sm:$0xff] }
 0x2e7   :  { %6254 = vrot.lane.b32.xlu0 %v6253_v45, %s7123_s18 }
 0x2e9   :  { %v6075_v8 = vpop.permute.xlu0 %6074 }
 0x2ea   :  { %v6076_v38 = vunpack.i.l.bf16 %v6075_v8 }
 0x2eb   :  { %5955 = vmatmul.msk.f32.gmra.mxu3 %vm325_vm0, %v1593_v34  ;;  %v6258_v34 = vpack.i.bf16 %v8532_v56, %v8663_v49  ;;  %v6077_v56 = vunpack.i.h.bf16 %v6075_v8  ;;  %v1490_v8 = vld [vmem:[#allocation2 + $0xe1] sm:$0xff] }
 0x2ec   :  { %v3333_v45 = vsel %vm325_vm0, %v8404_v62, %v6076_v38  ;;  %v1488_v62 = vld [vmem:[#allocation2 + $0xc9] sm:$0xff] }
 0x2ed   :  { %6174 = vrot.lane.b32.xlu2 %v6173_v54, %s7124_s19  ;;  %5912 = vmatmul.msk.f32.gmra.mxu0 %vm325_vm0, %v8588_v1  ;;  %v6298_v54 = vpack.i.bf16 %v1486_v63, %v8617_v15  ;;  %v6278_v51 = vpack.i.bf16 %v8641_v12, %v1488_v62  ;;  %v1489_v12 = vld [vmem:[#allocation2 + $0xd9] sm:$0xff] }
 0x2ee   :  { %6184 = vrot.lane.b32.xlu1 %v6183_v18, %s7125_s22  ;;  %v3541_v18 = vld [vmem:[%s12022_s2 + $0x80] sm:$0xff]  ;;  %v6293_v35 = vpack.i.bf16 %v8663_v49, %v1489_v12  ;;  %v6343_v55 = vpack.i.bf16 %v1489_v12, %v8677_v43 }
 0x2ef   :  { %6269 = vrot.lane.b32.xlu0 %v6268_v59, %s7123_s18  ;;  %3977 = vmatpush.msrb.mxu2 %v3541_v18  ;;  %v1027_v18 = vld [vmem:[#allocation2 + $0x8] sm:$0xff] }
 0x2f0   :  { %v6085_v16 = vpop.permute.xlu1 %6084 }
 0x2f1   :  { %v6080_v13 = vpop.permute.xlu0 %6079 }
 0x2f2   :  { %v6082_v52 = vunpack.i.h.bf16 %v6080_v13  ;;  %v6081_v42 = vunpack.i.l.bf16 %v6080_v13 }
 0x2f3   :  { %5956 = vmatmul.msk.f32.gmra.mxu3 %vm325_vm0, %v1594_v2  ;;  %v3525_v2 = vld [vmem:[%s12022_s2] sm:$0xff]  ;;  %s5887_s2 = sshll.u32 %s7126_s21, 4  ;;  %s5888_s2 = int_to_ptr.vmem [resolvable:$true] %s5887_s2 }
 0x2f4   :  { %3768 = vmatpush.msrb.mxu1 %v3525_v2 }
 0x2f5   :  { %6189 = vrot.lane.b32.xlu2 %v6188_v5, %s7124_s19  ;;  %5913 = vmatmul.msk.f32.gmra.mxu0 %vm325_vm0, %v8601_v37  ;;  %v1026_v5 = vld [vmem:[#allocation2] sm:$0xff] }
 0x2f6   :  { %6199 = vrot.lane.b32.xlu1 %v6198_v9, %s7125_s22  ;;  %v6263_v9 = vpack.i.bf16 %v8622_v10, %v1487_v61  ;;  %v3397_v10 = vsel %vm3203_vm7, %v3333_v45, %v6081_v42  ;;  %v8743_v61 = vpop.f32.mrf.mxu0  ;;  %v1491_v45 = vld [vmem:[#allocation2 + $0xf1] sm:$0xff] }
 0x2f7   :  { %6284 = vrot.lane.b32.xlu0 %v6283_v53, %s7123_s18  ;;  %v8724_v53 = vld [vmem:[#allocation2 + $0xe0] sm:$0xff] }
 0x2f8   :  { %v6303_v63 = vpack.i.bf16 %v8588_v1, %v8724_v53 }
 0x2f9   :  { %v6105_v59 = vpop.permute.xlu0 %6104 }
 0x2fa   :  { %v6106_v42 = vunpack.i.l.bf16 %v6105_v59 }
 0x2fb   :  { %5957 = vmatmul.msk.f32.gmra.mxu3 %vm325_vm0, %v1595_v58  ;;  %v6087_v58 = vunpack.i.h.bf16 %v6085_v16 }
 0x2fd   :  { %6204 = vrot.lane.b32.xlu2 %v6203_v40, %s7124_s19  ;;  %5914 = vmatmul.msk.f32.gmra.mxu0 %vm325_vm0, %v8617_v15  ;;  %v6086_v40 = vunpack.i.l.bf16 %v6085_v16  ;;  %v6308_v16 = vpack.i.bf16 %v8681_v47, %v1490_v8 }
 0x2fe   :  { %6214 = vrot.lane.b32.xlu1 %v6213_v0, %s7125_s22  ;;  %v3139_v0 = vsel %vm325_vm0, %v1026_v5, %v6077_v56 }
 0x2ff   :  { %6299 = vrot.lane.b32.xlu0 %v6298_v54, %s7123_s18  ;;  %v3204_v29 = vsel %vm3203_vm7, %v3139_v0, %v6082_v52  ;;  %v3461_v20 = vsel %vm3268_vm8, %v3397_v10, %v6086_v40  ;;  %v6107_v52 = vunpack.i.h.bf16 %v6105_v59  ;;  %v8762_v0 = vld [vmem:[#allocation2 + $0x122] sm:$0xff]  ;;  %v8766_v10 = vld [vmem:[#allocation2 + $0xf8] sm:$0xff] }
 0x300   :  { %v3269_v31 = vsel %vm3268_vm8, %v3204_v29, %v6087_v58  ;;  %3978 = vmatmul.f32.vlgmr.msrb.gmra.mxu2 %v3461_v20  ;;  %v3335_v20 = vsel %vm325_vm0, %v8353_v48, %v6106_v42 }
 0x301   :  { %3769 = vmatmul.f32.vlgmr.msrb.gmra.mxu1 %v3269_v31  ;;  %v3141_v31 = vsel %vm325_vm0, %v8348_v44, %v6107_v52 }
 0x303   :  { %5958 = vmatmul.msk.f32.gmra.mxu3 %vm325_vm0, %v1596_v21  ;;  %v8703_v21 = vld [vmem:[#allocation2 + $0xfa] sm:$0xff] }
 0x304   :  { %v6358_v40 = vpack.i.bf16 %v1490_v8, %v8703_v21 }
 0x305   :  { %6219 = vrot.lane.b32.xlu2 %v6218_v32, %s7124_s19  ;;  %5915 = vmatmul.msk.f32.gmra.mxu0 %vm325_vm0, %v8636_v33 }
 0x306   :  { %6229 = vrot.lane.b32.xlu1 %v6228_v41, %s7125_s22  ;;  %v8708_v41 = vld [vmem:[#allocation2 + $0xd8] sm:$0xff] }
 0x307   :  { %6314 = vrot.lane.b32.xlu0 %v6313_v17, %s7123_s18  ;;  %v6288_v24 = vpack.i.bf16 %v8572_v22, %v8708_v41  ;;  %v6323_v59 = vpack.i.bf16 %v8708_v41, %v1491_v45 }
 0x30b   :  { %5959 = vmatmul.msk.f32.gmra.mxu3 %vm325_vm0, %v1597_v14  ;;  %v6328_v14 = vpack.i.bf16 %v1488_v62, %v8658_v46 }
 0x30d   :  { %6234 = vrot.lane.b32.xlu2 %v6233_v4, %s7124_s19  ;;  %5916 = vmatmul.msk.f32.gmra.mxu0 %vm325_vm0, %v8658_v46  ;;  %v8717_v4 = vld [vmem:[#allocation2 + $0x10a] sm:$0xff] }
 0x30e   :  { %6244 = vrot.lane.b32.xlu1 %v6243_v50, %s7125_s22 }
 0x30f   :  { %6329 = vrot.lane.b32.xlu0 %v6328_v14, %s7123_s18 }
 0x311   :  { %v8726_v22 = vpop.permute.xlu0 %6119 }
 0x312   :  { %v6122_v12 = vunpack.i.h.bf16 %v8726_v22 }
 0x313   :  { %5960 = vmatmul.msk.f32.gmra.mxu3 %vm325_vm0, %v1598_v6  ;;  %v8734_v6 = vld [vmem:[#allocation2 + $0xf0] sm:$0xff] }
 0x314   :  { %v6318_v2 = vpack.i.bf16 %v8601_v37, %v8734_v6 }
 0x315   :  { %6249 = vrot.lane.b32.xlu2 %v6248_v11, %s7124_s19  ;;  %5917 = vmatmul.msk.f32.gmra.mxu0 %vm325_vm0, %v8677_v43  ;;  %v8736_v11 = vld [vmem:[#allocation2 + $0x112] sm:$0xff] }
 0x316   :  { %6259 = vrot.lane.b32.xlu1 %v6258_v34, %s7125_s22 }
 0x317   :  { %v8679_v36 = vpop.permute.xlu2 %6094  ;;  %6344 = vrot.lane.b32.xlu0 %v6343_v55, %s7123_s18  ;;  %v8793_v55 = vld [vmem:[#allocation2 + $0x12a] sm:$0xff] }
 0x318   :  { %v6097_v56 = vunpack.i.h.bf16 %v8679_v36  ;;  %v6096_v38 = vunpack.i.l.bf16 %v8679_v36 }
 0x319   :  { %v8750_v5 = vpop.permute.xlu0 %6134 }
 0x31b   :  { %5961 = vmatmul.msk.f32.gmra.mxu3 %vm325_vm0, %v1599_v19 }
 0x31d   :  { %6264 = vrot.lane.b32.xlu2 %v6263_v9, %s7124_s19  ;;  %5918 = vmatmul.msk.f32.gmra.mxu0 %vm325_vm0, %v8703_v21 }
 0x31e   :  { %6274 = vrot.lane.b32.xlu1 %v6273_v23, %s7125_s22 }
 0x31f   :  { %v6100_v32 = vpop.permute.xlu2 %6099  ;;  %6359 = vrot.lane.b32.xlu0 %v6358_v40, %s7123_s18 }
 0x320   :  { %v6102_v9 = vunpack.i.h.bf16 %v6100_v32  ;;  %v6101_v13 = vunpack.i.l.bf16 %v6100_v32 }
 0x321   :  { %v8775_v62 = vpop.permute.xlu0 %6149 }
 0x323   :  { %5962 = vmatmul.msk.f32.gmra.mxu3 %vm325_vm0, %v1600_v60  ;;  %v8778_v60 = vpop.f32.mrf.mxu0 }
 0x325   :  { %6279 = vrot.lane.b32.xlu2 %v6278_v51, %s7124_s19  ;;  %5919 = vmatmul.msk.f32.gmra.mxu0 %vm325_vm0, %v8717_v4  ;;  %v6333_v51 = vpack.i.bf16 %v8617_v15, %v8766_v10 }
 0x326   :  { %6289 = vrot.lane.b32.xlu1 %v6288_v24, %s7125_s22 }
 0x327   :  { %v8719_v50 = vpop.permute.xlu2 %6114 }
 0x328   :  { %v6117_v24 = vunpack.i.h.bf16 %v8719_v50  ;;  %v6116_v14 = vunpack.i.l.bf16 %v8719_v50  ;;  %v1492_v50 = vld [vmem:[#allocation2 + $0xf9] sm:$0xff] }
 0x329   :  { %v6388_v42 = vpack.i.bf16 %v1492_v50, %v8736_v11 }
 0x32b   :  { %v8817_v52 = vpop.f32.mrf.mxu0 }
 0x32d   :  { %6294 = vrot.lane.b32.xlu2 %v6293_v35, %s7124_s19  ;;  %5920 = vmatmul.msk.f32.gmra.mxu0 %vm325_vm0, %v8736_v11  ;;  %v6121_v35 = vunpack.i.l.bf16 %v8726_v22  ;;  %v3142_v22 = vsel %vm325_vm0, %v8471_v27, %v6122_v12 }
 0x32e   :  { %6304 = vrot.lane.b32.xlu1 %v6303_v63, %s7125_s22  ;;  %v6373_v63 = vpack.i.bf16 %v1491_v45, %v8717_v4 }
 0x32f   :  { %v8738_v34 = vpop.permute.xlu2 %6129 }
 0x330   :  { %v6090_v54 = vpop.permute.xlu1 %6089  ;;  %6374 = vrot.lane.b32.xlu0 %v6373_v63, %s7123_s18 }
 0x331   :  { %v6092_v1 = vunpack.i.h.bf16 %v6090_v54  ;;  %v6091_v49 = vunpack.i.l.bf16 %v6090_v54 }
 0x333   :  { %v3140_v23 = vsel %vm325_vm0, %v1027_v18, %v6092_v1  ;;  %v3334_v19 = vsel %vm325_vm0, %v8435_v57, %v6091_v49  ;;  %v8797_v18 = vld [vmem:[#allocation2 + $0x108] sm:$0xff]  ;;  %v3336_v1 = vsel %vm325_vm0, %v8473_v30, %v6121_v35  ;;  %v6132_v30 = vunpack.i.h.bf16 %v8738_v34 }
 0x334   :  { %v3205_v58 = vsel %vm3203_vm7, %v3140_v23, %v6097_v56  ;;  %v3398_v36 = vsel %vm3203_vm7, %v3334_v19, %v6096_v38  ;;  %v8806_v38 = vpop.permute.xlu0 %6164  ;;  %v6137_v23 = vunpack.i.h.bf16 %v8750_v5  ;;  %v6136_v19 = vunpack.i.l.bf16 %v8750_v5 }
 0x335   :  { %6309 = vrot.lane.b32.xlu2 %v6308_v16, %s7124_s19  ;;  %v3270_v37 = vsel %vm3268_vm8, %v3205_v58, %v6102_v9  ;;  %v3462_v47 = vsel %vm3268_vm8, %v3398_v36, %v6101_v13  ;;  %5921 = vmatmul.msk.f32.gmra.mxu0 %vm325_vm0, %v8762_v0  ;;  %v6338_v16 = vpack.i.bf16 %v8724_v53, %v1492_v50  ;;  %v6131_v13 = vunpack.i.l.bf16 %v8738_v34  ;;  %v8824_v58 = vld [vmem:[#allocation2 + $0x13a] sm:$0xff]  ;;  %v1493_v36 = vld [vmem:[#allocation2 + $0x109] sm:$0xff] }
 0x336   :  { %6319 = vrot.lane.b32.xlu1 %v6318_v2, %s7125_s22  ;;  %3772 = vmatmul.f32.gmra.mxu1 %v3270_v37  ;;  %v6348_v2 = vpack.i.bf16 %v8636_v33, %v8797_v18  ;;  %v8828_v37 = vld [vmem:[#allocation2 + $0x110] sm:$0xff]  ;;  %v3337_v40 = vsel %vm325_vm0, %v8494_v7, %v6136_v19  ;;  %v1495_v19 = vld [vmem:[#allocation2 + $0x121] sm:$0xff] }
 0x337   :  { %3981 = vmatmul.f32.gmra.mxu2 %v3462_v47  ;;  %v8764_v57 = vpop.permute.xlu2 %6144  ;;  %v3143_v47 = vsel %vm325_vm0, %v8377_v28, %v6137_v23  ;;  %v8883_v23 = vld [vmem:[#allocation2 + $0x152] sm:$0xff] }
 0x338   :  { %v6110_v29 = vpop.permute.xlu1 %6109  ;;  %6389 = vrot.lane.b32.xlu0 %v6388_v42, %s7123_s18  ;;  %v6147_v7 = vunpack.i.h.bf16 %v8764_v57 }
 0x339   :  { %v6112_v17 = vunpack.i.h.bf16 %v6110_v29  ;;  %v6111_v32 = vunpack.i.l.bf16 %v6110_v29 }
 0x33b   :  { %v3206_v44 = vsel %vm3203_vm7, %v3141_v31, %v6112_v17  ;;  %v3399_v48 = vsel %vm3203_vm7, %v3335_v20, %v6111_v32  ;;  %v6353_v20 = vpack.i.bf16 %v8734_v6, %v1493_v36  ;;  %v6363_v17 = vpack.i.bf16 %v8658_v46, %v8828_v37 }
 0x33c   :  { %v3271_v41 = vsel %vm3268_vm8, %v3206_v44, %v6117_v24  ;;  %v3463_v15 = vsel %vm3268_vm8, %v3399_v48, %v6116_v14  ;;  %v8837_v31 = vpop.permute.xlu0 %6179  ;;  %v6151_v44 = vunpack.i.l.bf16 %v8775_v62  ;;  %v6403_v48 = vpack.i.bf16 %v1493_v36, %v8762_v0  ;;  %v8853_v24 = vpop.f32.mrf.mxu0  ;;  %v1031_v14 = vld [vmem:[#allocation2 + $0x38] sm:$0xff] }
 0x33d   :  { %6324 = vrot.lane.b32.xlu2 %v6323_v59, %s7124_s19  ;;  %5922 = vmatmul.msk.f32.gmra.mxu0 %vm325_vm0, %v8793_v55  ;;  %v6146_v59 = vunpack.i.l.bf16 %v8764_v57  ;;  %v8855_v57 = vld [vmem:[#allocation2 + $0x142] sm:$0xff] }
 0x33e   :  { %6334 = vrot.lane.b32.xlu1 %v6333_v51, %s7125_s22  ;;  %3775 = vmatmul.f32.gmra.mxu1 %v3271_v41  ;;  %v6152_v51 = vunpack.i.h.bf16 %v8775_v62  ;;  %v1494_v62 = vld [vmem:[#allocation2 + $0x111] sm:$0xff]  ;;  %v8859_v41 = vld [vmem:[#allocation2 + $0x120] sm:$0xff]  ;;  %v3338_v63 = vsel %vm325_vm0, %v8517_v25, %v6151_v44 }
 0x33f   :  { %3984 = vmatmul.f32.gmra.mxu2 %v3463_v15  ;;  %v8795_v8 = vpop.permute.xlu2 %6159  ;;  %v8913_v44 = vld [vmem:[#allocation2 + $0x15a] sm:$0xff] }
 0x340   :  { %v6125_v54 = vpop.permute.xlu1 %6124  ;;  %v3144_v15 = vsel %vm325_vm0, %v1031_v14, %v6152_v51  ;;  %6404 = vrot.lane.b32.xlu0 %v6403_v48, %s7123_s18  ;;  %v6162_v25 = vunpack.i.h.bf16 %v8795_v8  ;;  %v1033_v51 = vld [vmem:[#allocation2 + $0x50] sm:$0xff] }
 0x341   :  { %v6127_v49 = vunpack.i.h.bf16 %v6125_v54  ;;  %v6126_v56 = vunpack.i.l.bf16 %v6125_v54 }
 0x343   :  { %v3207_v9 = vsel %vm3203_vm7, %v3142_v22, %v6127_v49  ;;  %v3400_v27 = vsel %vm3203_vm7, %v3336_v1, %v6126_v56  ;;  %v6368_v1 = vpack.i.bf16 %v8766_v10, %v1494_v62  ;;  %v6378_v49 = vpack.i.bf16 %v8677_v43, %v8859_v41 }
 0x344   :  { %v3272_v33 = vsel %vm3268_vm8, %v3207_v9, %v6132_v30  ;;  %v3464_v53 = vsel %vm3268_vm8, %v3400_v27, %v6131_v13  ;;  %v8867_v22 = vpop.permute.xlu0 %6194  ;;  %v6167_v9 = vunpack.i.h.bf16 %v8806_v38  ;;  %v6166_v27 = vunpack.i.l.bf16 %v8806_v38  ;;  %v1032_v13 = vld [vmem:[#allocation2 + $0x48] sm:$0xff]  ;;  %v8895_v36 = vpop.f32.mrf.mxu0 }
 0x345   :  { %6339 = vrot.lane.b32.xlu2 %v6338_v16, %s7124_s19  ;;  %5923 = vmatmul.msk.f32.gmra.mxu0 %vm325_vm0, %v8824_v58  ;;  %v6418_v30 = vpack.i.bf16 %v1494_v62, %v8793_v55  ;;  %v8887_v38 = vld [vmem:[#allocation2 + $0x128] sm:$0xff] }
 0x346   :  { %6349 = vrot.lane.b32.xlu1 %v6348_v2, %s7125_s22  ;;  %3778 = vmatmul.f32.gmra.mxu1 %v3272_v33  ;;  %v6161_v2 = vunpack.i.l.bf16 %v8795_v8  ;;  %v3339_v42 = vsel %vm325_vm0, %v8537_v39, %v6166_v27  ;;  %v1290_v27 = vld [vmem:[#allocation2 + $0x79] sm:$0xff] }
 0x347   :  { %3987 = vmatmul.f32.gmra.mxu2 %v3464_v53  ;;  %v8826_v34 = vpop.permute.xlu2 %6174  ;;  %v3145_v53 = vsel %vm325_vm0, %v1032_v13, %v6167_v9  ;;  %v1034_v9 = vld [vmem:[#allocation2 + $0x60] sm:$0xff] }
 0x348   :  { %v6140_v5 = vpop.permute.xlu1 %6139  ;;  %6419 = vrot.lane.b32.xlu0 %v6418_v30, %s7123_s18  ;;  %v8947_v30 = vld [vmem:[#allocation2 + $0x140] sm:$0xff] }
 0x349   :  { %v6142_v45 = vunpack.i.h.bf16 %v6140_v5  ;;  %v6141_v29 = vunpack.i.l.bf16 %v6140_v5 }
 0x34b   :  { %v3208_v32 = vsel %vm3203_vm7, %v3143_v47, %v6142_v45  ;;  %v3401_v28 = vsel %vm3203_vm7, %v3337_v40, %v6141_v29  ;;  %v6383_v45 = vpack.i.bf16 %v8797_v18, %v1495_v19  ;;  %v6393_v29 = vpack.i.bf16 %v8703_v21, %v8887_v38 }
 0x34c   :  { %v3273_v6 = vsel %vm3268_vm8, %v3208_v32, %v6147_v7  ;;  %v3465_v46 = vsel %vm3268_vm8, %v3401_v28, %v6146_v59  ;;  %v8897_v40 = vpop.permute.xlu0 %6209  ;;  %v6176_v32 = vunpack.i.l.bf16 %v8826_v34  ;;  %v6182_v28 = vunpack.i.h.bf16 %v8837_v31 }
 0x34d   :  { %6354 = vrot.lane.b32.xlu2 %v6353_v20, %s7124_s19  ;;  %5924 = vmatmul.msk.f32.gmra.mxu0 %vm325_vm0, %v8855_v57  ;;  %v6181_v7 = vunpack.i.l.bf16 %v8837_v31  ;;  %v6433_v59 = vpack.i.bf16 %v1495_v19, %v8824_v58  ;;  %v8917_v31 = vld [vmem:[#allocation2 + $0x138] sm:$0xff] }
 0x34e   :  { %6364 = vrot.lane.b32.xlu1 %v6363_v17, %s7125_s22  ;;  %3781 = vmatmul.f32.gmra.mxu1 %v3273_v6  ;;  %v6177_v17 = vunpack.i.h.bf16 %v8826_v34  ;;  %v1496_v6 = vld [vmem:[#allocation2 + $0x129] sm:$0xff]  ;;  %v3146_v48 = vsel %vm325_vm0, %v1033_v51, %v6182_v28 }
 0x34f   :  { %3990 = vmatmul.f32.gmra.mxu2 %v3465_v46  ;;  %v8857_v12 = vpop.permute.xlu2 %6189  ;;  %v3340_v14 = vsel %vm325_vm0, %v8557_v26, %v6181_v7 }
 0x350   :  { %v6155_v35 = vpop.permute.xlu1 %6154  ;;  %6434 = vrot.lane.b32.xlu0 %v6433_v59, %s7123_s18 }
 0x351   :  { %v6157_v50 = vunpack.i.h.bf16 %v6155_v35  ;;  %v6156_v54 = vunpack.i.l.bf16 %v6155_v35 }
 0x353   :  { %v3209_v56 = vsel %vm3203_vm7, %v3144_v15, %v6157_v50  ;;  %v3402_v16 = vsel %vm3203_vm7, %v3338_v63, %v6156_v54  ;;  %v8927_v63 = vpop.f32.mrf.mxu0  ;;  %v6398_v50 = vpack.i.bf16 %v8828_v37, %v1496_v6  ;;  %v6408_v54 = vpack.i.bf16 %v8717_v4, %v8917_v31 }
 0x354   :  { %v3274_v10 = vsel %vm3268_vm8, %v3209_v56, %v6162_v25  ;;  %v3466_v43 = vsel %vm3268_vm8, %v3402_v16, %v6161_v2  ;;  %v8925_v15 = vpop.permute.xlu0 %6224  ;;  %v6191_v56 = vunpack.i.l.bf16 %v8857_v12  ;;  %v6197_v16 = vunpack.i.h.bf16 %v8867_v22 }
 0x355   :  { %6369 = vrot.lane.b32.xlu2 %v6368_v1, %s7124_s19  ;;  %5925 = vmatmul.msk.f32.gmra.mxu0 %vm325_vm0, %v8883_v23  ;;  %v6196_v25 = vunpack.i.l.bf16 %v8867_v22  ;;  %v6448_v2 = vpack.i.bf16 %v1496_v6, %v8855_v57  ;;  %v8976_v6 = vld [vmem:[#allocation2 + $0x150] sm:$0xff] }
 0x356   :  { %6379 = vrot.lane.b32.xlu1 %v6378_v49, %s7125_s22  ;;  %3784 = vmatmul.f32.gmra.mxu1 %v3274_v10  ;;  %v6192_v49 = vunpack.i.h.bf16 %v8857_v12  ;;  %v8943_v10 = vld [vmem:[#allocation2 + $0x16a] sm:$0xff]  ;;  %v3147_v13 = vsel %vm325_vm0, %v1034_v9, %v6197_v16  ;;  %v6227_v16 = vunpack.i.h.bf16 %v8925_v15  ;;  %v9001_v9 = vld [vmem:[#allocation2 + $0x182] sm:$0xff] }
 0x357   :  { %3993 = vmatmul.f32.gmra.mxu2 %v3466_v43  ;;  %v8885_v8 = vpop.permute.xlu2 %6204  ;;  %v1497_v43 = vld [vmem:[#allocation2 + $0x139] sm:$0xff]  ;;  %v3341_v19 = vsel %vm325_vm0, %v1290_v27, %v6196_v25  ;;  %v6226_v25 = vunpack.i.l.bf16 %v8925_v15  ;;  %v1499_v15 = vld [vmem:[#allocation2 + $0x151] sm:$0xff] }
 0x358   :  { %v6170_v33 = vpop.permute.xlu1 %6169  ;;  %6449 = vrot.lane.b32.xlu0 %v6448_v2, %s7123_s18  ;;  %v6463_v7 = vpack.i.bf16 %v1497_v43, %v8883_v23  ;;  %v1036_v2 = vld [vmem:[#allocation2 + $0x78] sm:$0xff] }
 0x359   :  { %v6172_v5 = vunpack.i.h.bf16 %v6170_v33  ;;  %v6171_v47 = vunpack.i.l.bf16 %v6170_v33 }
 0x35b   :  { %v3210_v20 = vsel %vm3203_vm7, %v3145_v53, %v6172_v5  ;;  %v3403_v39 = vsel %vm3203_vm7, %v3339_v42, %v6171_v47  ;;  %v6413_v5 = vpack.i.bf16 %v8859_v41, %v1497_v43  ;;  %v6423_v47 = vpack.i.bf16 %v8736_v11, %v8947_v30  ;;  %v8965_v28 = vpop.f32.mrf.mxu0 }
 0x35c   :  { %v3275_v18 = vsel %vm3268_vm8, %v3210_v20, %v6177_v17  ;;  %v3467_v21 = vsel %vm3268_vm8, %v3403_v39, %v6176_v32  ;;  %v8954_v42 = vpop.permute.xlu0 %6239  ;;  %v6207_v20 = vunpack.i.h.bf16 %v8885_v8  ;;  %v6206_v39 = vunpack.i.l.bf16 %v8885_v8  ;;  %v1291_v8 = vld [vmem:[#allocation2 + $0x81] sm:$0xff] }
 0x35d   :  { %6384 = vrot.lane.b32.xlu2 %v6383_v45, %s7124_s19  ;;  %5926 = vmatmul.msk.f32.gmra.mxu0 %vm325_vm0, %v8913_v44  ;;  %v6212_v17 = vunpack.i.h.bf16 %v8897_v40  ;;  %v6211_v32 = vunpack.i.l.bf16 %v8897_v40  ;;  %v1498_v40 = vld [vmem:[#allocation2 + $0x141] sm:$0xff] }
 0x35e   :  { %6394 = vrot.lane.b32.xlu1 %v6393_v29, %s7125_s22  ;;  %3787 = vmatmul.f32.gmra.mxu1 %v3275_v18  ;;  %v1035_v18 = vld [vmem:[#allocation2 + $0x68] sm:$0xff] }
 0x35f   :  { %3996 = vmatmul.f32.gmra.mxu2 %v3467_v21  ;;  %v8915_v34 = vpop.permute.xlu2 %6219  ;;  %v8972_v21 = vld [vmem:[#allocation2 + $0x172] sm:$0xff] }
 0x360   :  { %v6185_v46 = vpop.permute.xlu1 %6184  ;;  %6464 = vrot.lane.b32.xlu0 %v6463_v7, %s7123_s18  ;;  %v1037_v7 = vld [vmem:[#allocation2 + $0x80] sm:$0xff] }
 0x361   :  { %v6187_v62 = vunpack.i.h.bf16 %v6185_v46  ;;  %v6186_v35 = vunpack.i.l.bf16 %v6185_v46  ;;  %v3148_v46 = vsel %vm325_vm0, %v1035_v18, %v6212_v17  ;;  %v1293_v18 = vld [vmem:[#allocation2 + $0x99] sm:$0xff] }
 0x363   :  { %v3211_v1 = vsel %vm3203_vm7, %v3146_v48, %v6187_v62  ;;  %v3404_v26 = vsel %vm3203_vm7, %v3340_v14, %v6186_v35  ;;  %v3342_v48 = vsel %vm325_vm0, %v1291_v8, %v6211_v32  ;;  %v6242_v32 = vunpack.i.h.bf16 %v8954_v42  ;;  %v9028_v8 = vld [vmem:[#allocation2 + $0x18a] sm:$0xff] }
 0x364   :  { %v3276_v37 = vsel %vm3268_vm8, %v3211_v1, %v6192_v49  ;;  %v3468_v4 = vsel %vm3268_vm8, %v3404_v26, %v6191_v56  ;;  %v8983_v35 = vpop.permute.xlu0 %6254  ;;  %v6222_v49 = vunpack.i.h.bf16 %v8915_v34  ;;  %v6221_v56 = vunpack.i.l.bf16 %v8915_v34  ;;  %v1292_v34 = vld [vmem:[#allocation2 + $0x91] sm:$0xff] }
 0x365   :  { %6399 = vrot.lane.b32.xlu2 %v6398_v50, %s7124_s19  ;;  %5927 = vmatmul.msk.f32.gmra.mxu0 %vm325_vm0, %v8943_v10  ;;  %v6428_v50 = vpack.i.bf16 %v8887_v38, %v1498_v40 }
 0x366   :  { %6409 = vrot.lane.b32.xlu1 %v6408_v54, %s7125_s22  ;;  %3790 = vmatmul.f32.gmra.mxu1 %v3276_v37  ;;  %v6438_v54 = vpack.i.bf16 %v8762_v0, %v8976_v6  ;;  %v6478_v37 = vpack.i.bf16 %v1498_v40, %v8913_v44  ;;  %v1500_v40 = vld [vmem:[#allocation2 + $0x159] sm:$0xff] }
 0x367   :  { %3999 = vmatmul.f32.gmra.mxu2 %v3468_v4  ;;  %v8945_v12 = vpop.permute.xlu2 %6234  ;;  %v8999_v4 = vpop.f32.mrf.mxu0 }
 0x368   :  { %v6200_v22 = vpop.permute.xlu1 %6199  ;;  %6479 = vrot.lane.b32.xlu0 %v6478_v37, %s7123_s18  ;;  %v6236_v17 = vunpack.i.l.bf16 %v8945_v12  ;;  %v6508_v37 = vpack.i.bf16 %v1500_v40, %v8972_v21 }
 0x369   :  { %v6202_v33 = vunpack.i.h.bf16 %v6200_v22  ;;  %v6201_v53 = vunpack.i.l.bf16 %v6200_v22  ;;  %v9005_v22 = vld [vmem:[#allocation2 + $0x158] sm:$0xff] }
 0x36b   :  { %v3212_v45 = vsel %vm3203_vm7, %v3147_v13, %v6202_v33  ;;  %v3405_v29 = vsel %vm3203_vm7, %v3341_v19, %v6201_v53  ;;  %v3149_v13 = vsel %vm325_vm0, %v1036_v2, %v6227_v16  ;;  %v3343_v19 = vsel %vm325_vm0, %v1292_v34, %v6226_v25  ;;  %v1038_v2 = vld [vmem:[#allocation2 + $0x90] sm:$0xff] }
 0x36c   :  { %v3277_v11 = vsel %vm3268_vm8, %v3212_v45, %v6207_v20  ;;  %v3469_v41 = vsel %vm3268_vm8, %v3405_v29, %v6206_v39  ;;  %v6453_v45 = vpack.i.bf16 %v8793_v55, %v9005_v22  ;;  %v6237_v39 = vunpack.i.h.bf16 %v8945_v12  ;;  %v1294_v34 = vld [vmem:[#allocation2 + $0xa9] sm:$0xff] }
 0x36d   :  { %6414 = vrot.lane.b32.xlu2 %v6413_v5, %s7124_s19  ;;  %5928 = vmatmul.msk.f32.gmra.mxu0 %vm325_vm0, %v8972_v21  ;;  %v9012_v5 = vpop.permute.xlu0 %6269 }
 0x36e   :  { %6424 = vrot.lane.b32.xlu1 %v6423_v47, %s7125_s22  ;;  %3793 = vmatmul.f32.gmra.mxu1 %v3277_v11  ;;  %v6443_v47 = vpack.i.bf16 %v8917_v31, %v1499_v15  ;;  %v6241_v11 = vunpack.i.l.bf16 %v8954_v42 }
 0x36f   :  { %4002 = vmatmul.f32.gmra.mxu2 %v3469_v41  ;;  %v8974_v59 = vpop.permute.xlu2 %6249  ;;  %v6493_v41 = vpack.i.bf16 %v1499_v15, %v8943_v10 }
 0x370   :  { %v6215_v51 = vpop.permute.xlu1 %6214  ;;  %v6252_v16 = vunpack.i.h.bf16 %v8974_v59  ;;  %v6251_v25 = vunpack.i.l.bf16 %v8974_v59  ;;  %v1501_v59 = vld [vmem:[#allocation2 + $0x169] sm:$0xff] }
 0x371   :  { %v6217_v14 = vunpack.i.h.bf16 %v6215_v51  ;;  %v6216_v62 = vunpack.i.l.bf16 %v6215_v51  ;;  %v9032_v51 = vld [vmem:[#allocation2 + $0x168] sm:$0xff]  ;;  %6494 = vrot.lane.b32.xlu0 %v6493_v41, %s7123_s18  ;;  %v6271_v41 = vunpack.i.l.bf16 %v9012_v5 }
 0x373   :  { %v3213_v1 = vsel %vm3203_vm7, %v3148_v46, %v6217_v14  ;;  %v3406_v26 = vsel %vm3203_vm7, %v3342_v48, %v6216_v62  ;;  %v3150_v46 = vsel %vm325_vm0, %v1037_v7, %v6242_v32  ;;  %v3344_v48 = vsel %vm325_vm0, %v1293_v18, %v6241_v11  ;;  %v9039_v14 = vpop.f32.mrf.mxu0  ;;  %v1039_v18 = vld [vmem:[#allocation2 + $0x98] sm:$0xff] }
 0x374   :  { %v3278_v38 = vsel %vm3268_vm8, %v3213_v1, %v6222_v49  ;;  %v3470_v0 = vsel %vm3268_vm8, %v3406_v26, %v6221_v56  ;;  %v6458_v1 = vpack.i.bf16 %v8947_v30, %v1500_v40  ;;  %v6468_v26 = vpack.i.bf16 %v8824_v58, %v9032_v51  ;;  %v1295_v40 = vld [vmem:[#allocation2 + $0xb1] sm:$0xff] }
 0x375   :  { %6429 = vrot.lane.b32.xlu2 %v6428_v50, %s7124_s19  ;;  %5929 = vmatmul.msk.f32.gmra.mxu0 %vm325_vm0, %v9001_v9  ;;  %v6523_v7 = vpack.i.bf16 %v1501_v59, %v9001_v9 }
 0x376   :  { %6439 = vrot.lane.b32.xlu1 %v6438_v54, %s7125_s22  ;;  %3796 = vmatmul.f32.gmra.mxu1 %v3278_v38  ;;  %v9041_v54 = vpop.permute.xlu0 %6284  ;;  %v6257_v38 = vunpack.i.h.bf16 %v8983_v35 }
 0x377   :  { %4005 = vmatmul.f32.gmra.mxu2 %v3470_v0  ;;  %v9003_v27 = vpop.permute.xlu2 %6264  ;;  %v6256_v0 = vunpack.i.l.bf16 %v8983_v35 }
 0x378   :  { %v6230_v43 = vpop.permute.xlu1 %6229  ;;  %v3151_v35 = vsel %vm325_vm0, %v1038_v2, %v6257_v38  ;;  %v6267_v11 = vunpack.i.h.bf16 %v9003_v27 }
 0x379   :  { %v6232_v33 = vunpack.i.h.bf16 %v6230_v43  ;;  %v6231_v53 = vunpack.i.l.bf16 %v6230_v43  ;;  %6509 = vrot.lane.b32.xlu0 %v6508_v37, %s7123_s18 }
 0x37b   :  { %v3214_v29 = vsel %vm3203_vm7, %v3149_v13, %v6232_v33  ;;  %v3407_v20 = vsel %vm3203_vm7, %v3343_v19, %v6231_v53  ;;  %v9059_v13 = vld [vmem:[#allocation2 + $0x170] sm:$0xff]  ;;  %v3345_v19 = vsel %vm325_vm0, %v1294_v34, %v6256_v0  ;;  %v1040_v34 = vld [vmem:[#allocation2 + $0xa8] sm:$0xff] }
 0x37c   :  { %v3279_v31 = vsel %vm3268_vm8, %v3214_v29, %v6237_v39  ;;  %v3471_v55 = vsel %vm3268_vm8, %v3407_v20, %v6236_v17  ;;  %v9067_v29 = vpop.f32.mrf.mxu0  ;;  %v6473_v20 = vpack.i.bf16 %v8976_v6, %v1501_v59  ;;  %v6483_v39 = vpack.i.bf16 %v8855_v57, %v9059_v13 }
 0x37d   :  { %6444 = vrot.lane.b32.xlu2 %v6443_v47, %s7124_s19  ;;  %5930 = vmatmul.msk.f32.gmra.mxu0 %vm325_vm0, %v9028_v8  ;;  %v1569_v47 = vld [vmem:[#allocation2 + $0x19a] sm:$0xff] }
 0x37e   :  { %6454 = vrot.lane.b32.xlu1 %v6453_v45, %s7125_s22  ;;  %3799 = vmatmul.f32.gmra.mxu1 %v3279_v31  ;;  %v9064_v45 = vpop.permute.xlu0 %6299  ;;  %v6266_v31 = vunpack.i.l.bf16 %v9003_v27  ;;  %v1502_v27 = vld [vmem:[#allocation2 + $0x171] sm:$0xff] }
 0x37f   :  { %4008 = vmatmul.f32.gmra.mxu2 %v3471_v55  ;;  %v9030_v12 = vpop.permute.xlu2 %6279  ;;  %v6272_v55 = vunpack.i.h.bf16 %v9012_v5  ;;  %v6538_v2 = vpack.i.bf16 %v1502_v27, %v9028_v8 }
 0x380   :  { %v6245_v42 = vpop.permute.xlu1 %6244  ;;  %v6282_v38 = vunpack.i.h.bf16 %v9030_v12  ;;  %v6281_v0 = vunpack.i.l.bf16 %v9030_v12  ;;  %v1296_v12 = vld [vmem:[#allocation2 + $0xc1] sm:$0xff] }
 0x381   :  { %v6247_v62 = vunpack.i.h.bf16 %v6245_v42  ;;  %v6246_v50 = vunpack.i.l.bf16 %v6245_v42  ;;  %v3152_v5 = vsel %vm325_vm0, %v1039_v18, %v6272_v55  ;;  %6524 = vrot.lane.b32.xlu0 %v6523_v7, %s7123_s18  ;;  %v9127_v55 = vld [vmem:[#allocation2 + $0x1ca] sm:$0xff]  ;;  %v6301_v7 = vunpack.i.l.bf16 %v9064_v45 }
 0x383   :  { %v3215_v49 = vsel %vm3203_vm7, %v3150_v46, %v6247_v62  ;;  %v3408_v56 = vsel %vm3203_vm7, %v3344_v48, %v6246_v50  ;;  %v9085_v48 = vld [vmem:[#allocation2 + $0x180] sm:$0xff]  ;;  %v3346_v62 = vsel %vm325_vm0, %v1295_v40, %v6271_v41 }
 0x384   :  { %v3280_v30 = vsel %vm3268_vm8, %v3215_v49, %v6252_v16  ;;  %v3472_v58 = vsel %vm3268_vm8, %v3408_v56, %v6251_v25  ;;  %v6488_v49 = vpack.i.bf16 %v9005_v22, %v1502_v27  ;;  %v6498_v56 = vpack.i.bf16 %v8883_v23, %v9085_v48  ;;  %v9102_v37 = vpop.f32.mrf.mxu0  ;;  %v1041_v27 = vld [vmem:[#allocation2 + $0xb0] sm:$0xff] }
 0x385   :  { %6459 = vrot.lane.b32.xlu2 %v6458_v1, %s7124_s19  ;;  %5931 = vmatmul.msk.f32.gmra.mxu0 %vm325_vm0, %v1569_v47 }
 0x386   :  { %6469 = vrot.lane.b32.xlu1 %v6468_v26, %s7125_s22  ;;  %3802 = vmatmul.f32.gmra.mxu1 %v3280_v30  ;;  %v1570_v26 = vld [vmem:[#allocation2 + $0x1a2] sm:$0xff]  ;;  %v9090_v9 = vpop.permute.xlu0 %6314  ;;  %v6287_v30 = vunpack.i.h.bf16 %v9041_v54 }
 0x387   :  { %4011 = vmatmul.f32.gmra.mxu2 %v3472_v58  ;;  %v9057_v15 = vpop.permute.xlu2 %6294  ;;  %v6286_v58 = vunpack.i.l.bf16 %v9041_v54 }
 0x388   :  { %v6260_v43 = vpop.permute.xlu1 %6259  ;;  %v6297_v41 = vunpack.i.h.bf16 %v9057_v15 }
 0x389   :  { %v6262_v33 = vunpack.i.h.bf16 %v6260_v43  ;;  %v6261_v53 = vunpack.i.l.bf16 %v6260_v43  ;;  %v1503_v43 = vld [vmem:[#allocation2 + $0x181] sm:$0xff]  ;;  %6539 = vrot.lane.b32.xlu0 %v6538_v2, %s7123_s18 }
 0x38b   :  { %v3216_v17 = vsel %vm3203_vm7, %v3151_v35, %v6262_v33  ;;  %v3409_v32 = vsel %vm3203_vm7, %v3345_v19, %v6261_v53  ;;  %v9111_v35 = vld [vmem:[#allocation2 + $0x188] sm:$0xff]  ;;  %v3153_v19 = vsel %vm325_vm0, %v1040_v34, %v6287_v30  ;;  %v3347_v33 = vsel %vm325_vm0, %v1296_v12, %v6286_v58  ;;  %v1123_v58 = vld [vmem:[#allocation2 + $0x1b9] sm:$0xff] }
 0x38c   :  { %v3281_v6 = vsel %vm3268_vm8, %v3216_v17, %v6267_v11  ;;  %v3473_v57 = vsel %vm3268_vm8, %v3409_v32, %v6266_v31  ;;  %v6513_v17 = vpack.i.bf16 %v8913_v44, %v9111_v35  ;;  %v1122_v31 = vld [vmem:[#allocation2 + $0x1b1] sm:$0xff]  ;;  %v9138_v40 = vpop.f32.mrf.mxu0  ;;  %v6317_v34 = vunpack.i.h.bf16 %v9090_v9 }
 0x38d   :  { %6474 = vrot.lane.b32.xlu2 %v6473_v20, %s7124_s19  ;;  %5932 = vmatmul.msk.f32.gmra.mxu0 %vm325_vm0, %v1570_v26  ;;  %v9116_v20 = vld [vmem:[#allocation2 + $0x1e2] sm:$0xff]  ;;  %v6553_v18 = vpack.i.bf16 %v1122_v31, %v9127_v55  ;;  %v6316_v12 = vunpack.i.l.bf16 %v9090_v9  ;;  %v9173_v31 = vld [vmem:[#allocation2 + $0x1fa] sm:$0xff] }
 0x38e   :  { %6484 = vrot.lane.b32.xlu1 %v6483_v39, %s7125_s22  ;;  %3805 = vmatmul.f32.gmra.mxu1 %v3281_v6  ;;  %v9118_v8 = vpop.permute.xlu0 %6329  ;;  %v6503_v39 = vpack.i.bf16 %v9032_v51, %v1503_v43  ;;  %v6296_v6 = vunpack.i.l.bf16 %v9057_v15  ;;  %v1297_v15 = vld [vmem:[#allocation2 + $0xc9] sm:$0xff] }
 0x38f   :  { %4014 = vmatmul.f32.gmra.mxu2 %v3473_v57  ;;  %v9083_v42 = vpop.permute.xlu2 %6309  ;;  %v6302_v57 = vunpack.i.h.bf16 %v9064_v45 }
 0x390   :  { %v6275_v46 = vpop.permute.xlu1 %6274  ;;  %v6311_v2 = vunpack.i.l.bf16 %v9083_v42 }
 0x391   :  { %v6277_v50 = vunpack.i.h.bf16 %v6275_v46  ;;  %v6276_v1 = vunpack.i.l.bf16 %v6275_v46  ;;  %6554 = vrot.lane.b32.xlu0 %v6553_v18, %s7123_s18  ;;  %v1124_v18 = vld [vmem:[#allocation2 + $0x1c9] sm:$0xff] }
 0x393   :  { %v3217_v16 = vsel %vm3203_vm7, %v3152_v5, %v6277_v50  ;;  %v3410_v25 = vsel %vm3203_vm7, %v3346_v62, %v6276_v1  ;;  %v1504_v5 = vld [vmem:[#allocation2 + $0x189] sm:$0xff]  ;;  %v1441_v62 = vld [vmem:[#allocation2 + $0x198] sm:$0xff]  ;;  %v3154_v50 = vsel %vm325_vm0, %v1041_v27, %v6302_v57  ;;  %v3348_v1 = vsel %vm325_vm0, %v1297_v15, %v6301_v7 }
 0x394   :  { %v3282_v23 = vsel %vm3268_vm8, %v3217_v16, %v6282_v38  ;;  %v3474_v22 = vsel %vm3268_vm8, %v3410_v25, %v6281_v0  ;;  %v6518_v25 = vpack.i.bf16 %v9059_v13, %v1504_v5  ;;  %v6528_v38 = vpack.i.bf16 %v8943_v10, %v1441_v62 }
 0x395   :  { %6489 = vrot.lane.b32.xlu2 %v6488_v49, %s7124_s19  ;;  %5933 = vmatmul.msk.f32.gmra.mxu0 %vm325_vm0, %v9116_v20  ;;  %v6332_v5 = vunpack.i.h.bf16 %v9118_v8  ;;  %v6583_v62 = vpack.i.bf16 %v1124_v18, %v9116_v20 }
 0x396   :  { %6499 = vrot.lane.b32.xlu1 %v6498_v56, %s7125_s22  ;;  %3808 = vmatmul.f32.gmra.mxu1 %v3282_v23  ;;  %v9145_v56 = vld [vmem:[#allocation2 + $0x1ea] sm:$0xff]  ;;  %v9147_v16 = vpop.permute.xlu0 %6344  ;;  %v9155_v23 = vld [vmem:[#allocation2 + $0x1d2] sm:$0xff] }
 0x397   :  { %4017 = vmatmul.f32.gmra.mxu2 %v3474_v22  ;;  %v9109_v59 = vpop.permute.xlu2 %6324  ;;  %v6312_v22 = vunpack.i.h.bf16 %v9083_v42  ;;  %v6568_v43 = vpack.i.bf16 %v1123_v58, %v9155_v23  ;;  %v1505_v42 = vld [vmem:[#allocation2 + $0x199] sm:$0xff] }
 0x398   :  { %v6290_v54 = vpop.permute.xlu1 %6289  ;;  %v6533_v57 = vpack.i.bf16 %v9085_v48, %v1505_v42  ;;  %v6327_v27 = vunpack.i.h.bf16 %v9109_v59  ;;  %v6326_v15 = vunpack.i.l.bf16 %v9109_v59  ;;  %v1299_v59 = vld [vmem:[#allocation2 + $0xe1] sm:$0xff] }
 0x399   :  { %v6292_v53 = vunpack.i.h.bf16 %v6290_v54  ;;  %v6291_v47 = vunpack.i.l.bf16 %v6290_v54  ;;  %v1042_v54 = vld [vmem:[#allocation2 + $0xc0] sm:$0xff]  ;;  %6569 = vrot.lane.b32.xlu0 %v6568_v43, %s7123_s18 }
 0x39a   :  { %v3155_v9 = vsel %vm325_vm0, %v1042_v54, %v6317_v34 }
 0x39b   :  { %v3218_v32 = vsel %vm3203_vm7, %v3153_v19, %v6292_v53  ;;  %v3411_v11 = vsel %vm3203_vm7, %v3347_v33, %v6291_v47  ;;  %v1298_v19 = vld [vmem:[#allocation2 + $0xd9] sm:$0xff] }
 0x39c   :  { %v3283_v44 = vsel %vm3268_vm8, %v3218_v32, %v6297_v41  ;;  %v3475_v51 = vsel %vm3268_vm8, %v3411_v11, %v6296_v6  ;;  %v1442_v47 = vld [vmem:[#allocation2 + $0x1a0] sm:$0xff]  ;;  %v9175_v41 = vpop.f32.mrf.mxu1 }
 0x39d   :  { %6504 = vrot.lane.b32.xlu2 %v6503_v39, %s7124_s19  ;;  %5934 = vmatmul.msk.f32.gmra.mxu0 %vm325_vm0, %v9145_v56  ;;  %v3349_v39 = vsel %vm325_vm0, %v1298_v19, %v6316_v12  ;;  %v6543_v7 = vpack.i.bf16 %v8972_v21, %v1442_v47  ;;  %v1125_v19 = vld [vmem:[#allocation2 + $0x1d1] sm:$0xff]  ;;  %v6347_v47 = vunpack.i.h.bf16 %v9147_v16 }
 0x39e   :  { %6514 = vrot.lane.b32.xlu1 %v6513_v17, %s7125_s22  ;;  %3811 = vmatmul.f32.gmra.mxu1 %v3283_v44  ;;  %v9171_v17 = vpop.f32.mrf.mxu0  ;;  %v9177_v6 = vpop.permute.xlu0 %6359 }
 0x39f   :  { %4020 = vmatmul.f32.gmra.mxu2 %v3475_v51  ;;  %v9140_v46 = vpop.permute.xlu2 %6339 }
 0x3a0   :  { %v6305_v45 = vpop.permute.xlu1 %6304  ;;  %v6342_v42 = vunpack.i.h.bf16 %v9140_v46 }
 0x3a1   :  { %v6307_v26 = vunpack.i.h.bf16 %v6305_v45  ;;  %v6306_v49 = vunpack.i.l.bf16 %v6305_v45  ;;  %v6331_v45 = vunpack.i.l.bf16 %v9118_v8  ;;  %6584 = vrot.lane.b32.xlu0 %v6583_v62, %s7123_s18 }
 0x3a3   :  { %v3219_v0 = vsel %vm3203_vm7, %v3154_v50, %v6307_v26  ;;  %v3412_v30 = vsel %vm3203_vm7, %v3348_v1, %v6306_v49  ;;  %v9194_v50 = vpop.f32.mrf.mxu2  ;;  %v1043_v1 = vld [vmem:[#allocation2 + $0xc8] sm:$0xff] }
 0x3a4   :  { %v3284_v10 = vsel %vm3268_vm8, %v3219_v0, %v6312_v22  ;;  %v3476_v13 = vsel %vm3268_vm8, %v3412_v30, %v6311_v2  ;;  %v1506_v49 = vld [vmem:[#allocation2 + $0x1a1] sm:$0xff]  ;;  %v3156_v0 = vsel %vm325_vm0, %v1043_v1, %v6332_v5  ;;  %v3350_v30 = vsel %vm325_vm0, %v1299_v59, %v6331_v45 }
 0x3a5   :  { %6519 = vrot.lane.b32.xlu2 %v6518_v25, %s7124_s19  ;;  %5935 = vmatmul.msk.f32.gmra.mxu0 %vm325_vm0, %v9173_v31  ;;  %v1186_v25 = vld [vmem:[#allocation2 + $0x1b2] sm:$0xff]  ;;  %v9203_v2 = vld [vmem:[#allocation2 + $0x202] sm:$0xff]  ;;  %v1187_v45 = vld [vmem:[#allocation2 + $0x1ba] sm:$0xff] }
 0x3a6   :  { %6529 = vrot.lane.b32.xlu1 %v6528_v38, %s7125_s22  ;;  %3814 = vmatmul.f32.gmra.mxu1 %v3284_v10  ;;  %v9198_v38 = vld [vmem:[#allocation2 + $0x1e0] sm:$0xff]  ;;  %v9205_v34 = vpop.permute.xlu0 %6374  ;;  %v9209_v12 = vpop.f32.mrf.mxu0  ;;  %v6548_v10 = vpack.i.bf16 %v9111_v35, %v1506_v49 }
 0x3a7   :  { %4023 = vmatmul.f32.gmra.mxu2 %v3476_v13  ;;  %v9166_v33 = vpop.permute.xlu2 %6354  ;;  %v6558_v13 = vpack.i.bf16 %v1186_v25, %v9198_v38 }
 0x3a8   :  { %v6320_v53 = vpop.permute.xlu1 %6319 }
 0x3a9   :  { %v6322_v32 = vunpack.i.h.bf16 %v6320_v53  ;;  %v6321_v11 = vunpack.i.l.bf16 %v6320_v53  ;;  %v6341_v53 = vunpack.i.l.bf16 %v9140_v46 }
 0x3ab   :  { %v3220_v44 = vsel %vm3203_vm7, %v3155_v9, %v6322_v32  ;;  %v3413_v51 = vsel %vm3203_vm7, %v3349_v39, %v6321_v11  ;;  %v6346_v9 = vunpack.i.l.bf16 %v9147_v16  ;;  %v6598_v11 = vpack.i.bf16 %v1125_v19, %v9145_v56 }
 0x3ac   :  { %v3285_v48 = vsel %vm3268_vm8, %v3220_v44, %v6327_v27  ;;  %v3477_v21 = vsel %vm3268_vm8, %v3413_v51, %v6326_v15  ;;  %v1250_v44 = vld [vmem:[#allocation2 + $0x1c8] sm:$0xff] }
 0x3ad   :  { %6534 = vrot.lane.b32.xlu2 %v6533_v57, %s7124_s19  ;;  %5936 = vmatmul.msk.f32.gmra.mxu0 %vm325_vm0, %v9203_v2  ;;  %v1044_v57 = vld [vmem:[#allocation2 + $0xd8] sm:$0xff]  ;;  %v1507_v51 = vld [vmem:[#allocation2 + $0x1e1] sm:$0xff] }
 0x3ae   :  { %6544 = vrot.lane.b32.xlu1 %v6543_v7, %s7125_s22  ;;  %3817 = vmatmul.f32.gmra.mxu1 %v3285_v48  ;;  %v1300_v7 = vld [vmem:[#allocation2 + $0xf1] sm:$0xff]  ;;  %v3157_v18 = vsel %vm325_vm0, %v1044_v57, %v6347_v47  ;;  %v9229_v48 = vld [vmem:[#allocation2 + $0x1e8] sm:$0xff]  ;;  %v9233_v1 = vpop.permute.xlu0 %6389  ;;  %v6563_v59 = vpack.i.bf16 %v1250_v44, %v1507_v51  ;;  %v1045_v47 = vld [vmem:[#allocation2 + $0xe0] sm:$0xff] }
 0x3af   :  { %4026 = vmatmul.f32.gmra.mxu2 %v3477_v21  ;;  %v9196_v26 = vpop.permute.xlu2 %6369  ;;  %v3351_v27 = vsel %vm325_vm0, %v1300_v7, %v6346_v9  ;;  %6599 = vrot.lane.b32.xlu0 %v6598_v11, %s7123_s18  ;;  %v9231_v21 = vld [vmem:[#allocation2 + $0x212] sm:$0xff]  ;;  %v9260_v7 = vld [vmem:[#allocation2 + $0x21a] sm:$0xff] }
 0x3b0   :  { %v6335_v8 = vpop.permute.xlu1 %6334 }
 0x3b1   :  { %v6337_v58 = vunpack.i.h.bf16 %v6335_v8  ;;  %v6336_v22 = vunpack.i.l.bf16 %v6335_v8 }
 0x3b3   :  { %v3221_v43 = vsel %vm3203_vm7, %v3156_v0, %v6337_v58  ;;  %v3414_v54 = vsel %vm3203_vm7, %v3350_v30, %v6336_v22  ;;  %v3773_v39 = vpop.f32.mrf.mxu1  ;;  %v6357_v0 = vunpack.i.h.bf16 %v9166_v33  ;;  %v6356_v30 = vunpack.i.l.bf16 %v9166_v33  ;;  %v1251_v33 = vld [vmem:[#allocation2 + $0x1d0] sm:$0xff] }
 0x3b4   :  { %v3286_v35 = vsel %vm3268_vm8, %v3221_v43, %v6342_v42  ;;  %v3478_v32 = vsel %vm3268_vm8, %v3414_v54, %v6341_v53  ;;  %v6573_v58 = vpack.i.bf16 %v1187_v45, %v9229_v48  ;;  %v6362_v22 = vunpack.i.h.bf16 %v9177_v6  ;;  %v1508_v53 = vld [vmem:[#allocation2 + $0x1e9] sm:$0xff] }
 0x3b5   :  { %6549 = vrot.lane.b32.xlu2 %v6548_v10, %s7124_s19  ;;  %5937 = vmatmul.msk.f32.gmra.mxu0 %vm325_vm0, %v9231_v21  ;;  %v6361_v43 = vunpack.i.l.bf16 %v9177_v6  ;;  %v6613_v42 = vpack.i.bf16 %v1507_v51, %v9173_v31  ;;  %v6578_v44 = vpack.i.bf16 %v1251_v33, %v1508_v53 }
 0x3b6   :  { %6559 = vrot.lane.b32.xlu1 %v6558_v13, %s7125_s22  ;;  %3820 = vmatmul.f32.gmra.mxu1 %v3286_v35  ;;  %v9245_v13 = vpop.f32.mrf.mxu0  ;;  %v9255_v35 = vld [vmem:[#allocation2 + $0x1f8] sm:$0xff]  ;;  %v3158_v6 = vsel %vm325_vm0, %v1045_v47, %v6362_v22 }
 0x3b7   :  { %4029 = vmatmul.f32.gmra.mxu2 %v3478_v32  ;;  %v9224_v46 = vpop.permute.xlu2 %6384  ;;  %v1301_v32 = vld [vmem:[#allocation2 + $0xf9] sm:$0xff]  ;;  %6614 = vrot.lane.b32.xlu0 %v6613_v42, %s7123_s18 }
 0x3b8   :  { %v6350_v16 = vpop.permute.xlu1 %6349  ;;  %v3352_v57 = vsel %vm325_vm0, %v1301_v32, %v6361_v43 }
 0x3b9   :  { %v6352_v15 = vunpack.i.h.bf16 %v6350_v16  ;;  %v6351_v5 = vunpack.i.l.bf16 %v6350_v16 }
 0x3ba   :  { %v3982_v62 = vpop.f32.mrf.mxu2 }
 0x3bb   :  { %v9237_v49 = vadd.f32 %v3982_v62, %v3773_v39  ;;  %v3222_v8 = vsel %vm3203_vm7, %v3157_v18, %v6352_v15  ;;  %v3415_v25 = vsel %vm3203_vm7, %v3351_v27, %v6351_v5  ;;  %v3776_v10 = vpop.f32.mrf.mxu1  ;;  %v9262_v18 = vpop.permute.xlu0 %6404  ;;  %v6372_v27 = vunpack.i.h.bf16 %v9196_v26 }
 0x3bc   :  { %v3287_v54 = vsel %vm3268_vm8, %v3222_v8, %v6357_v0  ;;  %v3479_v19 = vsel %vm3268_vm8, %v3415_v25, %v6356_v30  ;;  %v6588_v15 = vpack.i.bf16 %v9127_v55, %v9255_v35  ;;  %v6371_v62 = vunpack.i.l.bf16 %v9196_v26  ;;  %v1509_v26 = vld [vmem:[#allocation2 + $0x1f9] sm:$0xff] }
 0x3bd   :  { %6564 = vrot.lane.b32.xlu2 %v6563_v59, %s7124_s19  ;;  %5938 = vmatmul.msk.f32.gmra.mxu0 %vm325_vm0, %v9260_v7  ;;  %v6377_v59 = vunpack.i.h.bf16 %v9205_v34  ;;  %v6376_v8 = vunpack.i.l.bf16 %v9205_v34  ;;  %v1302_v34 = vld [vmem:[#allocation2 + $0x109] sm:$0xff] }
 0x3be   :  { %6574 = vrot.lane.b32.xlu1 %v6573_v58, %s7125_s22  ;;  %3823 = vmatmul.f32.gmra.mxu1 %v3287_v54  ;;  %v6628_v58 = vpack.i.bf16 %v1508_v53, %v9203_v2  ;;  %v9281_v22 = vpop.f32.mrf.mxu0 }
 0x3bf   :  { %4032 = vmatmul.f32.gmra.mxu2 %v3479_v19  ;;  %v9253_v9 = vpop.permute.xlu2 %6399  ;;  %12169 = vst [vmem:[#allocation6_spill] sm:$0xff] %v9281_v22  ;;  %v9285_v19 = vld [vmem:[#allocation2 + $0x200] sm:$0xff]  ;;  %v3353_v33 = vsel %vm325_vm0, %v1302_v34, %v6376_v8  ;;  %v6643_v8 = vpack.i.bf16 %v1509_v26, %v9231_v21  ;;  %v1059_v22 = vld [vmem:[#allocation2 + $0x1b8] sm:$0xff] }
 0x3c0   :  { %v6365_v39 = vpop.permute.xlu1 %6364  ;;  %6629 = vrot.lane.b32.xlu0 %v6628_v58, %s7123_s18 }
 0x3c1   :  { %v6367_v11 = vunpack.i.h.bf16 %v6365_v39  ;;  %v6366_v51 = vunpack.i.l.bf16 %v6365_v39  ;;  %v9290_v39 = vld [vmem:[#allocation2 + $0x22a] sm:$0xff] }
 0x3c2   :  { %v3985_v16 = vpop.f32.mrf.mxu2 }
 0x3c3   :  { %v9269_v5 = vadd.f32 %v3985_v16, %v3776_v10  ;;  %v3223_v45 = vsel %vm3203_vm7, %v3158_v6, %v6367_v11  ;;  %v3779_v25 = vpop.f32.mrf.mxu1  ;;  %v3416_v0 = vsel %vm3203_vm7, %v3352_v57, %v6366_v51  ;;  %v1046_v10 = vld [vmem:[#allocation2 + $0xf0] sm:$0xff]  ;;  %v6593_v6 = vpack.i.bf16 %v9198_v38, %v1509_v26  ;;  %v9293_v11 = vpop.permute.xlu0 %6419 }
 0x3c4   :  { %v3288_v30 = vsel %vm3268_vm8, %v3223_v45, %v6372_v27  ;;  %v3480_v55 = vsel %vm3268_vm8, %v3416_v0, %v6371_v62  ;;  %v3159_v42 = vsel %vm325_vm0, %v1046_v10, %v6377_v59  ;;  %v6603_v57 = vpack.i.bf16 %v9155_v23, %v9285_v19  ;;  %v1047_v0 = vld [vmem:[#allocation2 + $0xf8] sm:$0xff] }
 0x3c5   :  { %6579 = vrot.lane.b32.xlu2 %v6578_v44, %s7124_s19  ;;  %5939 = vmatmul.msk.f32.gmra.mxu0 %vm325_vm0, %v9290_v39  ;;  %v6387_v27 = vunpack.i.h.bf16 %v9224_v46  ;;  %v6392_v38 = vunpack.i.h.bf16 %v9233_v1  ;;  %v6391_v45 = vunpack.i.l.bf16 %v9233_v1  ;;  %v9314_v1 = vld [vmem:[#allocation2 + $0x210] sm:$0xff] }
 0x3c6   :  { %6589 = vrot.lane.b32.xlu1 %v6588_v15, %s7125_s22  ;;  %3826 = vmatmul.f32.gmra.mxu1 %v3288_v30  ;;  %v6386_v15 = vunpack.i.l.bf16 %v9224_v46  ;;  %v1303_v46 = vld [vmem:[#allocation2 + $0x111] sm:$0xff]  ;;  %v9319_v34 = vpop.f32.mrf.mxu0 }
 0x3c7   :  { %4035 = vmatmul.f32.gmra.mxu2 %v3480_v55  ;;  %v9283_v43 = vpop.permute.xlu2 %6414  ;;  %v3160_v58 = vsel %vm325_vm0, %v1047_v0, %v6392_v38  ;;  %v3354_v10 = vsel %vm325_vm0, %v1303_v46, %v6391_v45  ;;  %12170 = vst [vmem:[#allocation7_spill] sm:$0xff] %v9319_v34  ;;  %v1058_v34 = vld [vmem:[#allocation2 + $0x1b0] sm:$0xff] }
 0x3c8   :  { %v6380_v54 = vpop.permute.xlu1 %6379  ;;  %6644 = vrot.lane.b32.xlu0 %v6643_v8, %s7123_s18 }
 0x3c9   :  { %v6382_v47 = vunpack.i.h.bf16 %v6380_v54  ;;  %v6381_v53 = vunpack.i.l.bf16 %v6380_v54 }
 0x3ca   :  { %v3988_v32 = vpop.f32.mrf.mxu2 }
 0x3cb   :  { %v9299_v44 = vadd.f32 %v3988_v32, %v3779_v25  ;;  %v3224_v51 = vsel %vm3203_vm7, %v3159_v42, %v6382_v47  ;;  %v3417_v16 = vsel %vm3203_vm7, %v3353_v33, %v6381_v53  ;;  %v3782_v62 = vpop.f32.mrf.mxu1  ;;  %v1510_v25 = vld [vmem:[#allocation2 + $0x201] sm:$0xff]  ;;  %v9321_v42 = vld [vmem:[#allocation2 + $0x232] sm:$0xff]  ;;  %v9324_v53 = vpop.permute.xlu0 %6434 }
 0x3cc   :  { %v3289_v23 = vsel %vm3268_vm8, %v3224_v51, %v6387_v27  ;;  %v3481_v59 = vsel %vm3268_vm8, %v3417_v16, %v6386_v15  ;;  %v6608_v33 = vpack.i.bf16 %v9229_v48, %v1510_v25  ;;  %v6402_v16 = vunpack.i.h.bf16 %v9253_v9 }
 0x3cd   :  { %6594 = vrot.lane.b32.xlu2 %v6593_v6, %s7124_s19  ;;  %5940 = vmatmul.msk.f32.gmra.mxu0 %vm325_vm0, %v9321_v42  ;;  %v6618_v6 = vpack.i.bf16 %v9116_v20, %v9314_v1  ;;  %v6401_v27 = vunpack.i.l.bf16 %v9253_v9  ;;  %v6407_v48 = vunpack.i.h.bf16 %v9262_v18  ;;  %v6406_v15 = vunpack.i.l.bf16 %v9262_v18  ;;  %v1304_v9 = vld [vmem:[#allocation2 + $0x121] sm:$0xff]  ;;  %v9345_v18 = vld [vmem:[#allocation2 + $0x218] sm:$0xff] }
 0x3ce   :  { %6604 = vrot.lane.b32.xlu1 %v6603_v57, %s7125_s22  ;;  %3829 = vmatmul.f32.gmra.mxu1 %v3289_v23  ;;  %v1511_v23 = vld [vmem:[#allocation2 + $0x211] sm:$0xff] }
 0x3cf   :  { %4038 = vmatmul.f32.gmra.mxu2 %v3481_v59  ;;  %v9312_v30 = vpop.permute.xlu2 %6429  ;;  %v1048_v59 = vld [vmem:[#allocation2 + $0x108] sm:$0xff] }
 0x3d0   :  { %v6395_v55 = vpop.permute.xlu1 %6394  ;;  %v3161_v46 = vsel %vm325_vm0, %v1048_v59, %v6407_v48  ;;  %v6422_v48 = vunpack.i.h.bf16 %v9293_v11  ;;  %v1049_v59 = vld [vmem:[#allocation2 + $0x110] sm:$0xff] }
 0x3d1   :  { %v6397_v54 = vunpack.i.h.bf16 %v6395_v55  ;;  %v6396_v26 = vunpack.i.l.bf16 %v6395_v55  ;;  %v3355_v55 = vsel %vm325_vm0, %v1304_v9, %v6406_v15  ;;  %v6421_v15 = vunpack.i.l.bf16 %v9293_v11  ;;  %v9376_v11 = vld [vmem:[#allocation2 + $0x228] sm:$0xff] }
 0x3d2   :  { %v3991_v47 = vpop.f32.mrf.mxu2 }
 0x3d3   :  { %v9330_v32 = vadd.f32 %v3991_v47, %v3782_v62  ;;  %v3225_v57 = vsel %vm3203_vm7, %v3160_v58, %v6397_v54  ;;  %v3418_v51 = vsel %vm3203_vm7, %v3354_v10, %v6396_v26  ;;  %v3785_v38 = vpop.f32.mrf.mxu1  ;;  %v6658_v62 = vpack.i.bf16 %v1510_v25, %v9260_v7  ;;  %v9350_v54 = vld [vmem:[#allocation2 + $0x242] sm:$0xff]  ;;  %v9357_v47 = vpop.f32.mrf.mxu0 }
 0x3d4   :  { %v3290_v20 = vsel %vm3268_vm8, %v3225_v57, %v6402_v16  ;;  %v3482_v45 = vsel %vm3268_vm8, %v3418_v51, %v6401_v27  ;;  %v6623_v25 = vpack.i.bf16 %v9255_v35, %v1511_v23  ;;  %12171 = vst [vmem:[#allocation8_spill] sm:$0xff] %v9357_v47  ;;  %v6417_v27 = vunpack.i.h.bf16 %v9283_v43 }
 0x3d5   :  { %6609 = vrot.lane.b32.xlu2 %v6608_v33, %s7124_s19  ;;  %6659 = vrot.lane.b32.xlu0 %v6658_v62, %s7123_s18  ;;  %v9353_v33 = vpop.permute.xlu0 %6449  ;;  %v6416_v35 = vunpack.i.l.bf16 %v9283_v43  ;;  %v1512_v62 = vld [vmem:[#allocation2 + $0x219] sm:$0xff]  ;;  %v1305_v43 = vld [vmem:[#allocation2 + $0x129] sm:$0xff] }
 0x3d6   :  { %6619 = vrot.lane.b32.xlu1 %v6618_v6, %s7125_s22  ;;  %3832 = vmatmul.f32.gmra.mxu1 %v3290_v20  ;;  %v6633_v6 = vpack.i.bf16 %v9145_v56, %v9345_v18 }
 0x3d7   :  { %4041 = vmatmul.f32.gmra.mxu2 %v3482_v45  ;;  %v9343_v8 = vpop.permute.xlu2 %6444  ;;  %5941 = vmatmul.msk.f32.gmra.mxu0 %vm325_vm0, %v9350_v54  ;;  %v6673_v45 = vpack.i.bf16 %v1511_v23, %v9290_v39  ;;  %v6638_v23 = vpack.i.bf16 %v9285_v19, %v1512_v62  ;;  %v6437_v19 = vunpack.i.h.bf16 %v9324_v53 }
 0x3d8   :  { %v6410_v0 = vpop.permute.xlu1 %6409 }
 0x3d9   :  { %v6412_v58 = vunpack.i.h.bf16 %v6410_v0  ;;  %v6411_v10 = vunpack.i.l.bf16 %v6410_v0 }
 0x3da   :  { %v3994_v26 = vpop.f32.mrf.mxu2 }
 0x3db   :  { %v9361_v57 = vadd.f32 %v3994_v26, %v3785_v38  ;;  %v3226_v51 = vsel %vm3203_vm7, %v3161_v46, %v6412_v58  ;;  %v3419_v16 = vsel %vm3203_vm7, %v3355_v55, %v6411_v10  ;;  %v3788_v20 = vpop.f32.mrf.mxu1  ;;  %v3162_v46 = vsel %vm325_vm0, %v1049_v59, %v6422_v48 }
 0x3dc   :  { %v3291_v56 = vsel %vm3268_vm8, %v3226_v51, %v6417_v27  ;;  %v3483_v38 = vsel %vm3268_vm8, %v3419_v16, %v6416_v35  ;;  %v3356_v55 = vsel %vm325_vm0, %v1305_v43, %v6421_v15  ;;  %v6648_v51 = vpack.i.bf16 %v9173_v31, %v9376_v11  ;;  %v1513_v43 = vld [vmem:[#allocation2 + $0x229] sm:$0xff] }
 0x3dd   :  { %6624 = vrot.lane.b32.xlu2 %v6623_v25, %s7124_s19  ;;  %6674 = vrot.lane.b32.xlu0 %v6673_v45, %s7123_s18  ;;  %v9381_v25 = vld [vmem:[#allocation2 + $0x24a] sm:$0xff]  ;;  %v6432_v48 = vunpack.i.h.bf16 %v9312_v30  ;;  %v6431_v15 = vunpack.i.l.bf16 %v9312_v30  ;;  %v9398_v45 = vpop.f32.mrf.mxu0  ;;  %v6688_v59 = vpack.i.bf16 %v1512_v62, %v9321_v42  ;;  %v1050_v30 = vld [vmem:[#allocation2 + $0x120] sm:$0xff]  ;;  %v6653_v62 = vpack.i.bf16 %v9314_v1, %v1513_v43 }
 0x3de   :  { %6634 = vrot.lane.b32.xlu1 %v6633_v6, %s7125_s22  ;;  %3835 = vmatmul.f32.gmra.mxu1 %v3291_v56  ;;  %v9384_v6 = vpop.permute.xlu0 %6464  ;;  %v6436_v56 = vunpack.i.l.bf16 %v9324_v53  ;;  %12172 = vst [vmem:[#allocation9_spill] sm:$0xff] %v9398_v45  ;;  %v6452_v1 = vunpack.i.h.bf16 %v9353_v33 }
 0x3df   :  { %4044 = vmatmul.f32.gmra.mxu2 %v3483_v38  ;;  %v9374_v9 = vpop.permute.xlu2 %6459  ;;  %5942 = vmatmul.msk.f32.gmra.mxu0 %vm325_vm0, %v9381_v25 }
 0x3e0   :  { %v6425_v0 = vpop.permute.xlu1 %6424 }
 0x3e1   :  { %v6427_v58 = vunpack.i.h.bf16 %v6425_v0  ;;  %v6426_v10 = vunpack.i.l.bf16 %v6425_v0  ;;  %v1306_v0 = vld [vmem:[#allocation2 + $0x139] sm:$0xff] }
 0x3e2   :  { %v3997_v26 = vpop.f32.mrf.mxu2 }
 0x3e3   :  { %v9390_v16 = vadd.f32 %v3997_v26, %v3788_v20  ;;  %v3227_v27 = vsel %vm3203_vm7, %v3162_v46, %v6427_v58  ;;  %v3420_v35 = vsel %vm3203_vm7, %v3356_v55, %v6426_v10  ;;  %v3791_v38 = vpop.f32.mrf.mxu1  ;;  %v9407_v55 = vld [vmem:[#allocation2 + $0x230] sm:$0xff]  ;;  %v3163_v58 = vsel %vm325_vm0, %v1050_v30, %v6437_v19 }
 0x3e4   :  { %v3292_v31 = vsel %vm3268_vm8, %v3227_v27, %v6432_v48  ;;  %v3484_v20 = vsel %vm3268_vm8, %v3420_v35, %v6431_v15  ;;  %v3357_v10 = vsel %vm325_vm0, %v1306_v0, %v6436_v56  ;;  %v6663_v48 = vpack.i.bf16 %v9203_v2, %v9407_v55 }
 0x3e5   :  { %6639 = vrot.lane.b32.xlu2 %v6638_v23, %s7124_s19  ;;  %6689 = vrot.lane.b32.xlu0 %v6688_v59, %s7123_s18  ;;  %v6451_v59 = vunpack.i.l.bf16 %v9353_v33  ;;  %v6703_v0 = vpack.i.bf16 %v1513_v43, %v9350_v54 }
 0x3e6   :  { %6649 = vrot.lane.b32.xlu1 %v6648_v51, %s7125_s22  ;;  %3838 = vmatmul.f32.gmra.mxu1 %v3292_v31  ;;  %v9412_v51 = vld [vmem:[#allocation2 + $0x25a] sm:$0xff]  ;;  %v9415_v35 = vpop.permute.xlu0 %6479  ;;  %v6447_v31 = vunpack.i.h.bf16 %v9343_v8 }
 0x3e7   :  { %4047 = vmatmul.f32.gmra.mxu2 %v3484_v20  ;;  %v9405_v46 = vpop.permute.xlu2 %6474  ;;  %5943 = vmatmul.msk.f32.gmra.mxu0 %vm325_vm0, %v9412_v51  ;;  %v6446_v20 = vunpack.i.l.bf16 %v9343_v8  ;;  %v1051_v8 = vld [vmem:[#allocation2 + $0x128] sm:$0xff]  ;;  %v6481_v3 = vunpack.i.l.bf16 %v9415_v35 }
 0x3e8   :  { %v6440_v53 = vpop.permute.xlu1 %6439 }
 0x3e9   :  { %v6442_v23 = vunpack.i.h.bf16 %v6440_v53  ;;  %v6441_v26 = vunpack.i.l.bf16 %v6440_v53  ;;  %v9434_v53 = vpop.f32.mrf.mxu0 }
 0x3ea   :  { %v4000_v27 = vpop.f32.mrf.mxu2  ;;  %12173 = vst [vmem:[#allocation10_spill] sm:$0xff] %v9434_v53 }
 0x3eb   :  { %v9421_v15 = vadd.f32 %v4000_v27, %v3791_v38  ;;  %v3228_v19 = vsel %vm3203_vm7, %v3163_v58, %v6442_v23  ;;  %v3421_v56 = vsel %vm3203_vm7, %v3357_v10, %v6441_v26  ;;  %v3794_v30 = vpop.f32.mrf.mxu1  ;;  %v1514_v58 = vld [vmem:[#allocation2 + $0x231] sm:$0xff]  ;;  %v1307_v10 = vld [vmem:[#allocation2 + $0x141] sm:$0xff] }
 0x3ec   :  { %v3293_v2 = vsel %vm3268_vm8, %v3228_v19, %v6447_v31  ;;  %v3485_v38 = vsel %vm3268_vm8, %v3421_v56, %v6446_v20  ;;  %v9438_v26 = vld [vmem:[#allocation2 + $0x240] sm:$0xff]  ;;  %v3358_v27 = vsel %vm325_vm0, %v1307_v10, %v6451_v59  ;;  %v6668_v56 = vpack.i.bf16 %v9345_v18, %v1514_v58 }
 0x3ed   :  { %6654 = vrot.lane.b32.xlu2 %v6653_v62, %s7124_s19  ;;  %v3164_v62 = vsel %vm325_vm0, %v1051_v8, %v6452_v1  ;;  %6704 = vrot.lane.b32.xlu0 %v6703_v0, %s7123_s18  ;;  %v9443_v19 = vld [vmem:[#allocation2 + $0x262] sm:$0xff]  ;;  %v6462_v0 = vunpack.i.h.bf16 %v9374_v9  ;;  %v6461_v8 = vunpack.i.l.bf16 %v9374_v9  ;;  %v6467_v18 = vunpack.i.h.bf16 %v9384_v6  ;;  %v1308_v9 = vld [vmem:[#allocation2 + $0x151] sm:$0xff] }
 0x3ee   :  { %6664 = vrot.lane.b32.xlu1 %v6663_v48, %s7125_s22  ;;  %3841 = vmatmul.f32.gmra.mxu1 %v3293_v2  ;;  %v9446_v20 = vpop.permute.xlu0 %6494  ;;  %v6678_v2 = vpack.i.bf16 %v9231_v21, %v9438_v26  ;;  %v6466_v10 = vunpack.i.l.bf16 %v9384_v6  ;;  %v9467_v6 = vld [vmem:[#allocation2 + $0x248] sm:$0xff] }
 0x3ef   :  { %4050 = vmatmul.f32.gmra.mxu2 %v3485_v38  ;;  %v9436_v23 = vpop.permute.xlu2 %6489  ;;  %5944 = vmatmul.msk.f32.gmra.mxu0 %vm325_vm0, %v9443_v19 }
 0x3f0   :  { %v6455_v33 = vpop.permute.xlu1 %6454 }
 0x3f1   :  { %v6457_v48 = vunpack.i.h.bf16 %v6455_v33  ;;  %v6456_v43 = vunpack.i.l.bf16 %v6455_v33 }
 0x3f2   :  { %v4003_v31 = vpop.f32.mrf.mxu2 }
 0x3f3   :  { %v9452_v1 = vadd.f32 %v4003_v31, %v3794_v30  ;;  %v3229_v59 = vsel %vm3203_vm7, %v3164_v62, %v6457_v48  ;;  %v3422_v38 = vsel %vm3203_vm7, %v3358_v27, %v6456_v43  ;;  %v3797_v33 = vpop.f32.mrf.mxu1  ;;  %v6718_v62 = vpack.i.bf16 %v1514_v58, %v9381_v25  ;;  %v1515_v27 = vld [vmem:[#allocation2 + $0x241] sm:$0xff]  ;;  %v1052_v48 = vld [vmem:[#allocation2 + $0x138] sm:$0xff] }
 0x3f4   :  { %v3294_v21 = vsel %vm3268_vm8, %v3229_v59, %v6462_v0  ;;  %v3486_v30 = vsel %vm3268_vm8, %v3422_v38, %v6461_v8  ;;  %v9472_v59 = vpop.f32.mrf.mxu0  ;;  %v9474_v0 = vld [vmem:[#allocation2 + $0x272] sm:$0xff]  ;;  %v6683_v8 = vpack.i.bf16 %v9376_v11, %v1515_v27  ;;  %v6482_v11 = vunpack.i.h.bf16 %v9415_v35 }
 0x3f5   :  { %6669 = vrot.lane.b32.xlu2 %v6668_v56, %s7124_s19  ;;  %v3165_v56 = vsel %vm325_vm0, %v1052_v48, %v6467_v18  ;;  %6719 = vrot.lane.b32.xlu0 %v6718_v62, %s7123_s18  ;;  %12174 = vst [vmem:[#allocation11_spill] sm:$0xff] %v9472_v59  ;;  %v6693_v18 = vpack.i.bf16 %v9260_v7, %v9467_v6  ;;  %v9498_v35 = vld [vmem:[#allocation2 + $0x258] sm:$0xff] }
 0x3f6   :  { %6679 = vrot.lane.b32.xlu1 %v6678_v2, %s7125_s22  ;;  %3844 = vmatmul.f32.gmra.mxu1 %v3294_v21  ;;  %v3359_v2 = vsel %vm325_vm0, %v1308_v9, %v6466_v10  ;;  %v6477_v9 = vunpack.i.h.bf16 %v9405_v46 }
 0x3f7   :  { %4053 = vmatmul.f32.gmra.mxu2 %v3486_v30  ;;  %v9465_v43 = vpop.permute.xlu2 %6504  ;;  %v9477_v30 = vpop.permute.xlu0 %6509  ;;  %5945 = vmatmul.msk.f32.gmra.mxu0 %vm325_vm0, %v9474_v0 }
 0x3f8   :  { %v6470_v31 = vpop.permute.xlu1 %6469 }
 0x3f9   :  { %v6472_v38 = vunpack.i.h.bf16 %v6470_v31  ;;  %v6471_v58 = vunpack.i.l.bf16 %v6470_v31  ;;  %v6476_v31 = vunpack.i.l.bf16 %v9405_v46  ;;  %v1309_v46 = vld [vmem:[#allocation2 + $0x159] sm:$0xff] }
 0x3fa   :  { %v4006_v21 = vpop.f32.mrf.mxu2 }
 0x3fb   :  { %v9483_v10 = vadd.f32 %v4006_v21, %v3797_v33  ;;  %v3230_v62 = vsel %vm3203_vm7, %v3165_v56, %v6472_v38  ;;  %v3423_v48 = vsel %vm3203_vm7, %v3359_v2, %v6471_v58  ;;  %v3800_v59 = vpop.f32.mrf.mxu1  ;;  %v6733_v56 = vpack.i.bf16 %v1515_v27, %v9412_v51  ;;  %v1516_v2 = vld [vmem:[#allocation2 + $0x249] sm:$0xff]  ;;  %v1053_v38 = vld [vmem:[#allocation2 + $0x140] sm:$0xff] }
 0x3fc   :  { %v3295_v7 = vsel %vm3268_vm8, %v3230_v62, %v6477_v9  ;;  %v3487_v33 = vsel %vm3268_vm8, %v3423_v48, %v6476_v31  ;;  %v6698_v27 = vpack.i.bf16 %v9407_v55, %v1516_v2  ;;  %v6496_v55 = vunpack.i.l.bf16 %v9446_v20 }
 0x3fd   :  { %6684 = vrot.lane.b32.xlu2 %v6683_v8, %s7124_s19  ;;  %v3166_v8 = vsel %vm325_vm0, %v1053_v38, %v6482_v11  ;;  %6734 = vrot.lane.b32.xlu0 %v6733_v56, %s7123_s18  ;;  %v6491_v56 = vunpack.i.l.bf16 %v9436_v23  ;;  %v6497_v38 = vunpack.i.h.bf16 %v9446_v20  ;;  %v9523_v20 = vld [vmem:[#allocation2 + $0x260] sm:$0xff] }
 0x3fe   :  { %6694 = vrot.lane.b32.xlu1 %v6693_v18, %s7125_s22  ;;  %3847 = vmatmul.f32.gmra.mxu1 %v3295_v7  ;;  %v3360_v18 = vsel %vm325_vm0, %v1309_v46, %v6481_v3  ;;  %v6708_v7 = vpack.i.bf16 %v9290_v39, %v9498_v35  ;;  %v6492_v3 = vunpack.i.h.bf16 %v9436_v23  ;;  %v1310_v23 = vld [vmem:[#allocation2 + $0x169] sm:$0xff] }
 0x3ff   :  { %4056 = vmatmul.f32.gmra.mxu2 %v3487_v33  ;;  %v9496_v58 = vpop.permute.xlu2 %6519  ;;  %v9504_v31 = vpop.permute.xlu0 %6524 }
 0x400   :  { %v6485_v21 = vpop.permute.xlu1 %6484 }
 0x401   :  { %v6487_v62 = vunpack.i.h.bf16 %v6485_v21  ;;  %v6486_v48 = vunpack.i.l.bf16 %v6485_v21  ;;  %v6748_v21 = vpack.i.bf16 %v1516_v2, %v9443_v19 }
 0x402   :  { %v4009_v9 = vpop.f32.mrf.mxu2 }
 0x403   :  { %v9508_v33 = vadd.f32 %v4009_v9, %v3800_v59  ;;  %v3231_v53 = vsel %vm3203_vm7, %v3166_v8, %v6487_v62  ;;  %v3424_v11 = vsel %vm3203_vm7, %v3360_v18, %v6486_v48  ;;  %v3803_v46 = vpop.f32.mrf.mxu1  ;;  %v1517_v8 = vld [vmem:[#allocation2 + $0x259] sm:$0xff]  ;;  %v1054_v18 = vld [vmem:[#allocation2 + $0x150] sm:$0xff]  ;;  %v3361_v9 = vsel %vm325_vm0, %v1310_v23, %v6496_v55 }
 0x404   :  { %v3296_v39 = vsel %vm3268_vm8, %v3231_v53, %v6492_v3  ;;  %v3488_v59 = vsel %vm3268_vm8, %v3424_v11, %v6491_v56  ;;  %v6713_v2 = vpack.i.bf16 %v9438_v26, %v1517_v8  ;;  %v6723_v56 = vpack.i.bf16 %v9321_v42, %v9523_v20 }
 0x405   :  { %6699 = vrot.lane.b32.xlu2 %v6698_v27, %s7124_s19  ;;  %v3167_v27 = vsel %vm325_vm0, %v1054_v18, %v6497_v38  ;;  %6749 = vrot.lane.b32.xlu0 %v6748_v21, %s7123_s18  ;;  %v6507_v55 = vunpack.i.h.bf16 %v9465_v43  ;;  %v6506_v21 = vunpack.i.l.bf16 %v9465_v43  ;;  %v6512_v18 = vunpack.i.h.bf16 %v9477_v30  ;;  %v1311_v43 = vld [vmem:[#allocation2 + $0x171] sm:$0xff] }
 0x406   :  { %6709 = vrot.lane.b32.xlu1 %v6708_v7, %s7125_s22  ;;  %3850 = vmatmul.f32.gmra.mxu1 %v3296_v39  ;;  %v6511_v26 = vunpack.i.l.bf16 %v9477_v30  ;;  %v9548_v30 = vld [vmem:[#allocation2 + $0x270] sm:$0xff] }
 0x407   :  { %4059 = vmatmul.f32.gmra.mxu2 %v3488_v59  ;;  %v9521_v62 = vpop.permute.xlu2 %6534  ;;  %v9529_v3 = vpop.permute.xlu0 %6539 }
 0x408   :  { %v6500_v48 = vpop.permute.xlu1 %6499 }
 0x409   :  { %v6502_v53 = vunpack.i.h.bf16 %v6500_v48  ;;  %v6501_v7 = vunpack.i.l.bf16 %v6500_v48  ;;  %v6763_v48 = vpack.i.bf16 %v1517_v8, %v9474_v0 }
 0x40a   :  { %v4012_v11 = vpop.f32.mrf.mxu2 }
 0x40b   :  { %v9533_v39 = vadd.f32 %v4012_v11, %v3803_v46  ;;  %v3232_v59 = vsel %vm3203_vm7, %v3167_v27, %v6502_v53  ;;  %v3425_v38 = vsel %vm3203_vm7, %v3361_v9, %v6501_v7  ;;  %v3806_v23 = vpop.f32.mrf.mxu1  ;;  %v1518_v27 = vld [vmem:[#allocation2 + $0x261] sm:$0xff]  ;;  %v1055_v9 = vld [vmem:[#allocation2 + $0x158] sm:$0xff]  ;;  %v3362_v11 = vsel %vm325_vm0, %v1311_v43, %v6511_v26 }
 0x40c   :  { %v3297_v42 = vsel %vm3268_vm8, %v3232_v59, %v6507_v55  ;;  %v3489_v46 = vsel %vm3268_vm8, %v3425_v38, %v6506_v21  ;;  %v6728_v8 = vpack.i.bf16 %v9467_v6, %v1518_v27  ;;  %v6738_v21 = vpack.i.bf16 %v9350_v54, %v9548_v30 }
 0x40d   :  { %6714 = vrot.lane.b32.xlu2 %v6713_v2, %s7124_s19  ;;  %v3168_v2 = vsel %vm325_vm0, %v1055_v9, %v6512_v18  ;;  %6764 = vrot.lane.b32.xlu0 %v6763_v48, %s7123_s18  ;;  %v9562_v9 = vld [vmem:[#allocation2 + $0x27a] sm:$0xff]  ;;  %v6522_v26 = vunpack.i.h.bf16 %v9496_v58  ;;  %v6521_v48 = vunpack.i.l.bf16 %v9496_v58  ;;  %v6527_v6 = vunpack.i.h.bf16 %v9504_v31 }
 0x40e   :  { %6724 = vrot.lane.b32.xlu1 %v6723_v56, %s7125_s22  ;;  %3853 = vmatmul.f32.gmra.mxu1 %v3297_v42  ;;  %v6526_v43 = vunpack.i.l.bf16 %v9504_v31  ;;  %v1312_v58 = vld [vmem:[#allocation2 + $0x181] sm:$0xff]  ;;  %v9575_v31 = vld [vmem:[#allocation2 + $0x278] sm:$0xff] }
 0x40f   :  { %4062 = vmatmul.f32.gmra.mxu2 %v3489_v46  ;;  %v9546_v53 = vpop.permute.xlu2 %6549  ;;  %v9554_v55 = vpop.permute.xlu0 %6554 }
 0x410   :  { %v6515_v7 = vpop.permute.xlu1 %6514 }
 0x411   :  { %v6517_v56 = vunpack.i.h.bf16 %v6515_v7  ;;  %v6516_v59 = vunpack.i.l.bf16 %v6515_v7 }
 0x412   :  { %v4015_v38 = vpop.f32.mrf.mxu2 }
 0x413   :  { %v9558_v42 = vadd.f32 %v4015_v38, %v3806_v23  ;;  %v3233_v46 = vsel %vm3203_vm7, %v3168_v2, %v6517_v56  ;;  %v3426_v18 = vsel %vm3203_vm7, %v3362_v11, %v6516_v59  ;;  %v3809_v7 = vpop.f32.mrf.mxu1  ;;  %v6778_v2 = vpack.i.bf16 %v1518_v27, %v9562_v9  ;;  %v1519_v11 = vld [vmem:[#allocation2 + $0x271] sm:$0xff]  ;;  %v1056_v56 = vld [vmem:[#allocation2 + $0x168] sm:$0xff] }
 0x414   :  { %v3298_v54 = vsel %vm3268_vm8, %v3233_v46, %v6522_v26  ;;  %v3490_v23 = vsel %vm3268_vm8, %v3426_v18, %v6521_v48  ;;  %v6743_v27 = vpack.i.bf16 %v9498_v35, %v1519_v11  ;;  %v6542_v35 = vunpack.i.h.bf16 %v9529_v3 }
 0x415   :  { %6729 = vrot.lane.b32.xlu2 %v6728_v8, %s7124_s19  ;;  %v3169_v8 = vsel %vm325_vm0, %v1056_v56, %v6527_v6  ;;  %6779 = vrot.lane.b32.xlu0 %v6778_v2, %s7123_s18  ;;  %v9589_v56 = vld [vmem:[#allocation2 + $0x28a] sm:$0xff]  ;;  %v6536_v2 = vunpack.i.l.bf16 %v9521_v62 }
 0x416   :  { %6739 = vrot.lane.b32.xlu1 %v6738_v21, %s7125_s22  ;;  %3856 = vmatmul.f32.gmra.mxu1 %v3298_v54  ;;  %v3363_v21 = vsel %vm325_vm0, %v1312_v58, %v6526_v43  ;;  %v6753_v54 = vpack.i.bf16 %v9381_v25, %v9575_v31  ;;  %v6537_v43 = vunpack.i.h.bf16 %v9521_v62  ;;  %v6541_v58 = vunpack.i.l.bf16 %v9529_v3  ;;  %v1313_v62 = vld [vmem:[#allocation2 + $0x189] sm:$0xff] }
 0x417   :  { %4065 = vmatmul.f32.gmra.mxu2 %v3490_v23  ;;  %v9573_v59 = vpop.permute.xlu2 %6564  ;;  %v9581_v48 = vpop.permute.xlu0 %6569  ;;  %v9602_v3 = vld [vmem:[#allocation2 + $0x288] sm:$0xff] }
 0x418   :  { %v6530_v38 = vpop.permute.xlu1 %6529 }
 0x419   :  { %v6532_v46 = vunpack.i.h.bf16 %v6530_v38  ;;  %v6531_v18 = vunpack.i.l.bf16 %v6530_v38 }
 0x41a   :  { %v4018_v26 = vpop.f32.mrf.mxu2 }
 0x41b   :  { %v9585_v23 = vadd.f32 %v4018_v26, %v3809_v7  ;;  %v3234_v45 = vsel %vm3203_vm7, %v3169_v8, %v6532_v46  ;;  %v3427_v6 = vsel %vm3203_vm7, %v3363_v21, %v6531_v18  ;;  %v3812_v38 = vpop.f32.mrf.mxu1  ;;  %v6793_v8 = vpack.i.bf16 %v1519_v11, %v9589_v56  ;;  %v1520_v21 = vld [vmem:[#allocation2 + $0x279] sm:$0xff]  ;;  %v1057_v46 = vld [vmem:[#allocation2 + $0x170] sm:$0xff] }
 0x41c   :  { %v3299_v25 = vsel %vm3268_vm8, %v3234_v45, %v6537_v43  ;;  %v3491_v7 = vsel %vm3268_vm8, %v3427_v6, %v6536_v2  ;;  %v6758_v11 = vpack.i.bf16 %v9523_v20, %v1520_v21  ;;  %v6557_v20 = vunpack.i.h.bf16 %v9554_v55 }
 0x41d   :  { %6744 = vrot.lane.b32.xlu2 %v6743_v27, %s7124_s19  ;;  %v3170_v27 = vsel %vm325_vm0, %v1057_v46, %v6542_v35  ;;  %6794 = vrot.lane.b32.xlu0 %v6793_v8, %s7123_s18  ;;  %v9616_v46 = vld [vmem:[#allocation2 + $0x292] sm:$0xff]  ;;  %v6551_v8 = vunpack.i.l.bf16 %v9546_v53 }
 0x41e   :  { %6754 = vrot.lane.b32.xlu1 %v6753_v54, %s7125_s22  ;;  %3859 = vmatmul.f32.gmra.mxu1 %v3299_v25  ;;  %v3364_v54 = vsel %vm325_vm0, %v1313_v62, %v6541_v58  ;;  %v6768_v25 = vpack.i.bf16 %v9412_v51, %v9602_v3  ;;  %v6552_v58 = vunpack.i.h.bf16 %v9546_v53  ;;  %v6556_v62 = vunpack.i.l.bf16 %v9554_v55  ;;  %v1314_v53 = vld [vmem:[#allocation2 + $0x1c9] sm:$0xff] }
 0x41f   :  { %4068 = vmatmul.f32.gmra.mxu2 %v3491_v7  ;;  %v9600_v18 = vpop.permute.xlu2 %6579  ;;  %v9608_v2 = vpop.permute.xlu0 %6584  ;;  %v9629_v55 = vld [vmem:[#allocation2 + $0x290] sm:$0xff] }
 0x420   :  { %v6545_v26 = vpop.permute.xlu1 %6544 }
 0x421   :  { %v6547_v45 = vunpack.i.h.bf16 %v6545_v26  ;;  %v6546_v6 = vunpack.i.l.bf16 %v6545_v26 }
 0x422   :  { %v4021_v43 = vpop.f32.mrf.mxu2 }
 0x423   :  { %v9612_v7 = vadd.f32 %v4021_v43, %v3812_v38  ;;  %v3235_v47 = vsel %vm3203_vm7, %v3170_v27, %v6547_v45  ;;  %v3428_v35 = vsel %vm3203_vm7, %v3364_v54, %v6546_v6  ;;  %v3815_v26 = vpop.f32.mrf.mxu1  ;;  %v6808_v27 = vpack.i.bf16 %v1520_v21, %v9616_v46  ;;  %v1521_v54 = vld [vmem:[#allocation2 + $0x289] sm:$0xff] }
 0x424   :  { %v3300_v51 = vsel %vm3268_vm8, %v3235_v47, %v6552_v58  ;;  %v3492_v38 = vsel %vm3268_vm8, %v3428_v35, %v6551_v8  ;;  %v3171_v43 = vsel %vm325_vm0, %v1058_v34, %v6557_v20  ;;  %v6773_v35 = vpack.i.bf16 %v9548_v30, %v1521_v54  ;;  %v9643_v20 = vld [vmem:[#allocation2 + $0x2a2] sm:$0xff] }
 0x425   :  { %6759 = vrot.lane.b32.xlu2 %v6758_v11, %s7124_s19  ;;  %v3365_v11 = vsel %vm325_vm0, %v1314_v53, %v6556_v62  ;;  %6809 = vrot.lane.b32.xlu0 %v6808_v27, %s7123_s18  ;;  %v6783_v8 = vpack.i.bf16 %v9443_v19, %v9629_v55  ;;  %v6567_v62 = vunpack.i.h.bf16 %v9573_v59  ;;  %v6566_v27 = vunpack.i.l.bf16 %v9573_v59  ;;  %v1315_v59 = vld [vmem:[#allocation2 + $0x1d1] sm:$0xff] }
 0x426   :  { %6769 = vrot.lane.b32.xlu1 %v6768_v25, %s7125_s22  ;;  %3862 = vmatmul.f32.gmra.mxu1 %v3300_v51  ;;  %v6572_v30 = vunpack.i.h.bf16 %v9581_v48  ;;  %v6571_v53 = vunpack.i.l.bf16 %v9581_v48  ;;  %v9656_v48 = vld [vmem:[#allocation2 + $0x2a0] sm:$0xff] }
 0x427   :  { %4071 = vmatmul.f32.gmra.mxu2 %v3492_v38  ;;  %v9627_v45 = vpop.permute.xlu2 %6594  ;;  %v9635_v58 = vpop.permute.xlu0 %6599 }
 0x428   :  { %v6560_v6 = vpop.permute.xlu1 %6559 }
 0x429   :  { %v6562_v47 = vunpack.i.h.bf16 %v6560_v6  ;;  %v6561_v25 = vunpack.i.l.bf16 %v6560_v6 }
 0x42a   :  { %v4024_v21 = vpop.f32.mrf.mxu2 }
 0x42b   :  { %v9639_v51 = vadd.f32 %v4024_v21, %v3815_v26  ;;  %v3236_v38 = vsel %vm3203_vm7, %v3171_v43, %v6562_v47  ;;  %v3429_v34 = vsel %vm3203_vm7, %v3365_v11, %v6561_v25  ;;  %v3818_v6 = vpop.f32.mrf.mxu1  ;;  %v6823_v43 = vpack.i.bf16 %v1521_v54, %v9643_v20  ;;  %v1522_v11 = vld [vmem:[#allocation2 + $0x291] sm:$0xff] }
 0x42c   :  { %v3301_v19 = vsel %vm3268_vm8, %v3236_v38, %v6567_v62  ;;  %v3493_v26 = vsel %vm3268_vm8, %v3429_v34, %v6566_v27  ;;  %v3172_v21 = vsel %vm325_vm0, %v1059_v22, %v6572_v30  ;;  %v6788_v34 = vpack.i.bf16 %v9575_v31, %v1522_v11  ;;  %v9670_v30 = vld [vmem:[#allocation2 + $0x2aa] sm:$0xff] }
 0x42d   :  { %12175 = vst [vmem:[#allocation12_spill] sm:$0xff] %v9639_v51  ;;  %6774 = vrot.lane.b32.xlu2 %v6773_v35, %s7124_s19  ;;  %v3366_v35 = vsel %vm325_vm0, %v1315_v59, %v6571_v53  ;;  %6824 = vrot.lane.b32.xlu0 %v6823_v43, %s7123_s18  ;;  %v6798_v27 = vpack.i.bf16 %v9474_v0, %v9656_v48  ;;  %v6582_v53 = vunpack.i.h.bf16 %v9600_v18  ;;  %v6581_v43 = vunpack.i.l.bf16 %v9600_v18  ;;  %v1316_v18 = vld [vmem:[#allocation2 + $0x1e1] sm:$0xff] }
 0x42e   :  { %6784 = vrot.lane.b32.xlu1 %v6783_v8, %s7125_s22  ;;  %3865 = vmatmul.f32.gmra.mxu1 %v3301_v19  ;;  %v6587_v31 = vunpack.i.h.bf16 %v9608_v2  ;;  %v6586_v59 = vunpack.i.l.bf16 %v9608_v2  ;;  %v9683_v2 = vld [vmem:[#allocation2 + $0x2a8] sm:$0xff] }
 0x42f   :  { %4074 = vmatmul.f32.gmra.mxu2 %v3493_v26  ;;  %v9654_v47 = vpop.permute.xlu2 %6609  ;;  %v9662_v62 = vpop.permute.xlu0 %6614 }
 0x430   :  { %v6575_v25 = vpop.permute.xlu1 %6574 }
 0x431   :  { %v6577_v8 = vunpack.i.h.bf16 %v6575_v25  ;;  %v6576_v38 = vunpack.i.l.bf16 %v6575_v25 }
 0x432   :  { %v4027_v54 = vpop.f32.mrf.mxu2 }
 0x433   :  { %v9666_v19 = vadd.f32 %v4027_v54, %v3818_v6  ;;  %v3237_v26 = vsel %vm3203_vm7, %v3172_v21, %v6577_v8  ;;  %v3430_v22 = vsel %vm3203_vm7, %v3366_v35, %v6576_v38  ;;  %v3821_v25 = vpop.f32.mrf.mxu1  ;;  %v6838_v21 = vpack.i.bf16 %v1522_v11, %v9670_v30  ;;  %v1523_v35 = vld [vmem:[#allocation2 + $0x2a1] sm:$0xff] }
 0x434   :  { %v3302_v0 = vsel %vm3268_vm8, %v3237_v26, %v6582_v53  ;;  %v3494_v6 = vsel %vm3268_vm8, %v3430_v22, %v6581_v43  ;;  %v1060_v8 = vld [vmem:[#allocation2 + $0x1c8] sm:$0xff]  ;;  %v6803_v11 = vpack.i.bf16 %v9602_v3, %v1523_v35  ;;  %v6602_v3 = vunpack.i.h.bf16 %v9635_v58 }
 0x435   :  { %12176 = vst [vmem:[#allocation13_spill] sm:$0xff] %v9666_v19  ;;  %6789 = vrot.lane.b32.xlu2 %v6788_v34, %s7124_s19  ;;  %v3173_v34 = vsel %vm325_vm0, %v1060_v8, %v6587_v31  ;;  %6839 = vrot.lane.b32.xlu0 %v6838_v21, %s7123_s18  ;;  %v9697_v8 = vld [vmem:[#allocation2 + $0x2ba] sm:$0xff]  ;;  %v6596_v21 = vunpack.i.l.bf16 %v9627_v45 }
 0x436   :  { %6799 = vrot.lane.b32.xlu1 %v6798_v27, %s7125_s22  ;;  %3868 = vmatmul.f32.gmra.mxu1 %v3302_v0  ;;  %v3367_v27 = vsel %vm325_vm0, %v1316_v18, %v6586_v59  ;;  %v6813_v0 = vpack.i.bf16 %v9562_v9, %v9683_v2  ;;  %v6597_v59 = vunpack.i.h.bf16 %v9627_v45  ;;  %v6601_v18 = vunpack.i.l.bf16 %v9635_v58  ;;  %v1317_v45 = vld [vmem:[#allocation2 + $0x1e9] sm:$0xff]  ;;  %v9710_v58 = vld [vmem:[#allocation2 + $0x2b8] sm:$0xff] }
 0x437   :  { %4077 = vmatmul.f32.gmra.mxu2 %v3494_v6  ;;  %v9681_v38 = vpop.permute.xlu2 %6624  ;;  %v9689_v43 = vpop.permute.xlu0 %6629 }
 0x438   :  { %v6590_v54 = vpop.permute.xlu1 %6589 }
 0x439   :  { %v6592_v26 = vunpack.i.h.bf16 %v6590_v54  ;;  %v6591_v22 = vunpack.i.l.bf16 %v6590_v54 }
 0x43a   :  { %v4030_v53 = vpop.f32.mrf.mxu2 }
 0x43b   :  { %v9693_v6 = vadd.f32 %v4030_v53, %v3821_v25  ;;  %v3238_v19 = vsel %vm3203_vm7, %v3173_v34, %v6592_v26  ;;  %v3431_v31 = vsel %vm3203_vm7, %v3367_v27, %v6591_v22  ;;  %v3824_v54 = vpop.f32.mrf.mxu1  ;;  %v6853_v34 = vpack.i.bf16 %v1523_v35, %v9697_v8  ;;  %v1524_v27 = vld [vmem:[#allocation2 + $0x2a9] sm:$0xff] }
 0x43c   :  { %v3303_v9 = vsel %vm3268_vm8, %v3238_v19, %v6597_v59  ;;  %v3495_v25 = vsel %vm3268_vm8, %v3431_v31, %v6596_v21  ;;  %v1061_v26 = vld [vmem:[#allocation2 + $0x1d0] sm:$0xff]  ;;  %v6818_v35 = vpack.i.bf16 %v9629_v55, %v1524_v27  ;;  %v6611_v55 = vunpack.i.l.bf16 %v9654_v47 }
 0x43d   :  { %12177 = vst [vmem:[#allocation14_spill] sm:$0xff] %v9693_v6  ;;  %6804 = vrot.lane.b32.xlu2 %v6803_v11, %s7124_s19  ;;  %v3174_v11 = vsel %vm325_vm0, %v1061_v26, %v6602_v3  ;;  %6854 = vrot.lane.b32.xlu0 %v6853_v34, %s7123_s18  ;;  %v9726_v26 = vld [vmem:[#allocation2 + $0x2c2] sm:$0xff]  ;;  %v6612_v34 = vunpack.i.h.bf16 %v9654_v47  ;;  %v1318_v47 = vld [vmem:[#allocation2 + $0x1f9] sm:$0xff] }
 0x43e   :  { %6814 = vrot.lane.b32.xlu1 %v6813_v0, %s7125_s22  ;;  %3871 = vmatmul.f32.gmra.mxu1 %v3303_v9  ;;  %v3368_v0 = vsel %vm325_vm0, %v1317_v45, %v6601_v18  ;;  %v9718_v9 = vpop.f32.mrf.mxu0  ;;  %v6617_v45 = vunpack.i.h.bf16 %v9662_v62 }
 0x43f   :  { %4080 = vmatmul.f32.gmra.mxu2 %v3495_v25  ;;  %v9708_v22 = vpop.permute.xlu2 %6639  ;;  %v9716_v21 = vpop.permute.xlu0 %6644  ;;  %12178 = vst [vmem:[#allocation16_spill] sm:$0xff] %v9718_v9  ;;  %v6828_v25 = vpack.i.bf16 %v9589_v56, %v9710_v58 }
 0x440   :  { %v6605_v53 = vpop.permute.xlu1 %6604 }
 0x441   :  { %v6607_v19 = vunpack.i.h.bf16 %v6605_v53  ;;  %v6606_v31 = vunpack.i.l.bf16 %v6605_v53  ;;  %v6616_v53 = vunpack.i.l.bf16 %v9662_v62  ;;  %v9739_v62 = vld [vmem:[#allocation2 + $0x2c0] sm:$0xff] }
 0x442   :  { %v4033_v59 = vpop.f32.mrf.mxu2 }
 0x443   :  { %v9722_v6 = vadd.f32 %v4033_v59, %v3824_v54  ;;  %v3239_v3 = vsel %vm3203_vm7, %v3174_v11, %v6607_v19  ;;  %v3432_v18 = vsel %vm3203_vm7, %v3368_v0, %v6606_v31  ;;  %v3827_v9 = vpop.f32.mrf.mxu1  ;;  %v6868_v11 = vpack.i.bf16 %v1524_v27, %v9726_v26  ;;  %v1525_v0 = vld [vmem:[#allocation2 + $0x2b9] sm:$0xff] }
 0x444   :  { %v3304_v56 = vsel %vm3268_vm8, %v3239_v3, %v6612_v34  ;;  %v3496_v54 = vsel %vm3268_vm8, %v3432_v18, %v6611_v55  ;;  %v1062_v19 = vld [vmem:[#allocation2 + $0x1e0] sm:$0xff]  ;;  %v6833_v27 = vpack.i.bf16 %v9656_v48, %v1525_v0  ;;  %v6632_v48 = vunpack.i.h.bf16 %v9689_v43 }
 0x445   :  { %12179 = vst [vmem:[#allocation18_spill] sm:$0xff] %v9722_v6  ;;  %6819 = vrot.lane.b32.xlu2 %v6818_v35, %s7124_s19  ;;  %v3175_v35 = vsel %vm325_vm0, %v1062_v19, %v6617_v45  ;;  %6869 = vrot.lane.b32.xlu0 %v6868_v11, %s7123_s18  ;;  %v9753_v19 = vld [vmem:[#allocation2 + $0x2d2] sm:$0xff]  ;;  %v6626_v11 = vunpack.i.l.bf16 %v9681_v38 }
 0x446   :  { %6829 = vrot.lane.b32.xlu1 %v6828_v25, %s7125_s22  ;;  %3874 = vmatmul.f32.gmra.mxu1 %v3304_v56  ;;  %v3369_v25 = vsel %vm325_vm0, %v1318_v47, %v6616_v53  ;;  %v6843_v56 = vpack.i.bf16 %v9616_v46, %v9739_v62  ;;  %v6627_v53 = vunpack.i.h.bf16 %v9681_v38  ;;  %v6631_v47 = vunpack.i.l.bf16 %v9689_v43  ;;  %v9759_v51 = vpop.f32.mrf.mxu0  ;;  %v1063_v38 = vld [vmem:[#allocation2 + $0x1e8] sm:$0xff] }
 0x447   :  { %4083 = vmatmul.f32.gmra.mxu2 %v3496_v54  ;;  %v9737_v31 = vpop.permute.xlu2 %6654  ;;  %v9745_v55 = vpop.permute.xlu0 %6659  ;;  %12181 = vst [vmem:[#allocation20_spill] sm:$0xff] %v9759_v51 }
 0x448   :  { %v6620_v59 = vpop.permute.xlu1 %6619 }
 0x449   :  { %v6622_v3 = vunpack.i.h.bf16 %v6620_v59  ;;  %v6621_v18 = vunpack.i.l.bf16 %v6620_v59 }
 0x44a   :  { %v4036_v34 = vpop.f32.mrf.mxu2 }
 0x44b   :  { %v9749_v54 = vadd.f32 %v4036_v34, %v3827_v9  ;;  %v3240_v6 = vsel %vm3203_vm7, %v3175_v35, %v6622_v3  ;;  %v3433_v45 = vsel %vm3203_vm7, %v3369_v25, %v6621_v18  ;;  %v3830_v59 = vpop.f32.mrf.mxu1  ;;  %v6883_v35 = vpack.i.bf16 %v1525_v0, %v9753_v19  ;;  %v1526_v25 = vld [vmem:[#allocation2 + $0x2c1] sm:$0xff]  ;;  %v9768_v34 = vld [vmem:[#allocation2 + $0x2d0] sm:$0xff] }
 0x44c   :  { %v3305_v46 = vsel %vm3268_vm8, %v3240_v6, %v6627_v53  ;;  %v3497_v9 = vsel %vm3268_vm8, %v3433_v45, %v6626_v11  ;;  %v1319_v3 = vld [vmem:[#allocation2 + $0x201] sm:$0xff]  ;;  %v6848_v0 = vpack.i.bf16 %v9683_v2, %v1526_v25  ;;  %v6647_v2 = vunpack.i.h.bf16 %v9716_v21 }
 0x44d   :  { %12180 = vst [vmem:[#allocation19_spill] sm:$0xff] %v9749_v54  ;;  %6834 = vrot.lane.b32.xlu2 %v6833_v27, %s7124_s19  ;;  %v3176_v27 = vsel %vm325_vm0, %v1063_v38, %v6632_v48  ;;  %6884 = vrot.lane.b32.xlu0 %v6883_v35, %s7123_s18  ;;  %v9782_v38 = vld [vmem:[#allocation2 + $0x2da] sm:$0xff]  ;;  %v6641_v35 = vunpack.i.l.bf16 %v9708_v22 }
 0x44e   :  { %6844 = vrot.lane.b32.xlu1 %v6843_v56, %s7125_s22  ;;  %3877 = vmatmul.f32.gmra.mxu1 %v3305_v46  ;;  %v3370_v56 = vsel %vm325_vm0, %v1319_v3, %v6631_v47  ;;  %v6858_v46 = vpack.i.bf16 %v9643_v20, %v9768_v34  ;;  %v6642_v47 = vunpack.i.h.bf16 %v9708_v22  ;;  %v6646_v3 = vunpack.i.l.bf16 %v9716_v21  ;;  %v1064_v22 = vld [vmem:[#allocation2 + $0x1f8] sm:$0xff] }
 0x44f   :  { %4086 = vmatmul.f32.gmra.mxu2 %v3497_v9  ;;  %v9766_v18 = vpop.permute.xlu2 %6669  ;;  %v9774_v11 = vpop.permute.xlu0 %6674 }
 0x450   :  { %v6635_v43 = vpop.permute.xlu1 %6634 }
 0x451   :  { %v6637_v6 = vunpack.i.h.bf16 %v6635_v43  ;;  %v6636_v45 = vunpack.i.l.bf16 %v6635_v43 }
 0x452   :  { %v4039_v53 = vpop.f32.mrf.mxu2 }
 0x453   :  { %v9778_v9 = vadd.f32 %v4039_v53, %v3830_v59  ;;  %v3241_v51 = vsel %vm3203_vm7, %v3176_v27, %v6637_v6  ;;  %v3434_v48 = vsel %vm3203_vm7, %v3370_v56, %v6636_v45  ;;  %v3833_v43 = vpop.f32.mrf.mxu1  ;;  %v6898_v27 = vpack.i.bf16 %v1526_v25, %v9782_v38  ;;  %v9793_v56 = vpop.f32.mrf.mxu0  ;;  %v1527_v6 = vld [vmem:[#allocation2 + $0x2d1] sm:$0xff] }
 0x454   :  { %v3306_v20 = vsel %vm3268_vm8, %v3241_v51, %v6642_v47  ;;  %v3498_v59 = vsel %vm3268_vm8, %v3434_v48, %v6641_v35  ;;  %12183 = vst [vmem:[#allocation22_spill] sm:$0xff] %v9793_v56  ;;  %v1320_v45 = vld [vmem:[#allocation2 + $0x211] sm:$0xff]  ;;  %v6863_v48 = vpack.i.bf16 %v9710_v58, %v1527_v6  ;;  %v6662_v58 = vunpack.i.h.bf16 %v9745_v55 }
 0x455   :  { %12182 = vst [vmem:[#allocation21_spill] sm:$0xff] %v9778_v9  ;;  %6849 = vrot.lane.b32.xlu2 %v6848_v0, %s7124_s19  ;;  %v9797_v9 = vld [vmem:[#allocation2 + $0x2d8] sm:$0xff]  ;;  %v3177_v0 = vsel %vm325_vm0, %v1064_v22, %v6647_v2  ;;  %v3371_v51 = vsel %vm325_vm0, %v1320_v45, %v6646_v3  ;;  %6899 = vrot.lane.b32.xlu0 %v6898_v27, %s7123_s18  ;;  %v9811_v22 = vld [vmem:[#allocation2 + $0x2ea] sm:$0xff]  ;;  %v6657_v3 = vunpack.i.h.bf16 %v9737_v31  ;;  %v6656_v27 = vunpack.i.l.bf16 %v9737_v31 }
 0x456   :  { %6859 = vrot.lane.b32.xlu1 %v6858_v46, %s7125_s22  ;;  %3880 = vmatmul.f32.gmra.mxu1 %v3306_v20  ;;  %v6873_v20 = vpack.i.bf16 %v9670_v30, %v9797_v9  ;;  %v6661_v45 = vunpack.i.l.bf16 %v9745_v55  ;;  %v1321_v31 = vld [vmem:[#allocation2 + $0x219] sm:$0xff]  ;;  %v9824_v55 = vld [vmem:[#allocation2 + $0x2e8] sm:$0xff] }
 0x457   :  { %4089 = vmatmul.f32.gmra.mxu2 %v3498_v59  ;;  %v9795_v53 = vpop.permute.xlu2 %6684  ;;  %v9803_v35 = vpop.permute.xlu0 %6689 }
 0x458   :  { %v6650_v21 = vpop.permute.xlu1 %6649 }
 0x459   :  { %v6652_v46 = vunpack.i.h.bf16 %v6650_v21  ;;  %v6651_v25 = vunpack.i.l.bf16 %v6650_v21 }
 0x45a   :  { %v4042_v47 = vpop.f32.mrf.mxu2 }
 0x45b   :  { %v9807_v59 = vadd.f32 %v4042_v47, %v3833_v43  ;;  %v3242_v56 = vsel %vm3203_vm7, %v3177_v0, %v6652_v46  ;;  %v3435_v2 = vsel %vm3203_vm7, %v3371_v51, %v6651_v25  ;;  %v3836_v21 = vpop.f32.mrf.mxu1  ;;  %v6913_v0 = vpack.i.bf16 %v1527_v6, %v9811_v22  ;;  %v1528_v51 = vld [vmem:[#allocation2 + $0x2d9] sm:$0xff] }
 0x45c   :  { %v3307_v30 = vsel %vm3268_vm8, %v3242_v56, %v6657_v3  ;;  %v3499_v43 = vsel %vm3268_vm8, %v3435_v2, %v6656_v27  ;;  %v1065_v46 = vld [vmem:[#allocation2 + $0x200] sm:$0xff]  ;;  %v9829_v56 = vpop.f32.mrf.mxu0  ;;  %v6878_v3 = vpack.i.bf16 %v9739_v62, %v1528_v51  ;;  %v6677_v62 = vunpack.i.h.bf16 %v9774_v11 }
 0x45d   :  { %12184 = vst [vmem:[#allocation23_spill] sm:$0xff] %v9807_v59  ;;  %6864 = vrot.lane.b32.xlu2 %v6863_v48, %s7124_s19  ;;  %v3178_v48 = vsel %vm325_vm0, %v1065_v46, %v6662_v58  ;;  %6914 = vrot.lane.b32.xlu0 %v6913_v0, %s7123_s18  ;;  %v9840_v46 = vld [vmem:[#allocation2 + $0x2f2] sm:$0xff]  ;;  %v6672_v0 = vunpack.i.h.bf16 %v9766_v18 }
 0x45e   :  { %6874 = vrot.lane.b32.xlu1 %v6873_v20, %s7125_s22  ;;  %3883 = vmatmul.f32.gmra.mxu1 %v3307_v30  ;;  %v3372_v20 = vsel %vm325_vm0, %v1321_v31, %v6661_v45  ;;  %12185 = vst [vmem:[#allocation24_spill] sm:$0xff] %v9829_v56  ;;  %v6671_v31 = vunpack.i.l.bf16 %v9766_v18  ;;  %v1322_v18 = vld [vmem:[#allocation2 + $0x229] sm:$0xff] }
 0x45f   :  { %4092 = vmatmul.f32.gmra.mxu2 %v3499_v43  ;;  %v9822_v25 = vpop.permute.xlu2 %6699  ;;  %v9832_v30 = vpop.permute.xlu0 %6704  ;;  %v6888_v43 = vpack.i.bf16 %v9697_v8, %v9824_v55 }
 0x460   :  { %v6665_v47 = vpop.permute.xlu1 %6664 }
 0x461   :  { %v6667_v2 = vunpack.i.h.bf16 %v6665_v47  ;;  %v6666_v6 = vunpack.i.l.bf16 %v6665_v47  ;;  %v6676_v47 = vunpack.i.l.bf16 %v9774_v11  ;;  %v9853_v11 = vld [vmem:[#allocation2 + $0x2f0] sm:$0xff] }
 0x462   :  { %v4045_v27 = vpop.f32.mrf.mxu2 }
 0x463   :  { %v9836_v59 = vadd.f32 %v4045_v27, %v3836_v21  ;;  %v3243_v58 = vsel %vm3203_vm7, %v3178_v48, %v6667_v2  ;;  %v3436_v45 = vsel %vm3203_vm7, %v3372_v20, %v6666_v6  ;;  %v3839_v56 = vpop.f32.mrf.mxu1  ;;  %v6928_v48 = vpack.i.bf16 %v1528_v51, %v9840_v46  ;;  %v1529_v20 = vld [vmem:[#allocation2 + $0x2e9] sm:$0xff] }
 0x464   :  { %v3308_v8 = vsel %vm3268_vm8, %v3243_v58, %v6672_v0  ;;  %v3500_v21 = vsel %vm3268_vm8, %v3436_v45, %v6671_v31  ;;  %v1066_v2 = vld [vmem:[#allocation2 + $0x210] sm:$0xff]  ;;  %v6893_v51 = vpack.i.bf16 %v9768_v34, %v1529_v20  ;;  %v6686_v34 = vunpack.i.l.bf16 %v9795_v53 }
 0x465   :  { %12186 = vst [vmem:[#allocation25_spill] sm:$0xff] %v9836_v59  ;;  %6879 = vrot.lane.b32.xlu2 %v6878_v3, %s7124_s19  ;;  %v3179_v3 = vsel %vm325_vm0, %v1066_v2, %v6677_v62  ;;  %6929 = vrot.lane.b32.xlu0 %v6928_v48, %s7123_s18  ;;  %v9869_v2 = vld [vmem:[#allocation2 + $0x302] sm:$0xff]  ;;  %v6687_v48 = vunpack.i.h.bf16 %v9795_v53  ;;  %v1323_v53 = vld [vmem:[#allocation2 + $0x231] sm:$0xff] }
 0x466   :  { %6889 = vrot.lane.b32.xlu1 %v6888_v43, %s7125_s22  ;;  %3886 = vmatmul.f32.gmra.mxu1 %v3308_v8  ;;  %v3373_v43 = vsel %vm325_vm0, %v1322_v18, %v6676_v47  ;;  %v9861_v8 = vpop.f32.mrf.mxu0  ;;  %v6692_v18 = vunpack.i.h.bf16 %v9803_v35 }
 0x467   :  { %4095 = vmatmul.f32.gmra.mxu2 %v3500_v21  ;;  %v9851_v6 = vpop.permute.xlu2 %6714  ;;  %v9859_v31 = vpop.permute.xlu0 %6719  ;;  %12187 = vst [vmem:[#allocation26_spill] sm:$0xff] %v9861_v8  ;;  %v6903_v21 = vpack.i.bf16 %v9726_v26, %v9853_v11 }
 0x468   :  { %v6680_v27 = vpop.permute.xlu1 %6679 }
 0x469   :  { %v6682_v58 = vunpack.i.h.bf16 %v6680_v27  ;;  %v6681_v45 = vunpack.i.l.bf16 %v6680_v27  ;;  %v6691_v27 = vunpack.i.l.bf16 %v9803_v35  ;;  %v9882_v35 = vld [vmem:[#allocation2 + $0x300] sm:$0xff] }
 0x46a   :  { %v4048_v0 = vpop.f32.mrf.mxu2 }
 0x46b   :  { %v9865_v59 = vadd.f32 %v4048_v0, %v3839_v56  ;;  %v3244_v62 = vsel %vm3203_vm7, %v3179_v3, %v6682_v58  ;;  %v3437_v47 = vsel %vm3203_vm7, %v3373_v43, %v6681_v45  ;;  %v3842_v8 = vpop.f32.mrf.mxu1  ;;  %v6943_v3 = vpack.i.bf16 %v1529_v20, %v9869_v2  ;;  %v1530_v43 = vld [vmem:[#allocation2 + $0x2f1] sm:$0xff] }
 0x46c   :  { %v3309_v26 = vsel %vm3268_vm8, %v3244_v62, %v6687_v48  ;;  %v3501_v56 = vsel %vm3268_vm8, %v3437_v47, %v6686_v34  ;;  %v1067_v58 = vld [vmem:[#allocation2 + $0x218] sm:$0xff]  ;;  %v6908_v20 = vpack.i.bf16 %v9797_v9, %v1530_v43  ;;  %v6707_v9 = vunpack.i.h.bf16 %v9832_v30 }
 0x46d   :  { %12188 = vst [vmem:[#allocation27_spill] sm:$0xff] %v9865_v59  ;;  %6894 = vrot.lane.b32.xlu2 %v6893_v51, %s7124_s19  ;;  %v3180_v51 = vsel %vm325_vm0, %v1067_v58, %v6692_v18  ;;  %6944 = vrot.lane.b32.xlu0 %v6943_v3, %s7123_s18  ;;  %v9896_v58 = vld [vmem:[#allocation2 + $0x30a] sm:$0xff]  ;;  %v6701_v3 = vunpack.i.l.bf16 %v9822_v25 }
 0x46e   :  { %6904 = vrot.lane.b32.xlu1 %v6903_v21, %s7125_s22  ;;  %3889 = vmatmul.f32.gmra.mxu1 %v3309_v26  ;;  %v3374_v21 = vsel %vm325_vm0, %v1323_v53, %v6691_v27  ;;  %v6918_v26 = vpack.i.bf16 %v9753_v19, %v9882_v35  ;;  %v6702_v27 = vunpack.i.h.bf16 %v9822_v25  ;;  %v6706_v53 = vunpack.i.l.bf16 %v9832_v30  ;;  %v9902_v54 = vpop.f32.mrf.mxu0  ;;  %v1068_v25 = vld [vmem:[#allocation2 + $0x228] sm:$0xff] }
 0x46f   :  { %4098 = vmatmul.f32.gmra.mxu2 %v3501_v56  ;;  %v9880_v45 = vpop.permute.xlu2 %6729  ;;  %v9888_v34 = vpop.permute.xlu0 %6734  ;;  %12189 = vst [vmem:[#allocation28_spill] sm:$0xff] %v9902_v54 }
 0x470   :  { %v6695_v0 = vpop.permute.xlu1 %6694 }
 0x471   :  { %v6697_v62 = vunpack.i.h.bf16 %v6695_v0  ;;  %v6696_v47 = vunpack.i.l.bf16 %v6695_v0 }
 0x472   :  { %v4051_v48 = vpop.f32.mrf.mxu2 }
 0x473   :  { %v9892_v56 = vadd.f32 %v4051_v48, %v3842_v8  ;;  %v3245_v59 = vsel %vm3203_vm7, %v3180_v51, %v6697_v62  ;;  %v3438_v18 = vsel %vm3203_vm7, %v3374_v21, %v6696_v47  ;;  %v3845_v0 = vpop.f32.mrf.mxu1  ;;  %v6958_v51 = vpack.i.bf16 %v1530_v43, %v9896_v58  ;;  %v1531_v21 = vld [vmem:[#allocation2 + $0x301] sm:$0xff] }
 0x474   :  { %v3310_v19 = vsel %vm3268_vm8, %v3245_v59, %v6702_v27  ;;  %v3502_v8 = vsel %vm3268_vm8, %v3438_v18, %v6701_v3  ;;  %v1324_v62 = vld [vmem:[#allocation2 + $0x241] sm:$0xff]  ;;  %v6923_v43 = vpack.i.bf16 %v9824_v55, %v1531_v21  ;;  %v6722_v55 = vunpack.i.h.bf16 %v9859_v31 }
 0x475   :  { %6909 = vrot.lane.b32.xlu2 %v6908_v20, %s7124_s19  ;;  %v9911_v48 = vld [vmem:[#allocation2 + $0x308] sm:$0xff]  ;;  %v3181_v20 = vsel %vm325_vm0, %v1068_v25, %v6707_v9  ;;  %6959 = vrot.lane.b32.xlu0 %v6958_v51, %s7123_s18  ;;  %v9925_v25 = vld [vmem:[#allocation2 + $0x31a] sm:$0xff]  ;;  %v6716_v51 = vunpack.i.l.bf16 %v9851_v6 }
 0x476   :  { %6919 = vrot.lane.b32.xlu1 %v6918_v26, %s7125_s22  ;;  %3892 = vmatmul.f32.gmra.mxu1 %v3310_v19  ;;  %v3375_v26 = vsel %vm325_vm0, %v1324_v62, %v6706_v53  ;;  %v6933_v19 = vpack.i.bf16 %v9782_v38, %v9911_v48  ;;  %v6717_v53 = vunpack.i.h.bf16 %v9851_v6  ;;  %v6721_v62 = vunpack.i.l.bf16 %v9859_v31  ;;  %v1069_v6 = vld [vmem:[#allocation2 + $0x230] sm:$0xff] }
 0x477   :  { %4101 = vmatmul.f32.gmra.mxu2 %v3502_v8  ;;  %v9909_v47 = vpop.permute.xlu2 %6744  ;;  %v9917_v3 = vpop.permute.xlu0 %6749 }
 0x478   :  { %v6710_v30 = vpop.permute.xlu1 %6709 }
 0x479   :  { %v6712_v59 = vunpack.i.h.bf16 %v6710_v30  ;;  %v6711_v18 = vunpack.i.l.bf16 %v6710_v30 }
 0x47a   :  { %v4054_v27 = vpop.f32.mrf.mxu2 }
 0x47b   :  { %v9921_v8 = vadd.f32 %v4054_v27, %v3845_v0  ;;  %v3246_v54 = vsel %vm3203_vm7, %v3181_v20, %v6712_v59  ;;  %v3439_v9 = vsel %vm3203_vm7, %v3375_v26, %v6711_v18  ;;  %v3848_v30 = vpop.f32.mrf.mxu1  ;;  %v6973_v20 = vpack.i.bf16 %v1531_v21, %v9925_v25  ;;  %v9936_v26 = vpop.f32.mrf.mxu0  ;;  %v1532_v59 = vld [vmem:[#allocation2 + $0x309] sm:$0xff] }
 0x47c   :  { %v3311_v38 = vsel %vm3268_vm8, %v3246_v54, %v6717_v53  ;;  %v3503_v0 = vsel %vm3268_vm8, %v3439_v9, %v6716_v51  ;;  %12191 = vst [vmem:[#allocation30_spill] sm:$0xff] %v9936_v26  ;;  %v1325_v18 = vld [vmem:[#allocation2 + $0x249] sm:$0xff]  ;;  %v6938_v9 = vpack.i.bf16 %v9853_v11, %v1532_v59  ;;  %v6737_v11 = vunpack.i.h.bf16 %v9888_v34 }
 0x47d   :  { %12190 = vst [vmem:[#allocation29_spill] sm:$0xff] %v9921_v8  ;;  %6924 = vrot.lane.b32.xlu2 %v6923_v43, %s7124_s19  ;;  %v9940_v8 = vld [vmem:[#allocation2 + $0x318] sm:$0xff]  ;;  %v3182_v43 = vsel %vm325_vm0, %v1069_v6, %v6722_v55  ;;  %v3376_v54 = vsel %vm325_vm0, %v1325_v18, %v6721_v62  ;;  %6974 = vrot.lane.b32.xlu0 %v6973_v20, %s7123_s18  ;;  %v9954_v6 = vld [vmem:[#allocation2 + $0x322] sm:$0xff]  ;;  %v6732_v62 = vunpack.i.h.bf16 %v9880_v45  ;;  %v6731_v20 = vunpack.i.l.bf16 %v9880_v45 }
 0x47e   :  { %6934 = vrot.lane.b32.xlu1 %v6933_v19, %s7125_s22  ;;  %3895 = vmatmul.f32.gmra.mxu1 %v3311_v38  ;;  %v6948_v38 = vpack.i.bf16 %v9811_v22, %v9940_v8  ;;  %v6736_v18 = vunpack.i.l.bf16 %v9888_v34  ;;  %v1326_v45 = vld [vmem:[#allocation2 + $0x259] sm:$0xff] }
 0x47f   :  { %4104 = vmatmul.f32.gmra.mxu2 %v3503_v0  ;;  %v9938_v27 = vpop.permute.xlu2 %6759  ;;  %v9946_v51 = vpop.permute.xlu0 %6764  ;;  %v9967_v34 = vld [vmem:[#allocation2 + $0x320] sm:$0xff] }
 0x480   :  { %v6725_v31 = vpop.permute.xlu1 %6724 }
 0x481   :  { %v6727_v19 = vunpack.i.h.bf16 %v6725_v31  ;;  %v6726_v21 = vunpack.i.l.bf16 %v6725_v31 }
 0x482   :  { %v4057_v53 = vpop.f32.mrf.mxu2 }
 0x483   :  { %v9950_v0 = vadd.f32 %v4057_v53, %v3848_v30  ;;  %v3247_v26 = vsel %vm3203_vm7, %v3182_v43, %v6727_v19  ;;  %v3440_v55 = vsel %vm3203_vm7, %v3376_v54, %v6726_v21  ;;  %v3851_v31 = vpop.f32.mrf.mxu1  ;;  %v6988_v43 = vpack.i.bf16 %v1532_v59, %v9954_v6  ;;  %v1533_v54 = vld [vmem:[#allocation2 + $0x319] sm:$0xff] }
 0x484   :  { %v3312_v22 = vsel %vm3268_vm8, %v3247_v26, %v6732_v62  ;;  %v3504_v30 = vsel %vm3268_vm8, %v3440_v55, %v6731_v20  ;;  %v1070_v19 = vld [vmem:[#allocation2 + $0x240] sm:$0xff]  ;;  %v9972_v26 = vpop.f32.mrf.mxu0  ;;  %v6953_v62 = vpack.i.bf16 %v9882_v35, %v1533_v54  ;;  %v6751_v35 = vunpack.i.l.bf16 %v9917_v3 }
 0x485   :  { %12192 = vst [vmem:[#allocation31_spill] sm:$0xff] %v9950_v0  ;;  %6939 = vrot.lane.b32.xlu2 %v6938_v9, %s7124_s19  ;;  %v3183_v9 = vsel %vm325_vm0, %v1070_v19, %v6737_v11  ;;  %6989 = vrot.lane.b32.xlu0 %v6988_v43, %s7123_s18  ;;  %v1408_v19 = vld [vmem:[#allocation2 + $0x332] sm:$0xff]  ;;  %v6747_v43 = vunpack.i.h.bf16 %v9909_v47 }
 0x486   :  { %6949 = vrot.lane.b32.xlu1 %v6948_v38, %s7125_s22  ;;  %3898 = vmatmul.f32.gmra.mxu1 %v3312_v22  ;;  %v3377_v38 = vsel %vm325_vm0, %v1326_v45, %v6736_v18  ;;  %12193 = vst [vmem:[#allocation15_spill] sm:$0xff] %v9972_v26  ;;  %v6746_v45 = vunpack.i.l.bf16 %v9909_v47 }
 0x487   :  { %4107 = vmatmul.f32.gmra.mxu2 %v3504_v30  ;;  %v9965_v21 = vpop.permute.xlu2 %6774  ;;  %v9975_v22 = vpop.permute.xlu0 %6779  ;;  %v6963_v30 = vpack.i.bf16 %v9840_v46, %v9967_v34 }
 0x488   :  { %v6740_v53 = vpop.permute.xlu1 %6739 }
 0x489   :  { %v6742_v55 = vunpack.i.h.bf16 %v6740_v53  ;;  %v6741_v59 = vunpack.i.l.bf16 %v6740_v53  ;;  %v6752_v53 = vunpack.i.h.bf16 %v9917_v3 }
 0x48a   :  { %v4060_v20 = vpop.f32.mrf.mxu2 }
 0x48b   :  { %v9979_v0 = vadd.f32 %v4060_v20, %v3851_v31  ;;  %v3248_v11 = vsel %vm3203_vm7, %v3183_v9, %v6742_v55  ;;  %v3441_v18 = vsel %vm3203_vm7, %v3377_v38, %v6741_v59  ;;  %v3854_v26 = vpop.f32.mrf.mxu1  ;;  %v7003_v9 = vpack.i.bf16 %v1533_v54, %v1408_v19  ;;  %v1534_v38 = vld [vmem:[#allocation2 + $0x321] sm:$0xff] }
 0x48c   :  { %v3313_v46 = vsel %vm3268_vm8, %v3248_v11, %v6747_v43  ;;  %v3505_v31 = vsel %vm3268_vm8, %v3441_v18, %v6746_v45  ;;  %v1071_v55 = vld [vmem:[#allocation2 + $0x248] sm:$0xff]  ;;  %v6968_v54 = vpack.i.bf16 %v9911_v48, %v1534_v38  ;;  %v10001_v43 = vpop.f32.mrf.mxu0  ;;  %v6767_v48 = vunpack.i.h.bf16 %v9946_v51 }
 0x48d   :  { %12194 = vst [vmem:[#allocation17_spill] sm:$0xff] %v9979_v0  ;;  %6954 = vrot.lane.b32.xlu2 %v6953_v62, %s7124_s19  ;;  %v1327_v59 = vld [vmem:[#allocation2 + $0x261] sm:$0xff]  ;;  %v9993_v0 = vld [vmem:[#allocation2 + $0x330] sm:$0xff]  ;;  %v3184_v3 = vsel %vm325_vm0, %v1071_v55, %v6752_v53  ;;  %7004 = vrot.lane.b32.xlu0 %v7003_v9, %s7123_s18  ;;  %v6762_v9 = vunpack.i.h.bf16 %v9938_v27  ;;  %v6761_v55 = vunpack.i.l.bf16 %v9938_v27 }
 0x48e   :  { %6964 = vrot.lane.b32.xlu1 %v6963_v30, %s7125_s22  ;;  %3901 = vmatmul.f32.gmra.mxu1 %v3313_v46  ;;  %v3378_v62 = vsel %vm325_vm0, %v1327_v59, %v6751_v35  ;;  %12195 = vst [vmem:[#allocation33_spill] sm:$0xff] %v10001_v43  ;;  %v6978_v45 = vpack.i.bf16 %v9869_v2, %v9993_v0  ;;  %v6766_v59 = vunpack.i.l.bf16 %v9946_v51  ;;  %v10019_v43 = vld [vmem:[#allocation2 + $0x338] sm:$0xff] }
 0x48f   :  { %4110 = vmatmul.f32.gmra.mxu2 %v3505_v31  ;;  %v9991_v47 = vpop.permute.xlu2 %6789  ;;  %v9999_v19 = vpop.permute.xlu0 %6794  ;;  %v1409_v31 = vld [vmem:[#allocation2 + $0x33a] sm:$0xff] }
 0x490   :  { %v6755_v20 = vpop.permute.xlu1 %6754 }
 0x491   :  { %v6757_v30 = vunpack.i.h.bf16 %v6755_v20  ;;  %v6756_v11 = vunpack.i.l.bf16 %v6755_v20 }
 0x492   :  { %v4063_v18 = vpop.f32.mrf.mxu2 }
 0x493   :  { %v10005_v46 = vadd.f32 %v4063_v18, %v3854_v26  ;;  %v3249_v53 = vsel %vm3203_vm7, %v3184_v3, %v6757_v30  ;;  %v3442_v35 = vsel %vm3203_vm7, %v3378_v62, %v6756_v11  ;;  %v3857_v20 = vpop.f32.mrf.mxu1  ;;  %v7018_v3 = vpack.i.bf16 %v1534_v38, %v1409_v31  ;;  %v1535_v62 = vld [vmem:[#allocation2 + $0x331] sm:$0xff] }
 0x494   :  { %v3314_v2 = vsel %vm3268_vm8, %v3249_v53, %v6762_v9  ;;  %v3506_v26 = vsel %vm3268_vm8, %v3442_v35, %v6761_v55  ;;  %v1072_v30 = vld [vmem:[#allocation2 + $0x258] sm:$0xff]  ;;  %v6983_v38 = vpack.i.bf16 %v9940_v8, %v1535_v62  ;;  %v6993_v9 = vpack.i.bf16 %v9896_v58, %v10019_v43 }
 0x495   :  { %6969 = vrot.lane.b32.xlu2 %v6968_v54, %s7124_s19  ;;  %v1328_v11 = vld [vmem:[#allocation2 + $0x271] sm:$0xff]  ;;  %v3185_v51 = vsel %vm325_vm0, %v1072_v30, %v6767_v48  ;;  %7019 = vrot.lane.b32.xlu0 %v7018_v3, %s7123_s18  ;;  %v6782_v3 = vunpack.i.h.bf16 %v9975_v22  ;;  %v6781_v8 = vunpack.i.l.bf16 %v9975_v22  ;;  %v10037_v30 = vpop.f32.mrf.mxu0  ;;  %v1473_v22 = vld [vmem:[#allocation2 + $0x348] sm:$0xff] }
 0x496   :  { %6979 = vrot.lane.b32.xlu1 %v6978_v45, %s7125_s22  ;;  %3904 = vmatmul.f32.gmra.mxu1 %v3314_v2  ;;  %v3379_v54 = vsel %vm325_vm0, %v1328_v11, %v6766_v59  ;;  %v6777_v59 = vunpack.i.h.bf16 %v9965_v21  ;;  %v1536_v11 = vld [vmem:[#allocation2 + $0x339] sm:$0xff] }
 0x497   :  { %4113 = vmatmul.f32.gmra.mxu2 %v3506_v26  ;;  %v10017_v27 = vpop.permute.xlu2 %6804  ;;  %v10025_v31 = vpop.permute.xlu0 %6809  ;;  %v6776_v26 = vunpack.i.l.bf16 %v9965_v21  ;;  %v1329_v21 = vld [vmem:[#allocation2 + $0x279] sm:$0xff] }
 0x498   :  { %v6770_v18 = vpop.permute.xlu1 %6769 }
 0x499   :  { %v6772_v45 = vunpack.i.h.bf16 %v6770_v18  ;;  %v6771_v53 = vunpack.i.l.bf16 %v6770_v18  ;;  %v1073_v18 = vld [vmem:[#allocation2 + $0x260] sm:$0xff] }
 0x49a   :  { %v4066_v35 = vpop.f32.mrf.mxu2 }
 0x49b   :  { %v10029_v55 = vadd.f32 %v4066_v35, %v3857_v20  ;;  %v3250_v2 = vsel %vm3203_vm7, %v3185_v51, %v6772_v45  ;;  %v3443_v48 = vsel %vm3203_vm7, %v3379_v54, %v6771_v53  ;;  %v3860_v62 = vpop.f32.mrf.mxu1  ;;  %v3186_v45 = vsel %vm325_vm0, %v1073_v18, %v6782_v3 }
 0x49c   :  { %v3315_v58 = vsel %vm3268_vm8, %v3250_v2, %v6777_v59  ;;  %v3507_v20 = vsel %vm3268_vm8, %v3443_v48, %v6776_v26  ;;  %v3380_v53 = vsel %vm325_vm0, %v1329_v21, %v6781_v8  ;;  %v7008_v59 = vpack.i.bf16 %v9925_v25, %v1473_v22  ;;  %v1074_v21 = vld [vmem:[#allocation2 + $0x270] sm:$0xff] }
 0x49d   :  { %6984 = vrot.lane.b32.xlu2 %v6983_v38, %s7124_s19  ;;  %2049 = vrot.lane.b32.xlu0 %v9954_v6, %s7125_s22  ;;  %v6792_v8 = vunpack.i.h.bf16 %v9991_v47  ;;  %v6797_v6 = vunpack.i.h.bf16 %v9999_v19  ;;  %v6796_v18 = vunpack.i.l.bf16 %v9999_v19  ;;  %v1537_v22 = vld [vmem:[#allocation2 + $0x349] sm:$0xff] }
 0x49e   :  { %6994 = vrot.lane.b32.xlu1 %v6993_v9, %s7125_s22  ;;  %3907 = vmatmul.f32.gmra.mxu1 %v3315_v58  ;;  %v6998_v9 = vpack.i.bf16 %v9967_v34, %v1536_v11  ;;  %v10065_v11 = vpop.f32.mrf.mxu0 }
 0x49f   :  { %4116 = vmatmul.f32.gmra.mxu2 %v3507_v20  ;;  %v10043_v51 = vpop.permute.xlu2 %6819  ;;  %v10050_v48 = vpop.permute.xlu0 %6824  ;;  %v6791_v20 = vunpack.i.l.bf16 %v9991_v47  ;;  %v3187_v19 = vsel %vm325_vm0, %v1074_v21, %v6797_v6  ;;  %v6806_v6 = vunpack.i.l.bf16 %v10017_v27 }
 0x4a0   :  { %v6785_v54 = vpop.permute.xlu1 %6784 }
 0x4a1   :  { %v6787_v38 = vunpack.i.h.bf16 %v6785_v54  ;;  %v6786_v35 = vunpack.i.l.bf16 %v6785_v54  ;;  %v1330_v54 = vld [vmem:[#allocation2 + $0x289] sm:$0xff] }
 0x4a2   :  { %v4069_v2 = vpop.f32.mrf.mxu2 }
 0x4a3   :  { %v10053_v26 = vadd.f32 %v4069_v2, %v3860_v62  ;;  %v3251_v58 = vsel %vm3203_vm7, %v3186_v45, %v6787_v38  ;;  %v3444_v3 = vsel %vm3203_vm7, %v3380_v53, %v6786_v35  ;;  %v3863_v34 = vpop.f32.mrf.mxu1  ;;  %v3381_v53 = vsel %vm325_vm0, %v1330_v54, %v6796_v18  ;;  %v1075_v54 = vld [vmem:[#allocation2 + $0x278] sm:$0xff] }
 0x4a4   :  { %v3316_v25 = vsel %vm3268_vm8, %v3251_v58, %v6792_v8  ;;  %v3508_v62 = vsel %vm3268_vm8, %v3444_v3, %v6791_v20  ;;  %v1474_v58 = vld [vmem:[#allocation2 + $0x350] sm:$0xff]  ;;  %v6812_v18 = vunpack.i.h.bf16 %v10025_v31 }
 0x4a5   :  { %6999 = vrot.lane.b32.xlu2 %v6998_v9, %s7124_s19 }
 0x4a6   :  { %7009 = vrot.lane.b32.xlu1 %v7008_v59, %s7125_s22  ;;  %3910 = vmatmul.f32.gmra.mxu1 %v3316_v25  ;;  %v7013_v59 = vpack.i.bf16 %v9993_v0, %v1537_v22  ;;  %v6807_v25 = vunpack.i.h.bf16 %v10017_v27  ;;  %v1331_v22 = vld [vmem:[#allocation2 + $0x291] sm:$0xff] }
 0x4a7   :  { %4119 = vmatmul.f32.gmra.mxu2 %v3508_v62  ;;  %v10067_v47 = vpop.permute.xlu2 %6834  ;;  %v10071_v2 = vpop.permute.xlu0 %6839  ;;  %v6811_v62 = vunpack.i.l.bf16 %v10025_v31 }
 0x4a8   :  { %v6800_v45 = vpop.permute.xlu1 %6799 }
 0x4a9   :  { %v6802_v38 = vunpack.i.h.bf16 %v6800_v45  ;;  %v6801_v35 = vunpack.i.l.bf16 %v6800_v45  ;;  %v3382_v31 = vsel %vm325_vm0, %v1331_v22, %v6811_v62  ;;  %v6827_v62 = vunpack.i.h.bf16 %v10050_v48  ;;  %v1076_v22 = vld [vmem:[#allocation2 + $0x288] sm:$0xff] }
 0x4aa   :  { %v4072_v9 = vpop.f32.mrf.mxu2 }
 0x4ab   :  { %v10074_v3 = vadd.f32 %v4072_v9, %v3863_v34  ;;  %v3252_v8 = vsel %vm3203_vm7, %v3187_v19, %v6802_v38  ;;  %v3445_v20 = vsel %vm3203_vm7, %v3381_v53, %v6801_v35  ;;  %v3866_v21 = vpop.f32.mrf.mxu1  ;;  %v3188_v19 = vsel %vm325_vm0, %v1075_v54, %v6812_v18  ;;  %v10090_v53 = vpop.f32.mrf.mxu0 }
 0x4ac   :  { %v3317_v0 = vsel %vm3268_vm8, %v3252_v8, %v6807_v25  ;;  %v3509_v34 = vsel %vm3268_vm8, %v3445_v20, %v6806_v6  ;;  %12196 = vst [vmem:[#allocation34_spill] sm:$0xff] %v10090_v53  ;;  %v1538_v25 = vld [vmem:[#allocation2 + $0x351] sm:$0xff]  ;;  %v6822_v6 = vunpack.i.h.bf16 %v10043_v51  ;;  %v6821_v18 = vunpack.i.l.bf16 %v10043_v51 }
 0x4ad   :  { %7014 = vrot.lane.b32.xlu2 %v7013_v59, %s7124_s19 }
 0x4ae   :  { %2817 = vrot.lane.b32.xlu1 %v1474_v58, %s7125_s22  ;;  %3913 = vmatmul.f32.gmra.mxu1 %v3317_v0  ;;  %v6826_v0 = vunpack.i.l.bf16 %v10050_v48  ;;  %s5889_s22 = sshll.u32 %s12030_s10, 4  ;;  %s5890_s22 = int_to_ptr.hbm [resolvable:$true] %s5889_s22 }
 0x4af   :  { %4122 = vmatmul.f32.gmra.mxu2 %v3509_v34  ;;  %v10086_v45 = vpop.permute.xlu2 %6849  ;;  %v10092_v59 = vpop.permute.xlu0 %6854 }
 0x4b0   :  { %v6815_v27 = vpop.permute.xlu1 %6814 }
 0x4b1   :  { %v6817_v38 = vunpack.i.h.bf16 %v6815_v27  ;;  %v6816_v35 = vunpack.i.l.bf16 %v6815_v27  ;;  %v1332_v27 = vld [vmem:[#allocation2 + $0x2a1] sm:$0xff] }
 0x4b2   :  { %v4075_v9 = vpop.f32.mrf.mxu2  ;;  %v3383_v48 = vsel %vm325_vm0, %v1332_v27, %v6826_v0 }
 0x4b3   :  { %v10094_v58 = vadd.f32 %v4075_v9, %v3866_v21  ;;  %v3253_v8 = vsel %vm3203_vm7, %v3188_v19, %v6817_v38  ;;  %v3446_v20 = vsel %vm3203_vm7, %v3382_v31, %v6816_v35  ;;  %v3869_v34 = vpop.f32.mrf.mxu1  ;;  %v3189_v31 = vsel %vm325_vm0, %v1076_v22, %v6827_v62 }
 0x4b4   :  { %v3318_v21 = vsel %vm3268_vm8, %v3253_v8, %v6822_v6  ;;  %v3510_v54 = vsel %vm3268_vm8, %v3446_v20, %v6821_v18  ;;  %v4287_v6 = vpop.f32.mrf.mxu0  ;;  %v6837_v18 = vunpack.i.h.bf16 %v10067_v47  ;;  %v6841_v62 = vunpack.i.l.bf16 %v10071_v2 }
 0x4b5   :  { %3073 = vrot.lane.b32.xlu2 %v1538_v25, %s7124_s19 }
 0x4b6   :  { %2305 = vrot.lane.b32.xlu1 %v10019_v43, %s7124_s19  ;;  %3916 = vmatmul.f32.gmra.mxu1 %v3318_v21  ;;  %v6836_v21 = vunpack.i.l.bf16 %v10067_v47 }
 0x4b7   :  { %4125 = vmatmul.f32.gmra.mxu2 %v3510_v54  ;;  %v10107_v19 = vpop.permute.xlu2 %6864  ;;  %v10111_v9 = vpop.permute.xlu0 %6869  ;;  %v6842_v54 = vunpack.i.h.bf16 %v10071_v2 }
 0x4b8   :  { %v6830_v51 = vpop.permute.xlu1 %6829 }
 0x4b9   :  { %v6832_v38 = vunpack.i.h.bf16 %v6830_v51  ;;  %v6831_v35 = vunpack.i.l.bf16 %v6830_v51  ;;  %v1077_v51 = vld [vmem:[#allocation2 + $0x290] sm:$0xff] }
 0x4ba   :  { %v4078_v43 = vpop.f32.mrf.mxu2  ;;  %v3190_v47 = vsel %vm325_vm0, %v1077_v51, %v6842_v54  ;;  %v6856_v54 = vunpack.i.l.bf16 %v10092_v59 }
 0x4bb   :  { %v4079_v8 = vadd.f32 %v4078_v43, %v3869_v34  ;;  %v3254_v20 = vsel %vm3203_vm7, %v3189_v31, %v6832_v38  ;;  %v3447_v25 = vsel %vm3203_vm7, %v3383_v48, %v6831_v35  ;;  %v3872_v0 = vpop.f32.mrf.mxu1  ;;  %v1333_v31 = vld [vmem:[#allocation2 + $0x2a9] sm:$0xff] }
 0x4bc   :  { %v3319_v27 = vsel %vm3268_vm8, %v3254_v20, %v6837_v18  ;;  %v3511_v34 = vsel %vm3268_vm8, %v3447_v25, %v6836_v21  ;;  %v3384_v35 = vsel %vm325_vm0, %v1333_v31, %v6841_v62  ;;  %v6852_v18 = vunpack.i.h.bf16 %v10086_v45 }
 0x4bd   :  { %v10119_v22 = vadd.f32 %v4287_v6, %v4079_v8  ;;  %v6851_v21 = vunpack.i.l.bf16 %v10086_v45 }
 0x4be   :  { %3919 = vmatmul.f32.gmra.mxu1 %v3319_v27  ;;  %v6857_v27 = vunpack.i.h.bf16 %v10092_v59 }
 0x4bf   :  { %12197 = vst [vmem:[#allocation35_spill] sm:$0xff] %v10119_v22  ;;  %4128 = vmatmul.f32.gmra.mxu2 %v3511_v34  ;;  %v10123_v48 = vpop.permute.xlu2 %6879  ;;  %v10127_v8 = vpop.permute.xlu0 %6884 }
 0x4c0   :  { %v6845_v38 = vpop.permute.xlu1 %6844 }
 0x4c1   :  { %v6847_v43 = vunpack.i.h.bf16 %v6845_v38  ;;  %v6846_v2 = vunpack.i.l.bf16 %v6845_v38 }
 0x4c2   :  { %v4081_v53 = vpop.f32.mrf.mxu2 }
 0x4c3   :  { %v10129_v6 = vadd.f32 %v4081_v53, %v3872_v0  ;;  %v3255_v20 = vsel %vm3203_vm7, %v3190_v47, %v6847_v43  ;;  %v3448_v25 = vsel %vm3203_vm7, %v3384_v35, %v6846_v2  ;;  %v3875_v62 = vpop.f32.mrf.mxu1  ;;  %v1078_v53 = vld [vmem:[#allocation2 + $0x2a0] sm:$0xff] }
 0x4c4   :  { %v3320_v34 = vsel %vm3268_vm8, %v3255_v20, %v6852_v18  ;;  %v3512_v51 = vsel %vm3268_vm8, %v3448_v25, %v6851_v21  ;;  %v1334_v0 = vld [vmem:[#allocation2 + $0x2b9] sm:$0xff]  ;;  %v3191_v38 = vsel %vm325_vm0, %v1078_v53, %v6857_v27  ;;  %v6867_v18 = vunpack.i.h.bf16 %v10107_v19 }
 0x4c5   :  { %v3385_v47 = vsel %vm325_vm0, %v1334_v0, %v6856_v54  ;;  %v6866_v21 = vunpack.i.l.bf16 %v10107_v19  ;;  %v6872_v27 = vunpack.i.h.bf16 %v10111_v9  ;;  %v6871_v54 = vunpack.i.l.bf16 %v10111_v9  ;;  %v1335_v0 = vld [vmem:[#allocation2 + $0x2c1] sm:$0xff] }
 0x4c6   :  { %3922 = vmatmul.f32.gmra.mxu1 %v3320_v34 }
 0x4c7   :  { %4131 = vmatmul.f32.gmra.mxu2 %v3512_v51  ;;  %v6895_v35 = vpop.permute.xlu2 %6894  ;;  %v10141_v22 = vpop.permute.xlu0 %6899 }
 0x4c8   :  { %v6860_v31 = vpop.permute.xlu1 %6859 }
 0x4c9   :  { %v6862_v45 = vunpack.i.h.bf16 %v6860_v31  ;;  %v6861_v43 = vunpack.i.l.bf16 %v6860_v31 }
 0x4ca   :  { %v4084_v2 = vpop.f32.mrf.mxu2 }
 0x4cb   :  { %v10143_v59 = vadd.f32 %v4084_v2, %v3875_v62  ;;  %v3256_v20 = vsel %vm3203_vm7, %v3191_v38, %v6862_v45  ;;  %v3449_v25 = vsel %vm3203_vm7, %v3385_v47, %v6861_v43  ;;  %v3878_v34 = vpop.f32.mrf.mxu1  ;;  %v1079_v62 = vld [vmem:[#allocation2 + $0x2a8] sm:$0xff]  ;;  %v3386_v47 = vsel %vm325_vm0, %v1335_v0, %v6871_v54  ;;  %v1336_v0 = vld [vmem:[#allocation2 + $0x2d1] sm:$0xff] }
 0x4cc   :  { %v3321_v51 = vsel %vm3268_vm8, %v3256_v20, %v6867_v18  ;;  %v3513_v53 = vsel %vm3268_vm8, %v3449_v25, %v6866_v21  ;;  %v3192_v38 = vsel %vm325_vm0, %v1079_v62, %v6872_v27  ;;  %v6882_v18 = vunpack.i.h.bf16 %v10123_v48 }
 0x4cd   :  { %12198 = vst [vmem:[#allocation36_spill] sm:$0xff] %v10143_v59  ;;  %v6881_v21 = vunpack.i.l.bf16 %v10123_v48  ;;  %v6886_v27 = vunpack.i.l.bf16 %v10127_v8 }
 0x4ce   :  { %3925 = vmatmul.f32.gmra.mxu1 %v3321_v51  ;;  %v6887_v51 = vunpack.i.h.bf16 %v10127_v8 }
 0x4cf   :  { %4134 = vmatmul.f32.gmra.mxu2 %v3513_v53  ;;  %v6910_v2 = vpop.permute.xlu2 %6909  ;;  %v6915_v25 = vpop.permute.xlu0 %6914 }
 0x4d0   :  { %v6875_v31 = vpop.permute.xlu1 %6874 }
 0x4d1   :  { %v6877_v45 = vunpack.i.h.bf16 %v6875_v31  ;;  %v6876_v19 = vunpack.i.l.bf16 %v6875_v31 }
 0x4d2   :  { %v4087_v43 = vpop.f32.mrf.mxu2 }
 0x4d3   :  { %v10155_v59 = vadd.f32 %v4087_v43, %v3878_v34  ;;  %v3257_v9 = vsel %vm3203_vm7, %v3192_v38, %v6877_v45  ;;  %v3450_v20 = vsel %vm3203_vm7, %v3386_v47, %v6876_v19  ;;  %v3881_v54 = vpop.f32.mrf.mxu1  ;;  %v1080_v34 = vld [vmem:[#allocation2 + $0x2b8] sm:$0xff]  ;;  %v3387_v47 = vsel %vm325_vm0, %v1336_v0, %v6886_v27 }
 0x4d4   :  { %v3322_v53 = vsel %vm3268_vm8, %v3257_v9, %v6882_v18  ;;  %v3514_v62 = vsel %vm3268_vm8, %v3450_v20, %v6881_v21  ;;  %v3193_v38 = vsel %vm325_vm0, %v1080_v34, %v6887_v51  ;;  %v6897_v18 = vunpack.i.h.bf16 %v6895_v35  ;;  %v1337_v0 = vld [vmem:[#allocation2 + $0x2d9] sm:$0xff] }
 0x4d5   :  { %12199 = vst [vmem:[#allocation37_spill] sm:$0xff] %v10155_v59  ;;  %v6896_v20 = vunpack.i.l.bf16 %v6895_v35  ;;  %v6902_v21 = vunpack.i.h.bf16 %v10141_v22 }
 0x4d6   :  { %3928 = vmatmul.f32.gmra.mxu1 %v3322_v53  ;;  %v6901_v53 = vunpack.i.l.bf16 %v10141_v22 }
 0x4d7   :  { %4137 = vmatmul.f32.gmra.mxu2 %v3514_v62  ;;  %v6925_v59 = vpop.permute.xlu2 %6924  ;;  %v6930_v51 = vpop.permute.xlu0 %6929 }
 0x4d8   :  { %v6890_v31 = vpop.permute.xlu1 %6889  ;;  %v3388_v35 = vsel %vm325_vm0, %v1337_v0, %v6901_v53  ;;  %v1082_v53 = vld [vmem:[#allocation2 + $0x2d0] sm:$0xff] }
 0x4d9   :  { %v6892_v45 = vunpack.i.h.bf16 %v6890_v31  ;;  %v6891_v48 = vunpack.i.l.bf16 %v6890_v31  ;;  %v1338_v0 = vld [vmem:[#allocation2 + $0x2e9] sm:$0xff] }
 0x4da   :  { %v4090_v19 = vpop.f32.mrf.mxu2 }
 0x4db   :  { %v10167_v43 = vadd.f32 %v4090_v19, %v3881_v54  ;;  %v3258_v8 = vsel %vm3203_vm7, %v3193_v38, %v6892_v45  ;;  %v3451_v9 = vsel %vm3203_vm7, %v3387_v47, %v6891_v48  ;;  %v3884_v62 = vpop.f32.mrf.mxu1  ;;  %v1081_v54 = vld [vmem:[#allocation2 + $0x2c0] sm:$0xff] }
 0x4dc   :  { %v3323_v27 = vsel %vm3268_vm8, %v3258_v8, %v6897_v18  ;;  %v3515_v34 = vsel %vm3268_vm8, %v3451_v9, %v6896_v20  ;;  %v3194_v38 = vsel %vm325_vm0, %v1081_v54, %v6902_v21  ;;  %v6912_v18 = vunpack.i.h.bf16 %v6910_v2 }
 0x4dd   :  { %12200 = vst [vmem:[#allocation38_spill] sm:$0xff] %v10167_v43  ;;  %v6911_v9 = vunpack.i.l.bf16 %v6910_v2  ;;  %v6917_v20 = vunpack.i.h.bf16 %v6915_v25 }
 0x4de   :  { %3931 = vmatmul.f32.gmra.mxu1 %v3323_v27  ;;  %v6916_v27 = vunpack.i.l.bf16 %v6915_v25 }
 0x4df   :  { %4140 = vmatmul.f32.gmra.mxu2 %v3515_v34  ;;  %v6940_v54 = vpop.permute.xlu2 %6939 }
 0x4e0   :  { %v6905_v31 = vpop.permute.xlu1 %6904 }
 0x4e1   :  { %v6907_v47 = vunpack.i.h.bf16 %v6905_v31  ;;  %v6906_v45 = vunpack.i.l.bf16 %v6905_v31 }
 0x4e2   :  { %v4093_v48 = vpop.f32.mrf.mxu2 }
 0x4e3   :  { %v10177_v22 = vadd.f32 %v4093_v48, %v3884_v62  ;;  %v3259_v19 = vsel %vm3203_vm7, %v3194_v38, %v6907_v47  ;;  %v3452_v8 = vsel %vm3203_vm7, %v3388_v35, %v6906_v45  ;;  %v3887_v34 = vpop.f32.mrf.mxu1  ;;  %v6945_v62 = vpop.permute.xlu0 %6944  ;;  %v3195_v38 = vsel %vm325_vm0, %v1082_v53, %v6917_v20  ;;  %v1339_v53 = vld [vmem:[#allocation2 + $0x2f1] sm:$0xff] }
 0x4e4   :  { %v3324_v43 = vsel %vm3268_vm8, %v3259_v19, %v6912_v18  ;;  %v3516_v21 = vsel %vm3268_vm8, %v3452_v8, %v6911_v9  ;;  %v3389_v35 = vsel %vm325_vm0, %v1338_v0, %v6916_v27  ;;  %v6927_v8 = vunpack.i.h.bf16 %v6925_v59  ;;  %v1083_v27 = vld [vmem:[#allocation2 + $0x2d8] sm:$0xff] }
 0x4e5   :  { %12201 = vst [vmem:[#allocation39_spill] sm:$0xff] %v10177_v22  ;;  %v6932_v18 = vunpack.i.h.bf16 %v6930_v51  ;;  %v6931_v9 = vunpack.i.l.bf16 %v6930_v51 }
 0x4e6   :  { %3934 = vmatmul.f32.gmra.mxu1 %v3324_v43  ;;  %v6926_v43 = vunpack.i.l.bf16 %v6925_v59 }
 0x4e7   :  { %4143 = vmatmul.f32.gmra.mxu2 %v3516_v21 }
 0x4e8   :  { %v6920_v31 = vpop.permute.xlu1 %6919 }
 0x4e9   :  { %v6922_v47 = vunpack.i.h.bf16 %v6920_v31  ;;  %v6921_v2 = vunpack.i.l.bf16 %v6920_v31  ;;  %v3390_v31 = vsel %vm325_vm0, %v1339_v53, %v6931_v9  ;;  %v1084_v53 = vld [vmem:[#allocation2 + $0x2e8] sm:$0xff] }
 0x4ea   :  { %v4096_v45 = vpop.f32.mrf.mxu2 }
 0x4eb   :  { %v10185_v25 = vadd.f32 %v4096_v45, %v3887_v34  ;;  %v3260_v48 = vsel %vm3203_vm7, %v3195_v38, %v6922_v47  ;;  %v3453_v19 = vsel %vm3203_vm7, %v3389_v35, %v6921_v2  ;;  %v3890_v21 = vpop.f32.mrf.mxu1  ;;  %v3196_v34 = vsel %vm325_vm0, %v1083_v27, %v6932_v18  ;;  %v6955_v38 = vpop.permute.xlu2 %6954 }
 0x4ec   :  { %v3325_v22 = vsel %vm3268_vm8, %v3260_v48, %v6927_v8  ;;  %v3517_v20 = vsel %vm3268_vm8, %v3453_v19, %v6926_v43  ;;  %v6960_v59 = vpop.permute.xlu0 %6959  ;;  %v6941_v19 = vunpack.i.l.bf16 %v6940_v54  ;;  %v6947_v8 = vunpack.i.h.bf16 %v6945_v62  ;;  %v10199_v27 = vpop.f32.mrf.mxu3 }
 0x4ed   :  { %v6946_v43 = vunpack.i.l.bf16 %v6945_v62  ;;  %12203 = vst [vmem:[#allocation41_spill] sm:$0xff] %v10199_v27  ;;  %v6961_v27 = vunpack.i.l.bf16 %v6960_v59 }
 0x4ee   :  { %3937 = vmatmul.f32.gmra.mxu1 %v3325_v22  ;;  %v6942_v22 = vunpack.i.h.bf16 %v6940_v54 }
 0x4ef   :  { %4146 = vmatmul.f32.gmra.mxu2 %v3517_v20 }
 0x4f0   :  { %v6935_v0 = vpop.permute.xlu1 %6934 }
 0x4f1   :  { %v6937_v35 = vunpack.i.h.bf16 %v6935_v0  ;;  %v6936_v47 = vunpack.i.l.bf16 %v6935_v0 }
 0x4f2   :  { %v4099_v2 = vpop.f32.mrf.mxu2 }
 0x4f3   :  { %v10193_v51 = vadd.f32 %v4099_v2, %v3890_v21  ;;  %v3261_v45 = vsel %vm3203_vm7, %v3196_v34, %v6937_v35  ;;  %v3454_v48 = vsel %vm3203_vm7, %v3390_v31, %v6936_v47  ;;  %v3893_v20 = vpop.f32.mrf.mxu1  ;;  %v1340_v21 = vld [vmem:[#allocation2 + $0x301] sm:$0xff]  ;;  %v3197_v34 = vsel %vm325_vm0, %v1084_v53, %v6947_v8  ;;  %v6970_v62 = vpop.permute.xlu2 %6969  ;;  %v1085_v53 = vld [vmem:[#allocation2 + $0x2f0] sm:$0xff] }
 0x4f4   :  { %v3326_v18 = vsel %vm3268_vm8, %v3261_v45, %v6942_v22  ;;  %v3518_v9 = vsel %vm3268_vm8, %v3454_v48, %v6941_v19  ;;  %v3391_v31 = vsel %vm325_vm0, %v1340_v21, %v6946_v43  ;;  %v6975_v22 = vpop.permute.xlu0 %6974  ;;  %v6957_v19 = vunpack.i.h.bf16 %v6955_v38  ;;  %v1341_v21 = vld [vmem:[#allocation2 + $0x309] sm:$0xff] }
 0x4f5   :  { %12202 = vst [vmem:[#allocation40_spill] sm:$0xff] %v10193_v51 }
 0x4f6   :  { %3940 = vmatmul.f32.gmra.mxu1 %v3326_v18  ;;  %v6956_v18 = vunpack.i.l.bf16 %v6955_v38 }
 0x4f7   :  { %4149 = vmatmul.f32.gmra.mxu2 %v3518_v9  ;;  %v6962_v9 = vunpack.i.h.bf16 %v6960_v59  ;;  %v1601_v59 = vld [vmem:[#allocation2 + $0x34a] sm:$0xff] }
 0x4f8   :  { %v6950_v0 = vpop.permute.xlu1 %6949  ;;  %5963 = vmatmul.msk.f32.gmra.mxu3 %vm325_vm0, %v1601_v59 }
 0x4f9   :  { %v6952_v35 = vunpack.i.h.bf16 %v6950_v0  ;;  %v6951_v54 = vunpack.i.l.bf16 %v6950_v0  ;;  %v3198_v0 = vsel %vm325_vm0, %v1085_v53, %v6962_v9  ;;  %v6976_v9 = vunpack.i.l.bf16 %v6975_v22 }
 0x4fa   :  { %v4102_v47 = vpop.f32.mrf.mxu2 }
 0x4fb   :  { %v10203_v2 = vadd.f32 %v4102_v47, %v3893_v20  ;;  %v3262_v45 = vsel %vm3203_vm7, %v3197_v34, %v6952_v35  ;;  %v3455_v48 = vsel %vm3203_vm7, %v3391_v31, %v6951_v54  ;;  %v3896_v51 = vpop.f32.mrf.mxu1  ;;  %v3392_v34 = vsel %vm325_vm0, %v1341_v21, %v6961_v27  ;;  %v10211_v31 = vpop.f32.mrf.mxu3 }
 0x4fc   :  { %v3327_v8 = vsel %vm3268_vm8, %v3262_v45, %v6957_v19  ;;  %v3519_v43 = vsel %vm3268_vm8, %v3455_v48, %v6956_v18  ;;  %12204 = vst [vmem:[#allocation42_spill] sm:$0xff] %v10211_v31  ;;  %v6972_v19 = vunpack.i.h.bf16 %v6970_v62  ;;  %v6971_v18 = vunpack.i.l.bf16 %v6970_v62  ;;  %v6985_v27 = vpop.permute.xlu2 %6984  ;;  %v6990_v53 = vpop.permute.xlu0 %6989 }
 0x4fe   :  { %3943 = vmatmul.f32.gmra.mxu1 %v3327_v8  ;;  %v6977_v8 = vunpack.i.h.bf16 %v6975_v22  ;;  %v1602_v22 = vld [vmem:[#allocation2 + $0x352] sm:$0xff] }
 0x4ff   :  { %4152 = vmatmul.f32.gmra.mxu2 %v3519_v43 }
 0x500   :  { %v6965_v20 = vpop.permute.xlu1 %6964  ;;  %5964 = vmatmul.msk.f32.gmra.mxu3 %vm325_vm0, %v1602_v22 }
 0x501   :  { %v6967_v35 = vunpack.i.h.bf16 %v6965_v20  ;;  %v6966_v38 = vunpack.i.l.bf16 %v6965_v20 }
 0x502   :  { %v4105_v54 = vpop.f32.mrf.mxu2 }
 0x503   :  { %v10213_v47 = vadd.f32 %v4105_v54, %v3896_v51  ;;  %v3263_v45 = vsel %vm3203_vm7, %v3198_v0, %v6967_v35  ;;  %v3456_v48 = vsel %vm3203_vm7, %v3392_v34, %v6966_v38  ;;  %v3899_v43 = vpop.f32.mrf.mxu1  ;;  %v1086_v51 = vld [vmem:[#allocation2 + $0x300] sm:$0xff]  ;;  %v10222_v31 = vpop.f32.mrf.mxu3 }
 0x504   :  { %v3328_v21 = vsel %vm3268_vm8, %v3263_v45, %v6972_v19  ;;  %v3520_v20 = vsel %vm3268_vm8, %v3456_v48, %v6971_v18  ;;  %v1342_v54 = vld [vmem:[#allocation2 + $0x319] sm:$0xff]  ;;  %v3199_v34 = vsel %vm325_vm0, %v1086_v51, %v6977_v8  ;;  %12206 = vst [vmem:[#allocation44_spill] sm:$0xff] %v10222_v31  ;;  %v6987_v19 = vunpack.i.h.bf16 %v6985_v27 }
 0x505   :  { %12205 = vst [vmem:[#allocation43_spill] sm:$0xff] %v10213_v47  ;;  %v3393_v35 = vsel %vm325_vm0, %v1342_v54, %v6976_v9  ;;  %v6986_v18 = vunpack.i.l.bf16 %v6985_v27  ;;  %v6991_v8 = vunpack.i.l.bf16 %v6990_v53  ;;  %v7000_v54 = vpop.permute.xlu2 %6999 }
 0x506   :  { %3946 = vmatmul.f32.gmra.mxu1 %v3328_v21  ;;  %v6992_v21 = vunpack.i.h.bf16 %v6990_v53 }
 0x507   :  { %4155 = vmatmul.f32.gmra.mxu2 %v3520_v20 }
 0x508   :  { %v6980_v0 = vpop.permute.xlu1 %6979 }
 0x509   :  { %v6982_v38 = vunpack.i.h.bf16 %v6980_v0  ;;  %v6981_v62 = vunpack.i.l.bf16 %v6980_v0  ;;  %v1087_v0 = vld [vmem:[#allocation2 + $0x308] sm:$0xff] }
 0x50a   :  { %v4108_v59 = vpop.f32.mrf.mxu2 }
 0x50b   :  { %v10224_v47 = vadd.f32 %v4108_v59, %v3899_v43  ;;  %v3264_v45 = vsel %vm3203_vm7, %v3199_v34, %v6982_v38  ;;  %v3457_v48 = vsel %vm3203_vm7, %v3393_v35, %v6981_v62  ;;  %v3902_v20 = vpop.f32.mrf.mxu1  ;;  %v7005_v43 = vpop.permute.xlu0 %7004  ;;  %v1343_v59 = vld [vmem:[#allocation2 + $0x321] sm:$0xff]  ;;  %v3200_v35 = vsel %vm325_vm0, %v1087_v0, %v6992_v21  ;;  %v1088_v0 = vld [vmem:[#allocation2 + $0x318] sm:$0xff] }
 0x50c   :  { %v3329_v9 = vsel %vm3268_vm8, %v3264_v45, %v6987_v19  ;;  %v3521_v51 = vsel %vm3268_vm8, %v3457_v48, %v6986_v18  ;;  %v3394_v38 = vsel %vm325_vm0, %v1343_v59, %v6991_v8  ;;  %v7002_v19 = vunpack.i.h.bf16 %v7000_v54 }
 0x50d   :  { %12207 = vst [vmem:[#allocation45_spill] sm:$0xff] %v10224_v47  ;;  %v7001_v18 = vunpack.i.l.bf16 %v7000_v54  ;;  %v10237_v47 = vpop.f32.mrf.mxu3 }
 0x50e   :  { %3949 = vmatmul.f32.gmra.mxu1 %v3329_v9  ;;  %v7007_v9 = vunpack.i.h.bf16 %v7005_v43  ;;  %12208 = vst [vmem:[#allocation46_spill] sm:$0xff] %v10237_v47 }
 0x50f   :  { %4158 = vmatmul.f32.gmra.mxu2 %v3521_v51  ;;  %v7006_v51 = vunpack.i.l.bf16 %v7005_v43 }
 0x510   :  { %v6995_v34 = vpop.permute.xlu1 %6994 }
 0x511   :  { %v6997_v62 = vunpack.i.h.bf16 %v6995_v34  ;;  %v6996_v27 = vunpack.i.l.bf16 %v6995_v34  ;;  %v3201_v34 = vsel %vm325_vm0, %v1088_v0, %v7007_v9 }
 0x512   :  { %v4111_v22 = vpop.f32.mrf.mxu2 }
 0x513   :  { %v10233_v53 = vadd.f32 %v4111_v22, %v3902_v20  ;;  %v3265_v45 = vsel %vm3203_vm7, %v3200_v35, %v6997_v62  ;;  %v3458_v48 = vsel %vm3203_vm7, %v3394_v38, %v6996_v27  ;;  %v3905_v31 = vpop.f32.mrf.mxu1  ;;  %v1344_v20 = vld [vmem:[#allocation2 + $0x331] sm:$0xff]  ;;  %v7015_v38 = vpop.permute.xlu2 %7014 }
 0x514   :  { %v3330_v21 = vsel %vm3268_vm8, %v3265_v45, %v7002_v19  ;;  %v3522_v8 = vsel %vm3268_vm8, %v3458_v48, %v7001_v18  ;;  %v3395_v35 = vsel %vm325_vm0, %v1344_v20, %v7006_v51  ;;  %v7020_v43 = vpop.permute.xlu0 %7019  ;;  %v10247_v19 = vpop.f32.mrf.mxu0  ;;  %v7017_v18 = vunpack.i.h.bf16 %v7015_v38 }
 0x515   :  { %v10251_v0 = vpop.f32.mrf.mxu3 }
 0x516   :  { %3952 = vmatmul.f32.gmra.mxu1 %v3330_v21  ;;  %v7016_v21 = vunpack.i.l.bf16 %v7015_v38 }
 0x517   :  { %4161 = vmatmul.f32.gmra.mxu2 %v3522_v8  ;;  %v7021_v8 = vunpack.i.l.bf16 %v7020_v43 }
 0x518   :  { %v7010_v59 = vpop.permute.xlu1 %7009 }
 0x519   :  { %v7012_v54 = vunpack.i.h.bf16 %v7010_v59  ;;  %v7011_v62 = vunpack.i.l.bf16 %v7010_v59 }
 0x51a   :  { %v4114_v27 = vpop.f32.mrf.mxu2 }
 0x51b   :  { %v10243_v22 = vadd.f32 %v4114_v27, %v3905_v31  ;;  %v3266_v45 = vsel %vm3203_vm7, %v3201_v34, %v7012_v54  ;;  %v3459_v48 = vsel %vm3203_vm7, %v3395_v35, %v7011_v62  ;;  %v3908_v47 = vpop.f32.mrf.mxu1  ;;  %v1345_v31 = vld [vmem:[#allocation2 + $0x339] sm:$0xff]  ;;  %v7022_v34 = vunpack.i.h.bf16 %v7020_v43  ;;  %v3074_v54 = vpop.permute.xlu2 %3073 }
 0x51c   :  { %v3331_v9 = vsel %vm3268_vm8, %v3266_v45, %v7017_v18  ;;  %v3523_v51 = vsel %vm3268_vm8, %v3459_v48, %v7016_v21  ;;  %v3396_v59 = vsel %vm325_vm0, %v1345_v31, %v7021_v8  ;;  %v2050_v62 = vpop.permute.xlu0 %2049  ;;  %v10258_v18 = vpop.f32.mrf.mxu0  ;;  %v3980_v43 = vadd.f32 %v9194_v50, %v9175_v41 }
 0x51d   :  { %12209 = vst [vmem:[#allocation47_spill] sm:$0xff] %v10243_v22  ;;  %v1089_v22 = vld [vmem:[#allocation2 + $0x320] sm:$0xff]  ;;  %v10269_v31 = vadd.f32 %v8778_v60, %v9237_v49  ;;  %v10278_v41 = vadd.f32 %v8817_v52, %v9269_v5  ;;  %v10296_v52 = vadd.f32 %v8895_v36, %v9330_v32  ;;  %v10312_v36 = vadd.f32 %v8927_v63, %v9361_v57 }
 0x51e   :  { %3955 = vmatmul.f32.gmra.mxu1 %v3331_v9  ;;  %v3202_v48 = vsel %vm325_vm0, %v1089_v22, %v7022_v34 }
 0x51f   :  { %4164 = vmatmul.f32.gmra.mxu2 %v3523_v51  ;;  %v3267_v21 = vsel %vm3203_vm7, %v3202_v48, %v2050_v62  ;;  %v10264_v51 = vpop.f32.mrf.mxu3  ;;  %v4515_v50 = vmul.f32 %v10269_v31, %v10269_v31  ;;  %v4932_v62 = vld [vmem:[%s12023_s3 + $0x18] sm:$0xff]  ;;  %12210 = vst [vmem:[#allocation48_spill] sm:$0xff] %v10312_v36 }
 0x520   :  { %v2818_v20 = vpop.permute.xlu1 %2817  ;;  %5137 = vmatpush.msrb.mxu3 %v4932_v62 }
 0x521   :  { %v3460_v38 = vsel %vm3203_vm7, %v3396_v59, %v2818_v20  ;;  %v10274_v59 = vadd.f32 %v8743_v61, %v3980_v43  ;;  %v4381_v61 = vsel %vm325_vm0, %v10269_v31, 0.0 }
 0x522   :  { %v4117_v35 = vpop.f32.mrf.mxu2  ;;  %v3524_v9 = vsel %vm3268_vm8, %v3460_v38, %v3074_v54  ;;  %v4516_v54 = vmul.f32 %v10278_v41, %v10278_v41 }
 0x523   :  { %v10254_v27 = vadd.f32 %v4117_v35, %v3908_v47  ;;  %v3911_v45 = vpop.f32.mrf.mxu1  ;;  %v10284_v35 = vadd.f32 %v8853_v24, %v9299_v44  ;;  %v4514_v60 = vmul.f32 %v10274_v59, %v10274_v59  ;;  %v4380_v5 = vsel %vm325_vm0, %v10274_v59, 0.0 }
 0x524   :  { %v10288_v49 = vpop.f32.mrf.mxu0  ;;  %v4579_v24 = vsel %vm325_vm0, %v4515_v50, 0.0  ;;  %v10324_v50 = vadd.f32 %v8965_v28, %v9390_v16  ;;  %v4389_v28 = vsel %vm325_vm0, %v10312_v36, 0.0 }
 0x525   :  { %v4517_v48 = vmul.f32 %v10284_v35, %v10284_v35 }
 0x526   :  { %12211 = vst [vmem:[#allocation49_spill] sm:$0xff] %v10324_v50  ;;  %v4520_v16 = vmul.f32 %v10324_v50, %v10324_v50 }
 0x527   :  { %4167 = vmatmul.f32.gmra.mxu2 %v3524_v9  ;;  %v10304_v38 = vpop.f32.mrf.mxu3  ;;  %v4382_v9 = vadd.f32 %v4381_v61, %v4380_v5  ;;  %v4519_v61 = vmul.f32 %v10312_v36, %v10312_v36 }
 0x528   :  { %v2306_v8 = vpop.permute.xlu1 %2305 }
 0x529   :  { %v3332_v47 = vsel %vm3268_vm8, %v3267_v21, %v2306_v8  ;;  %v4578_v21 = vsel %vm325_vm0, %v4514_v60, 0.0  ;;  %v4581_v8 = vsel %vm325_vm0, %v4516_v54, 0.0  ;;  %v4387_v60 = vsel %vm325_vm0, %v10296_v52, 0.0 }
 0x52a   :  { %3958 = vmatmul.f32.gmra.mxu1 %v3332_v47  ;;  %v4120_v22 = vpop.f32.mrf.mxu2  ;;  %v4385_v47 = vsel %vm325_vm0, %v10284_v35, 0.0  ;;  %v4580_v63 = vadd.f32 %v4579_v24, %v4578_v21  ;;  %v10333_v54 = vadd.f32 %v8999_v4, %v9421_v15  ;;  %v10342_v24 = vadd.f32 %v9039_v14, %v9452_v1 }
 0x52b   :  { %v10271_v20 = vadd.f32 %v4120_v22, %v3911_v45  ;;  %v3914_v34 = vpop.f32.mrf.mxu1  ;;  %v4383_v45 = vsel %vm325_vm0, %v10278_v41, 0.0  ;;  %v4518_v22 = vmul.f32 %v10296_v52, %v10296_v52  ;;  %v10346_v4 = vadd.f32 %v9067_v29, %v9483_v10 }
 0x52c   :  { %v4384_v57 = vadd.f32 %v4383_v45, %v4382_v9  ;;  %12212 = vst [vmem:[#allocation50_spill] sm:$0xff] %v10333_v54  ;;  %v4582_v5 = vadd.f32 %v4581_v8, %v4580_v63  ;;  %v10348_v15 = vpop.f32.mrf.mxu0  ;;  %v4587_v9 = vsel %vm325_vm0, %v4519_v61, 0.0  ;;  %v4391_v8 = vsel %vm325_vm0, %v10324_v50, 0.0 }
 0x52d   :  { %v4585_v62 = vsel %vm325_vm0, %v4518_v22, 0.0  ;;  %12213 = vst [vmem:[#allocation51_spill] sm:$0xff] %v10342_v24  ;;  %v4589_v29 = vsel %vm325_vm0, %v4520_v16, 0.0  ;;  %v4393_v10 = vsel %vm325_vm0, %v10333_v54, 0.0 }
 0x52e   :  { %12214 = vst [vmem:[#allocation52_spill] sm:$0xff] %v10346_v4 }
 0x532   :  { %v4123_v44 = vpop.f32.mrf.mxu2 }
 0x533   :  { %v10314_v32 = vadd.f32 %v4123_v44, %v3914_v34  ;;  %v3917_v43 = vpop.f32.mrf.mxu1  ;;  %v4583_v34 = vsel %vm325_vm0, %v4517_v48, 0.0  ;;  %v4386_v44 = vadd.f32 %v4385_v47, %v4384_v57  ;;  %v4521_v47 = vmul.f32 %v10333_v54, %v10333_v54  ;;  %v10357_v57 = vpop.f32.mrf.mxu3 }
 0x534   :  { %v4584_v45 = vadd.f32 %v4583_v34, %v4582_v5  ;;  %v4522_v34 = vmul.f32 %v10342_v24, %v10342_v24  ;;  %v4523_v5 = vmul.f32 %v10346_v4, %v10346_v4 }
 0x535   :  { %v4388_v48 = vadd.f32 %v4387_v60, %v4386_v44  ;;  %v10366_v60 = vadd.f32 %v9102_v37, %v9508_v33  ;;  %v4591_v44 = vsel %vm325_vm0, %v4521_v47, 0.0  ;;  %v4397_v37 = vsel %vm325_vm0, %v10346_v4, 0.0 }
 0x536   :  { %v4586_v14 = vadd.f32 %v4585_v62, %v4584_v45  ;;  %v4395_v62 = vsel %vm325_vm0, %v10342_v24, 0.0  ;;  %v4595_v47 = vsel %vm325_vm0, %v4523_v5, 0.0 }
 0x537   :  { %v4390_v1 = vadd.f32 %v4389_v28, %v4388_v48  ;;  %12215 = vst [vmem:[#allocation53_spill] sm:$0xff] %v10366_v60  ;;  %v10375_v28 = vadd.f32 %v9138_v40, %v9533_v39  ;;  %v4593_v48 = vsel %vm325_vm0, %v4522_v34, 0.0  ;;  %v4524_v33 = vmul.f32 %v10366_v60, %v10366_v60 }
 0x538   :  { %v4588_v61 = vadd.f32 %v4587_v9, %v4586_v14  ;;  %v4399_v39 = vsel %vm325_vm0, %v10366_v60, 0.0 }
 0x539   :  { %12216 = vst [vmem:[#allocation54_spill] sm:$0xff] %v10375_v28  ;;  %v4525_v14 = vmul.f32 %v10375_v28, %v10375_v28 }
 0x53a   :  { %v4126_v21 = vpop.f32.mrf.mxu2  ;;  %v4590_v16 = vadd.f32 %v4589_v29, %v4588_v61  ;;  %v4597_v61 = vsel %vm325_vm0, %v4524_v33, 0.0 }
 0x53b   :  { %v10355_v22 = vadd.f32 %v4126_v21, %v3917_v43  ;;  %v3920_v63 = vpop.f32.mrf.mxu1  ;;  %v4392_v43 = vadd.f32 %v4391_v8, %v4390_v1  ;;  %v10384_v21 = vadd.f32 %v9171_v17, %v9558_v42  ;;  %v10393_v1 = vadd.f32 %v9209_v12, %v9585_v23  ;;  %v10397_v42 = vpop.f32.mrf.mxu0 }
 0x53c   :  { %v4592_v9 = vadd.f32 %v4591_v44, %v4590_v16  ;;  %v10406_v44 = vadd.f32 %v9245_v13, %v9612_v7 }
 0x53d   :  { %v4394_v45 = vadd.f32 %v4393_v10, %v4392_v43  ;;  %12217 = vst [vmem:[#allocation55_spill] sm:$0xff] %v10384_v21  ;;  %v4401_v43 = vsel %vm325_vm0, %v10375_v28, 0.0  ;;  %v4526_v5 = vmul.f32 %v10384_v21, %v10384_v21  ;;  %v4403_v16 = vsel %vm325_vm0, %v10384_v21, 0.0  ;;  %v12226_v21 = vld [vmem:[#allocation14_spill] sm:$0xff]  ;;  %v12227_v28 = vld [vmem:[#allocation8_spill] sm:$0xff] }
 0x53e   :  { %12218 = vst [vmem:[#allocation56_spill] sm:$0xff] %v10393_v1  ;;  %v4594_v10 = vadd.f32 %v4593_v48, %v4592_v9  ;;  %v12220_v48 = vld [vmem:[#allocation12_spill] sm:$0xff]  ;;  %v4405_v7 = vsel %vm325_vm0, %v10393_v1, 0.0 }
 0x53f   :  { %v4396_v8 = vadd.f32 %v4395_v62, %v4394_v45  ;;  %12219 = vst [vmem:[#allocation57_spill] sm:$0xff] %v10406_v44  ;;  %v4599_v62 = vsel %vm325_vm0, %v4525_v14, 0.0  ;;  %v4527_v45 = vmul.f32 %v10393_v1, %v10393_v1  ;;  %v4601_v13 = vsel %vm325_vm0, %v4526_v5, 0.0 }
 0x540   :  { %v4596_v12 = vadd.f32 %v4595_v47, %v4594_v10  ;;  %v4528_v47 = vmul.f32 %v10406_v44, %v10406_v44  ;;  %v4407_v5 = vsel %vm325_vm0, %v10406_v44, 0.0 }
 0x541   :  { %v4398_v17 = vadd.f32 %v4397_v37, %v4396_v8  ;;  %v12221_v37 = vld [vmem:[#allocation6_spill] sm:$0xff] }
 0x542   :  { %v4129_v40 = vpop.f32.mrf.mxu2  ;;  %v10417_v33 = vadd.f32 %v12221_v37, %v12220_v48  ;;  %v4598_v9 = vadd.f32 %v4597_v61, %v4596_v12  ;;  %v10430_v48 = vadd.f32 %v12227_v28, %v12226_v21 }
 0x543   :  { %v10395_v29 = vadd.f32 %v4129_v40, %v3920_v63  ;;  %v3923_v34 = vpop.f32.mrf.mxu1  ;;  %v4400_v23 = vadd.f32 %v4399_v39, %v4398_v17  ;;  %v10408_v63 = vpop.f32.mrf.mxu3  ;;  %v12223_v40 = vld [vmem:[#allocation13_spill] sm:$0xff]  ;;  %v12224_v39 = vld [vmem:[#allocation7_spill] sm:$0xff] }
 0x544   :  { %12222 = vst [vmem:[#allocation12_spill] sm:$0xff] %v10417_v33  ;;  %v10426_v14 = vadd.f32 %v12224_v39, %v12223_v40  ;;  %v4600_v10 = vadd.f32 %v4599_v62, %v4598_v9  ;;  %v4529_v12 = vmul.f32 %v10417_v33, %v10417_v33  ;;  %v4605_v62 = vsel %vm325_vm0, %v4528_v47, 0.0 }
 0x545   :  { %v4402_v8 = vadd.f32 %v4401_v43, %v4400_v23  ;;  %12228 = vst [vmem:[#allocation13_spill] sm:$0xff] %v10430_v48  ;;  %v4603_v43 = vsel %vm325_vm0, %v4527_v45, 0.0  ;;  %v4409_v28 = vsel %vm325_vm0, %v10417_v33, 0.0  ;;  %v12230_v45 = vld [vmem:[#allocation9_spill] sm:$0xff] }
 0x546   :  { %12225 = vst [vmem:[#allocation6_spill] sm:$0xff] %v10426_v14  ;;  %v4602_v37 = vadd.f32 %v4601_v13, %v4600_v10  ;;  %v4530_v21 = vmul.f32 %v10426_v14, %v10426_v14  ;;  %v10450_v13 = vpop.f32.mrf.mxu0  ;;  %v4411_v47 = vsel %vm325_vm0, %v10426_v14, 0.0  ;;  %v12232_v10 = vld [vmem:[#allocation19_spill] sm:$0xff] }
 0x547   :  { %v4404_v17 = vadd.f32 %v4403_v16, %v4402_v8  ;;  %v12229_v16 = vld [vmem:[#allocation18_spill] sm:$0xff] }
 0x548   :  { %v10446_v9 = vadd.f32 %v12230_v45, %v12229_v16  ;;  %v4604_v8 = vadd.f32 %v4603_v43, %v4602_v37  ;;  %v4609_v43 = vsel %vm325_vm0, %v4530_v21, 0.0  ;;  %v12238_v21 = vld [vmem:[#allocation23_spill] sm:$0xff] }
 0x549   :  { %v4406_v40 = vadd.f32 %v4405_v7, %v4404_v17  ;;  %v4607_v7 = vsel %vm325_vm0, %v4529_v12, 0.0  ;;  %v12233_v17 = vld [vmem:[#allocation10_spill] sm:$0xff]  ;;  %v12235_v12 = vld [vmem:[#allocation21_spill] sm:$0xff] }
 0x54a   :  { %v4132_v61 = vpop.f32.mrf.mxu2  ;;  %12231 = vst [vmem:[#allocation7_spill] sm:$0xff] %v10446_v9  ;;  %v4606_v33 = vadd.f32 %v4605_v62, %v4604_v8  ;;  %v4532_v37 = vmul.f32 %v10446_v9, %v10446_v9  ;;  %v12239_v8 = vld [vmem:[#allocation16_spill] sm:$0xff] }
 0x54b   :  { %v10437_v23 = vadd.f32 %v4132_v61, %v3923_v34  ;;  %v3926_v39 = vpop.f32.mrf.mxu1  ;;  %v4408_v44 = vadd.f32 %v4407_v5, %v4406_v40  ;;  %v4531_v34 = vmul.f32 %v10430_v48, %v10430_v48  ;;  %v10457_v61 = vadd.f32 %v12233_v17, %v12232_v10  ;;  %v10459_v16 = vpop.f32.mrf.mxu3  ;;  %v12236_v40 = vld [vmem:[#allocation11_spill] sm:$0xff] }
 0x54c   :  { %v4413_v5 = vsel %vm325_vm0, %v10430_v48, 0.0  ;;  %v10468_v45 = vadd.f32 %v12236_v40, %v12235_v12  ;;  %v4608_v14 = vadd.f32 %v4607_v7, %v4606_v33  ;;  %v10477_v17 = vadd.f32 %v12239_v8, %v12238_v21  ;;  %v12241_v7 = vld [vmem:[#allocation25_spill] sm:$0xff] }
 0x54d   :  { %12234 = vst [vmem:[#allocation14_spill] sm:$0xff] %v10457_v61  ;;  %v4410_v1 = vadd.f32 %v4409_v28, %v4408_v44  ;;  %v4611_v10 = vsel %vm325_vm0, %v4531_v34, 0.0  ;;  %v4415_v44 = vsel %vm325_vm0, %v10446_v9, 0.0  ;;  %v4533_v28 = vmul.f32 %v10457_v61, %v10457_v61 }
 0x54e   :  { %12237 = vst [vmem:[#allocation8_spill] sm:$0xff] %v10468_v45  ;;  %v4610_v4 = vadd.f32 %v4609_v43, %v4608_v14  ;;  %v4417_v33 = vsel %vm325_vm0, %v10457_v61, 0.0  ;;  %v4534_v34 = vmul.f32 %v10468_v45, %v10468_v45  ;;  %v4535_v14 = vmul.f32 %v10477_v17, %v10477_v17  ;;  %v12244_v43 = vld [vmem:[#allocation27_spill] sm:$0xff]  ;;  %v10501_v24 = vpop.f32.mrf.mxu0 }
 0x54f   :  { %v4412_v60 = vadd.f32 %v4411_v47, %v4410_v1  ;;  %12240 = vst [vmem:[#allocation18_spill] sm:$0xff] %v10477_v17  ;;  %v4613_v1 = vsel %vm325_vm0, %v4532_v37, 0.0  ;;  %v12242_v47 = vld [vmem:[#allocation20_spill] sm:$0xff] }
 0x550   :  { %v10490_v9 = vadd.f32 %v12242_v47, %v12241_v7  ;;  %v4612_v21 = vadd.f32 %v4611_v10, %v4610_v4  ;;  %v4617_v7 = vsel %vm325_vm0, %v4534_v34, 0.0  ;;  %v4421_v4 = vsel %vm325_vm0, %v10477_v17, 0.0  ;;  %v12250_v17 = vld [vmem:[#allocation31_spill] sm:$0xff] }
 0x551   :  { %v4414_v12 = vadd.f32 %v4413_v5, %v4412_v60  ;;  %v4419_v60 = vsel %vm325_vm0, %v10468_v45, 0.0  ;;  %v12245_v5 = vld [vmem:[#allocation22_spill] sm:$0xff]  ;;  %v4619_v34 = vsel %vm325_vm0, %v4535_v14, 0.0  ;;  %v12251_v45 = vld [vmem:[#allocation28_spill] sm:$0xff] }
 0x552   :  { %v4135_v62 = vpop.f32.mrf.mxu2  ;;  %12243 = vst [vmem:[#allocation9_spill] sm:$0xff] %v10490_v9  ;;  %v10499_v37 = vadd.f32 %v12245_v5, %v12244_v43  ;;  %v4536_v10 = vmul.f32 %v10490_v9, %v10490_v9  ;;  %v12249_v5 = vld [vmem:[#allocation26_spill] sm:$0xff]  ;;  %v10537_v54 = vadd.f32 %v12251_v45, %v12250_v17 }
 0x553   :  { %v10479_v48 = vadd.f32 %v4135_v62, %v3926_v39  ;;  %v10481_v40 = vpop.f32.mrf.mxu1  ;;  %v4416_v8 = vadd.f32 %v4415_v44, %v4414_v12  ;;  %v4615_v39 = vsel %vm325_vm0, %v4533_v28, 0.0  ;;  %v4614_v62 = vadd.f32 %v4613_v1, %v4612_v21  ;;  %v12247_v44 = vld [vmem:[#allocation24_spill] sm:$0xff] }
 0x554   :  { %12246 = vst [vmem:[#allocation19_spill] sm:$0xff] %v10499_v37  ;;  %v10510_v28 = vadd.f32 %v12247_v44, %v9892_v56  ;;  %v4931_v1 = vld [vmem:[%s12023_s3 + $0x10] sm:$0xff]  ;;  %v4423_v21 = vsel %vm325_vm0, %v10490_v9, 0.0  ;;  %v12248_v56 = vld [vmem:[#allocation29_spill] sm:$0xff]  ;;  %v4621_v44 = vsel %vm325_vm0, %v4536_v10, 0.0  ;;  %v4425_v14 = vsel %vm325_vm0, %v10499_v37, 0.0 }
 0x555   :  { %v4418_v61 = vadd.f32 %v4417_v33, %v4416_v8  ;;  %v4616_v12 = vadd.f32 %v4615_v39, %v4614_v62  ;;  %v10517_v33 = vpop.f32.mrf.mxu3  ;;  %v4537_v8 = vmul.f32 %v10499_v37, %v10499_v37  ;;  %v10526_v39 = vadd.f32 %v12249_v5, %v12248_v56  ;;  %5138 = vmatpush.msrb.mxu3 %v4931_v1  ;;  %v12253_v10 = vld [vmem:[#allocation17_spill] sm:$0xff] }
 0x556   :  { %v4538_v9 = vmul.f32 %v10510_v28, %v10510_v28  ;;  %12252 = vst [vmem:[#allocation10_spill] sm:$0xff] %v10537_v54  ;;  %v4540_v17 = vmul.f32 %v10537_v54, %v10537_v54 }
 0x557   :  { %v4420_v47 = vadd.f32 %v4419_v60, %v4418_v61  ;;  %v4618_v61 = vadd.f32 %v4617_v7, %v4616_v12  ;;  %v4623_v1 = vsel %vm325_vm0, %v4537_v8, 0.0  ;;  %v4427_v7 = vsel %vm325_vm0, %v10510_v28, 0.0  ;;  %v12254_v12 = vld [vmem:[#allocation30_spill] sm:$0xff] }
 0x558   :  { %v4625_v36 = vsel %vm325_vm0, %v4538_v9, 0.0  ;;  %v4429_v45 = vsel %vm325_vm0, %v10526_v39, 0.0  ;;  %v4431_v9 = vsel %vm325_vm0, %v10537_v54, 0.0 }
 0x559   :  { %v4422_v60 = vadd.f32 %v4421_v4, %v4420_v47  ;;  %v4620_v50 = vadd.f32 %v4619_v34, %v4618_v61  ;;  %v4539_v4 = vmul.f32 %v10526_v39, %v10526_v39  ;;  %v10546_v47 = vadd.f32 %v12254_v12, %v12253_v10  ;;  %v12256_v34 = vld [vmem:[#allocation15_spill] sm:$0xff] }
 0x55a   :  { %v10512_v43 = vpop.f32.mrf.mxu2 }
 0x55b   :  { %v10528_v62 = vpop.f32.mrf.mxu1  ;;  %v4424_v56 = vadd.f32 %v4423_v21, %v4422_v60  ;;  %12255 = vst [vmem:[#allocation21_spill] sm:$0xff] %v10546_v47  ;;  %v4622_v5 = vadd.f32 %v4621_v44, %v4620_v50  ;;  %v10555_v21 = vadd.f32 %v12256_v34, %v10005_v46  ;;  %v10557_v60 = vpop.f32.mrf.mxu0  ;;  %v4627_v50 = vsel %vm325_vm0, %v4539_v4, 0.0 }
 0x55c   :  { %v4541_v44 = vmul.f32 %v10546_v47, %v10546_v47  ;;  %v4433_v4 = vsel %vm325_vm0, %v10546_v47, 0.0  ;;  %v10581_v34 = vadd.f32 %v10037_v30, %v10053_v26 }
 0x55d   :  { %v4426_v37 = vadd.f32 %v4425_v14, %v4424_v56  ;;  %v4624_v8 = vadd.f32 %v4623_v1, %v4622_v5  ;;  %v12257_v14 = vld [vmem:[#allocation33_spill] sm:$0xff]  ;;  %v4542_v5 = vmul.f32 %v10555_v21, %v10555_v21 }
 0x55e   :  { %v10568_v56 = vadd.f32 %v12257_v14, %v10029_v55  ;;  %12259 = vst [vmem:[#allocation23_spill] sm:$0xff] %v10581_v34  ;;  %v4544_v26 = vmul.f32 %v10581_v34, %v10581_v34 }
 0x55f   :  { %v4428_v61 = vadd.f32 %v4427_v7, %v4426_v37  ;;  %v4626_v46 = vadd.f32 %v4625_v36, %v4624_v8  ;;  %v10572_v37 = vpop.f32.mrf.mxu3  ;;  %v4629_v7 = vsel %vm325_vm0, %v4540_v17, 0.0  ;;  %v4631_v36 = vsel %vm325_vm0, %v4541_v44, 0.0 }
 0x560   :  { %12258 = vst [vmem:[#allocation11_spill] sm:$0xff] %v10568_v56  ;;  %v4543_v17 = vmul.f32 %v10568_v56, %v10568_v56  ;;  %v10590_v8 = vadd.f32 %v10065_v11, %v10074_v3  ;;  %v4633_v54 = vsel %vm325_vm0, %v4542_v5, 0.0  ;;  %v4437_v30 = vsel %vm325_vm0, %v10568_v56, 0.0 }
 0x561   :  { %v4430_v12 = vadd.f32 %v4429_v45, %v4428_v61  ;;  %v4628_v55 = vadd.f32 %v4627_v50, %v4626_v46  ;;  %v4435_v45 = vsel %vm325_vm0, %v10555_v21, 0.0  ;;  %v12261_v50 = vld [vmem:[#allocation34_spill] sm:$0xff]  ;;  %v4439_v3 = vsel %vm325_vm0, %v10581_v34, 0.0 }
 0x562   :  { %v10559_v10 = vpop.f32.mrf.mxu2  ;;  %12260 = vst [vmem:[#allocation16_spill] sm:$0xff] %v10590_v8  ;;  %v4635_v11 = vsel %vm325_vm0, %v4543_v17, 0.0 }
 0x563   :  { %v10570_v1 = vpop.f32.mrf.mxu1  ;;  %v4432_v14 = vadd.f32 %v4431_v9, %v4430_v12  ;;  %v4630_v61 = vadd.f32 %v4629_v7, %v4628_v55  ;;  %v10599_v9 = vadd.f32 %v12261_v50, %v10094_v58  ;;  %v4545_v7 = vmul.f32 %v10590_v8, %v10590_v8 }
 0x564   :  { %v4637_v58 = vsel %vm325_vm0, %v4544_v26, 0.0  ;;  %v12264_v26 = vld [vmem:[#allocation35_spill] sm:$0xff] }
 0x565   :  { %v4434_v47 = vadd.f32 %v4433_v4, %v4432_v14  ;;  %12262 = vst [vmem:[#allocation25_spill] sm:$0xff] %v10599_v9  ;;  %v4632_v44 = vadd.f32 %v4631_v36, %v4630_v61  ;;  %v4314_v4 = vpop.f32.mrf.mxu0  ;;  %v4546_v36 = vmul.f32 %v10599_v9, %v10599_v9 }
 0x567   :  { %v4436_v46 = vadd.f32 %v4435_v45, %v4434_v47  ;;  %v4634_v5 = vadd.f32 %v4633_v54, %v4632_v44  ;;  %v4441_v47 = vsel %vm325_vm0, %v10590_v8, 0.0  ;;  %v10617_v45 = vadd.f32 %v10247_v19, %v10129_v6  ;;  %v10619_v50 = vpop.f32.mrf.mxu3 }
 0x568   :  { %v4639_v54 = vsel %vm325_vm0, %v4545_v7, 0.0  ;;  %v4547_v44 = vmul.f32 %v12264_v26, %v12264_v26  ;;  %v4641_v6 = vsel %vm325_vm0, %v4546_v36, 0.0  ;;  %v4445_v19 = vsel %vm325_vm0, %v12264_v26, 0.0  ;;  %v12268_v36 = vld [vmem:[#allocation38_spill] sm:$0xff] }
 0x569   :  { %v4438_v55 = vadd.f32 %v4437_v30, %v4436_v46  ;;  %12263 = vst [vmem:[#allocation20_spill] sm:$0xff] %v10617_v45  ;;  %v4636_v17 = vadd.f32 %v4635_v11, %v4634_v5  ;;  %v4443_v30 = vsel %vm325_vm0, %v10599_v9, 0.0  ;;  %v12265_v46 = vld [vmem:[#allocation36_spill] sm:$0xff]  ;;  %v4548_v11 = vmul.f32 %v10617_v45, %v10617_v45 }
 0x56a   :  { %v10601_v12 = vpop.f32.mrf.mxu2  ;;  %v10628_v8 = vadd.f32 %v10258_v18, %v12265_v46  ;;  %v4643_v18 = vsel %vm325_vm0, %v4547_v44, 0.0 }
 0x56b   :  { %v10608_v14 = vpop.f32.mrf.mxu1  ;;  %v4440_v61 = vadd.f32 %v4439_v3, %v4438_v55  ;;  %v4638_v34 = vadd.f32 %v4637_v58, %v4636_v17  ;;  %v12267_v3 = vld [vmem:[#allocation37_spill] sm:$0xff]  ;;  %v4447_v58 = vsel %vm325_vm0, %v10617_v45, 0.0  ;;  %v10648_v17 = vadd.f32 %v10348_v15, %v12268_v36 }
 0x56c   :  { %12266 = vst [vmem:[#allocation27_spill] sm:$0xff] %v10628_v8  ;;  %v10637_v7 = vadd.f32 %v10288_v49, %v12267_v3 }
 0x56d   :  { %v4442_v56 = vadd.f32 %v4441_v47, %v4440_v61  ;;  %v4640_v5 = vadd.f32 %v4639_v54, %v4638_v34  ;;  %v4549_v47 = vmul.f32 %v10628_v8, %v10628_v8  ;;  %12269 = vst [vmem:[#allocation22_spill] sm:$0xff] %v10648_v17  ;;  %v4449_v34 = vsel %vm325_vm0, %v10628_v8, 0.0  ;;  %v4317_v3 = vpop.f32.mrf.mxu0 }
 0x56e   :  { %v4550_v54 = vmul.f32 %v10637_v7, %v10637_v7 }
 0x56f   :  { %v4444_v55 = vadd.f32 %v4443_v30, %v4442_v56  ;;  %v4642_v61 = vadd.f32 %v4641_v6, %v4640_v5  ;;  %v4645_v56 = vsel %vm325_vm0, %v4548_v11, 0.0  ;;  %v12270_v30 = vld [vmem:[#allocation39_spill] sm:$0xff]  ;;  %v4647_v6 = vsel %vm325_vm0, %v4549_v47, 0.0  ;;  %v10670_v8 = vpop.f32.mrf.mxu3  ;;  %v12273_v47 = vld [vmem:[#allocation40_spill] sm:$0xff] }
 0x570   :  { %v10659_v44 = vadd.f32 %v10397_v42, %v12270_v30  ;;  %v4551_v11 = vmul.f32 %v10648_v17, %v10648_v17  ;;  %v10668_v5 = vadd.f32 %v10450_v13, %v10185_v25  ;;  %v4649_v42 = vsel %vm325_vm0, %v4550_v54, 0.0 }
 0x571   :  { %v4446_v46 = vadd.f32 %v4445_v19, %v4444_v55  ;;  %v4644_v45 = vadd.f32 %v4643_v18, %v4642_v61  ;;  %v4451_v19 = vsel %vm325_vm0, %v10637_v7, 0.0  ;;  %v4453_v18 = vsel %vm325_vm0, %v10648_v17, 0.0 }
 0x572   :  { %v10639_v9 = vpop.f32.mrf.mxu2  ;;  %12271 = vst [vmem:[#allocation24_spill] sm:$0xff] %v10659_v44  ;;  %v10679_v61 = vadd.f32 %v10501_v24, %v12273_v47  ;;  %v4651_v13 = vsel %vm325_vm0, %v4551_v11, 0.0 }
 0x573   :  { %v10650_v49 = vpop.f32.mrf.mxu1  ;;  %v4448_v15 = vadd.f32 %v4447_v58, %v4446_v46  ;;  %12272 = vst [vmem:[#allocation29_spill] sm:$0xff] %v10668_v5  ;;  %v4646_v55 = vadd.f32 %v4645_v56, %v4644_v45  ;;  %v4552_v58 = vmul.f32 %v10659_v44, %v10659_v44  ;;  %v4455_v45 = vsel %vm325_vm0, %v10659_v44, 0.0 }
 0x574   :  { %v4553_v56 = vmul.f32 %v10668_v5, %v10668_v5  ;;  %v4554_v11 = vmul.f32 %v10679_v61, %v10679_v61 }
 0x575   :  { %v4450_v36 = vadd.f32 %v4449_v34, %v4448_v15  ;;  %v4648_v46 = vadd.f32 %v4647_v6, %v4646_v55  ;;  %v10690_v34 = vadd.f32 %v10557_v60, %v10203_v2  ;;  %v4653_v6 = vsel %vm325_vm0, %v4552_v58, 0.0  ;;  %v12275_v55 = vld [vmem:[#allocation43_spill] sm:$0xff] }
 0x576   :  { %v4655_v2 = vsel %vm325_vm0, %v4553_v56, 0.0  ;;  %v4459_v60 = vsel %vm325_vm0, %v10679_v61, 0.0  ;;  %v4657_v17 = vsel %vm325_vm0, %v4554_v11, 0.0 }
 0x577   :  { %v4452_v30 = vadd.f32 %v4451_v19, %v4450_v36  ;;  %12274 = vst [vmem:[#allocation26_spill] sm:$0xff] %v10690_v34  ;;  %v4650_v54 = vadd.f32 %v4649_v42, %v4648_v46  ;;  %v4457_v19 = vsel %vm325_vm0, %v10668_v5, 0.0  ;;  %v10700_v36 = vadd.f32 %v4314_v4, %v12275_v55  ;;  %v4320_v46 = vpop.f32.mrf.mxu0  ;;  %v12280_v55 = vld [vmem:[#allocation41_spill] sm:$0xff] }
 0x578   :  { %v4555_v42 = vmul.f32 %v10690_v34, %v10690_v34  ;;  %v4461_v4 = vsel %vm325_vm0, %v10690_v34, 0.0 }
 0x579   :  { %v4454_v15 = vadd.f32 %v4453_v18, %v4452_v30  ;;  %12276 = vst [vmem:[#allocation31_spill] sm:$0xff] %v10700_v36  ;;  %v4652_v47 = vadd.f32 %v4651_v13, %v4650_v54  ;;  %v12277_v18 = vld [vmem:[#allocation45_spill] sm:$0xff]  ;;  %v4556_v13 = vmul.f32 %v10700_v36, %v10700_v36 }
 0x57a   :  { %v10681_v25 = vpop.f32.mrf.mxu2  ;;  %v10708_v58 = vadd.f32 %v4317_v3, %v12277_v18  ;;  %v4930_v3 = vld [vmem:[%s12023_s3 + $0x8] sm:$0xff] }
 0x57b   :  { %v10692_v24 = vpop.f32.mrf.mxu1  ;;  %v4456_v44 = vadd.f32 %v4455_v45, %v4454_v15  ;;  %v4654_v30 = vadd.f32 %v4653_v6, %v4652_v47  ;;  %v10716_v45 = vadd.f32 %v4320_v46, %v10233_v53  ;;  %v4659_v6 = vsel %vm325_vm0, %v4555_v42, 0.0  ;;  %v12279_v53 = vld [vmem:[#allocation47_spill] sm:$0xff]  ;;  %5139 = vmatpush.msrb.mxu3 %v4930_v3 }
 0x57c   :  { %12278 = vst [vmem:[#allocation28_spill] sm:$0xff] %v10708_v58  ;;  %v4557_v11 = vmul.f32 %v10708_v58, %v10708_v58  ;;  %v10732_v47 = vadd.f32 %v12280_v55, %v12279_v53  ;;  %v4661_v18 = vsel %vm325_vm0, %v4556_v13, 0.0  ;;  %v4465_v42 = vsel %vm325_vm0, %v10708_v58, 0.0  ;;  %v12282_v13 = vld [vmem:[#allocation44_spill] sm:$0xff] }
 0x57d   :  { %v4458_v5 = vadd.f32 %v4457_v19, %v4456_v44  ;;  %v4656_v56 = vadd.f32 %v4655_v2, %v4654_v30  ;;  %v10723_v44 = vpop.f32.mrf.mxu3  ;;  %v4463_v19 = vsel %vm325_vm0, %v10700_v36, 0.0  ;;  %v4558_v46 = vmul.f32 %v10716_v45, %v10716_v45  ;;  %v12281_v30 = vld [vmem:[#allocation42_spill] sm:$0xff] }
 0x57e   :  { %v10743_v36 = vadd.f32 %v12281_v30, %v10254_v27  ;;  %v4663_v3 = vsel %vm325_vm0, %v4557_v11, 0.0  ;;  %v4469_v27 = vsel %vm325_vm0, %v10732_v47, 0.0 }
 0x57f   :  { %v4460_v54 = vadd.f32 %v4459_v60, %v4458_v5  ;;  %v4658_v5 = vadd.f32 %v4657_v17, %v4656_v56  ;;  %v4467_v17 = vsel %vm325_vm0, %v10716_v45, 0.0  ;;  %v10752_v56 = vadd.f32 %v12282_v13, %v10271_v20 }
 0x580   :  { %v4665_v58 = vsel %vm325_vm0, %v4558_v46, 0.0  ;;  %v10765_v20 = vadd.f32 %v10251_v0, %v10355_v22 }
 0x581   :  { %v4462_v2 = vadd.f32 %v4461_v4, %v4460_v54  ;;  %v4660_v34 = vadd.f32 %v4659_v6, %v4658_v5  ;;  %v4559_v4 = vmul.f32 %v10732_v47, %v10732_v47  ;;  %v4560_v6 = vmul.f32 %v10743_v36, %v10743_v36 }
 0x582   :  { %v10718_v15 = vpop.f32.mrf.mxu2  ;;  %v4561_v46 = vmul.f32 %v10752_v56, %v10752_v56  ;;  %v4473_v0 = vsel %vm325_vm0, %v10752_v56, 0.0 }
 0x583   :  { %v10734_v60 = vpop.f32.mrf.mxu1  ;;  %v4464_v53 = vadd.f32 %v4463_v19, %v4462_v2  ;;  %v4662_v54 = vadd.f32 %v4661_v18, %v4660_v34  ;;  %v12283_v19 = vld [vmem:[#allocation46_spill] sm:$0xff]  ;;  %v4667_v18 = vsel %vm325_vm0, %v4559_v4, 0.0  ;;  %v10785_v4 = vadd.f32 %v10264_v51, %v10395_v29 }
 0x584   :  { %v10761_v11 = vadd.f32 %v12283_v19, %v10314_v32  ;;  %v4139_v19 = vadd.f32 %v10512_v43, %v10481_v40  ;;  %v4142_v29 = vadd.f32 %v10559_v10, %v10528_v62 }
 0x585   :  { %v4466_v55 = vadd.f32 %v4465_v42, %v4464_v53  ;;  %v4664_v5 = vadd.f32 %v4663_v3, %v4662_v54  ;;  %v4471_v42 = vsel %vm325_vm0, %v10743_v36, 0.0  ;;  %v10776_v3 = vpop.f32.mrf.mxu3  ;;  %v4479_v62 = vsel %vm325_vm0, %v10785_v4, 0.0 }
 0x586   :  { %v4562_v22 = vmul.f32 %v10761_v11, %v10761_v11 }
 0x587   :  { %v4468_v2 = vadd.f32 %v4467_v17, %v4466_v55  ;;  %v4666_v30 = vadd.f32 %v4665_v58, %v4664_v5  ;;  %v4669_v17 = vsel %vm325_vm0, %v4560_v6, 0.0  ;;  %v4563_v58 = vmul.f32 %v10765_v20, %v10765_v20 }
 0x588   :  { %v4671_v55 = vsel %vm325_vm0, %v4561_v46, 0.0  ;;  %v10794_v6 = vadd.f32 %v10304_v38, %v10437_v23  ;;  %v10807_v38 = vadd.f32 %v10357_v57, %v10479_v48  ;;  %v10820_v48 = vadd.f32 %v10459_v16, %v4142_v29 }
 0x589   :  { %v4470_v53 = vadd.f32 %v4469_v27, %v4468_v2  ;;  %v4668_v13 = vadd.f32 %v4667_v18, %v4666_v30  ;;  %v4475_v27 = vsel %vm325_vm0, %v10761_v11, 0.0  ;;  %v4673_v2 = vsel %vm325_vm0, %v4562_v22, 0.0 }
 0x58a   :  { %v10767_v34 = vpop.f32.mrf.mxu2  ;;  %v4477_v18 = vsel %vm325_vm0, %v10765_v20, 0.0  ;;  %v4675_v40 = vsel %vm325_vm0, %v4563_v58, 0.0  ;;  %v4565_v10 = vmul.f32 %v10794_v6, %v10794_v6  ;;  %v10815_v30 = vadd.f32 %v10408_v63, %v4139_v19 }
 0x58b   :  { %v10774_v32 = vpop.f32.mrf.mxu1  ;;  %v4472_v54 = vadd.f32 %v4471_v42, %v4470_v53  ;;  %v4670_v5 = vadd.f32 %v4669_v17, %v4668_v13  ;;  %v4564_v42 = vmul.f32 %v10785_v4, %v10785_v4  ;;  %v4145_v53 = vadd.f32 %v10601_v12, %v10570_v1 }
 0x58c   :  { %v4481_v22 = vsel %vm325_vm0, %v10794_v6, 0.0  ;;  %v4566_v13 = vmul.f32 %v10807_v38, %v10807_v38  ;;  %v4148_v63 = vadd.f32 %v10639_v9, %v10608_v14  ;;  %v4151_v1 = vadd.f32 %v10681_v25, %v10650_v49 }
 0x58d   :  { %v4474_v51 = vadd.f32 %v4473_v0, %v4472_v54  ;;  %v4672_v23 = vadd.f32 %v4671_v55, %v4670_v5  ;;  %v4677_v0 = vsel %vm325_vm0, %v4564_v42, 0.0  ;;  %v4371_v55 = vpop.f32.mrf.mxu3  ;;  %v4679_v16 = vsel %vm325_vm0, %v4565_v10, 0.0 }
 0x58e   :  { %v4567_v19 = vmul.f32 %v10815_v30, %v10815_v30  ;;  %v10837_v5 = vadd.f32 %v10517_v33, %v4145_v53  ;;  %v4568_v14 = vmul.f32 %v10820_v48, %v10820_v48  ;;  %v4681_v49 = vsel %vm325_vm0, %v4566_v13, 0.0 }
 0x58f   :  { %v4476_v46 = vadd.f32 %v4475_v27, %v4474_v51  ;;  %v4674_v17 = vadd.f32 %v4673_v2, %v4672_v23  ;;  %v4483_v27 = vsel %vm325_vm0, %v10807_v38, 0.0  ;;  %v4485_v25 = vsel %vm325_vm0, %v10815_v30, 0.0 }
 0x590   :  { %v10845_v29 = vadd.f32 %v10572_v37, %v4148_v63  ;;  %v4154_v2 = vadd.f32 %v10718_v15, %v10692_v24  ;;  %v10850_v33 = vadd.f32 %v10619_v50, %v4151_v1  ;;  %v4157_v37 = vadd.f32 %v10767_v34, %v10734_v60 }
 0x591   :  { %v4478_v57 = vadd.f32 %v4477_v18, %v4476_v46  ;;  %v4676_v54 = vadd.f32 %v4675_v40, %v4674_v17  ;;  %v4683_v46 = vsel %vm325_vm0, %v4567_v19, 0.0  ;;  %v4487_v40 = vsel %vm325_vm0, %v10820_v48, 0.0 }
 0x592   :  { %v4159_v43 = vpop.f32.mrf.mxu2  ;;  %v4685_v24 = vsel %vm325_vm0, %v4568_v14, 0.0  ;;  %v4489_v50 = vsel %vm325_vm0, %v10837_v5, 0.0  ;;  %v4570_v15 = vmul.f32 %v10845_v29, %v10845_v29  ;;  %v10865_v17 = vadd.f32 %v10670_v8, %v4154_v2 }
 0x593   :  { %v4480_v58 = vadd.f32 %v4479_v62, %v4478_v57  ;;  %v3953_v12 = vpop.f32.mrf.mxu1  ;;  %v4678_v51 = vadd.f32 %v4677_v0, %v4676_v54  ;;  %v4569_v62 = vmul.f32 %v10837_v5, %v10837_v5  ;;  %v4160_v57 = vadd.f32 %v4159_v43, %v10774_v32 }
 0x594   :  { %v4571_v60 = vmul.f32 %v10850_v33, %v10850_v33  ;;  %v4491_v13 = vsel %vm325_vm0, %v10845_v29, 0.0  ;;  %v10874_v63 = vadd.f32 %v10723_v44, %v4157_v37  ;;  %v4689_v32 = vsel %vm325_vm0, %v4570_v15, 0.0 }
 0x595   :  { %v4482_v9 = vadd.f32 %v4481_v22, %v4480_v58  ;;  %v4680_v18 = vadd.f32 %v4679_v16, %v4678_v51  ;;  %v4687_v34 = vsel %vm325_vm0, %v4569_v62, 0.0  ;;  %v4374_v58 = vpop.f32.mrf.mxu3  ;;  %v4493_v43 = vsel %vm325_vm0, %v10850_v33, 0.0 }
 0x596   :  { %v10882_v19 = vadd.f32 %v10776_v3, %v4160_v57  ;;  %v4691_v44 = vsel %vm325_vm0, %v4571_v60, 0.0  ;;  %v4495_v14 = vsel %vm325_vm0, %v10865_v17, 0.0  ;;  %v4497_v3 = vsel %vm325_vm0, %v10874_v63, 0.0 }
 0x597   :  { %v4484_v42 = vadd.f32 %v4483_v27, %v4482_v9  ;;  %v4682_v10 = vadd.f32 %v4681_v49, %v4680_v18  ;;  %v4572_v27 = vmul.f32 %v10865_v17, %v10865_v17  ;;  %v4573_v49 = vmul.f32 %v10874_v63, %v10874_v63 }
 0x599   :  { %v4486_v53 = vadd.f32 %v4485_v25, %v4484_v42  ;;  %v4684_v0 = vadd.f32 %v4683_v46, %v4682_v10  ;;  %v4574_v46 = vmul.f32 %v10882_v19, %v10882_v19  ;;  %v4695_v10 = vsel %vm325_vm0, %v4573_v49, 0.0 }
 0x59a   :  { %v4162_v23 = vpop.f32.mrf.mxu2 }
 0x59b   :  { %v4488_v22 = vadd.f32 %v4487_v40, %v4486_v53  ;;  %v4163_v54 = vadd.f32 %v4162_v23, %v3953_v12  ;;  %v4686_v1 = vadd.f32 %v4685_v24, %v4684_v0  ;;  %v3956_v16 = vpop.f32.mrf.mxu1  ;;  %v4693_v23 = vsel %vm325_vm0, %v4572_v27, 0.0 }
 0x59c   :  { %v4697_v15 = vsel %vm325_vm0, %v4574_v46, 0.0 }
 0x59d   :  { %v4490_v8 = vadd.f32 %v4489_v50, %v4488_v22  ;;  %v4688_v51 = vadd.f32 %v4687_v34, %v4686_v1  ;;  %v10889_v25 = vadd.f32 %v4371_v55, %v4163_v54  ;;  %v4499_v55 = vsel %vm325_vm0, %v10882_v19, 0.0  ;;  %v4377_v22 = vpop.f32.mrf.mxu3 }
 0x59f   :  { %v4492_v9 = vadd.f32 %v4491_v13, %v4490_v8  ;;  %v4690_v18 = vadd.f32 %v4689_v32, %v4688_v51  ;;  %v4575_v53 = vmul.f32 %v10889_v25, %v10889_v25  ;;  %v4501_v57 = vsel %vm325_vm0, %v10889_v25, 0.0 }
 0x5a1   :  { %v4494_v42 = vadd.f32 %v4493_v43, %v4492_v9  ;;  %v4692_v62 = vadd.f32 %v4691_v44, %v4690_v18 }
 0x5a2   :  { %v4165_v12 = vpop.f32.mrf.mxu2 }
 0x5a3   :  { %v4166_v2 = vadd.f32 %v4165_v12, %v3956_v16  ;;  %v4496_v37 = vadd.f32 %v4495_v14, %v4494_v42  ;;  %v4694_v24 = vadd.f32 %v4693_v23, %v4692_v62 }
 0x5a5   :  { %v10896_v40 = vadd.f32 %v4374_v58, %v4166_v2  ;;  %v4498_v50 = vadd.f32 %v4497_v3, %v4496_v37  ;;  %v4696_v60 = vadd.f32 %v4695_v10, %v4694_v24  ;;  %v4699_v58 = vsel %vm325_vm0, %v4575_v53, 0.0 }
 0x5a7   :  { %v4576_v0 = vmul.f32 %v10896_v40, %v10896_v40  ;;  %v4500_v34 = vadd.f32 %v4499_v55, %v4498_v50  ;;  %v3959_v13 = vpop.f32.mrf.mxu1  ;;  %v4503_v1 = vsel %vm325_vm0, %v10896_v40, 0.0  ;;  %v4698_v16 = vadd.f32 %v4697_v15, %v4696_v60  ;;  %v12284_v15 = vld [vmem:[#allocation32_spill] sm:$0xff] }
 0x5a9   :  { %v4502_v32 = vadd.f32 %v4501_v57, %v4500_v34  ;;  %v4701_v43 = vsel %vm325_vm0, %v4576_v0, 0.0  ;;  %v4700_v51 = vadd.f32 %v4699_v58, %v4698_v16  ;;  %v4929_v58 = vld [vmem:[%s12023_s3] sm:$0xff] }
 0x5aa   :  { %v4168_v54 = vpop.f32.mrf.mxu2  ;;  %5140 = vmatpush.msrb.mxu3 %v4929_v58 }
 0x5ab   :  { %v4169_v8 = vadd.f32 %v4168_v54, %v3959_v13  ;;  %v4504_v9 = vadd.f32 %v4503_v1, %v4502_v32  ;;  %v4702_v14 = vadd.f32 %v4701_v43, %v4700_v51  ;;  %v4715_v51 = vld [vmem:[%s12026_s6] sm:$0x1] }
 0x5ad   :  { %v4378_v27 = vadd.f32 %v4377_v22, %v4169_v8 }
 0x5af   :  { %v4505_v44 = vsel %vm325_vm0, %v4378_v27, 0.0  ;;  %v4577_v12 = vmul.f32 %v4378_v27, %v4378_v27 }
 0x5b0   :  { %v4506_v49 = vadd.f32 %v4505_v44, %v4504_v9 }
 0x5b1   :  { %v4703_v2 = vsel %vm325_vm0, %v4577_v12, 0.0 }
 0x5b2   :  { %v4507_v18 = vrot.slane %v4506_v49, 4  ;;  %v4704_v42 = vadd.f32 %v4703_v2, %v4702_v14 }
 0x5b4   :  { %v4508_v23 = vadd.f32 %v4507_v18, %v4506_v49  ;;  %v4705_v3 = vrot.slane %v4704_v42, 4  ;;  %v4795_v18 = vld [vmem:[%s12027_s7] sm:$0x1] }
 0x5b6   :  { %v4509_v46 = vrot.slane %v4508_v23, 2  ;;  %v4706_v62 = vadd.f32 %v4705_v3, %v4704_v42 }
 0x5b8   :  { %v4510_v37 = vadd.f32 %v4509_v46, %v4508_v23  ;;  %v4707_v10 = vrot.slane %v4706_v62, 2 }
 0x5ba   :  { %v4511_v55 = vrot.slane %v4510_v37, 1  ;;  %v4708_v53 = vadd.f32 %v4707_v10, %v4706_v62 }
 0x5bc   :  { %v4512_v24 = vadd.f32 %v4511_v55, %v4510_v37  ;;  %v4709_v50 = vrot.slane %v4708_v53, 1 }
 0x5be   :  { %v4513_v57 = vmul.f32 %v4512_v24, %v12284_v15  ;;  %v4710_v0 = vadd.f32 %v4709_v50, %v4708_v53 }
 0x5c0   :  { %v4711_v22 = vmul.f32 %v4710_v0, %v12284_v15  ;;  %v4712_v60 = vmul.f32 %v4513_v57, %v4513_v57 }
 0x5c2   :  { %v4713_v34 = vsub.f32 %v4711_v22, %v4712_v60 }
 0x5c4   :  { %v4714_v13 = vmax.f32 %v4713_v34, 0.0 }
 0x5c6   :  { %v4716_v54 = vadd.f32 1e-05, %v4714_v13 }
 0x5c8   :  { %7027 = vrsqrt.f32 %v4716_v54  ;;  %vm4723_vm10 = vweird.f32 %v4716_v54 }
 0x5ce   :  { %v7028_v1 = vpop.eup %7027 }
 0x5cf   :  { %v4718_v8 = vmul.f32 %v7028_v1, %v4716_v54  ;;  %vm4724_vm9 = vweird.f32 %v7028_v1 }
 0x5d0   :  { %vm4725_vm11 = vmor %vm4723_vm10, %vm4724_vm9 }
 0x5d1   :  { %v4719_v16 = vmul.f32 %v7028_v1, %v4718_v8 }
 0x5d3   :  { %v4720_v32 = vmul.f32 0.5, %v4719_v16 }
 0x5d5   :  { %v4721_v43 = vsub.f32 1.5, %v4720_v32 }
 0x5d7   :  { %v4722_v9 = vmul.f32 %v7028_v1, %v4721_v43  ;;  %v12288_v43 = vld [vmem:[#allocation51_spill] sm:$0xff] }
 0x5d9   :  { %v4726_v44 = vsel %vm4725_vm11, %v7028_v1, %v4722_v9 }
 0x5da   :  { %v4727_v12 = vmul.f32 %v4726_v44, %v4715_v51 }
 0x5dc   :  { %v10922_v14 = vperm.slane %v4727_v12, 0  ;;  %v4796_v2 = vmul.f32 %v4727_v12, %v4513_v57  ;;  %v12289_v12 = vld [vmem:[#allocation52_spill] sm:$0xff] }
 0x5de   :  { %v10925_v49 = vmul.f32 %v10922_v14, %v4378_v27  ;;  %v4797_v42 = vsub.f32 %v4795_v18, %v4796_v2  ;;  %v4731_v3 = vmul.f32 %v10922_v14, %v10274_v59  ;;  %v4732_v27 = vmul.f32 %v10922_v14, %v10269_v31 }
 0x5df   :  { %v4733_v55 = vmul.f32 %v10922_v14, %v10278_v41  ;;  %v4734_v59 = vmul.f32 %v10922_v14, %v10284_v35  ;;  %v4735_v31 = vmul.f32 %v10922_v14, %v10296_v52  ;;  %v12285_v41 = vld [vmem:[#allocation48_spill] sm:$0xff]  ;;  %v12286_v35 = vld [vmem:[#allocation49_spill] sm:$0xff]  ;;  %v12287_v52 = vld [vmem:[#allocation50_spill] sm:$0xff]  ;;  %v4739_v51 = vmul.f32 %v10922_v14, %v12288_v43 }
 0x5e0   :  { %v10930_v23 = vperm.slane %v4797_v42, 0  ;;  %v4736_v60 = vmul.f32 %v10922_v14, %v12285_v41  ;;  %v4737_v54 = vmul.f32 %v10922_v14, %v12286_v35  ;;  %v4738_v8 = vmul.f32 %v10922_v14, %v12287_v52 }
 0x5e1   :  { %v4740_v2 = vmul.f32 %v10922_v14, %v12289_v12 }
 0x5e2   :  { %v4801_v46 = vadd.f32 %v10930_v23, %v4731_v3  ;;  %v4802_v37 = vadd.f32 %v10930_v23, %v4732_v27  ;;  %v4803_v53 = vadd.f32 %v10930_v23, %v4733_v55  ;;  %v4804_v50 = vadd.f32 %v10930_v23, %v4734_v59  ;;  %v12290_v3 = vld [vmem:[#allocation53_spill] sm:$0xff] }
 0x5e3   :  { %v4805_v0 = vadd.f32 %v10930_v23, %v4735_v31  ;;  %v4806_v34 = vadd.f32 %v10930_v23, %v4736_v60  ;;  %v4807_v58 = vadd.f32 %v10930_v23, %v4737_v54  ;;  %v4808_v16 = vadd.f32 %v10930_v23, %v4738_v8  ;;  %v12293_v31 = vld [vmem:[#allocation56_spill] sm:$0xff]  ;;  %v12294_v60 = vld [vmem:[#allocation57_spill] sm:$0xff]  ;;  %v12296_v8 = vld [vmem:[#allocation6_spill] sm:$0xff] }
 0x5e4   :  { %v4865_v62 = vmax.f32 %v4801_v46, 0.0  ;;  %v4866_v10 = vmax.f32 %v4802_v37, 0.0  ;;  %v4867_v24 = vmax.f32 %v4803_v53, 0.0  ;;  %v4868_v57 = vmax.f32 %v4804_v50, 0.0  ;;  %v12291_v37 = vld [vmem:[#allocation54_spill] sm:$0xff]  ;;  %v12295_v54 = vld [vmem:[#allocation12_spill] sm:$0xff] }
 0x5e5   :  { %v4869_v22 = vmax.f32 %v4805_v0, 0.0  ;;  %v4870_v13 = vmax.f32 %v4806_v34, 0.0  ;;  %v4871_v1 = vmax.f32 %v4807_v58, 0.0  ;;  %v4872_v32 = vmax.f32 %v4808_v16, 0.0 }
 0x5e6   :  { %5965 = vmatmul.msk.f32.vlgmr.msrb.gmra.mxu3 %vm325_vm0, %v4865_v62  ;;  %v4809_v9 = vadd.f32 %v10930_v23, %v4739_v51  ;;  %v4810_v18 = vadd.f32 %v10930_v23, %v4740_v2  ;;  %v4741_v46 = vmul.f32 %v10922_v14, %v12290_v3  ;;  %v4744_v0 = vmul.f32 %v10922_v14, %v12293_v31  ;;  %v12297_v51 = vld [vmem:[#allocation13_spill] sm:$0xff] }
 0x5e7   :  { %v4745_v34 = vmul.f32 %v10922_v14, %v12294_v60  ;;  %v4746_v58 = vmul.f32 %v10922_v14, %v12295_v54  ;;  %v4747_v16 = vmul.f32 %v10922_v14, %v12296_v8 }
 0x5e8   :  { %v4873_v44 = vmax.f32 %v4809_v9, 0.0  ;;  %v4874_v42 = vmax.f32 %v4810_v18, 0.0  ;;  %v4811_v62 = vadd.f32 %v10930_v23, %v4741_v46  ;;  %v4748_v9 = vmul.f32 %v10922_v14, %v12297_v51  ;;  %v12299_v18 = vld [vmem:[#allocation7_spill] sm:$0xff] }
 0x5e9   :  { %v4755_v51 = vmul.f32 %v10922_v14, %v10510_v28 }
 0x5ea   :  { %v4875_v27 = vmax.f32 %v4811_v62, 0.0 }
 0x5ee   :  { %5966 = vmatmul.msk.f32.gmra.mxu3 %vm325_vm0, %v4866_v10  ;;  %v4742_v10 = vmul.f32 %v10922_v14, %v12291_v37 }
 0x5f0   :  { %v4812_v55 = vadd.f32 %v10930_v23, %v4742_v10 }
 0x5f2   :  { %v4876_v53 = vmax.f32 %v4812_v55, 0.0 }
 0x5f6   :  { %5967 = vmatmul.msk.f32.gmra.mxu3 %vm325_vm0, %v4867_v24  ;;  %v12292_v24 = vld [vmem:[#allocation55_spill] sm:$0xff] }
 0x5f7   :  { %v4743_v59 = vmul.f32 %v10922_v14, %v12292_v24  ;;  %v12303_v24 = vld [vmem:[#allocation8_spill] sm:$0xff] }
 0x5f9   :  { %v4813_v50 = vadd.f32 %v10930_v23, %v4743_v59  ;;  %v4751_v59 = vmul.f32 %v10922_v14, %v12303_v24  ;;  %v12315_v24 = vld [vmem:[#allocation21_spill] sm:$0xff] }
 0x5fe   :  { %5968 = vmatmul.msk.f32.gmra.mxu3 %vm325_vm0, %v4868_v57  ;;  %v4877_v57 = vmax.f32 %v4813_v50, 0.0  ;;  %v4821_v50 = vadd.f32 %v10930_v23, %v4751_v59 }
 0x600   :  { %v4885_v31 = vmax.f32 %v4821_v50, 0.0 }
 0x606   :  { %5969 = vmatmul.msk.f32.gmra.mxu3 %vm325_vm0, %v4869_v22  ;;  %v4814_v22 = vadd.f32 %v10930_v23, %v4744_v0  ;;  %v12305_v0 = vld [vmem:[#allocation18_spill] sm:$0xff] }
 0x608   :  { %v4878_v41 = vmax.f32 %v4814_v22, 0.0  ;;  %v4752_v22 = vmul.f32 %v10922_v14, %v12305_v0  ;;  %v4759_v0 = vmul.f32 %v10922_v14, %v10555_v21 }
 0x60e   :  { %5970 = vmatmul.msk.f32.gmra.mxu3 %vm325_vm0, %v4870_v13  ;;  %v4815_v13 = vadd.f32 %v10930_v23, %v4745_v34 }
 0x610   :  { %v4879_v35 = vmax.f32 %v4815_v13, 0.0  ;;  %v12307_v13 = vld [vmem:[#allocation9_spill] sm:$0xff] }
 0x616   :  { %5971 = vmatmul.msk.f32.gmra.mxu3 %vm325_vm0, %v4871_v1  ;;  %v4816_v1 = vadd.f32 %v10930_v23, %v4746_v58 }
 0x618   :  { %v4880_v52 = vmax.f32 %v4816_v1, 0.0 }
 0x61e   :  { %5972 = vmatmul.msk.f32.gmra.mxu3 %vm325_vm0, %v4872_v32  ;;  %v4817_v32 = vadd.f32 %v10930_v23, %v4747_v16 }
 0x620   :  { %v4881_v43 = vmax.f32 %v4817_v32, 0.0 }
 0x626   :  { %5973 = vmatmul.msk.f32.gmra.mxu3 %vm325_vm0, %v4873_v44  ;;  %v4818_v44 = vadd.f32 %v10930_v23, %v4748_v9  ;;  %v4825_v9 = vadd.f32 %v10930_v23, %v4755_v51 }
 0x628   :  { %v4882_v2 = vmax.f32 %v4818_v44, 0.0 }
 0x62e   :  { %5974 = vmatmul.msk.f32.gmra.mxu3 %vm325_vm0, %v4874_v42  ;;  %v4749_v42 = vmul.f32 %v10922_v14, %v12299_v18  ;;  %v4756_v18 = vmul.f32 %v10922_v14, %v10526_v39  ;;  %v4758_v39 = vmul.f32 %v10922_v14, %v12315_v24 }
 0x630   :  { %v4819_v3 = vadd.f32 %v10930_v23, %v4749_v42  ;;  %v4826_v42 = vadd.f32 %v10930_v23, %v4756_v18  ;;  %v4828_v59 = vadd.f32 %v10930_v23, %v4758_v39  ;;  %v4764_v39 = vmul.f32 %v10922_v14, %v12264_v26 }
 0x632   :  { %v4883_v62 = vmax.f32 %v4819_v3, 0.0 }
 0x636   :  { %5975 = vmatmul.msk.f32.gmra.mxu3 %vm325_vm0, %v4875_v27  ;;  %v12301_v27 = vld [vmem:[#allocation14_spill] sm:$0xff] }
 0x637   :  { %v4750_v37 = vmul.f32 %v10922_v14, %v12301_v27  ;;  %v12313_v27 = vld [vmem:[#allocation10_spill] sm:$0xff] }
 0x638   :  { %v4757_v28 = vmul.f32 %v10922_v14, %v12313_v27  ;;  %v12324_v27 = vld [vmem:[#allocation25_spill] sm:$0xff] }
 0x639   :  { %v4820_v10 = vadd.f32 %v10930_v23, %v4750_v37 }
 0x63a   :  { %v4827_v37 = vadd.f32 %v10930_v23, %v4757_v28  ;;  %v4763_v28 = vmul.f32 %v10922_v14, %v12324_v27 }
 0x63e   :  { %5976 = vmatmul.msk.f32.gmra.mxu3 %vm325_vm0, %v4876_v53  ;;  %v4884_v53 = vmax.f32 %v4820_v10, 0.0 }
 0x646   :  { %5977 = vmatmul.msk.f32.gmra.mxu3 %vm325_vm0, %v4877_v57 }
 0x64e   :  { %5978 = vmatmul.msk.f32.gmra.mxu3 %vm325_vm0, %v4878_v41  ;;  %v4822_v41 = vadd.f32 %v10930_v23, %v4752_v22  ;;  %v4829_v22 = vadd.f32 %v10930_v23, %v4759_v0 }
 0x650   :  { %v4886_v34 = vmax.f32 %v4822_v41, 0.0 }
 0x656   :  { %5979 = vmatmul.msk.f32.gmra.mxu3 %vm325_vm0, %v4879_v35  ;;  %v4753_v35 = vmul.f32 %v10922_v14, %v12307_v13  ;;  %v12318_v13 = vld [vmem:[#allocation11_spill] sm:$0xff] }
 0x658   :  { %v4823_v54 = vadd.f32 %v10930_v23, %v4753_v35  ;;  %v4760_v35 = vmul.f32 %v10922_v14, %v12318_v13 }
 0x65a   :  { %v4887_v1 = vmax.f32 %v4823_v54, 0.0  ;;  %v4830_v54 = vadd.f32 %v10930_v23, %v4760_v35 }
 0x65e   :  { %5980 = vmatmul.msk.f32.gmra.mxu3 %vm325_vm0, %v4880_v52  ;;  %v12309_v52 = vld [vmem:[#allocation19_spill] sm:$0xff] }
 0x65f   :  { %v4754_v8 = vmul.f32 %v10922_v14, %v12309_v52  ;;  %v4894_v52 = vmax.f32 %v4830_v54, 0.0 }
 0x661   :  { %v4824_v16 = vadd.f32 %v10930_v23, %v4754_v8  ;;  %v12320_v8 = vld [vmem:[#allocation23_spill] sm:$0xff] }
 0x662   :  { %v4761_v21 = vmul.f32 %v10922_v14, %v12320_v8 }
 0x666   :  { %5981 = vmatmul.msk.f32.gmra.mxu3 %vm325_vm0, %v4881_v43  ;;  %v4888_v43 = vmax.f32 %v4824_v16, 0.0  ;;  %v4831_v16 = vadd.f32 %v10930_v23, %v4761_v21 }
 0x668   :  { %v4895_v51 = vmax.f32 %v4831_v16, 0.0 }
 0x669   :  { %v11003_v12 = vpop.f32.mrf.mxu3 }
 0x66a   :  { %12298 = vst [vmem:[#allocation17_spill] sm:$0xff] %v11003_v12 }
 0x66e   :  { %5982 = vmatmul.msk.f32.gmra.mxu3 %vm325_vm0, %v4882_v2  ;;  %v4889_v2 = vmax.f32 %v4825_v9, 0.0  ;;  %v12322_v9 = vld [vmem:[#allocation16_spill] sm:$0xff] }
 0x671   :  { %v11009_v46 = vpop.f32.mrf.mxu3 }
 0x672   :  { %12300 = vst [vmem:[#allocation30_spill] sm:$0xff] %v11009_v46 }
 0x676   :  { %5983 = vmatmul.msk.f32.gmra.mxu3 %vm325_vm0, %v4883_v62  ;;  %v4890_v62 = vmax.f32 %v4826_v42, 0.0 }
 0x679   :  { %v11015_v55 = vpop.f32.mrf.mxu3 }
 0x67a   :  { %12302 = vst [vmem:[#allocation15_spill] sm:$0xff] %v11015_v55 }
 0x67e   :  { %5984 = vmatmul.msk.f32.gmra.mxu3 %vm325_vm0, %v4884_v53  ;;  %v4891_v53 = vmax.f32 %v4827_v37, 0.0  ;;  %v4833_v37 = vadd.f32 %v10930_v23, %v4763_v28 }
 0x680   :  { %v4897_v24 = vmax.f32 %v4833_v37, 0.0 }
 0x681   :  { %v11021_v57 = vpop.f32.mrf.mxu3 }
 0x682   :  { %12304 = vst [vmem:[#allocation33_spill] sm:$0xff] %v11021_v57 }
 0x686   :  { %5985 = vmatmul.msk.f32.gmra.mxu3 %vm325_vm0, %v4885_v31  ;;  %v4892_v31 = vmax.f32 %v4828_v59, 0.0  ;;  %v4834_v59 = vadd.f32 %v10930_v23, %v4764_v39  ;;  %v12334_v39 = vld [vmem:[#allocation24_spill] sm:$0xff] }
 0x688   :  { %v4898_v0 = vmax.f32 %v4834_v59, 0.0 }
 0x689   :  { %v11027_v60 = vpop.f32.mrf.mxu3 }
 0x68a   :  { %12306 = vst [vmem:[#allocation34_spill] sm:$0xff] %v11027_v60 }
 0x68e   :  { %5986 = vmatmul.msk.f32.gmra.mxu3 %vm325_vm0, %v4886_v34  ;;  %v4893_v34 = vmax.f32 %v4829_v22, 0.0  ;;  %v12327_v22 = vld [vmem:[#allocation20_spill] sm:$0xff] }
 0x691   :  { %v11033_v58 = vpop.f32.mrf.mxu3 }
 0x692   :  { %12308 = vst [vmem:[#allocation35_spill] sm:$0xff] %v11033_v58 }
 0x696   :  { %5987 = vmatmul.msk.f32.gmra.mxu3 %vm325_vm0, %v4887_v1 }
 0x699   :  { %v11039_v32 = vpop.f32.mrf.mxu3 }
 0x69a   :  { %12310 = vst [vmem:[#allocation36_spill] sm:$0xff] %v11039_v32 }
 0x69e   :  { %5988 = vmatmul.msk.f32.gmra.mxu3 %vm325_vm0, %v4888_v43 }
 0x6a1   :  { %v11045_v44 = vpop.f32.mrf.mxu3 }
 0x6a2   :  { %12311 = vst [vmem:[#allocation37_spill] sm:$0xff] %v11045_v44 }
 0x6a6   :  { %5989 = vmatmul.msk.f32.gmra.mxu3 %vm325_vm0, %v4889_v2  ;;  %v4762_v2 = vmul.f32 %v10922_v14, %v12322_v9 }
 0x6a8   :  { %v4832_v18 = vadd.f32 %v10930_v23, %v4762_v2 }
 0x6a9   :  { %v11051_v3 = vpop.f32.mrf.mxu3 }
 0x6aa   :  { %12312 = vst [vmem:[#allocation38_spill] sm:$0xff] %v11051_v3 }
 0x6ae   :  { %5990 = vmatmul.msk.f32.gmra.mxu3 %vm325_vm0, %v4890_v62  ;;  %v4896_v62 = vmax.f32 %v4832_v18, 0.0 }
 0x6b1   :  { %v11057_v10 = vpop.f32.mrf.mxu3 }
 0x6b2   :  { %12314 = vst [vmem:[#allocation39_spill] sm:$0xff] %v11057_v10 }
 0x6b6   :  { %5991 = vmatmul.msk.f32.gmra.mxu3 %vm325_vm0, %v4891_v53 }
 0x6b9   :  { %v11063_v50 = vpop.f32.mrf.mxu3 }
 0x6ba   :  { %12316 = vst [vmem:[#allocation40_spill] sm:$0xff] %v11063_v50 }
 0x6be   :  { %5992 = vmatmul.msk.f32.gmra.mxu3 %vm325_vm0, %v4892_v31 }
 0x6c1   :  { %v11069_v41 = vpop.f32.mrf.mxu3 }
 0x6c2   :  { %12317 = vst [vmem:[#allocation43_spill] sm:$0xff] %v11069_v41 }
 0x6c6   :  { %5993 = vmatmul.msk.f32.gmra.mxu3 %vm325_vm0, %v4893_v34  ;;  %v4765_v34 = vmul.f32 %v10922_v14, %v12327_v22 }
 0x6c8   :  { %v4835_v13 = vadd.f32 %v10930_v23, %v4765_v34  ;;  %v12336_v34 = vld [vmem:[#allocation29_spill] sm:$0xff] }
 0x6c9   :  { %v11075_v1 = vpop.f32.mrf.mxu3 }
 0x6ca   :  { %12319 = vst [vmem:[#allocation45_spill] sm:$0xff] %v11075_v1  ;;  %v4899_v54 = vmax.f32 %v4835_v13, 0.0  ;;  %v4770_v13 = vmul.f32 %v10922_v14, %v12336_v34  ;;  %v12340_v34 = vld [vmem:[#allocation28_spill] sm:$0xff] }
 0x6ce   :  { %5994 = vmatmul.msk.f32.gmra.mxu3 %vm325_vm0, %v4894_v52  ;;  %v12329_v52 = vld [vmem:[#allocation27_spill] sm:$0xff] }
 0x6cf   :  { %v4766_v26 = vmul.f32 %v10922_v14, %v12329_v52 }
 0x6d1   :  { %v11081_v43 = vpop.f32.mrf.mxu3  ;;  %v4836_v8 = vadd.f32 %v10930_v23, %v4766_v26 }
 0x6d2   :  { %12321 = vst [vmem:[#allocation47_spill] sm:$0xff] %v11081_v43 }
 0x6d3   :  { %v4900_v16 = vmax.f32 %v4836_v8, 0.0  ;;  %v4771_v8 = vmul.f32 %v10922_v14, %v10679_v61 }
 0x6d6   :  { %5995 = vmatmul.msk.f32.gmra.mxu3 %vm325_vm0, %v4895_v51  ;;  %v4767_v51 = vmul.f32 %v10922_v14, %v10637_v7  ;;  %v4769_v7 = vmul.f32 %v10922_v14, %v12334_v39  ;;  %v12339_v39 = vld [vmem:[#allocation31_spill] sm:$0xff] }
 0x6d7   :  { %v4773_v61 = vmul.f32 %v10922_v14, %v12339_v39 }
 0x6d8   :  { %v4837_v9 = vadd.f32 %v10930_v23, %v4767_v51  ;;  %v4839_v59 = vadd.f32 %v10930_v23, %v4769_v7 }
 0x6d9   :  { %v11087_v42 = vpop.f32.mrf.mxu3  ;;  %v4843_v7 = vadd.f32 %v10930_v23, %v4773_v61 }
 0x6da   :  { %12323 = vst [vmem:[#allocation41_spill] sm:$0xff] %v11087_v42  ;;  %v4901_v18 = vmax.f32 %v4837_v9, 0.0  ;;  %v4903_v22 = vmax.f32 %v4839_v59, 0.0 }
 0x6de   :  { %5996 = vmatmul.msk.f32.gmra.mxu3 %vm325_vm0, %v4896_v62  ;;  %v12332_v62 = vld [vmem:[#allocation22_spill] sm:$0xff] }
 0x6df   :  { %v4768_v27 = vmul.f32 %v10922_v14, %v12332_v62 }
 0x6e1   :  { %v11093_v53 = vpop.f32.mrf.mxu3  ;;  %v4838_v28 = vadd.f32 %v10930_v23, %v4768_v27 }
 0x6e2   :  { %12325 = vst [vmem:[#allocation42_spill] sm:$0xff] %v11093_v53 }
 0x6e6   :  { %5997 = vmatmul.msk.f32.gmra.mxu3 %vm325_vm0, %v4897_v24  ;;  %v4902_v24 = vmax.f32 %v4838_v28, 0.0 }
 0x6e9   :  { %v11099_v31 = vpop.f32.mrf.mxu3 }
 0x6ea   :  { %12326 = vst [vmem:[#allocation44_spill] sm:$0xff] %v11099_v31 }
 0x6ee   :  { %5998 = vmatmul.msk.f32.gmra.mxu3 %vm325_vm0, %v4898_v0 }
 0x6f1   :  { %v11105_v35 = vpop.f32.mrf.mxu3 }
 0x6f2   :  { %12328 = vst [vmem:[#allocation46_spill] sm:$0xff] %v11105_v35 }
 0x6f6   :  { %5999 = vmatmul.msk.f32.gmra.mxu3 %vm325_vm0, %v4899_v54  ;;  %v4840_v54 = vadd.f32 %v10930_v23, %v4770_v13  ;;  %v4774_v13 = vmul.f32 %v10922_v14, %v12340_v34 }
 0x6f8   :  { %v4904_v26 = vmax.f32 %v4840_v54, 0.0  ;;  %v4844_v54 = vadd.f32 %v10930_v23, %v4774_v13 }
 0x6f9   :  { %v11111_v21 = vpop.f32.mrf.mxu3 }
 0x6fa   :  { %12330 = vst [vmem:[#allocation32_spill] sm:$0xff] %v11111_v21 }
 0x6fe   :  { %6000 = vmatmul.msk.f32.gmra.mxu3 %vm325_vm0, %v4900_v16  ;;  %v4841_v16 = vadd.f32 %v10930_v23, %v4771_v8  ;;  %v4908_v8 = vmax.f32 %v4844_v54, 0.0 }
 0x700   :  { %v4905_v9 = vmax.f32 %v4841_v16, 0.0  ;;  %v4775_v16 = vmul.f32 %v10922_v14, %v10716_v45  ;;  %v4777_v45 = vmul.f32 %v10922_v14, %v10743_v36  ;;  %v4779_v36 = vmul.f32 %v10922_v14, %v10761_v11 }
 0x701   :  { %v11117_v2 = vpop.f32.mrf.mxu3  ;;  %v4781_v11 = vmul.f32 %v10922_v14, %v10785_v4  ;;  %v4783_v4 = vmul.f32 %v10922_v14, %v10807_v38  ;;  %v4785_v38 = vmul.f32 %v10922_v14, %v10820_v48  ;;  %v4787_v48 = vmul.f32 %v10922_v14, %v10845_v29 }
 0x702   :  { %12331 = vst [vmem:[#allocation48_spill] sm:$0xff] %v11117_v2  ;;  %v4789_v29 = vmul.f32 %v10922_v14, %v10865_v17  ;;  %v4791_v17 = vmul.f32 %v10922_v14, %v10882_v19  ;;  %v4793_v19 = vmul.f32 %v10922_v14, %v10896_v40  ;;  %v5405_v40 = vmul.f32 %v11009_v46, %v11009_v46 }
 0x706   :  { %6001 = vmatmul.msk.f32.gmra.mxu3 %vm325_vm0, %v4901_v18  ;;  %v12338_v18 = vld [vmem:[#allocation26_spill] sm:$0xff] }
 0x707   :  { %v4772_v62 = vmul.f32 %v10922_v14, %v12338_v18 }
 0x709   :  { %v11123_v37 = vpop.f32.mrf.mxu3  ;;  %v4842_v27 = vadd.f32 %v10930_v23, %v4772_v62 }
 0x70a   :  { %12333 = vst [vmem:[#allocation49_spill] sm:$0xff] %v11123_v37 }
 0x70e   :  { %6002 = vmatmul.msk.f32.gmra.mxu3 %vm325_vm0, %v4902_v24  ;;  %v4906_v24 = vmax.f32 %v4842_v27, 0.0  ;;  %v4776_v27 = vmul.f32 %v10922_v14, %v10732_v47  ;;  %v4778_v47 = vmul.f32 %v10922_v14, %v10752_v56  ;;  %v4780_v56 = vmul.f32 %v10922_v14, %v10765_v20 }
 0x70f   :  { %v4782_v20 = vmul.f32 %v10922_v14, %v10794_v6  ;;  %v4784_v6 = vmul.f32 %v10922_v14, %v10815_v30  ;;  %v4786_v30 = vmul.f32 %v10922_v14, %v10837_v5  ;;  %v4788_v5 = vmul.f32 %v10922_v14, %v10850_v33 }
 0x710   :  { %v4848_v13 = vadd.f32 %v10930_v23, %v4778_v47  ;;  %v4790_v33 = vmul.f32 %v10922_v14, %v10874_v63  ;;  %v4792_v63 = vmul.f32 %v10922_v14, %v10889_v25  ;;  %v4864_v25 = vadd.f32 %v10930_v23, %v10925_v49 }
 0x711   :  { %v11129_v0 = vpop.f32.mrf.mxu3  ;;  %v4852_v47 = vadd.f32 %v10930_v23, %v4782_v20  ;;  %v4856_v20 = vadd.f32 %v10930_v23, %v4786_v30  ;;  %v5404_v14 = vmul.f32 %v11003_v12, %v11003_v12 }
 0x712   :  { %12335 = vst [vmem:[#allocation50_spill] sm:$0xff] %v11129_v0  ;;  %v4860_v30 = vadd.f32 %v10930_v23, %v4790_v33 }
 0x713   :  { %v5468_v49 = vadd.f32 %v5405_v40, %v5404_v14  ;;  %v5410_v14 = vmul.f32 %v11039_v32, %v11039_v32 }
 0x716   :  { %6003 = vmatmul.msk.f32.gmra.mxu3 %vm325_vm0, %v4903_v22  ;;  %v4907_v22 = vmax.f32 %v4843_v7, 0.0  ;;  %v4847_v7 = vadd.f32 %v10930_v23, %v4777_v45  ;;  %v4851_v45 = vadd.f32 %v10930_v23, %v4781_v11  ;;  %v4855_v11 = vadd.f32 %v10930_v23, %v4785_v38 }
 0x717   :  { %v4859_v38 = vadd.f32 %v10930_v23, %v4789_v29  ;;  %v4863_v29 = vadd.f32 %v10930_v23, %v4793_v19  ;;  %v5408_v19 = vmul.f32 %v11027_v60, %v11027_v60 }
 0x718   :  { %v4911_v34 = vmax.f32 %v4847_v7, 0.0 }
 0x719   :  { %v11135_v52 = vpop.f32.mrf.mxu3 }
 0x71a   :  { %12337 = vst [vmem:[#allocation51_spill] sm:$0xff] %v11135_v52 }
 0x71e   :  { %6004 = vmatmul.msk.f32.gmra.mxu3 %vm325_vm0, %v4904_v26 }
 0x721   :  { %v11141_v51 = vpop.f32.mrf.mxu3 }
 0x726   :  { %6005 = vmatmul.msk.f32.gmra.mxu3 %vm325_vm0, %v4905_v9  ;;  %v4845_v9 = vadd.f32 %v10930_v23, %v4775_v16  ;;  %v4849_v16 = vadd.f32 %v10930_v23, %v4779_v36  ;;  %v4853_v36 = vadd.f32 %v10930_v23, %v4783_v4  ;;  %v4857_v4 = vadd.f32 %v10930_v23, %v4787_v48 }
 0x727   :  { %v4861_v48 = vadd.f32 %v10930_v23, %v4791_v17  ;;  %v5334_v17 = vadd.f32 %v11009_v46, %v11003_v12 }
 0x728   :  { %v4909_v62 = vmax.f32 %v4845_v9, 0.0 }
 0x729   :  { %v11147_v28 = vpop.f32.mrf.mxu3 }
 0x72e   :  { %6006 = vmatmul.msk.f32.gmra.mxu3 %vm325_vm0, %v4906_v24  ;;  %v4846_v24 = vadd.f32 %v10930_v23, %v4776_v27  ;;  %v4850_v27 = vadd.f32 %v10930_v23, %v4780_v56  ;;  %v4854_v56 = vadd.f32 %v10930_v23, %v4784_v6  ;;  %v4858_v6 = vadd.f32 %v10930_v23, %v4788_v5 }
 0x72f   :  { %v4862_v5 = vadd.f32 %v10930_v23, %v4792_v63  ;;  %v5335_v23 = vadd.f32 %v5334_v17, %v11015_v55 }
 0x730   :  { %v4910_v61 = vmax.f32 %v4846_v24, 0.0 }
 0x731   :  { %v11153_v59 = vpop.f32.mrf.mxu3 }
 0x736   :  { %6007 = vmatmul.msk.f32.gmra.mxu3 %vm325_vm0, %v4907_v22 }
 0x739   :  { %v11159_v26 = vpop.f32.mrf.mxu3 }
 0x73e   :  { %6008 = vmatmul.msk.f32.gmra.mxu3 %vm325_vm0, %v4908_v8  ;;  %v4912_v8 = vmax.f32 %v4848_v13, 0.0 }
 0x741   :  { %v11165_v18 = vpop.f32.mrf.mxu3 }
 0x746   :  { %6009 = vmatmul.msk.f32.gmra.mxu3 %vm325_vm0, %v4909_v62  ;;  %v4913_v62 = vmax.f32 %v4849_v16, 0.0 }
 0x749   :  { %v11171_v39 = vpop.f32.mrf.mxu3 }
 0x74e   :  { %6010 = vmatmul.msk.f32.gmra.mxu3 %vm325_vm0, %v4910_v61  ;;  %v4914_v61 = vmax.f32 %v4850_v27, 0.0 }
 0x751   :  { %v11177_v22 = vpop.f32.mrf.mxu3 }
 0x756   :  { %6011 = vmatmul.msk.f32.gmra.mxu3 %vm325_vm0, %v4911_v34  ;;  %v4915_v34 = vmax.f32 %v4851_v45, 0.0 }
 0x759   :  { %v11183_v54 = vpop.f32.mrf.mxu3 }
 0x75e   :  { %6012 = vmatmul.msk.f32.gmra.mxu3 %vm325_vm0, %v4912_v8  ;;  %v4916_v8 = vmax.f32 %v4852_v47, 0.0 }
 0x761   :  { %v11189_v9 = vpop.f32.mrf.mxu3 }
 0x766   :  { %6013 = vmatmul.msk.f32.gmra.mxu3 %vm325_vm0, %v4913_v62  ;;  %v4917_v62 = vmax.f32 %v4853_v36, 0.0 }
 0x769   :  { %v11195_v24 = vpop.f32.mrf.mxu3 }
 0x76e   :  { %6014 = vmatmul.msk.f32.gmra.mxu3 %vm325_vm0, %v4914_v61  ;;  %v4918_v61 = vmax.f32 %v4854_v56, 0.0 }
 0x771   :  { %v11201_v7 = vpop.f32.mrf.mxu3 }
 0x776   :  { %6015 = vmatmul.msk.f32.gmra.mxu3 %vm325_vm0, %v4915_v34  ;;  %v4919_v34 = vmax.f32 %v4855_v11, 0.0 }
 0x779   :  { %v11207_v13 = vpop.f32.mrf.mxu3 }
 0x77e   :  { %6016 = vmatmul.msk.f32.gmra.mxu3 %vm325_vm0, %v4916_v8  ;;  %v4920_v8 = vmax.f32 %v4856_v20, 0.0 }
 0x781   :  { %v11213_v16 = vpop.f32.mrf.mxu3 }
 0x786   :  { %6017 = vmatmul.msk.f32.gmra.mxu3 %vm325_vm0, %v4917_v62  ;;  %v4921_v62 = vmax.f32 %v4857_v4, 0.0 }
 0x789   :  { %v11219_v27 = vpop.f32.mrf.mxu3 }
 0x78e   :  { %6018 = vmatmul.msk.f32.gmra.mxu3 %vm325_vm0, %v4918_v61  ;;  %v4922_v61 = vmax.f32 %v4858_v6, 0.0 }
 0x791   :  { %v11225_v45 = vpop.f32.mrf.mxu3 }
 0x796   :  { %6019 = vmatmul.msk.f32.gmra.mxu3 %vm325_vm0, %v4919_v34  ;;  %v4923_v34 = vmax.f32 %v4859_v38, 0.0 }
 0x799   :  { %v11231_v47 = vpop.f32.mrf.mxu3 }
 0x79e   :  { %6020 = vmatmul.msk.f32.gmra.mxu3 %vm325_vm0, %v4920_v8  ;;  %v4924_v8 = vmax.f32 %v4860_v30, 0.0  ;;  %v4928_v30 = vmax.f32 %v4864_v25, 0.0  ;;  %v5409_v25 = vmul.f32 %v11033_v58, %v11033_v58 }
 0x7a1   :  { %v11237_v36 = vpop.f32.mrf.mxu3 }
 0x7a6   :  { %6021 = vmatmul.msk.f32.gmra.mxu3 %vm325_vm0, %v4921_v62  ;;  %v4925_v62 = vmax.f32 %v4861_v48, 0.0  ;;  %v5406_v48 = vmul.f32 %v11015_v55, %v11015_v55 }
 0x7a9   :  { %v11243_v56 = vpop.f32.mrf.mxu3 }
 0x7ae   :  { %6022 = vmatmul.msk.f32.gmra.mxu3 %vm325_vm0, %v4922_v61  ;;  %v4926_v61 = vmax.f32 %v4862_v5, 0.0  ;;  %v5469_v5 = vadd.f32 %v5468_v49, %v5406_v48  ;;  %v5411_v49 = vmul.f32 %v11045_v44, %v11045_v44 }
 0x7b1   :  { %v11249_v11 = vpop.f32.mrf.mxu3 }
 0x7b6   :  { %6023 = vmatmul.msk.f32.gmra.mxu3 %vm325_vm0, %v4923_v34  ;;  %v4927_v34 = vmax.f32 %v4863_v29, 0.0 }
 0x7b9   :  { %v11255_v20 = vpop.f32.mrf.mxu3 }
 0x7be   :  { %6024 = vmatmul.msk.f32.gmra.mxu3 %vm325_vm0, %v4924_v8 }
 0x7c1   :  { %v11261_v4 = vpop.f32.mrf.mxu3 }
 0x7c6   :  { %6025 = vmatmul.msk.f32.gmra.mxu3 %vm325_vm0, %v4925_v62  ;;  %v5407_v62 = vmul.f32 %v11021_v57, %v11021_v57 }
 0x7c8   :  { %v5470_v29 = vadd.f32 %v5469_v5, %v5407_v62 }
 0x7c9   :  { %v11267_v6 = vpop.f32.mrf.mxu3 }
 0x7ce   :  { %6026 = vmatmul.msk.f32.gmra.mxu3 %vm325_vm0, %v4926_v61  ;;  %v5336_v61 = vadd.f32 %v5335_v23, %v11021_v57 }
 0x7d1   :  { %v11273_v38 = vpop.f32.mrf.mxu3 }
 0x7d6   :  { %6027 = vmatmul.msk.f32.gmra.mxu3 %vm325_vm0, %v4927_v34  ;;  %v5337_v34 = vadd.f32 %v5336_v61, %v11027_v60  ;;  %v5412_v61 = vmul.f32 %v11051_v3, %v11051_v3 }
 0x7d8   :  { %v5338_v40 = vadd.f32 %v5337_v34, %v11033_v58  ;;  %v5413_v34 = vmul.f32 %v11057_v10, %v11057_v10 }
 0x7d9   :  { %v11278_v33 = vpop.f32.mrf.mxu3 }
 0x7da   :  { %v5339_v48 = vadd.f32 %v5338_v40, %v11039_v32  ;;  %v5414_v40 = vmul.f32 %v11063_v50, %v11063_v50 }
 0x7dc   :  { %v5340_v5 = vadd.f32 %v5339_v48, %v11045_v44 }
 0x7de   :  { %6028 = vmatmul.msk.f32.gmra.mxu3 %vm325_vm0, %v4928_v30  ;;  %v5471_v30 = vadd.f32 %v5470_v29, %v5408_v19  ;;  %v5341_v29 = vadd.f32 %v5340_v5, %v11051_v3  ;;  %v5416_v5 = vmul.f32 %v11075_v1, %v11075_v1 }
 0x7e0   :  { %v5472_v17 = vadd.f32 %v5471_v30, %v5409_v25  ;;  %v5342_v30 = vadd.f32 %v5341_v29, %v11057_v10  ;;  %v5417_v29 = vmul.f32 %v11081_v43, %v11081_v43 }
 0x7e1   :  { %v11281_v8 = vpop.f32.mrf.mxu3 }
 0x7e2   :  { %v5473_v62 = vadd.f32 %v5472_v17, %v5410_v14  ;;  %v5343_v14 = vadd.f32 %v5342_v30, %v11063_v50  ;;  %v5415_v17 = vmul.f32 %v11069_v41, %v11069_v41  ;;  %v5418_v30 = vmul.f32 %v11087_v42, %v11087_v42 }
 0x7e4   :  { %v5474_v19 = vadd.f32 %v5473_v62, %v5411_v49  ;;  %v5344_v62 = vadd.f32 %v5343_v14, %v11069_v41 }
 0x7e6   :  { %v5475_v25 = vadd.f32 %v5474_v19, %v5412_v61  ;;  %v5345_v19 = vadd.f32 %v5344_v62, %v11075_v1  ;;  %v5420_v62 = vmul.f32 %v11099_v31, %v11099_v31 }
 0x7e8   :  { %v5476_v32 = vadd.f32 %v5475_v25, %v5413_v34  ;;  %v5346_v25 = vadd.f32 %v5345_v19, %v11081_v43  ;;  %v5421_v19 = vmul.f32 %v11105_v35, %v11105_v35 }
 0x7e9   :  { %v11294_v63 = vpop.f32.mrf.mxu3 }
 0x7ea   :  { %v5477_v49 = vadd.f32 %v5476_v32, %v5414_v40  ;;  %v5347_v32 = vadd.f32 %v5346_v25, %v11087_v42  ;;  %v5419_v40 = vmul.f32 %v11093_v53, %v11093_v53  ;;  %v5422_v25 = vmul.f32 %v11111_v21, %v11111_v21 }
 0x7ec   :  { %v5478_v61 = vadd.f32 %v5477_v49, %v5415_v17  ;;  %v5348_v49 = vadd.f32 %v5347_v32, %v11093_v53 }
 0x7ee   :  { %v5479_v34 = vadd.f32 %v5478_v61, %v5416_v5  ;;  %v5349_v61 = vadd.f32 %v5348_v49, %v11099_v31  ;;  %v5424_v49 = vmul.f32 %v11123_v37, %v11123_v37 }
 0x7f0   :  { %v5480_v50 = vadd.f32 %v5479_v34, %v5417_v29  ;;  %v5350_v34 = vadd.f32 %v5349_v61, %v11105_v35  ;;  %v5425_v61 = vmul.f32 %v11129_v0, %v11129_v0 }
 0x7f1   :  { %v11308_v23 = vpop.f32.mrf.mxu3 }
 0x7f2   :  { %v5481_v17 = vadd.f32 %v5480_v50, %v5418_v30  ;;  %v5351_v50 = vadd.f32 %v5350_v34, %v11111_v21  ;;  %v5423_v30 = vmul.f32 %v11117_v2, %v11117_v2  ;;  %v5426_v34 = vmul.f32 %v11135_v52, %v11135_v52 }
 0x7f4   :  { %v5482_v5 = vadd.f32 %v5481_v17, %v5419_v40  ;;  %v5352_v17 = vadd.f32 %v5351_v50, %v11117_v2 }
 0x7f6   :  { %v5483_v29 = vadd.f32 %v5482_v5, %v5420_v62  ;;  %v5353_v5 = vadd.f32 %v5352_v17, %v11123_v37  ;;  %v5428_v17 = vmul.f32 %v11147_v28, %v11147_v28 }
 0x7f8   :  { %v5484_v42 = vadd.f32 %v5483_v29, %v5421_v19  ;;  %v5354_v29 = vadd.f32 %v5353_v5, %v11129_v0  ;;  %v5429_v5 = vmul.f32 %v11153_v59, %v11153_v59 }
 0x7f9   :  { %v11322_v48 = vpop.f32.mrf.mxu3 }
 0x7fa   :  { %v5485_v40 = vadd.f32 %v5484_v42, %v5422_v25  ;;  %v5355_v42 = vadd.f32 %v5354_v29, %v11135_v52  ;;  %v5427_v25 = vmul.f32 %v11141_v51, %v11141_v51  ;;  %v5430_v29 = vmul.f32 %v11159_v26, %v11159_v26 }
 0x7fc   :  { %v5486_v62 = vadd.f32 %v5485_v40, %v5423_v30  ;;  %v5356_v40 = vadd.f32 %v5355_v42, %v11141_v51 }
 0x7fe   :  { %v5487_v19 = vadd.f32 %v5486_v62, %v5424_v49  ;;  %v5357_v62 = vadd.f32 %v5356_v40, %v11147_v28  ;;  %v5432_v40 = vmul.f32 %v11171_v39, %v11171_v39 }
 0x800   :  { %v5488_v21 = vadd.f32 %v5487_v19, %v5425_v61  ;;  %v5358_v19 = vadd.f32 %v5357_v62, %v11153_v59  ;;  %v5433_v62 = vmul.f32 %v11177_v22, %v11177_v22 }
 0x801   :  { %v11336_v14 = vpop.f32.mrf.mxu3 }
 0x802   :  { %v5489_v30 = vadd.f32 %v5488_v21, %v5426_v34  ;;  %v5359_v21 = vadd.f32 %v5358_v19, %v11159_v26  ;;  %v5431_v34 = vmul.f32 %v11165_v18, %v11165_v18  ;;  %v5434_v19 = vmul.f32 %v11183_v54, %v11183_v54 }
 0x804   :  { %v5490_v49 = vadd.f32 %v5489_v30, %v5427_v25  ;;  %v5360_v30 = vadd.f32 %v5359_v21, %v11165_v18 }
 0x806   :  { %v5491_v61 = vadd.f32 %v5490_v49, %v5428_v17  ;;  %v5361_v49 = vadd.f32 %v5360_v30, %v11171_v39  ;;  %v5436_v30 = vmul.f32 %v11195_v24, %v11195_v24 }
 0x808   :  { %v5492_v52 = vadd.f32 %v5491_v61, %v5429_v5  ;;  %v5362_v61 = vadd.f32 %v5361_v49, %v11177_v22  ;;  %v5437_v49 = vmul.f32 %v11201_v7, %v11201_v7 }
 0x809   :  { %v11350_v32 = vpop.f32.mrf.mxu3 }
 0x80a   :  { %v5493_v25 = vadd.f32 %v5492_v52, %v5430_v29  ;;  %v5363_v52 = vadd.f32 %v5362_v61, %v11183_v54  ;;  %v5435_v29 = vmul.f32 %v11189_v9, %v11189_v9  ;;  %v5438_v61 = vmul.f32 %v11207_v13, %v11207_v13 }
 0x80c   :  { %v5494_v17 = vadd.f32 %v5493_v25, %v5431_v34  ;;  %v5364_v25 = vadd.f32 %v5363_v52, %v11189_v9 }
 0x80e   :  { %v5495_v5 = vadd.f32 %v5494_v17, %v5432_v40  ;;  %v5365_v17 = vadd.f32 %v5364_v25, %v11195_v24  ;;  %v5440_v25 = vmul.f32 %v11219_v27, %v11219_v27 }
 0x810   :  { %v5496_v0 = vadd.f32 %v5495_v5, %v5433_v62  ;;  %v5366_v5 = vadd.f32 %v5365_v17, %v11201_v7  ;;  %v5441_v17 = vmul.f32 %v11225_v45, %v11225_v45 }
 0x811   :  { %v11364_v50 = vpop.f32.mrf.mxu3 }
 0x812   :  { %v5497_v34 = vadd.f32 %v5496_v0, %v5434_v19  ;;  %v5367_v0 = vadd.f32 %v5366_v5, %v11207_v13  ;;  %v5439_v19 = vmul.f32 %v11213_v16, %v11213_v16  ;;  %v5442_v5 = vmul.f32 %v11231_v47, %v11231_v47 }
 0x814   :  { %v5498_v40 = vadd.f32 %v5497_v34, %v5435_v29  ;;  %v5368_v34 = vadd.f32 %v5367_v0, %v11213_v16 }
 0x816   :  { %v5499_v62 = vadd.f32 %v5498_v40, %v5436_v30  ;;  %v5369_v40 = vadd.f32 %v5368_v34, %v11219_v27  ;;  %v5444_v34 = vmul.f32 %v11243_v56, %v11243_v56 }
 0x818   :  { %v5500_v37 = vadd.f32 %v5499_v62, %v5437_v49  ;;  %v5370_v62 = vadd.f32 %v5369_v40, %v11225_v45  ;;  %v5445_v40 = vmul.f32 %v11249_v11, %v11249_v11 }
 0x819   :  { %v11378_v42 = vpop.f32.mrf.mxu3 }
 0x81a   :  { %v5501_v29 = vadd.f32 %v5500_v37, %v5438_v61  ;;  %v5371_v37 = vadd.f32 %v5370_v62, %v11231_v47  ;;  %v5443_v61 = vmul.f32 %v11237_v36, %v11237_v36  ;;  %v5446_v62 = vmul.f32 %v11255_v20, %v11255_v20 }
 0x81c   :  { %v5502_v30 = vadd.f32 %v5501_v29, %v5439_v19  ;;  %v5372_v29 = vadd.f32 %v5371_v37, %v11237_v36 }
 0x81e   :  { %v5503_v49 = vadd.f32 %v5502_v30, %v5440_v25  ;;  %v5373_v25 = vadd.f32 %v5372_v29, %v11243_v56 }
 0x820   :  { %v5504_v2 = vadd.f32 %v5503_v49, %v5441_v17  ;;  %v5374_v49 = vadd.f32 %v5373_v25, %v11249_v11  ;;  %v5449_v25 = vmul.f32 %v11273_v38, %v11273_v38 }
 0x821   :  { %v11392_v21 = vpop.f32.mrf.mxu3 }
 0x822   :  { %v5505_v19 = vadd.f32 %v5504_v2, %v5442_v5  ;;  %v5375_v2 = vadd.f32 %v5374_v49, %v11255_v20  ;;  %v5447_v5 = vmul.f32 %v11261_v4, %v11261_v4 }
 0x824   :  { %v5506_v30 = vadd.f32 %v5505_v19, %v5443_v61  ;;  %v5376_v61 = vadd.f32 %v5375_v2, %v11261_v4  ;;  %v5448_v19 = vmul.f32 %v11267_v6, %v11267_v6 }
 0x826   :  { %v5507_v17 = vadd.f32 %v5506_v30, %v5444_v34  ;;  %v5377_v34 = vadd.f32 %v5376_v61, %v11267_v6  ;;  %v5452_v61 = vmul.f32 %v11294_v63, %v11294_v63 }
 0x828   :  { %v5508_v35 = vadd.f32 %v5507_v17, %v5445_v40  ;;  %v5378_v40 = vadd.f32 %v5377_v34, %v11273_v38  ;;  %v5450_v17 = vmul.f32 %v11278_v33, %v11278_v33  ;;  %v5453_v34 = vmul.f32 %v11308_v23, %v11308_v23 }
 0x829   :  { %v11406_v52 = vpop.f32.mrf.mxu3 }
 0x82a   :  { %v5509_v31 = vadd.f32 %v5508_v35, %v5446_v62  ;;  %v5379_v35 = vadd.f32 %v5378_v40, %v11278_v33  ;;  %v5451_v62 = vmul.f32 %v11281_v8, %v11281_v8  ;;  %v5454_v40 = vmul.f32 %v11322_v48, %v11322_v48 }
 0x82c   :  { %v5510_v29 = vadd.f32 %v5509_v31, %v5447_v5  ;;  %v5380_v5 = vadd.f32 %v5379_v35, %v11281_v8 }
 0x82e   :  { %v5511_v30 = vadd.f32 %v5510_v29, %v5448_v19  ;;  %v5381_v29 = vadd.f32 %v5380_v5, %v11294_v63  ;;  %v5456_v5 = vmul.f32 %v11350_v32, %v11350_v32 }
 0x830   :  { %v5512_v49 = vadd.f32 %v5511_v30, %v5449_v25  ;;  %v5382_v30 = vadd.f32 %v5381_v29, %v11308_v23  ;;  %v5457_v29 = vmul.f32 %v11364_v50, %v11364_v50 }
 0x831   :  { %v11420_v0 = vpop.f32.mrf.mxu3 }
 0x832   :  { %v5513_v31 = vadd.f32 %v5512_v49, %v5450_v17  ;;  %v5383_v17 = vadd.f32 %v5382_v30, %v11322_v48  ;;  %v5455_v49 = vmul.f32 %v11336_v14, %v11336_v14  ;;  %v5458_v30 = vmul.f32 %v11378_v42, %v11378_v42 }
 0x834   :  { %v5514_v19 = vadd.f32 %v5513_v31, %v5451_v62  ;;  %v5384_v31 = vadd.f32 %v5383_v17, %v11336_v14 }
 0x836   :  { %v5515_v25 = vadd.f32 %v5514_v19, %v5452_v61  ;;  %v5385_v19 = vadd.f32 %v5384_v31, %v11350_v32  ;;  %v5460_v31 = vmul.f32 %v11406_v52, %v11406_v52 }
 0x838   :  { %v5516_v53 = vadd.f32 %v5515_v25, %v5453_v34  ;;  %v5386_v25 = vadd.f32 %v5385_v19, %v11364_v50  ;;  %v5461_v19 = vmul.f32 %v11420_v0, %v11420_v0 }
 0x839   :  { %v11434_v37 = vpop.f32.mrf.mxu3 }
 0x83a   :  { %v5517_v62 = vadd.f32 %v5516_v53, %v5454_v40  ;;  %v5387_v53 = vadd.f32 %v5386_v25, %v11378_v42  ;;  %v5459_v40 = vmul.f32 %v11392_v21, %v11392_v21  ;;  %v5462_v25 = vmul.f32 %v11434_v37, %v11434_v37 }
 0x83c   :  { %v5518_v61 = vadd.f32 %v5517_v62, %v5455_v49  ;;  %v5388_v62 = vadd.f32 %v5387_v53, %v11392_v21 }
 0x83e   :  { %v5519_v34 = vadd.f32 %v5518_v61, %v5456_v5  ;;  %v5389_v61 = vadd.f32 %v5388_v62, %v11406_v52 }
 0x840   :  { %v5520_v43 = vadd.f32 %v5519_v34, %v5457_v29  ;;  %v5390_v34 = vadd.f32 %v5389_v61, %v11420_v0 }
 0x841   :  { %v11448_v2 = vpop.f32.mrf.mxu3 }
 0x842   :  { %v5521_v49 = vadd.f32 %v5520_v43, %v5458_v30  ;;  %v5391_v43 = vadd.f32 %v5390_v34, %v11434_v37  ;;  %v5463_v30 = vmul.f32 %v11448_v2, %v11448_v2 }
 0x844   :  { %v5522_v5 = vadd.f32 %v5521_v49, %v5459_v40  ;;  %v5392_v49 = vadd.f32 %v5391_v43, %v11448_v2 }
 0x846   :  { %v5523_v29 = vadd.f32 %v5522_v5, %v5460_v31 }
 0x848   :  { %v5524_v1 = vadd.f32 %v5523_v29, %v5461_v19 }
 0x849   :  { %v11462_v35 = vpop.f32.mrf.mxu3 }
 0x84a   :  { %v5525_v40 = vadd.f32 %v5524_v1, %v5462_v25  ;;  %v5464_v62 = vmul.f32 %v11462_v35, %v11462_v35  ;;  %v5393_v5 = vadd.f32 %v5392_v49, %v11462_v35 }
 0x84c   :  { %v5526_v31 = vadd.f32 %v5525_v40, %v5463_v30 }
 0x84e   :  { %v5527_v19 = vadd.f32 %v5526_v31, %v5464_v62 }
 0x851   :  { %v11476_v17 = vpop.f32.mrf.mxu3 }
 0x852   :  { %v5465_v61 = vmul.f32 %v11476_v17, %v11476_v17  ;;  %v5394_v29 = vadd.f32 %v5393_v5, %v11476_v17 }
 0x854   :  { %v5528_v41 = vadd.f32 %v5527_v19, %v5465_v61 }
 0x859   :  { %v11490_v53 = vpop.f32.mrf.mxu3 }
 0x85a   :  { %v5466_v34 = vmul.f32 %v11490_v53, %v11490_v53  ;;  %v5395_v1 = vadd.f32 %v5394_v29, %v11490_v53 }
 0x85c   :  { %v5529_v43 = vadd.f32 %v5528_v41, %v5466_v34 }
 0x861   :  { %v5331_v25 = vpop.f32.mrf.mxu3 }
 0x862   :  { %v5396_v10 = vadd.f32 %v5395_v1, %v5331_v25  ;;  %v5467_v3 = vmul.f32 %v5331_v25, %v5331_v25 }
 0x864   :  { %v5397_v44 = vrot.slane %v5396_v10, 4  ;;  %v5530_v30 = vadd.f32 %v5529_v43, %v5467_v3 }
 0x866   :  { %v5398_v40 = vadd.f32 %v5397_v44, %v5396_v10  ;;  %v5531_v49 = vrot.slane %v5530_v30, 4 }
 0x868   :  { %v5399_v58 = vrot.slane %v5398_v40, 2  ;;  %v5532_v60 = vadd.f32 %v5531_v49, %v5530_v30 }
 0x86a   :  { %v5400_v57 = vadd.f32 %v5399_v58, %v5398_v40  ;;  %v5533_v62 = vrot.slane %v5532_v60, 2 }
 0x86c   :  { %v5401_v31 = vrot.slane %v5400_v57, 1  ;;  %v5534_v5 = vadd.f32 %v5533_v62, %v5532_v60 }
 0x86e   :  { %v5402_v55 = vadd.f32 %v5401_v31, %v5400_v57  ;;  %v5535_v46 = vrot.slane %v5534_v5, 1  ;;  %v5541_v57 = vld [vmem:[%s12028_s8] sm:$0x1] }
 0x870   :  { %v5403_v61 = vmul.f32 %v5402_v55, %v12284_v15  ;;  %v5536_v19 = vadd.f32 %v5535_v46, %v5534_v5  ;;  %v5621_v55 = vld [vmem:[%s12029_s9] sm:$0x1] }
 0x872   :  { %v5537_v29 = vmul.f32 %v5536_v19, %v12284_v15  ;;  %v5538_v41 = vmul.f32 %v5403_v61, %v5403_v61 }
 0x874   :  { %v5539_v34 = vsub.f32 %v5537_v29, %v5538_v41 }
 0x876   :  { %v5540_v1 = vmax.f32 %v5539_v34, 0.0 }
 0x878   :  { %v5542_v12 = vadd.f32 1e-05, %v5540_v1 }
 0x87a   :  { %7029 = vrsqrt.f32 %v5542_v12  ;;  %vm5549_vm13 = vweird.f32 %v5542_v12 }
 0x880   :  { %v7030_v44 = vpop.eup %7029 }
 0x881   :  { %v5544_v3 = vmul.f32 %v7030_v44, %v5542_v12  ;;  %vm5550_vm12 = vweird.f32 %v7030_v44  ;;  %v7031_v12 = vld [vmem:[%s12020_s0 + $0x1f8] sm:$0xff] }
 0x882   :  { %vm5551_vm14 = vmor %vm5549_vm13, %vm5550_vm12 }
 0x883   :  { %v5545_v10 = vmul.f32 %v7030_v44, %v5544_v3 }
 0x885   :  { %v5546_v43 = vmul.f32 0.5, %v5545_v10 }
 0x887   :  { %v5547_v58 = vsub.f32 1.5, %v5546_v43 }
 0x889   :  { %v5548_v60 = vmul.f32 %v7030_v44, %v5547_v58 }
 0x88b   :  { %v5552_v46 = vsel %vm5551_vm14, %v7030_v44, %v5548_v60 }
 0x88c   :  { %v5553_v15 = vmul.f32 %v5552_v46, %v5541_v57 }
 0x88e   :  { %v11510_v30 = vperm.slane %v5553_v15, 0  ;;  %v5622_v40 = vmul.f32 %v5553_v15, %v5403_v61 }
 0x890   :  { %v5623_v49 = vsub.f32 %v5621_v55, %v5622_v40  ;;  %v5620_v62 = vmul.f32 %v11510_v30, %v5331_v25  ;;  %v5580_v41 = vmul.f32 %v11510_v30, %v11141_v51  ;;  %v5581_v61 = vmul.f32 %v11510_v30, %v11147_v28 }
 0x891   :  { %v5582_v25 = vmul.f32 %v11510_v30, %v11153_v59  ;;  %v5583_v34 = vmul.f32 %v11510_v30, %v11159_v26  ;;  %v5584_v1 = vmul.f32 %v11510_v30, %v11165_v18  ;;  %v5585_v44 = vmul.f32 %v11510_v30, %v11171_v39 }
 0x892   :  { %v11513_v31 = vperm.slane %v5623_v49, 0  ;;  %v5586_v3 = vmul.f32 %v11510_v30, %v11177_v22  ;;  %v5587_v51 = vmul.f32 %v11510_v30, %v11183_v54  ;;  %v5588_v28 = vmul.f32 %v11510_v30, %v11189_v9 }
 0x893   :  { %v5589_v59 = vmul.f32 %v11510_v30, %v11195_v24  ;;  %v5590_v26 = vmul.f32 %v11510_v30, %v11201_v7  ;;  %v5591_v18 = vmul.f32 %v11510_v30, %v11207_v13  ;;  %v5592_v39 = vmul.f32 %v11510_v30, %v11213_v16 }
 0x894   :  { %v5690_v5 = vadd.f32 %v11513_v31, %v5620_v62  ;;  %v5593_v22 = vmul.f32 %v11510_v30, %v11219_v27  ;;  %v5594_v54 = vmul.f32 %v11510_v30, %v11225_v45  ;;  %v5595_v9 = vmul.f32 %v11510_v30, %v11231_v47 }
 0x895   :  { %v5596_v24 = vmul.f32 %v11510_v30, %v11237_v36  ;;  %v5597_v7 = vmul.f32 %v11510_v30, %v11243_v56  ;;  %v5598_v13 = vmul.f32 %v11510_v30, %v11249_v11  ;;  %v5599_v16 = vmul.f32 %v11510_v30, %v11255_v20 }
 0x896   :  { %v5754_v19 = vadd.f32 %v7031_v12, %v5690_v5  ;;  %v5600_v27 = vmul.f32 %v11510_v30, %v11261_v4  ;;  %v5601_v45 = vmul.f32 %v11510_v30, %v11267_v6  ;;  %v5602_v47 = vmul.f32 %v11510_v30, %v11273_v38 }
 0x897   :  { %v5603_v36 = vmul.f32 %v11510_v30, %v11278_v33  ;;  %v5604_v56 = vmul.f32 %v11510_v30, %v11281_v8  ;;  %v5605_v11 = vmul.f32 %v11510_v30, %v11294_v63  ;;  %v5606_v20 = vmul.f32 %v11510_v30, %v11308_v23 }
 0x898   :  { %v5818_v29 = vmax.f32 %v5754_v19, 0.0  ;;  %v5607_v4 = vmul.f32 %v11510_v30, %v11322_v48  ;;  %v5608_v6 = vmul.f32 %v11510_v30, %v11336_v14  ;;  %v5609_v38 = vmul.f32 %v11510_v30, %v11350_v32 }
 0x899   :  { %v5610_v33 = vmul.f32 %v11510_v30, %v11364_v50  ;;  %v5611_v8 = vmul.f32 %v11510_v30, %v11378_v42  ;;  %v5612_v63 = vmul.f32 %v11510_v30, %v11392_v21  ;;  %v5613_v23 = vmul.f32 %v11510_v30, %v11406_v52 }
 0x89a   :  { %5882 = vst [vmem:[#allocation3 + $0x1f8] sm:$0xff] %v5818_v29  ;;  %v5614_v48 = vmul.f32 %v11510_v30, %v11420_v0  ;;  %v5615_v14 = vmul.f32 %v11510_v30, %v11434_v37  ;;  %v5616_v32 = vmul.f32 %v11510_v30, %v11448_v2  ;;  %v5617_v50 = vmul.f32 %v11510_v30, %v11462_v35 }
 0x89b   :  { %v5618_v42 = vmul.f32 %v11510_v30, %v11476_v17  ;;  %v5619_v21 = vmul.f32 %v11510_v30, %v11490_v53  ;;  %v11600_v52 = vadd.f32 %v11513_v31, %v5580_v41  ;;  %v11603_v0 = vadd.f32 %v11513_v31, %v5581_v61 }
 0x89c   :  { %v11606_v37 = vadd.f32 %v11513_v31, %v5582_v25  ;;  %v11609_v2 = vadd.f32 %v11513_v31, %v5583_v34  ;;  %v11612_v35 = vadd.f32 %v11513_v31, %v5584_v1  ;;  %v11615_v17 = vadd.f32 %v11513_v31, %v5585_v44 }
 0x89d   :  { %v11618_v53 = vadd.f32 %v11513_v31, %v5586_v3  ;;  %v11621_v10 = vadd.f32 %v11513_v31, %v5587_v51  ;;  %v11624_v43 = vadd.f32 %v11513_v31, %v5588_v28  ;;  %v11627_v58 = vadd.f32 %v11513_v31, %v5589_v59 }
 0x89e   :  { %v11630_v57 = vadd.f32 %v11513_v31, %v5590_v26  ;;  %v11633_v60 = vadd.f32 %v11513_v31, %v5591_v18  ;;  %v11636_v46 = vadd.f32 %v11513_v31, %v5592_v39  ;;  %v11639_v15 = vadd.f32 %v11513_v31, %v5593_v22 }
 0x89f   :  { %v11642_v55 = vadd.f32 %v11513_v31, %v5594_v54  ;;  %v11645_v40 = vadd.f32 %v11513_v31, %v5595_v9  ;;  %v11648_v49 = vadd.f32 %v11513_v31, %v5596_v24  ;;  %v11651_v62 = vadd.f32 %v11513_v31, %v5597_v7 }
 0x8a0   :  { %v11654_v5 = vadd.f32 %v11513_v31, %v5598_v13  ;;  %v11657_v12 = vadd.f32 %v11513_v31, %v5599_v16  ;;  %v11660_v19 = vadd.f32 %v11513_v31, %v5600_v27  ;;  %v11663_v29 = vadd.f32 %v11513_v31, %v5601_v45  ;;  %v12346_v13 = vld [vmem:[#allocation17_spill] sm:$0xff]  ;;  %v12347_v27 = vld [vmem:[#allocation30_spill] sm:$0xff] }
 0x8a1   :  { %v11666_v41 = vadd.f32 %v11513_v31, %v5602_v47  ;;  %v11669_v61 = vadd.f32 %v11513_v31, %v5603_v36  ;;  %v11672_v25 = vadd.f32 %v11513_v31, %v5604_v56  ;;  %v11675_v34 = vadd.f32 %v11513_v31, %v5605_v11  ;;  %v12348_v47 = vld [vmem:[#allocation15_spill] sm:$0xff]  ;;  %v12349_v56 = vld [vmem:[#allocation33_spill] sm:$0xff] }
 0x8a2   :  { %v11678_v1 = vadd.f32 %v11513_v31, %v5606_v20  ;;  %v11681_v44 = vadd.f32 %v11513_v31, %v5607_v4  ;;  %v11684_v3 = vadd.f32 %v11513_v31, %v5608_v6  ;;  %v11687_v51 = vadd.f32 %v11513_v31, %v5609_v38  ;;  %v12350_v20 = vld [vmem:[#allocation34_spill] sm:$0xff]  ;;  %v12351_v38 = vld [vmem:[#allocation35_spill] sm:$0xff] }
 0x8a3   :  { %v11690_v28 = vadd.f32 %v11513_v31, %v5610_v33  ;;  %v11693_v59 = vadd.f32 %v11513_v31, %v5611_v8  ;;  %v11696_v26 = vadd.f32 %v11513_v31, %v5612_v63  ;;  %v11699_v18 = vadd.f32 %v11513_v31, %v5613_v23 }
 0x8a4   :  { %v11702_v39 = vadd.f32 %v11513_v31, %v5614_v48  ;;  %v11705_v22 = vadd.f32 %v11513_v31, %v5615_v14  ;;  %v11708_v54 = vadd.f32 %v11513_v31, %v5616_v32  ;;  %v11711_v9 = vadd.f32 %v11513_v31, %v5617_v50  ;;  %v12352_v48 = vld [vmem:[#allocation36_spill] sm:$0xff]  ;;  %v12353_v50 = vld [vmem:[#allocation37_spill] sm:$0xff] }
 0x8a5   :  { %v11714_v24 = vadd.f32 %v11513_v31, %v5618_v42  ;;  %v11717_v7 = vadd.f32 %v11513_v31, %v5619_v21  ;;  %v5557_v16 = vmul.f32 %v11510_v30, %v12346_v13  ;;  %v5558_v45 = vmul.f32 %v11510_v30, %v12347_v27  ;;  %v12354_v13 = vld [vmem:[#allocation38_spill] sm:$0xff]  ;;  %v12355_v27 = vld [vmem:[#allocation39_spill] sm:$0xff] }
 0x8a6   :  { %12341 = vst [vmem:[#allocation52_spill] sm:$0xff] %v11705_v22  ;;  %v5559_v36 = vmul.f32 %v11510_v30, %v12348_v47  ;;  %v5560_v11 = vmul.f32 %v11510_v30, %v12349_v56  ;;  %v5561_v4 = vmul.f32 %v11510_v30, %v12350_v20  ;;  %v5562_v33 = vmul.f32 %v11510_v30, %v12351_v38  ;;  %v7033_v20 = vld [vmem:[%s12020_s0 + $0x8] sm:$0xff]  ;;  %v7034_v38 = vld [vmem:[%s12020_s0 + $0x10] sm:$0xff]  ;;  %v12360_v22 = vld [vmem:[#allocation41_spill] sm:$0xff] }
 0x8a7   :  { %12342 = vst [vmem:[#allocation53_spill] sm:$0xff] %v11708_v54  ;;  %v5627_v6 = vadd.f32 %v11513_v31, %v5557_v16  ;;  %v5628_v8 = vadd.f32 %v11513_v31, %v5558_v45  ;;  %v5563_v14 = vmul.f32 %v11510_v30, %v12352_v48  ;;  %v5564_v42 = vmul.f32 %v11510_v30, %v12353_v50  ;;  %v7035_v48 = vld [vmem:[%s12020_s0 + $0x18] sm:$0xff]  ;;  %v12356_v50 = vld [vmem:[#allocation40_spill] sm:$0xff] }
 0x8a8   :  { %12343 = vst [vmem:[#allocation54_spill] sm:$0xff] %v11711_v9  ;;  %v5629_v63 = vadd.f32 %v11513_v31, %v5559_v36  ;;  %v5630_v23 = vadd.f32 %v11513_v31, %v5560_v11  ;;  %v5631_v32 = vadd.f32 %v11513_v31, %v5561_v4  ;;  %v5632_v21 = vadd.f32 %v11513_v31, %v5562_v33  ;;  %v7032_v36 = vld [vmem:[%s12020_s0] sm:$0xff] }
 0x8a9   :  { %12344 = vst [vmem:[#allocation55_spill] sm:$0xff] %v11714_v24  ;;  %v5565_v16 = vmul.f32 %v11510_v30, %v12354_v13  ;;  %v5566_v45 = vmul.f32 %v11510_v30, %v12355_v27  ;;  %v5633_v47 = vadd.f32 %v11513_v31, %v5563_v14  ;;  %v5691_v56 = vadd.f32 %v7032_v36, %v5627_v6  ;;  %v12357_v13 = vld [vmem:[#allocation43_spill] sm:$0xff] }
 0x8aa   :  { %12345 = vst [vmem:[#allocation56_spill] sm:$0xff] %v11717_v7  ;;  %v5634_v11 = vadd.f32 %v11513_v31, %v5564_v42  ;;  %v5692_v4 = vadd.f32 %v7033_v20, %v5628_v8  ;;  %v5693_v33 = vadd.f32 %v7034_v38, %v5629_v63  ;;  %v5694_v14 = vadd.f32 %v7035_v48, %v5630_v23  ;;  %v7036_v8 = vld [vmem:[%s12020_s0 + $0x20] sm:$0xff]  ;;  %v12358_v20 = vld [vmem:[#allocation45_spill] sm:$0xff]  ;;  %v12359_v38 = vld [vmem:[#allocation47_spill] sm:$0xff] }
 0x8ab   :  { %v5567_v6 = vmul.f32 %v11510_v30, %v12356_v50  ;;  %v5568_v42 = vmul.f32 %v11510_v30, %v12357_v13  ;;  %v5635_v27 = vadd.f32 %v11513_v31, %v5565_v16  ;;  %v5695_v36 = vadd.f32 %v7036_v8, %v5631_v32  ;;  %v7037_v48 = vld [vmem:[%s12020_s0 + $0x28] sm:$0xff]  ;;  %v7038_v32 = vld [vmem:[%s12020_s0 + $0x30] sm:$0xff] }
 0x8ac   :  { %v5569_v63 = vmul.f32 %v11510_v30, %v12358_v20  ;;  %v5570_v7 = vmul.f32 %v11510_v30, %v12359_v38  ;;  %v5636_v23 = vadd.f32 %v11513_v31, %v5566_v45  ;;  %v5696_v50 = vadd.f32 %v7037_v48, %v5632_v21  ;;  %v7039_v38 = vld [vmem:[%s12020_s0 + $0x38] sm:$0xff] }
 0x8ad   :  { %v5637_v16 = vadd.f32 %v11513_v31, %v5567_v6  ;;  %v5638_v13 = vadd.f32 %v11513_v31, %v5568_v42  ;;  %v5697_v8 = vadd.f32 %v7038_v32, %v5633_v47  ;;  %v5755_v20 = vmax.f32 %v5691_v56, 0.0  ;;  %v7040_v42 = vld [vmem:[%s12020_s0 + $0x40] sm:$0xff] }
 0x8ae   :  { %v5698_v45 = vadd.f32 %v7039_v38, %v5634_v11  ;;  %v5756_v24 = vmax.f32 %v5692_v4, 0.0  ;;  %v5757_v9 = vmax.f32 %v5693_v33, 0.0  ;;  %v5758_v54 = vmax.f32 %v5694_v14, 0.0  ;;  %v12361_v56 = vld [vmem:[#allocation42_spill] sm:$0xff]  ;;  %v7041_v4 = vld [vmem:[%s12020_s0 + $0x48] sm:$0xff]  ;;  %v12362_v14 = vld [vmem:[#allocation44_spill] sm:$0xff] }
 0x8af   :  { %v5571_v21 = vmul.f32 %v11510_v30, %v12360_v22  ;;  %v5639_v6 = vadd.f32 %v11513_v31, %v5569_v63  ;;  %v5699_v48 = vadd.f32 %v7040_v42, %v5635_v27  ;;  %v5759_v47 = vmax.f32 %v5695_v36, 0.0  ;;  %5819 = vst [vmem:[#allocation3] sm:$0xff] %v5755_v20  ;;  %v7042_v27 = vld [vmem:[%s12020_s0 + $0x50] sm:$0xff] }
 0x8b0   :  { %v5572_v32 = vmul.f32 %v11510_v30, %v12361_v56  ;;  %v5640_v11 = vadd.f32 %v11513_v31, %v5570_v7  ;;  %v5700_v33 = vadd.f32 %v7041_v4, %v5636_v23  ;;  %v5760_v22 = vmax.f32 %v5696_v50, 0.0  ;;  %5820 = vst [vmem:[#allocation3 + $0x8] sm:$0xff] %v5756_v24  ;;  %v12363_v7 = vld [vmem:[#allocation46_spill] sm:$0xff]  ;;  %v7043_v24 = vld [vmem:[%s12020_s0 + $0x58] sm:$0xff] }
 0x8b1   :  { %v5573_v63 = vmul.f32 %v11510_v30, %v12362_v14  ;;  %v5641_v38 = vadd.f32 %v11513_v31, %v5571_v21  ;;  %v5701_v36 = vadd.f32 %v7042_v27, %v5637_v16  ;;  %v5761_v20 = vmax.f32 %v5697_v8, 0.0  ;;  %5821 = vst [vmem:[#allocation3 + $0x10] sm:$0xff] %v5757_v9  ;;  %v12364_v21 = vld [vmem:[#allocation32_spill] sm:$0xff]  ;;  %v7044_v9 = vld [vmem:[%s12020_s0 + $0x60] sm:$0xff] }
 0x8b2   :  { %v5574_v42 = vmul.f32 %v11510_v30, %v12363_v7  ;;  %v5642_v56 = vadd.f32 %v11513_v31, %v5572_v32  ;;  %v5702_v23 = vadd.f32 %v7043_v24, %v5638_v13  ;;  %v5762_v50 = vmax.f32 %v5698_v45, 0.0  ;;  %5822 = vst [vmem:[#allocation3 + $0x18] sm:$0xff] %v5758_v54  ;;  %v12365_v32 = vld [vmem:[#allocation48_spill] sm:$0xff]  ;;  %v7045_v54 = vld [vmem:[%s12020_s0 + $0x68] sm:$0xff] }
 0x8b3   :  { %v5575_v4 = vmul.f32 %v11510_v30, %v12364_v21  ;;  %v5643_v14 = vadd.f32 %v11513_v31, %v5573_v63  ;;  %v5703_v16 = vadd.f32 %v7044_v9, %v5639_v6  ;;  %v5763_v8 = vmax.f32 %v5699_v48, 0.0  ;;  %5823 = vst [vmem:[#allocation3 + $0x20] sm:$0xff] %v5759_v47  ;;  %v12366_v63 = vld [vmem:[#allocation49_spill] sm:$0xff]  ;;  %v7046_v6 = vld [vmem:[%s12020_s0 + $0x70] sm:$0xff] }
 0x8b4   :  { %v5576_v27 = vmul.f32 %v11510_v30, %v12365_v32  ;;  %v5644_v7 = vadd.f32 %v11513_v31, %v5574_v42  ;;  %v5704_v13 = vadd.f32 %v7045_v54, %v5640_v11  ;;  %v5764_v45 = vmax.f32 %v5700_v33, 0.0  ;;  %5824 = vst [vmem:[#allocation3 + $0x28] sm:$0xff] %v5760_v22  ;;  %v12367_v42 = vld [vmem:[#allocation50_spill] sm:$0xff]  ;;  %v7047_v11 = vld [vmem:[%s12020_s0 + $0x78] sm:$0xff] }
 0x8b5   :  { %v5577_v24 = vmul.f32 %v11510_v30, %v12366_v63  ;;  %v5645_v21 = vadd.f32 %v11513_v31, %v5575_v4  ;;  %v5705_v48 = vadd.f32 %v7046_v6, %v5641_v38  ;;  %v5765_v47 = vmax.f32 %v5701_v36, 0.0  ;;  %5825 = vst [vmem:[#allocation3 + $0x30] sm:$0xff] %v5761_v20  ;;  %v12368_v4 = vld [vmem:[#allocation51_spill] sm:$0xff]  ;;  %v7048_v38 = vld [vmem:[%s12020_s0 + $0x80] sm:$0xff] }
 0x8b6   :  { %v5578_v9 = vmul.f32 %v11510_v30, %v12367_v42  ;;  %v5646_v32 = vadd.f32 %v11513_v31, %v5576_v27  ;;  %v5706_v33 = vadd.f32 %v7047_v11, %v5642_v56  ;;  %v5766_v22 = vmax.f32 %v5702_v23, 0.0  ;;  %5826 = vst [vmem:[#allocation3 + $0x38] sm:$0xff] %v5762_v50  ;;  %v7049_v56 = vld [vmem:[%s12020_s0 + $0x88] sm:$0xff]  ;;  %v7055_v11 = vld [vmem:[%s12020_s0 + $0xb8] sm:$0xff] }
 0x8b7   :  { %v5579_v54 = vmul.f32 %v11510_v30, %v12368_v4  ;;  %v5647_v63 = vadd.f32 %v11513_v31, %v5577_v24  ;;  %v5707_v36 = vadd.f32 %v7048_v38, %v5643_v14  ;;  %v5767_v20 = vmax.f32 %v5703_v16, 0.0  ;;  %5827 = vst [vmem:[#allocation3 + $0x40] sm:$0xff] %v5763_v8  ;;  %v7050_v24 = vld [vmem:[%s12020_s0 + $0x90] sm:$0xff]  ;;  %v7051_v14 = vld [vmem:[%s12020_s0 + $0x98] sm:$0xff]  ;;  %v7056_v4 = vld [vmem:[%s12020_s0 + $0xc0] sm:$0xff] }
 0x8b8   :  { %v5648_v27 = vadd.f32 %v11513_v31, %v5578_v9  ;;  %v5708_v23 = vadd.f32 %v7049_v56, %v5644_v7  ;;  %v5768_v50 = vmax.f32 %v5704_v13, 0.0  ;;  %5828 = vst [vmem:[#allocation3 + $0x48] sm:$0xff] %v5764_v45  ;;  %v5709_v6 = vadd.f32 %v7050_v24, %v5645_v21  ;;  %v7052_v7 = vld [vmem:[%s12020_s0 + $0xa0] sm:$0xff]  ;;  %v7053_v45 = vld [vmem:[%s12020_s0 + $0xa8] sm:$0xff] }
 0x8b9   :  { %v5649_v30 = vadd.f32 %v11513_v31, %v5579_v54  ;;  %v5769_v42 = vmax.f32 %v5705_v48, 0.0  ;;  %5829 = vst [vmem:[#allocation3 + $0x50] sm:$0xff] %v5765_v47  ;;  %v5710_v16 = vadd.f32 %v7051_v14, %v5646_v32  ;;  %v5770_v8 = vmax.f32 %v5706_v33, 0.0  ;;  %v7054_v47 = vld [vmem:[%s12020_s0 + $0xb0] sm:$0xff]  ;;  %v7057_v38 = vld [vmem:[%s12020_s0 + $0xc8] sm:$0xff] }
 0x8ba   :  { %5830 = vst [vmem:[#allocation3 + $0x58] sm:$0xff] %v5766_v22  ;;  %v5711_v13 = vadd.f32 %v7052_v7, %v5647_v63  ;;  %v5771_v31 = vmax.f32 %v5707_v36, 0.0  ;;  %v5712_v21 = vadd.f32 %v7053_v45, %v5648_v27  ;;  %v5772_v48 = vmax.f32 %v5708_v23, 0.0 }
 0x8bb   :  { %5831 = vst [vmem:[#allocation3 + $0x60] sm:$0xff] %v5767_v20  ;;  %v5713_v9 = vadd.f32 %v7054_v47, %v5649_v30  ;;  %v5773_v32 = vmax.f32 %v5709_v6, 0.0  ;;  %v5714_v33 = vadd.f32 %v7055_v11, %v11600_v52  ;;  %v5774_v22 = vmax.f32 %v5710_v16, 0.0  ;;  %v7058_v52 = vld [vmem:[%s12020_s0 + $0xd0] sm:$0xff] }
 0x8bc   :  { %5832 = vst [vmem:[#allocation3 + $0x68] sm:$0xff] %v5768_v50  ;;  %v5715_v54 = vadd.f32 %v7056_v4, %v11603_v0  ;;  %v5775_v63 = vmax.f32 %v5711_v13, 0.0  ;;  %v5716_v36 = vadd.f32 %v7057_v38, %v11606_v37  ;;  %v5776_v20 = vmax.f32 %v5712_v21, 0.0  ;;  %v7059_v0 = vld [vmem:[%s12020_s0 + $0xd8] sm:$0xff]  ;;  %v7060_v37 = vld [vmem:[%s12020_s0 + $0xe0] sm:$0xff] }
 0x8bd   :  { %5833 = vst [vmem:[#allocation3 + $0x70] sm:$0xff] %v5769_v42  ;;  %v5717_v27 = vadd.f32 %v7058_v52, %v11609_v2  ;;  %v5777_v56 = vmax.f32 %v5713_v9, 0.0  ;;  %v5718_v23 = vadd.f32 %v7059_v0, %v11612_v35  ;;  %v5778_v50 = vmax.f32 %v5714_v33, 0.0  ;;  %v7061_v2 = vld [vmem:[%s12020_s0 + $0xe8] sm:$0xff]  ;;  %v7062_v35 = vld [vmem:[%s12020_s0 + $0xf0] sm:$0xff] }
 0x8be   :  { %5834 = vst [vmem:[#allocation3 + $0x78] sm:$0xff] %v5770_v8  ;;  %v5719_v30 = vadd.f32 %v7060_v37, %v11615_v17  ;;  %v5779_v24 = vmax.f32 %v5715_v54, 0.0  ;;  %v5720_v6 = vadd.f32 %v7061_v2, %v11618_v53  ;;  %v5780_v42 = vmax.f32 %v5716_v36, 0.0  ;;  %v7063_v17 = vld [vmem:[%s12020_s0 + $0xf8] sm:$0xff]  ;;  %v7064_v53 = vld [vmem:[%s12020_s0 + $0x100] sm:$0xff] }
 0x8bf   :  { %5835 = vst [vmem:[#allocation3 + $0x80] sm:$0xff] %v5771_v31  ;;  %v5721_v14 = vadd.f32 %v7062_v35, %v11621_v10  ;;  %v5781_v16 = vmax.f32 %v5717_v27, 0.0  ;;  %v5722_v8 = vadd.f32 %v7063_v17, %v11624_v43  ;;  %v5782_v7 = vmax.f32 %v5718_v23, 0.0  ;;  %v7065_v10 = vld [vmem:[%s12020_s0 + $0x108] sm:$0xff]  ;;  %v7066_v43 = vld [vmem:[%s12020_s0 + $0x110] sm:$0xff] }
 0x8c0   :  { %5836 = vst [vmem:[#allocation3 + $0x88] sm:$0xff] %v5772_v48  ;;  %v5723_v13 = vadd.f32 %v7064_v53, %v11627_v58  ;;  %v5783_v31 = vmax.f32 %v5719_v30, 0.0  ;;  %v5724_v45 = vadd.f32 %v7065_v10, %v11630_v57  ;;  %v5784_v21 = vmax.f32 %v5720_v6, 0.0  ;;  %v7067_v58 = vld [vmem:[%s12020_s0 + $0x118] sm:$0xff]  ;;  %v7068_v57 = vld [vmem:[%s12020_s0 + $0x120] sm:$0xff] }
 0x8c1   :  { %5837 = vst [vmem:[#allocation3 + $0x90] sm:$0xff] %v5773_v32  ;;  %v5725_v48 = vadd.f32 %v7066_v43, %v11633_v60  ;;  %v5785_v47 = vmax.f32 %v5721_v14, 0.0  ;;  %v5726_v9 = vadd.f32 %v7067_v58, %v11636_v46  ;;  %v5786_v32 = vmax.f32 %v5722_v8, 0.0  ;;  %v7069_v60 = vld [vmem:[%s12020_s0 + $0x128] sm:$0xff]  ;;  %v7070_v46 = vld [vmem:[%s12020_s0 + $0x130] sm:$0xff] }
 0x8c2   :  { %5838 = vst [vmem:[#allocation3 + $0x98] sm:$0xff] %v5774_v22  ;;  %v5727_v11 = vadd.f32 %v7068_v57, %v11639_v15  ;;  %v5787_v33 = vmax.f32 %v5723_v13, 0.0  ;;  %v5728_v22 = vadd.f32 %v7069_v60, %v11642_v55  ;;  %v5788_v4 = vmax.f32 %v5724_v45, 0.0  ;;  %v7071_v15 = vld [vmem:[%s12020_s0 + $0x138] sm:$0xff]  ;;  %v7072_v55 = vld [vmem:[%s12020_s0 + $0x140] sm:$0xff] }
 0x8c3   :  { %5839 = vst [vmem:[#allocation3 + $0xa0] sm:$0xff] %v5775_v63  ;;  %v5729_v54 = vadd.f32 %v7070_v46, %v11645_v40  ;;  %v5789_v63 = vmax.f32 %v5725_v48, 0.0  ;;  %v5730_v38 = vadd.f32 %v7071_v15, %v11648_v49  ;;  %v5790_v36 = vmax.f32 %v5726_v9, 0.0  ;;  %v7073_v40 = vld [vmem:[%s12020_s0 + $0x148] sm:$0xff]  ;;  %v7074_v49 = vld [vmem:[%s12020_s0 + $0x150] sm:$0xff] }
 0x8c4   :  { %5840 = vst [vmem:[#allocation3 + $0xa8] sm:$0xff] %v5776_v20  ;;  %v5731_v20 = vadd.f32 %v7072_v55, %v11651_v62  ;;  %v5791_v52 = vmax.f32 %v5727_v11, 0.0  ;;  %v5732_v27 = vadd.f32 %v7073_v40, %v11654_v5  ;;  %v5733_v0 = vadd.f32 %v7074_v49, %v11657_v12  ;;  %v7075_v62 = vld [vmem:[%s12020_s0 + $0x158] sm:$0xff]  ;;  %v7076_v5 = vld [vmem:[%s12020_s0 + $0x160] sm:$0xff]  ;;  %v7077_v12 = vld [vmem:[%s12020_s0 + $0x168] sm:$0xff] }
 0x8c5   :  { %5841 = vst [vmem:[#allocation3 + $0xb0] sm:$0xff] %v5777_v56  ;;  %v5792_v56 = vmax.f32 %v5728_v22, 0.0  ;;  %v5793_v23 = vmax.f32 %v5729_v54, 0.0  ;;  %v5794_v37 = vmax.f32 %v5730_v38, 0.0  ;;  %v5735_v30 = vadd.f32 %v7076_v5, %v11663_v29  ;;  %v7079_v29 = vld [vmem:[%s12020_s0 + $0x178] sm:$0xff]  ;;  %v12372_v40 = vld [vmem:[#allocation55_spill] sm:$0xff] }
 0x8c6   :  { %5842 = vst [vmem:[#allocation3 + $0xb8] sm:$0xff] %v5778_v50  ;;  %v5734_v50 = vadd.f32 %v7075_v62, %v11660_v19  ;;  %v5736_v2 = vadd.f32 %v7077_v12, %v11666_v41  ;;  %v5796_v6 = vmax.f32 %v5732_v27, 0.0  ;;  %v7078_v19 = vld [vmem:[%s12020_s0 + $0x170] sm:$0xff]  ;;  %v5797_v35 = vmax.f32 %v5733_v0, 0.0  ;;  %v7080_v41 = vld [vmem:[%s12020_s0 + $0x180] sm:$0xff] }
 0x8c7   :  { %5843 = vst [vmem:[#allocation3 + $0xc0] sm:$0xff] %v5779_v24  ;;  %v5795_v24 = vmax.f32 %v5731_v20, 0.0  ;;  %v5738_v14 = vadd.f32 %v7079_v29, %v11672_v25  ;;  %v5739_v17 = vadd.f32 %v7080_v41, %v11675_v34  ;;  %v5799_v8 = vmax.f32 %v5735_v30, 0.0  ;;  %v7082_v25 = vld [vmem:[%s12020_s0 + $0x190] sm:$0xff]  ;;  %v7083_v34 = vld [vmem:[%s12020_s0 + $0x198] sm:$0xff] }
 0x8c8   :  { %5844 = vst [vmem:[#allocation3 + $0xc8] sm:$0xff] %v5780_v42  ;;  %v5737_v42 = vadd.f32 %v7078_v19, %v11669_v61  ;;  %v7081_v61 = vld [vmem:[%s12020_s0 + $0x188] sm:$0xff]  ;;  %v5800_v53 = vmax.f32 %v5736_v2, 0.0  ;;  %v5741_v13 = vadd.f32 %v7082_v25, %v11681_v44  ;;  %v5742_v10 = vadd.f32 %v7083_v34, %v11684_v3  ;;  %v7086_v3 = vld [vmem:[%s12020_s0 + $0x1b0] sm:$0xff] }
 0x8c9   :  { %5845 = vst [vmem:[#allocation3 + $0xd0] sm:$0xff] %v5781_v16  ;;  %v5798_v16 = vmax.f32 %v5734_v50, 0.0  ;;  %v5802_v45 = vmax.f32 %v5738_v14, 0.0  ;;  %v5803_v43 = vmax.f32 %v5739_v17, 0.0  ;;  %v7085_v44 = vld [vmem:[%s12020_s0 + $0x1a8] sm:$0xff]  ;;  %v5745_v58 = vadd.f32 %v7086_v3, %v11693_v59  ;;  %v7094_v49 = vld [vmem:[%s12020_s0 + $0x1f0] sm:$0xff] }
 0x8ca   :  { %5846 = vst [vmem:[#allocation3 + $0xd8] sm:$0xff] %v5782_v7  ;;  %v5740_v7 = vadd.f32 %v7081_v61, %v11678_v1  ;;  %v7084_v1 = vld [vmem:[%s12020_s0 + $0x1a0] sm:$0xff]  ;;  %v5744_v48 = vadd.f32 %v7085_v44, %v11690_v28  ;;  %v5805_v9 = vmax.f32 %v5741_v13, 0.0  ;;  %v5806_v57 = vmax.f32 %v5742_v10, 0.0  ;;  %v7089_v59 = vld [vmem:[%s12020_s0 + $0x1c8] sm:$0xff]  ;;  %v12373_v0 = vld [vmem:[#allocation56_spill] sm:$0xff] }
 0x8cb   :  { %5847 = vst [vmem:[#allocation3 + $0xe0] sm:$0xff] %v5783_v31  ;;  %v5801_v31 = vmax.f32 %v5737_v42, 0.0  ;;  %v7088_v28 = vld [vmem:[%s12020_s0 + $0x1c0] sm:$0xff]  ;;  %v5748_v60 = vadd.f32 %v7089_v59, %v11702_v39  ;;  %v5809_v54 = vmax.f32 %v5745_v58, 0.0 }
 0x8cc   :  { %5848 = vst [vmem:[#allocation3 + $0xe8] sm:$0xff] %v5784_v21  ;;  %v5743_v21 = vadd.f32 %v7084_v1, %v11687_v51  ;;  %v7087_v51 = vld [vmem:[%s12020_s0 + $0x1b8] sm:$0xff]  ;;  %v5747_v11 = vadd.f32 %v7088_v28, %v11699_v18  ;;  %v5808_v22 = vmax.f32 %v5744_v48, 0.0  ;;  %v7092_v39 = vld [vmem:[%s12020_s0 + $0x1e0] sm:$0xff] }
 0x8cd   :  { %5849 = vst [vmem:[#allocation3 + $0xf0] sm:$0xff] %v5785_v47  ;;  %v5804_v47 = vmax.f32 %v5740_v7, 0.0  ;;  %v7091_v18 = vld [vmem:[%s12020_s0 + $0x1d8] sm:$0xff] }
 0x8ce   :  { %5850 = vst [vmem:[#allocation3 + $0xf8] sm:$0xff] %v5786_v32  ;;  %v5746_v32 = vadd.f32 %v7087_v51, %v11696_v26  ;;  %v7090_v26 = vld [vmem:[%s12020_s0 + $0x1d0] sm:$0xff]  ;;  %v5811_v20 = vmax.f32 %v5747_v11, 0.0 }
 0x8cf   :  { %5851 = vst [vmem:[#allocation3 + $0x100] sm:$0xff] %v5787_v33  ;;  %v5807_v33 = vmax.f32 %v5743_v21, 0.0 }
 0x8d0   :  { %5852 = vst [vmem:[#allocation3 + $0x108] sm:$0xff] %v5788_v4  ;;  %v12369_v4 = vld [vmem:[#allocation52_spill] sm:$0xff]  ;;  %v5810_v38 = vmax.f32 %v5746_v32, 0.0 }
 0x8d1   :  { %5853 = vst [vmem:[#allocation3 + $0x110] sm:$0xff] %v5789_v63  ;;  %v5749_v46 = vadd.f32 %v7090_v26, %v12369_v4  ;;  %v12370_v63 = vld [vmem:[#allocation53_spill] sm:$0xff] }
 0x8d2   :  { %5854 = vst [vmem:[#allocation3 + $0x118] sm:$0xff] %v5790_v36  ;;  %v5750_v15 = vadd.f32 %v7091_v18, %v12370_v63  ;;  %v12371_v36 = vld [vmem:[#allocation54_spill] sm:$0xff] }
 0x8d3   :  { %5855 = vst [vmem:[#allocation3 + $0x120] sm:$0xff] %v5791_v52  ;;  %v5751_v55 = vadd.f32 %v7092_v39, %v12371_v36  ;;  %v7093_v52 = vld [vmem:[%s12020_s0 + $0x1e8] sm:$0xff]  ;;  %v5813_v62 = vmax.f32 %v5749_v46, 0.0  ;;  %s7127_s0 = smov 128  }
 0x8d4   :  { %5856 = vst [vmem:[#allocation3 + $0x128] sm:$0xff] %v5792_v56  ;;  %v5752_v27 = vadd.f32 %v7093_v52, %v12372_v40  ;;  %v5812_v56 = vmax.f32 %v5748_v60, 0.0  ;;  %v5814_v50 = vmax.f32 %v5750_v15, 0.0 }
 0x8d5   :  { %5857 = vst [vmem:[#allocation3 + $0x130] sm:$0xff] %v5793_v23  ;;  %v5753_v23 = vadd.f32 %v7094_v49, %v12373_v0 }
 0x8d6   :  { %5858 = vst [vmem:[#allocation3 + $0x138] sm:$0xff] %v5794_v37  ;;  %v5815_v37 = vmax.f32 %v5751_v55, 0.0  ;;  %v5816_v5 = vmax.f32 %v5752_v27, 0.0 }
 0x8d7   :  { %5859 = vst [vmem:[#allocation3 + $0x140] sm:$0xff] %v5795_v24  ;;  %v5817_v30 = vmax.f32 %v5753_v23, 0.0 }
 0x8d8   :  { %5860 = vst [vmem:[#allocation3 + $0x148] sm:$0xff] %v5796_v6 }
 0x8d9   :  { %5861 = vst [vmem:[#allocation3 + $0x150] sm:$0xff] %v5797_v35 }
 0x8da   :  { %5862 = vst [vmem:[#allocation3 + $0x158] sm:$0xff] %v5798_v16 }
 0x8db   :  { %5863 = vst [vmem:[#allocation3 + $0x160] sm:$0xff] %v5799_v8 }
 0x8dc   :  { %5864 = vst [vmem:[#allocation3 + $0x168] sm:$0xff] %v5800_v53 }
 0x8dd   :  { %5865 = vst [vmem:[#allocation3 + $0x170] sm:$0xff] %v5801_v31 }
 0x8de   :  { %5866 = vst [vmem:[#allocation3 + $0x178] sm:$0xff] %v5802_v45 }
 0x8df   :  { %5867 = vst [vmem:[#allocation3 + $0x180] sm:$0xff] %v5803_v43 }
 0x8e0   :  { %5868 = vst [vmem:[#allocation3 + $0x188] sm:$0xff] %v5804_v47 }
 0x8e1   :  { %5869 = vst [vmem:[#allocation3 + $0x190] sm:$0xff] %v5805_v9 }
 0x8e2   :  { %5870 = vst [vmem:[#allocation3 + $0x198] sm:$0xff] %v5806_v57 }
 0x8e3   :  { %5871 = vst [vmem:[#allocation3 + $0x1a0] sm:$0xff] %v5807_v33 }
 0x8e4   :  { %5872 = vst [vmem:[#allocation3 + $0x1a8] sm:$0xff] %v5808_v22 }
 0x8e5   :  { %5873 = vst [vmem:[#allocation3 + $0x1b0] sm:$0xff] %v5809_v54 }
 0x8e6   :  { %5874 = vst [vmem:[#allocation3 + $0x1b8] sm:$0xff] %v5810_v38 }
 0x8e7   :  { %5875 = vst [vmem:[#allocation3 + $0x1c0] sm:$0xff] %v5811_v20 }
 0x8e8   :  { %5876 = vst [vmem:[#allocation3 + $0x1c8] sm:$0xff] %v5812_v56 }
 0x8e9   :  { %5877 = vst [vmem:[#allocation3 + $0x1d0] sm:$0xff] %v5813_v62 }
 0x8ea   :  { %5878 = vst [vmem:[#allocation3 + $0x1d8] sm:$0xff] %v5814_v50 }
 0x8eb   :  { %5879 = vst [vmem:[#allocation3 + $0x1e0] sm:$0xff] %v5815_v37 }
 0x8ec   :  { %5880 = vst [vmem:[#allocation3 + $0x1e8] sm:$0xff] %v5816_v5 }
 0x8ed   :  { %5881 = vst [vmem:[#allocation3 + $0x1f0] sm:$0xff] %v5817_v30 }
 0x8ee   :  { %5895 = dma.vmem_to_hbm [thread:$0]  %s5888_s2, 8192, %s5890_s22, [#allocation4], %s7127_s0, %s7127_s0, %s7128_s23  }
 0x8ef   :  { %7119 = dma.done.wait [#allocation4], 8192  }
 0x8f0   :  { %7120 = vsyncadd [#allocation4], 4294959104 }
 0x8f1   :  { %5900 = vsyncpa [#allocation4], 1 }

</bundles_post_ra>
